<compile_context>
chip_gen: v7x
topology: tpu7x:2x2x1
jax: 0.10.0
libtpu: 0.0.40
codegen_flags: <defaults>
</compile_context>

<pallas_src>
import jax
import jax.numpy as jnp
from jax.experimental import pallas as pl
from jax.experimental.pallas import tpu as pltpu


# ----------------------------------------------------------------------------
# In-kernel helpers (operate on loaded jnp values)
# ----------------------------------------------------------------------------
def _mlp1(xyz, nxyz, w_xyz, w_nxyz, w_dist, b1):
    """Folded mlp1(relative_pos_encoding(...)) without building the 10-wide concat.

    xyz:  (T, 3)        per-point coordinates
    nxyz: (T, K, 3)     gathered neighbor coordinates
    w_xyz, w_nxyz: (3, d2)   combined weight slices (BN scale folded in)
    w_dist: (1, d2), b1: (1, d2)
    returns (T, K, d2) = ReLU(mlp1 output)
    """
    rel = xyz[:, None, :] - nxyz                                         # (T, K, 3)
    dist = jnp.sqrt(jnp.sum(rel * rel, axis=-1, keepdims=True))          # (T, K, 1)

    # xyz term is per-point (hoisted out of K); 3-wide contractions as VPU FMAs.
    xyz_t = (xyz[:, 0:1] * w_xyz[0]
             + xyz[:, 1:2] * w_xyz[1]
             + xyz[:, 2:3] * w_xyz[2])                                   # (T, d2)
    nx_t = (nxyz[..., 0:1] * w_nxyz[0]
            + nxyz[..., 1:2] * w_nxyz[1]
            + nxyz[..., 2:3] * w_nxyz[2])                                # (T, K, d2)

    pre = xyz_t[:, None, :] + nx_t + dist * w_dist[0] + b1[0]            # (T, K, d2)
    return jnp.maximum(pre, 0.0)


def _softmax_weighted_sum(att3, feat3):
    """softmax(att3) over K (axis=1), weighted sum of feat3 over K -> (T, C)."""
    m = jnp.max(att3, axis=1, keepdims=True)
    e = jnp.exp(att3 - m)
    inv = pl.reciprocal(jnp.sum(e, axis=1, keepdims=True), approx=True)  # EUP slot
    return jnp.sum(feat3 * (e * inv), axis=1)


def _att_pool(fn3, fx3, w_nn, w_xn, w_nx, w_xx, wm_up, wm_lo, bias):
    """Att_pooling over concat([fn, fx]) without materializing any concat.

    fn3, fx3: (T, K, d2)
    w_nn/w_xn/w_nx/w_xx: (d2, d2)  quadrants of the fc weight [fn|fx]->[n-half|x-half]
    wm_up/wm_lo: (d2, d_mlp)       halves of the mlp weight (BN scale folded in)
    bias: (1, d_mlp)
    returns (T, d_mlp)
    """
    T, K, d2 = fn3.shape
    f32 = jnp.float32
    fn2 = fn3.reshape(T * K, d2)
    fx2 = fx3.reshape(T * K, d2)

    # att[:, :d2]  -> scores for the fn half; att[:, d2:] -> scores for the fx half.
    # Computed as two independent d2-wide branches so no lane-dim slicing is needed.
    att_n = (jnp.dot(fn2, w_nn, preferred_element_type=f32)
             + jnp.dot(fx2, w_xn, preferred_element_type=f32)).reshape(T, K, d2)
    att_x = (jnp.dot(fn2, w_nx, preferred_element_type=f32)
             + jnp.dot(fx2, w_xx, preferred_element_type=f32)).reshape(T, K, d2)

    agg_fn = _softmax_weighted_sum(att_n, fn3)                            # (T, d2)
    agg_fx = _softmax_weighted_sum(att_x, fx3)                            # (T, d2)

    agg = (jnp.dot(agg_fn, wm_up, preferred_element_type=f32)
           + jnp.dot(agg_fx, wm_lo, preferred_element_type=f32))
    return jnp.maximum(agg + bias[0], 0.0)


# ----------------------------------------------------------------------------
# Stage 1: mlp1(rel_pos) -> att_pooling_1 -> (B, N, d2)
# ----------------------------------------------------------------------------
def _stage1_kernel(xyz_ref, nxyz_ref, fn_ref,
                   wxyz_ref, wnxyz_ref, wdist_ref, b1_ref,
                   wnn_ref, wxn_ref, wnx_ref, wxx_ref,
                   wm_up_ref, wm_lo_ref, bm_ref,
                   agg_ref):
    xyz = xyz_ref[0]        # (T, 3)
    nxyz = nxyz_ref[0]      # (T, K, 3)
    fn = fn_ref[0]          # (T, K, d2)

    fx1 = _mlp1(xyz, nxyz, wxyz_ref[...], wnxyz_ref[...],
                wdist_ref[...], b1_ref[...])                              # (T, K, d2)

    agg_ref[0] = _att_pool(fn, fx1,
                           wnn_ref[...], wxn_ref[...], wnx_ref[...], wxx_ref[...],
                           wm_up_ref[...], wm_lo_ref[...], bm_ref[...])


# ----------------------------------------------------------------------------
# Stage 2: recompute f_xyz = mlp2(mlp1(rel_pos)), concat-free att_pooling_2
# ----------------------------------------------------------------------------
def _stage2_kernel(xyz_ref, nxyz_ref, fn_ref,
                   wxyz_ref, wnxyz_ref, wdist_ref, b1_ref,
                   w2_ref, b2_ref,
                   wnn_ref, wxn_ref, wnx_ref, wxx_ref,
                   wm_up_ref, wm_lo_ref, bm_ref,
                   agg_ref):
    f32 = jnp.float32
    xyz = xyz_ref[0]        # (T, 3)
    nxyz = nxyz_ref[0]      # (T, K, 3)
    fn = fn_ref[0]          # (T, K, d2)  gathered f_pc_agg neighbors
    T, K, d2 = fn.shape

    # Recompute mlp1 output (cheaper than an HBM round trip of (N, K, d2)).
    fx1 = _mlp1(xyz, nxyz, wxyz_ref[...], wnxyz_ref[...],
                wdist_ref[...], b1_ref[...])                              # (T, K, d2)

    # mlp2 (BN scale folded into w2)
    fx2 = jnp.dot(fx1.reshape(T * K, d2), w2_ref[...],
                  preferred_element_type=f32) + b2_ref[0]
    fx2 = jnp.maximum(fx2, 0.0).reshape(T, K, d2)

    agg_ref[0] = _att_pool(fn, fx2,
                           wnn_ref[...], wxn_ref[...], wnx_ref[...], wxx_ref[...],
                           wm_up_ref[...], wm_lo_ref[...], bm_ref[...])


# ----------------------------------------------------------------------------
# Glue (plain JAX): gather_neighbour, weight folding, pallas_call wiring
# ----------------------------------------------------------------------------
def gather_neighbour(pc, neigh_idx):
    """pc: (B, N, C), neigh_idx: (B, N, K) -> (B, N, K, C); same as torch.gather."""
    B, N, C = pc.shape
    K = neigh_idx.shape[-1]
    flat = neigh_idx.reshape(B, N * K)
    g = jnp.take_along_axis(pc, flat[..., None], axis=1)
    return g.reshape(B, N, K, C)


def _wspec(shape):
    nd = len(shape)
    return pl.BlockSpec(shape, lambda b, n, _nd=nd: (0,) * _nd)


def _tspec(block_shape):
    nd = len(block_shape)
    return pl.BlockSpec(block_shape, lambda b, n, _nd=nd: (b, n) + (0,) * (_nd - 2))


def _pick_tile_n(n, k, d2, requested):
    """Largest multiple-of-8 divisor of N whose dominant (T, K, d2) f32 block
    stays under ~1 MiB (double-buffered inputs + in-kernel temporaries then fit
    comfortably in the default scoped VMEM on v5e/v6e/v7x)."""
    bytes_per_row = k * max(d2, 4) * 4
    cap = max(8, (1 << 20) // bytes_per_row)
    cap = min(cap, requested, n)
    best = None
    t = 8
    while t <= cap:
        if n % t == 0:
            best = t
        t += 8
    return best if best is not None else n


def building_block_forward(xyz, feature, neigh_idx, params, *, tile_n=512):
    """xyz: (B,N,3)  feature: (B, d_out//2, N, 1)  neigh_idx: (B,N,K) int32.

    Returns (B, d_out, N, 1) — same layout as the PyTorch module."""
    B, N, _ = xyz.shape
    K = neigh_idx.shape[-1]
    d2 = params["w1"].shape[1]
    d_out = 2 * d2
    f32 = jnp.float32

    tile_n = _pick_tile_n(N, K, d2, tile_n)
    n_tiles = N // tile_n

    # ---- fold BN scale into conv weights; split / combine weight slices ----
    w1f = params["w1"] * params["s1"]                    # (10, d2)
    w_dist = w1f[0:1]                                    # (1, d2)
    w_xyz = w1f[1:4] + w1f[4:7]                          # (3, d2)  rel+xyz terms
    w_nxyz = w1f[7:10] - w1f[1:4]                        # (3, d2)  nxyz-rel terms
    b1 = params["b1"]                                    # (1, d2)

    wfc1 = params["wfc1"]                                # (d_out, d_out)
    wfc1_nn, wfc1_xn = wfc1[:d2, :d2], wfc1[d2:, :d2]
    wfc1_nx, wfc1_xx = wfc1[:d2, d2:], wfc1[d2:, d2:]
    wm1f = params["wm1"] * params["sm1"]                 # (d_out, d2)
    wm1_up, wm1_lo = wm1f[:d2], wm1f[d2:]
    bm1 = params["bm1"]                                  # (1, d2)

    w2f = params["w2"] * params["s2"]                    # (d2, d2)
    b2 = params["b2"]                                    # (1, d2)

    wfc2 = params["wfc2"]                                # (d_out, d_out)
    wfc2_nn, wfc2_xn = wfc2[:d2, :d2], wfc2[d2:, :d2]
    wfc2_nx, wfc2_xx = wfc2[:d2, d2:], wfc2[d2:, d2:]
    wm2f = params["wm2"] * params["sm2"]                 # (d_out, d_out)
    wm2_up, wm2_lo = wm2f[:d2], wm2f[d2:]
    bm2 = params["bm2"]                                  # (1, d_out)

    # ---- gathers (XLA glue) ----
    feat_bnc = jnp.transpose(feature[..., 0], (0, 2, 1))          # (B, N, d2)
    nxyz = gather_neighbour(xyz, neigh_idx)                       # (B, N, K, 3)
    fneigh = gather_neighbour(feat_bnc, neigh_idx)                # (B, N, K, d2)

    cp = pltpu.CompilerParams(dimension_semantics=("parallel", "parallel"))

    # ---- stage 1 ----
    agg1 = pl.pallas_call(
        _stage1_kernel,
        out_shape=jax.ShapeDtypeStruct((B, N, d2), f32),
        grid=(B, n_tiles),
        in_specs=[
            _tspec((1, tile_n, 3)),
            _tspec((1, tile_n, K, 3)),
            _tspec((1, tile_n, K, d2)),
            _wspec(w_xyz.shape), _wspec(w_nxyz.shape),
            _wspec(w_dist.shape), _wspec(b1.shape),
            _wspec(wfc1_nn.shape), _wspec(wfc1_xn.shape),
            _wspec(wfc1_nx.shape), _wspec(wfc1_xx.shape),
            _wspec(wm1_up.shape), _wspec(wm1_lo.shape), _wspec(bm1.shape),
        ],
        out_specs=_tspec((1, tile_n, d2)),
        compiler_params=cp,
    )(xyz, nxyz, fneigh,
      w_xyz, w_nxyz, w_dist, b1,
      wfc1_nn, wfc1_xn, wfc1_nx, wfc1_xx,
      wm1_up, wm1_lo, bm1)

    # ---- stage 2 ----
    fneigh2 = gather_neighbour(agg1, neigh_idx)                   # (B, N, K, d2)

    agg2 = pl.pallas_call(
        _stage2_kernel,
        out_shape=jax.ShapeDtypeStruct((B, N, d_out), f32),
        grid=(B, n_tiles),
        in_specs=[
            _tspec((1, tile_n, 3)),
            _tspec((1, tile_n, K, 3)),
            _tspec((1, tile_n, K, d2)),
            _wspec(w_xyz.shape), _wspec(w_nxyz.shape),
            _wspec(w_dist.shape), _wspec(b1.shape),
            _wspec(w2f.shape), _wspec(b2.shape),
            _wspec(wfc2_nn.shape), _wspec(wfc2_xn.shape),
            _wspec(wfc2_nx.shape), _wspec(wfc2_xx.shape),
            _wspec(wm2_up.shape), _wspec(wm2_lo.shape), _wspec(bm2.shape),
        ],
        out_specs=_tspec((1, tile_n, d_out)),
        compiler_params=cp,
    )(xyz, nxyz, fneigh2,
      w_xyz, w_nxyz, w_dist, b1,
      w2f, b2,
      wfc2_nn, wfc2_xn, wfc2_nx, wfc2_xx,
      wm2_up, wm2_lo, bm2)

    # back to PyTorch layout (B, d_out, N, 1)
    return jnp.transpose(agg2, (0, 2, 1))[..., None]


# ----------------------------------------------------------------------------
# Pure-JAX reference (mirrors the PyTorch forward, channels-last)
# ----------------------------------------------------------------------------
def reference_forward(xyz, feature, neigh_idx, p):
    feat_bnc = jnp.transpose(feature[..., 0], (0, 2, 1))
    nxyz = gather_neighbour(xyz, neigh_idx)
    xyz_tile = jnp.broadcast_to(xyz[:, :, None, :], nxyz.shape)
    rel = xyz_tile - nxyz
    dist = jnp.sqrt(jnp.sum(rel * rel, axis=-1, keepdims=True))
    rel_feat = jnp.concatenate([dist, rel, xyz_tile, nxyz], axis=-1)   # (B,N,K,10)

    fx1 = jnp.maximum(rel_feat @ p["w1"] * p["s1"] + p["b1"], 0.0)
    fn = gather_neighbour(feat_bnc, neigh_idx)
    fcat = jnp.concatenate([fn, fx1], axis=-1)

    att = fcat @ p["wfc1"]
    scores = jax.nn.softmax(att, axis=2)
    agg = jnp.sum(fcat * scores, axis=2)                               # (B,N,d_out)
    agg = jnp.maximum(agg @ p["wm1"] * p["sm1"][0] + p["bm1"][0], 0.0)

    fx2 = jnp.maximum(fx1 @ p["w2"] * p["s2"] + p["b2"], 0.0)
    fn2 = gather_neighbour(agg, neigh_idx)
    fcat2 = jnp.concatenate([fn2, fx2], axis=-1)

    att2 = fcat2 @ p["wfc2"]
    scores2 = jax.nn.softmax(att2, axis=2)
    agg2 = jnp.sum(fcat2 * scores2, axis=2)
    agg2 = jnp.maximum(agg2 @ p["wm2"] * p["sm2"][0] + p["bm2"][0], 0.0)
    return jnp.transpose(agg2, (0, 2, 1))[..., None]


# ----------------------------------------------------------------------------
# Deterministic parameter construction (conv weights + eval-mode BN folding)
# ----------------------------------------------------------------------------
def make_params(key, d_out):
    d2 = d_out // 2
    eps = 1e-5
    ks = jax.random.split(key, 32)

    def conv_w(k, c_in, c_out):
        # PyTorch Conv2d weight is (out, in, 1, 1); stored here as (in, out).
        return 0.1 * jax.random.normal(k, (c_in, c_out), jnp.float32)

    def bn_fold(k, c):
        k1, k2, k3, k4 = jax.random.split(k, 4)
        gamma = 1.0 + 0.1 * jax.random.normal(k1, (c,), jnp.float32)
        beta = 0.1 * jax.random.normal(k2, (c,), jnp.float32)
        mean = 0.1 * jax.random.normal(k3, (c,), jnp.float32)
        var = jax.random.uniform(k4, (c,), jnp.float32, 0.5, 1.5)
        scale = gamma / jnp.sqrt(var + eps)
        bias = beta - mean * scale
        return scale.reshape(1, c), bias.reshape(1, c)

    p = {}
    p["w1"] = conv_w(ks[0], 10, d2)
    p["s1"], p["b1"] = bn_fold(ks[1], d2)
    p["wfc1"] = conv_w(ks[2], d_out, d_out)       # att_pooling_1.fc (no bias)
    p["wm1"] = conv_w(ks[3], d_out, d2)           # att_pooling_1.mlp
    p["sm1"], p["bm1"] = bn_fold(ks[4], d2)
    p["w2"] = conv_w(ks[5], d2, d2)               # mlp2
    p["s2"], p["b2"] = bn_fold(ks[6], d2)
    p["wfc2"] = conv_w(ks[7], d_out, d_out)       # att_pooling_2.fc (no bias)
    p["wm2"] = conv_w(ks[8], d_out, d_out)        # att_pooling_2.mlp
    p["sm2"], p["bm2"] = bn_fold(ks[9], d_out)
    return p


if __name__ == "__main__":
    B, N, K, d_out = 2, 64, 16, 32
    d2 = d_out // 2

    key = jax.random.PRNGKey(0)
    k_xyz, k_feat, k_idx, k_par = jax.random.split(key, 4)

    xyz = jax.random.normal(k_xyz, (B, N, 3), jnp.float32)
    feature = jax.random.normal(k_feat, (B, d2, N, 1), jnp.float32)
    neigh_idx = jax.random.randint(k_idx, (B, N, K), 0, N, jnp.int32)
    params = make_params(k_par, d_out)

    fwd = jax.jit(building_block_forward, static_argnames=("tile_n",))
    # small requested tile to exercise the (B, N-tile) grid (2 x 4 tiles here)
    out = fwd(xyz, feature, neigh_idx, params, tile_n=16)
    out = jax.block_until_ready(out)

    ref = jax.block_until_ready(reference_forward(xyz, feature, neigh_idx, params))
    assert out.shape == (B, d_out, N, 1)
    # tolerance relaxed: kernel uses EUP approximate reciprocal in the softmax
    assert jnp.allclose(out, ref, atol=2e-2, rtol=2e-2), "mismatch vs JAX reference"

    print("KERNEL_OK")
</pallas_src>

<mosaic_0001>
module attributes {stable_mosaic.version = 11 : i64} {
  func.func @_stage1_kernel(%arg0: i32, %arg1: i32, %arg2: memref<1x16x3xf32, #tpu.memory_space<vmem>>, %arg3: memref<1x16x16x3xf32, #tpu.memory_space<vmem>>, %arg4: memref<1x16x16x16xf32, #tpu.memory_space<vmem>>, %arg5: memref<3x16xf32, #tpu.memory_space<vmem>>, %arg6: memref<3x16xf32, #tpu.memory_space<vmem>>, %arg7: memref<1x16xf32, #tpu.memory_space<vmem>>, %arg8: memref<1x16xf32, #tpu.memory_space<vmem>>, %arg9: memref<16x16xf32, #tpu.memory_space<vmem>>, %arg10: memref<16x16xf32, #tpu.memory_space<vmem>>, %arg11: memref<16x16xf32, #tpu.memory_space<vmem>>, %arg12: memref<16x16xf32, #tpu.memory_space<vmem>>, %arg13: memref<16x16xf32, #tpu.memory_space<vmem>>, %arg14: memref<16x16xf32, #tpu.memory_space<vmem>>, %arg15: memref<1x16xf32, #tpu.memory_space<vmem>>, %arg16: memref<1x16x16xf32, #tpu.memory_space<vmem>>) attributes {dimension_semantics = [#tpu.dimension_semantics<parallel>, #tpu.dimension_semantics<parallel>], iteration_bounds = array<i64: 2, 4>, scalar_prefetch = 0 : i64, scratch_operands = 0 : i64, tpu.core_type = #tpu.core_type<tc>, window_params = [{transform_indices = @transform_0, window_bounds = array<i64: 1, 16, 3>}, {transform_indices = @transform_1, window_bounds = array<i64: 1, 16, 16, 3>}, {transform_indices = @transform_2, window_bounds = array<i64: 1, 16, 16, 16>}, {pipeline_mode = #tpu.pipeline_mode<synchronous>, transform_indices = @transform_3, window_bounds = array<i64: 3, 16>}, {pipeline_mode = #tpu.pipeline_mode<synchronous>, transform_indices = @transform_4, window_bounds = array<i64: 3, 16>}, {pipeline_mode = #tpu.pipeline_mode<synchronous>, transform_indices = @transform_5, window_bounds = array<i64: 1, 16>}, {pipeline_mode = #tpu.pipeline_mode<synchronous>, transform_indices = @transform_6, window_bounds = array<i64: 1, 16>}, {pipeline_mode = #tpu.pipeline_mode<synchronous>, transform_indices = @transform_7, window_bounds = array<i64: 16, 16>}, {pipeline_mode = #tpu.pipeline_mode<synchronous>, transform_indices = @transform_8, window_bounds = array<i64: 16, 16>}, {pipeline_mode = #tpu.pipeline_mode<synchronous>, transform_indices = @transform_9, window_bounds = array<i64: 16, 16>}, {pipeline_mode = #tpu.pipeline_mode<synchronous>, transform_indices = @transform_10, window_bounds = array<i64: 16, 16>}, {pipeline_mode = #tpu.pipeline_mode<synchronous>, transform_indices = @transform_11, window_bounds = array<i64: 16, 16>}, {pipeline_mode = #tpu.pipeline_mode<synchronous>, transform_indices = @transform_12, window_bounds = array<i64: 16, 16>}, {pipeline_mode = #tpu.pipeline_mode<synchronous>, transform_indices = @transform_13, window_bounds = array<i64: 1, 16>}, {transform_indices = @transform_14, window_bounds = array<i64: 1, 16, 16>}]} {
    %c0 = arith.constant 0 : index
    %c0_0 = arith.constant 0 : index
    %c0_1 = arith.constant 0 : index
    %0 = vector.load %arg2[%c0, %c0_0, %c0_1] : memref<1x16x3xf32, #tpu.memory_space<vmem>>, vector<1x16x3xf32>
    %1 = vector.shape_cast %0 : vector<1x16x3xf32> to vector<16x3xf32>
    %c0_2 = arith.constant 0 : index
    %c0_3 = arith.constant 0 : index
    %c0_4 = arith.constant 0 : index
    %c0_5 = arith.constant 0 : index
    %2 = vector.load %arg3[%c0_2, %c0_3, %c0_4, %c0_5] : memref<1x16x16x3xf32, #tpu.memory_space<vmem>>, vector<1x16x16x3xf32>
    %3 = vector.shape_cast %2 : vector<1x16x16x3xf32> to vector<16x16x3xf32>
    %c0_6 = arith.constant 0 : index
    %c0_7 = arith.constant 0 : index
    %c0_8 = arith.constant 0 : index
    %c0_9 = arith.constant 0 : index
    %4 = vector.load %arg4[%c0_6, %c0_7, %c0_8, %c0_9] : memref<1x16x16x16xf32, #tpu.memory_space<vmem>>, vector<1x16x16x16xf32>
    %5 = vector.shape_cast %4 : vector<1x16x16x16xf32> to vector<16x16x16xf32>
    %c0_10 = arith.constant 0 : index
    %c0_11 = arith.constant 0 : index
    %6 = vector.load %arg5[%c0_10, %c0_11] : memref<3x16xf32, #tpu.memory_space<vmem>>, vector<3x16xf32>
    %c0_12 = arith.constant 0 : index
    %c0_13 = arith.constant 0 : index
    %7 = vector.load %arg6[%c0_12, %c0_13] : memref<3x16xf32, #tpu.memory_space<vmem>>, vector<3x16xf32>
    %c0_14 = arith.constant 0 : index
    %c0_15 = arith.constant 0 : index
    %8 = vector.load %arg7[%c0_14, %c0_15] : memref<1x16xf32, #tpu.memory_space<vmem>>, vector<1x16xf32>
    %c0_16 = arith.constant 0 : index
    %c0_17 = arith.constant 0 : index
    %9 = vector.load %arg8[%c0_16, %c0_17] : memref<1x16xf32, #tpu.memory_space<vmem>>, vector<1x16xf32>
    %10 = vector.shape_cast %1 : vector<16x3xf32> to vector<16x1x3xf32>
    %11 = vector.broadcast %10 : vector<16x1x3xf32> to vector<16x16x3xf32>
    %12 = arith.subf %11, %3 : vector<16x16x3xf32>
    %13 = arith.mulf %12, %12 : vector<16x16x3xf32>
    %cst = arith.constant dense<0.000000e+00> : vector<16x16xf32>
    %14 = vector.multi_reduction <add>, %13, %cst [2] : vector<16x16x3xf32> to vector<16x16xf32>
    %15 = vector.shape_cast %14 : vector<16x16xf32> to vector<16x16x1xf32>
    %16 = math.sqrt %15 : vector<16x16x1xf32>
    %17 = vector.extract_strided_slice %1 {offsets = [0, 0], sizes = [16, 1], strides = [1, 1]} : vector<16x3xf32> to vector<16x1xf32>
    %18 = vector.extract_strided_slice %6 {offsets = [0, 0], sizes = [1, 16], strides = [1, 1]} : vector<3x16xf32> to vector<1x16xf32>
    %19 = vector.shape_cast %18 : vector<1x16xf32> to vector<16xf32>
    %20 = vector.shape_cast %19 : vector<16xf32> to vector<1x16xf32>
    %21 = vector.broadcast %17 : vector<16x1xf32> to vector<16x16xf32>
    %22 = vector.broadcast %20 : vector<1x16xf32> to vector<16x16xf32>
    %23 = arith.mulf %21, %22 : vector<16x16xf32>
    %24 = vector.extract_strided_slice %1 {offsets = [0, 1], sizes = [16, 1], strides = [1, 1]} : vector<16x3xf32> to vector<16x1xf32>
    %25 = vector.extract_strided_slice %6 {offsets = [1, 0], sizes = [1, 16], strides = [1, 1]} : vector<3x16xf32> to vector<1x16xf32>
    %26 = vector.shape_cast %25 : vector<1x16xf32> to vector<16xf32>
    %27 = vector.shape_cast %26 : vector<16xf32> to vector<1x16xf32>
    %28 = vector.broadcast %24 : vector<16x1xf32> to vector<16x16xf32>
    %29 = vector.broadcast %27 : vector<1x16xf32> to vector<16x16xf32>
    %30 = arith.mulf %28, %29 : vector<16x16xf32>
    %31 = arith.addf %23, %30 : vector<16x16xf32>
    %32 = vector.extract_strided_slice %1 {offsets = [0, 2], sizes = [16, 1], strides = [1, 1]} : vector<16x3xf32> to vector<16x1xf32>
    %33 = vector.extract_strided_slice %6 {offsets = [2, 0], sizes = [1, 16], strides = [1, 1]} : vector<3x16xf32> to vector<1x16xf32>
    %34 = vector.shape_cast %33 : vector<1x16xf32> to vector<16xf32>
    %35 = vector.shape_cast %34 : vector<16xf32> to vector<1x16xf32>
    %36 = vector.broadcast %32 : vector<16x1xf32> to vector<16x16xf32>
    %37 = vector.broadcast %35 : vector<1x16xf32> to vector<16x16xf32>
    %38 = arith.mulf %36, %37 : vector<16x16xf32>
    %39 = arith.addf %31, %38 : vector<16x16xf32>
    %40 = vector.extract_strided_slice %3 {offsets = [0, 0, 0], sizes = [16, 16, 1], strides = [1, 1, 1]} : vector<16x16x3xf32> to vector<16x16x1xf32>
    %41 = vector.extract_strided_slice %7 {offsets = [0, 0], sizes = [1, 16], strides = [1, 1]} : vector<3x16xf32> to vector<1x16xf32>
    %42 = vector.shape_cast %41 : vector<1x16xf32> to vector<16xf32>
    %43 = vector.shape_cast %42 : vector<16xf32> to vector<1x1x16xf32>
    %44 = vector.broadcast %40 : vector<16x16x1xf32> to vector<16x16x16xf32>
    %45 = vector.broadcast %43 : vector<1x1x16xf32> to vector<16x16x16xf32>
    %46 = arith.mulf %44, %45 : vector<16x16x16xf32>
    %47 = vector.extract_strided_slice %3 {offsets = [0, 0, 1], sizes = [16, 16, 1], strides = [1, 1, 1]} : vector<16x16x3xf32> to vector<16x16x1xf32>
    %48 = vector.extract_strided_slice %7 {offsets = [1, 0], sizes = [1, 16], strides = [1, 1]} : vector<3x16xf32> to vector<1x16xf32>
    %49 = vector.shape_cast %48 : vector<1x16xf32> to vector<16xf32>
    %50 = vector.shape_cast %49 : vector<16xf32> to vector<1x1x16xf32>
    %51 = vector.broadcast %47 : vector<16x16x1xf32> to vector<16x16x16xf32>
    %52 = vector.broadcast %50 : vector<1x1x16xf32> to vector<16x16x16xf32>
    %53 = arith.mulf %51, %52 : vector<16x16x16xf32>
    %54 = arith.addf %46, %53 : vector<16x16x16xf32>
    %55 = vector.extract_strided_slice %3 {offsets = [0, 0, 2], sizes = [16, 16, 1], strides = [1, 1, 1]} : vector<16x16x3xf32> to vector<16x16x1xf32>
    %56 = vector.extract_strided_slice %7 {offsets = [2, 0], sizes = [1, 16], strides = [1, 1]} : vector<3x16xf32> to vector<1x16xf32>
    %57 = vector.shape_cast %56 : vector<1x16xf32> to vector<16xf32>
    %58 = vector.shape_cast %57 : vector<16xf32> to vector<1x1x16xf32>
    %59 = vector.broadcast %55 : vector<16x16x1xf32> to vector<16x16x16xf32>
    %60 = vector.broadcast %58 : vector<1x1x16xf32> to vector<16x16x16xf32>
    %61 = arith.mulf %59, %60 : vector<16x16x16xf32>
    %62 = arith.addf %54, %61 : vector<16x16x16xf32>
    %63 = vector.shape_cast %39 : vector<16x16xf32> to vector<16x1x16xf32>
    %64 = vector.broadcast %63 : vector<16x1x16xf32> to vector<16x16x16xf32>
    %65 = arith.addf %64, %62 : vector<16x16x16xf32>
    %66 = vector.shape_cast %8 : vector<1x16xf32> to vector<16xf32>
    %67 = vector.shape_cast %66 : vector<16xf32> to vector<1x1x16xf32>
    %68 = vector.broadcast %16 : vector<16x16x1xf32> to vector<16x16x16xf32>
    %69 = vector.broadcast %67 : vector<1x1x16xf32> to vector<16x16x16xf32>
    %70 = arith.mulf %68, %69 : vector<16x16x16xf32>
    %71 = arith.addf %65, %70 : vector<16x16x16xf32>
    %72 = vector.shape_cast %9 : vector<1x16xf32> to vector<16xf32>
    %73 = vector.shape_cast %72 : vector<16xf32> to vector<1x1x16xf32>
    %74 = vector.broadcast %73 : vector<1x1x16xf32> to vector<16x16x16xf32>
    %75 = arith.addf %71, %74 : vector<16x16x16xf32>
    %cst_18 = arith.constant 0.000000e+00 : f32
    %76 = vector.broadcast %cst_18 : f32 to vector<16x16x16xf32>
    %77 = arith.maximumf %75, %76 : vector<16x16x16xf32>
    %c0_19 = arith.constant 0 : index
    %c0_20 = arith.constant 0 : index
    %78 = vector.load %arg9[%c0_19, %c0_20] : memref<16x16xf32, #tpu.memory_space<vmem>>, vector<16x16xf32>
    %c0_21 = arith.constant 0 : index
    %c0_22 = arith.constant 0 : index
    %79 = vector.load %arg10[%c0_21, %c0_22] : memref<16x16xf32, #tpu.memory_space<vmem>>, vector<16x16xf32>
    %c0_23 = arith.constant 0 : index
    %c0_24 = arith.constant 0 : index
    %80 = vector.load %arg11[%c0_23, %c0_24] : memref<16x16xf32, #tpu.memory_space<vmem>>, vector<16x16xf32>
    %c0_25 = arith.constant 0 : index
    %c0_26 = arith.constant 0 : index
    %81 = vector.load %arg12[%c0_25, %c0_26] : memref<16x16xf32, #tpu.memory_space<vmem>>, vector<16x16xf32>
    %c0_27 = arith.constant 0 : index
    %c0_28 = arith.constant 0 : index
    %82 = vector.load %arg13[%c0_27, %c0_28] : memref<16x16xf32, #tpu.memory_space<vmem>>, vector<16x16xf32>
    %c0_29 = arith.constant 0 : index
    %c0_30 = arith.constant 0 : index
    %83 = vector.load %arg14[%c0_29, %c0_30] : memref<16x16xf32, #tpu.memory_space<vmem>>, vector<16x16xf32>
    %c0_31 = arith.constant 0 : index
    %c0_32 = arith.constant 0 : index
    %84 = vector.load %arg15[%c0_31, %c0_32] : memref<1x16xf32, #tpu.memory_space<vmem>>, vector<1x16xf32>
    %85 = vector.shape_cast %5 : vector<16x16x16xf32> to vector<256x16xf32>
    %86 = vector.shape_cast %77 : vector<16x16x16xf32> to vector<256x16xf32>
    %cst_33 = arith.constant dense<0.000000e+00> : vector<256x16xf32>
    %87 = tpu.matmul %85, %78, %cst_33 {dimension_numbers = #tpu.dot_dimension_numbers<[1], [0], [0], [1], [0, 0, 1, 1], [], []>} : vector<256x16xf32>, vector<16x16xf32>, vector<256x16xf32> -> vector<256x16xf32>
    %cst_34 = arith.constant dense<0.000000e+00> : vector<256x16xf32>
    %88 = tpu.matmul %86, %79, %cst_34 {dimension_numbers = #tpu.dot_dimension_numbers<[1], [0], [0], [1], [0, 0, 1, 1], [], []>} : vector<256x16xf32>, vector<16x16xf32>, vector<256x16xf32> -> vector<256x16xf32>
    %89 = arith.addf %87, %88 : vector<256x16xf32>
    %90 = vector.shape_cast %89 : vector<256x16xf32> to vector<16x16x16xf32>
    %cst_35 = arith.constant dense<0.000000e+00> : vector<256x16xf32>
    %91 = tpu.matmul %85, %80, %cst_35 {dimension_numbers = #tpu.dot_dimension_numbers<[1], [0], [0], [1], [0, 0, 1, 1], [], []>} : vector<256x16xf32>, vector<16x16xf32>, vector<256x16xf32> -> vector<256x16xf32>
    %cst_36 = arith.constant dense<0.000000e+00> : vector<256x16xf32>
    %92 = tpu.matmul %86, %81, %cst_36 {dimension_numbers = #tpu.dot_dimension_numbers<[1], [0], [0], [1], [0, 0, 1, 1], [], []>} : vector<256x16xf32>, vector<16x16xf32>, vector<256x16xf32> -> vector<256x16xf32>
    %93 = arith.addf %91, %92 : vector<256x16xf32>
    %94 = vector.shape_cast %93 : vector<256x16xf32> to vector<16x16x16xf32>
    %cst_37 = arith.constant dense<0xFF800000> : vector<16x16xf32>
    %95 = vector.multi_reduction <maximumf>, %90, %cst_37 [1] : vector<16x16x16xf32> to vector<16x16xf32>
    %96 = vector.shape_cast %95 : vector<16x16xf32> to vector<16x1x16xf32>
    %97 = vector.broadcast %96 : vector<16x1x16xf32> to vector<16x16x16xf32>
    %98 = arith.subf %90, %97 : vector<16x16x16xf32>
    %99 = math.exp %98 : vector<16x16x16xf32>
    %cst_38 = arith.constant dense<0.000000e+00> : vector<16x16xf32>
    %100 = vector.multi_reduction <add>, %99, %cst_38 [1] : vector<16x16x16xf32> to vector<16x16xf32>
    %101 = vector.shape_cast %100 : vector<16x16xf32> to vector<16x1x16xf32>
    %102 = tpu.reciprocal %101 {approx = true} : vector<16x1x16xf32> -> vector<16x1x16xf32>
    %103 = vector.broadcast %102 : vector<16x1x16xf32> to vector<16x16x16xf32>
    %104 = arith.mulf %99, %103 : vector<16x16x16xf32>
    %105 = arith.mulf %5, %104 : vector<16x16x16xf32>
    %cst_39 = arith.constant dense<0.000000e+00> : vector<16x16xf32>
    %106 = vector.multi_reduction <add>, %105, %cst_39 [1] : vector<16x16x16xf32> to vector<16x16xf32>
    %cst_40 = arith.constant dense<0xFF800000> : vector<16x16xf32>
    %107 = vector.multi_reduction <maximumf>, %94, %cst_40 [1] : vector<16x16x16xf32> to vector<16x16xf32>
    %108 = vector.shape_cast %107 : vector<16x16xf32> to vector<16x1x16xf32>
    %109 = vector.broadcast %108 : vector<16x1x16xf32> to vector<16x16x16xf32>
    %110 = arith.subf %94, %109 : vector<16x16x16xf32>
    %111 = math.exp %110 : vector<16x16x16xf32>
    %cst_41 = arith.constant dense<0.000000e+00> : vector<16x16xf32>
    %112 = vector.multi_reduction <add>, %111, %cst_41 [1] : vector<16x16x16xf32> to vector<16x16xf32>
    %113 = vector.shape_cast %112 : vector<16x16xf32> to vector<16x1x16xf32>
    %114 = tpu.reciprocal %113 {approx = true} : vector<16x1x16xf32> -> vector<16x1x16xf32>
    %115 = vector.broadcast %114 : vector<16x1x16xf32> to vector<16x16x16xf32>
    %116 = arith.mulf %111, %115 : vector<16x16x16xf32>
    %117 = arith.mulf %77, %116 : vector<16x16x16xf32>
    %cst_42 = arith.constant dense<0.000000e+00> : vector<16x16xf32>
    %118 = vector.multi_reduction <add>, %117, %cst_42 [1] : vector<16x16x16xf32> to vector<16x16xf32>
    %cst_43 = arith.constant dense<0.000000e+00> : vector<16x16xf32>
    %119 = tpu.matmul %106, %82, %cst_43 {dimension_numbers = #tpu.dot_dimension_numbers<[1], [0], [0], [1], [0, 0, 1, 1], [], []>} : vector<16x16xf32>, vector<16x16xf32>, vector<16x16xf32> -> vector<16x16xf32>
    %cst_44 = arith.constant dense<0.000000e+00> : vector<16x16xf32>
    %120 = tpu.matmul %118, %83, %cst_44 {dimension_numbers = #tpu.dot_dimension_numbers<[1], [0], [0], [1], [0, 0, 1, 1], [], []>} : vector<16x16xf32>, vector<16x16xf32>, vector<16x16xf32> -> vector<16x16xf32>
    %121 = arith.addf %119, %120 : vector<16x16xf32>
    %122 = vector.shape_cast %84 : vector<1x16xf32> to vector<16xf32>
    %123 = vector.shape_cast %122 : vector<16xf32> to vector<1x16xf32>
    %124 = vector.broadcast %123 : vector<1x16xf32> to vector<16x16xf32>
    %125 = arith.addf %121, %124 : vector<16x16xf32>
    %cst_45 = arith.constant 0.000000e+00 : f32
    %126 = vector.broadcast %cst_45 : f32 to vector<16x16xf32>
    %127 = arith.maximumf %125, %126 : vector<16x16xf32>
    %c0_46 = arith.constant 0 : index
    %c0_47 = arith.constant 0 : index
    %c0_48 = arith.constant 0 : index
    %128 = vector.load %arg16[%c0_46, %c0_47, %c0_48] : memref<1x16x16xf32, #tpu.memory_space<vmem>>, vector<1x16x16xf32>
    %129 = vector.shape_cast %128 : vector<1x16x16xf32> to vector<16x16xf32>
    %130 = vector.shape_cast %127 : vector<16x16xf32> to vector<1x16x16xf32>
    tpu.vector_store %arg16[%c0_46, %c0_47, %c0_48], %130 {strides = array<i32>} : memref<1x16x16xf32, #tpu.memory_space<vmem>>, vector<1x16x16xf32>,
    return
  }
  func.func @transform_0(%arg0: i32, %arg1: i32) -> (i32, i32, i32) {
    %c0_i32 = arith.constant 0 : i32
    %c0_i32_0 = arith.constant 0 : i32
    return %arg0, %arg1, %c0_i32 : i32, i32, i32
  }
  func.func @transform_1(%arg0: i32, %arg1: i32) -> (i32, i32, i32, i32) {
    %c0_i32 = arith.constant 0 : i32
    %c0_i32_0 = arith.constant 0 : i32
    %c0_i32_1 = arith.constant 0 : i32
    return %arg0, %arg1, %c0_i32, %c0_i32_0 : i32, i32, i32, i32
  }
  func.func @transform_2(%arg0: i32, %arg1: i32) -> (i32, i32, i32, i32) {
    %c0_i32 = arith.constant 0 : i32
    %c0_i32_0 = arith.constant 0 : i32
    %c0_i32_1 = arith.constant 0 : i32
    return %arg0, %arg1, %c0_i32, %c0_i32_0 : i32, i32, i32, i32
  }
  func.func @transform_3(%arg0: i32, %arg1: i32) -> (i32, i32) {
    %c0_i32 = arith.constant 0 : i32
    %c0_i32_0 = arith.constant 0 : i32
    %c0_i32_1 = arith.constant 0 : i32
    return %c0_i32, %c0_i32_0 : i32, i32
  }
  func.func @transform_4(%arg0: i32, %arg1: i32) -> (i32, i32) {
    %c0_i32 = arith.constant 0 : i32
    %c0_i32_0 = arith.constant 0 : i32
    %c0_i32_1 = arith.constant 0 : i32
    return %c0_i32, %c0_i32_0 : i32, i32
  }
  func.func @transform_5(%arg0: i32, %arg1: i32) -> (i32, i32) {
    %c0_i32 = arith.constant 0 : i32
    %c0_i32_0 = arith.constant 0 : i32
    %c0_i32_1 = arith.constant 0 : i32
    return %c0_i32, %c0_i32_0 : i32, i32
  }
  func.func @transform_6(%arg0: i32, %arg1: i32) -> (i32, i32) {
    %c0_i32 = arith.constant 0 : i32
    %c0_i32_0 = arith.constant 0 : i32
    %c0_i32_1 = arith.constant 0 : i32
    return %c0_i32, %c0_i32_0 : i32, i32
  }
  func.func @transform_7(%arg0: i32, %arg1: i32) -> (i32, i32) {
    %c0_i32 = arith.constant 0 : i32
    %c0_i32_0 = arith.constant 0 : i32
    %c0_i32_1 = arith.constant 0 : i32
    return %c0_i32, %c0_i32_0 : i32, i32
  }
  func.func @transform_8(%arg0: i32, %arg1: i32) -> (i32, i32) {
    %c0_i32 = arith.constant 0 : i32
    %c0_i32_0 = arith.constant 0 : i32
    %c0_i32_1 = arith.constant 0 : i32
    return %c0_i32, %c0_i32_0 : i32, i32
  }
  func.func @transform_9(%arg0: i32, %arg1: i32) -> (i32, i32) {
    %c0_i32 = arith.constant 0 : i32
    %c0_i32_0 = arith.constant 0 : i32
    %c0_i32_1 = arith.constant 0 : i32
    return %c0_i32, %c0_i32_0 : i32, i32
  }
  func.func @transform_10(%arg0: i32, %arg1: i32) -> (i32, i32) {
    %c0_i32 = arith.constant 0 : i32
    %c0_i32_0 = arith.constant 0 : i32
    %c0_i32_1 = arith.constant 0 : i32
    return %c0_i32, %c0_i32_0 : i32, i32
  }
  func.func @transform_11(%arg0: i32, %arg1: i32) -> (i32, i32) {
    %c0_i32 = arith.constant 0 : i32
    %c0_i32_0 = arith.constant 0 : i32
    %c0_i32_1 = arith.constant 0 : i32
    return %c0_i32, %c0_i32_0 : i32, i32
  }
  func.func @transform_12(%arg0: i32, %arg1: i32) -> (i32, i32) {
    %c0_i32 = arith.constant 0 : i32
    %c0_i32_0 = arith.constant 0 : i32
    %c0_i32_1 = arith.constant 0 : i32
    return %c0_i32, %c0_i32_0 : i32, i32
  }
  func.func @transform_13(%arg0: i32, %arg1: i32) -> (i32, i32) {
    %c0_i32 = arith.constant 0 : i32
    %c0_i32_0 = arith.constant 0 : i32
    %c0_i32_1 = arith.constant 0 : i32
    return %c0_i32, %c0_i32_0 : i32, i32
  }
  func.func @transform_14(%arg0: i32, %arg1: i32) -> (i32, i32, i32) {
    %c0_i32 = arith.constant 0 : i32
    %c0_i32_0 = arith.constant 0 : i32
    return %arg0, %arg1, %c0_i32 : i32, i32, i32
  }
}

module attributes {stable_mosaic.version = 11 : i64} {
  func.func @_stage2_kernel(%arg0: i32, %arg1: i32, %arg2: memref<1x16x3xf32, #tpu.memory_space<vmem>>, %arg3: memref<1x16x16x3xf32, #tpu.memory_space<vmem>>, %arg4: memref<1x16x16x16xf32, #tpu.memory_space<vmem>>, %arg5: memref<3x16xf32, #tpu.memory_space<vmem>>, %arg6: memref<3x16xf32, #tpu.memory_space<vmem>>, %arg7: memref<1x16xf32, #tpu.memory_space<vmem>>, %arg8: memref<1x16xf32, #tpu.memory_space<vmem>>, %arg9: memref<16x16xf32, #tpu.memory_space<vmem>>, %arg10: memref<1x16xf32, #tpu.memory_space<vmem>>, %arg11: memref<16x16xf32, #tpu.memory_space<vmem>>, %arg12: memref<16x16xf32, #tpu.memory_space<vmem>>, %arg13: memref<16x16xf32, #tpu.memory_space<vmem>>, %arg14: memref<16x16xf32, #tpu.memory_space<vmem>>, %arg15: memref<16x32xf32, #tpu.memory_space<vmem>>, %arg16: memref<16x32xf32, #tpu.memory_space<vmem>>, %arg17: memref<1x32xf32, #tpu.memory_space<vmem>>, %arg18: memref<1x16x32xf32, #tpu.memory_space<vmem>>) attributes {dimension_semantics = [#tpu.dimension_semantics<parallel>, #tpu.dimension_semantics<parallel>], iteration_bounds = array<i64: 2, 4>, scalar_prefetch = 0 : i64, scratch_operands = 0 : i64, tpu.core_type = #tpu.core_type<tc>, window_params = [{transform_indices = @transform_0, window_bounds = array<i64: 1, 16, 3>}, {transform_indices = @transform_1, window_bounds = array<i64: 1, 16, 16, 3>}, {transform_indices = @transform_2, window_bounds = array<i64: 1, 16, 16, 16>}, {pipeline_mode = #tpu.pipeline_mode<synchronous>, transform_indices = @transform_3, window_bounds = array<i64: 3, 16>}, {pipeline_mode = #tpu.pipeline_mode<synchronous>, transform_indices = @transform_4, window_bounds = array<i64: 3, 16>}, {pipeline_mode = #tpu.pipeline_mode<synchronous>, transform_indices = @transform_5, window_bounds = array<i64: 1, 16>}, {pipeline_mode = #tpu.pipeline_mode<synchronous>, transform_indices = @transform_6, window_bounds = array<i64: 1, 16>}, {pipeline_mode = #tpu.pipeline_mode<synchronous>, transform_indices = @transform_7, window_bounds = array<i64: 16, 16>}, {pipeline_mode = #tpu.pipeline_mode<synchronous>, transform_indices = @transform_8, window_bounds = array<i64: 1, 16>}, {pipeline_mode = #tpu.pipeline_mode<synchronous>, transform_indices = @transform_9, window_bounds = array<i64: 16, 16>}, {pipeline_mode = #tpu.pipeline_mode<synchronous>, transform_indices = @transform_10, window_bounds = array<i64: 16, 16>}, {pipeline_mode = #tpu.pipeline_mode<synchronous>, transform_indices = @transform_11, window_bounds = array<i64: 16, 16>}, {pipeline_mode = #tpu.pipeline_mode<synchronous>, transform_indices = @transform_12, window_bounds = array<i64: 16, 16>}, {pipeline_mode = #tpu.pipeline_mode<synchronous>, transform_indices = @transform_13, window_bounds = array<i64: 16, 32>}, {pipeline_mode = #tpu.pipeline_mode<synchronous>, transform_indices = @transform_14, window_bounds = array<i64: 16, 32>}, {pipeline_mode = #tpu.pipeline_mode<synchronous>, transform_indices = @transform_15, window_bounds = array<i64: 1, 32>}, {transform_indices = @transform_16, window_bounds = array<i64: 1, 16, 32>}]} {
    %c0 = arith.constant 0 : index
    %c0_0 = arith.constant 0 : index
    %c0_1 = arith.constant 0 : index
    %0 = vector.load %arg2[%c0, %c0_0, %c0_1] : memref<1x16x3xf32, #tpu.memory_space<vmem>>, vector<1x16x3xf32>
    %1 = vector.shape_cast %0 : vector<1x16x3xf32> to vector<16x3xf32>
    %c0_2 = arith.constant 0 : index
    %c0_3 = arith.constant 0 : index
    %c0_4 = arith.constant 0 : index
    %c0_5 = arith.constant 0 : index
    %2 = vector.load %arg3[%c0_2, %c0_3, %c0_4, %c0_5] : memref<1x16x16x3xf32, #tpu.memory_space<vmem>>, vector<1x16x16x3xf32>
    %3 = vector.shape_cast %2 : vector<1x16x16x3xf32> to vector<16x16x3xf32>
    %c0_6 = arith.constant 0 : index
    %c0_7 = arith.constant 0 : index
    %c0_8 = arith.constant 0 : index
    %c0_9 = arith.constant 0 : index
    %4 = vector.load %arg4[%c0_6, %c0_7, %c0_8, %c0_9] : memref<1x16x16x16xf32, #tpu.memory_space<vmem>>, vector<1x16x16x16xf32>
    %5 = vector.shape_cast %4 : vector<1x16x16x16xf32> to vector<16x16x16xf32>
    %c0_10 = arith.constant 0 : index
    %c0_11 = arith.constant 0 : index
    %6 = vector.load %arg5[%c0_10, %c0_11] : memref<3x16xf32, #tpu.memory_space<vmem>>, vector<3x16xf32>
    %c0_12 = arith.constant 0 : index
    %c0_13 = arith.constant 0 : index
    %7 = vector.load %arg6[%c0_12, %c0_13] : memref<3x16xf32, #tpu.memory_space<vmem>>, vector<3x16xf32>
    %c0_14 = arith.constant 0 : index
    %c0_15 = arith.constant 0 : index
    %8 = vector.load %arg7[%c0_14, %c0_15] : memref<1x16xf32, #tpu.memory_space<vmem>>, vector<1x16xf32>
    %c0_16 = arith.constant 0 : index
    %c0_17 = arith.constant 0 : index
    %9 = vector.load %arg8[%c0_16, %c0_17] : memref<1x16xf32, #tpu.memory_space<vmem>>, vector<1x16xf32>
    %10 = vector.shape_cast %1 : vector<16x3xf32> to vector<16x1x3xf32>
    %11 = vector.broadcast %10 : vector<16x1x3xf32> to vector<16x16x3xf32>
    %12 = arith.subf %11, %3 : vector<16x16x3xf32>
    %13 = arith.mulf %12, %12 : vector<16x16x3xf32>
    %cst = arith.constant dense<0.000000e+00> : vector<16x16xf32>
    %14 = vector.multi_reduction <add>, %13, %cst [2] : vector<16x16x3xf32> to vector<16x16xf32>
    %15 = vector.shape_cast %14 : vector<16x16xf32> to vector<16x16x1xf32>
    %16 = math.sqrt %15 : vector<16x16x1xf32>
    %17 = vector.extract_strided_slice %1 {offsets = [0, 0], sizes = [16, 1], strides = [1, 1]} : vector<16x3xf32> to vector<16x1xf32>
    %18 = vector.extract_strided_slice %6 {offsets = [0, 0], sizes = [1, 16], strides = [1, 1]} : vector<3x16xf32> to vector<1x16xf32>
    %19 = vector.shape_cast %18 : vector<1x16xf32> to vector<16xf32>
    %20 = vector.shape_cast %19 : vector<16xf32> to vector<1x16xf32>
    %21 = vector.broadcast %17 : vector<16x1xf32> to vector<16x16xf32>
    %22 = vector.broadcast %20 : vector<1x16xf32> to vector<16x16xf32>
    %23 = arith.mulf %21, %22 : vector<16x16xf32>
    %24 = vector.extract_strided_slice %1 {offsets = [0, 1], sizes = [16, 1], strides = [1, 1]} : vector<16x3xf32> to vector<16x1xf32>
    %25 = vector.extract_strided_slice %6 {offsets = [1, 0], sizes = [1, 16], strides = [1, 1]} : vector<3x16xf32> to vector<1x16xf32>
    %26 = vector.shape_cast %25 : vector<1x16xf32> to vector<16xf32>
    %27 = vector.shape_cast %26 : vector<16xf32> to vector<1x16xf32>
    %28 = vector.broadcast %24 : vector<16x1xf32> to vector<16x16xf32>
    %29 = vector.broadcast %27 : vector<1x16xf32> to vector<16x16xf32>
    %30 = arith.mulf %28, %29 : vector<16x16xf32>
    %31 = arith.addf %23, %30 : vector<16x16xf32>
    %32 = vector.extract_strided_slice %1 {offsets = [0, 2], sizes = [16, 1], strides = [1, 1]} : vector<16x3xf32> to vector<16x1xf32>
    %33 = vector.extract_strided_slice %6 {offsets = [2, 0], sizes = [1, 16], strides = [1, 1]} : vector<3x16xf32> to vector<1x16xf32>
    %34 = vector.shape_cast %33 : vector<1x16xf32> to vector<16xf32>
    %35 = vector.shape_cast %34 : vector<16xf32> to vector<1x16xf32>
    %36 = vector.broadcast %32 : vector<16x1xf32> to vector<16x16xf32>
    %37 = vector.broadcast %35 : vector<1x16xf32> to vector<16x16xf32>
    %38 = arith.mulf %36, %37 : vector<16x16xf32>
    %39 = arith.addf %31, %38 : vector<16x16xf32>
    %40 = vector.extract_strided_slice %3 {offsets = [0, 0, 0], sizes = [16, 16, 1], strides = [1, 1, 1]} : vector<16x16x3xf32> to vector<16x16x1xf32>
    %41 = vector.extract_strided_slice %7 {offsets = [0, 0], sizes = [1, 16], strides = [1, 1]} : vector<3x16xf32> to vector<1x16xf32>
    %42 = vector.shape_cast %41 : vector<1x16xf32> to vector<16xf32>
    %43 = vector.shape_cast %42 : vector<16xf32> to vector<1x1x16xf32>
    %44 = vector.broadcast %40 : vector<16x16x1xf32> to vector<16x16x16xf32>
    %45 = vector.broadcast %43 : vector<1x1x16xf32> to vector<16x16x16xf32>
    %46 = arith.mulf %44, %45 : vector<16x16x16xf32>
    %47 = vector.extract_strided_slice %3 {offsets = [0, 0, 1], sizes = [16, 16, 1], strides = [1, 1, 1]} : vector<16x16x3xf32> to vector<16x16x1xf32>
    %48 = vector.extract_strided_slice %7 {offsets = [1, 0], sizes = [1, 16], strides = [1, 1]} : vector<3x16xf32> to vector<1x16xf32>
    %49 = vector.shape_cast %48 : vector<1x16xf32> to vector<16xf32>
    %50 = vector.shape_cast %49 : vector<16xf32> to vector<1x1x16xf32>
    %51 = vector.broadcast %47 : vector<16x16x1xf32> to vector<16x16x16xf32>
    %52 = vector.broadcast %50 : vector<1x1x16xf32> to vector<16x16x16xf32>
    %53 = arith.mulf %51, %52 : vector<16x16x16xf32>
    %54 = arith.addf %46, %53 : vector<16x16x16xf32>
    %55 = vector.extract_strided_slice %3 {offsets = [0, 0, 2], sizes = [16, 16, 1], strides = [1, 1, 1]} : vector<16x16x3xf32> to vector<16x16x1xf32>
    %56 = vector.extract_strided_slice %7 {offsets = [2, 0], sizes = [1, 16], strides = [1, 1]} : vector<3x16xf32> to vector<1x16xf32>
    %57 = vector.shape_cast %56 : vector<1x16xf32> to vector<16xf32>
    %58 = vector.shape_cast %57 : vector<16xf32> to vector<1x1x16xf32>
    %59 = vector.broadcast %55 : vector<16x16x1xf32> to vector<16x16x16xf32>
    %60 = vector.broadcast %58 : vector<1x1x16xf32> to vector<16x16x16xf32>
    %61 = arith.mulf %59, %60 : vector<16x16x16xf32>
    %62 = arith.addf %54, %61 : vector<16x16x16xf32>
    %63 = vector.shape_cast %39 : vector<16x16xf32> to vector<16x1x16xf32>
    %64 = vector.broadcast %63 : vector<16x1x16xf32> to vector<16x16x16xf32>
    %65 = arith.addf %64, %62 : vector<16x16x16xf32>
    %66 = vector.shape_cast %8 : vector<1x16xf32> to vector<16xf32>
    %67 = vector.shape_cast %66 : vector<16xf32> to vector<1x1x16xf32>
    %68 = vector.broadcast %16 : vector<16x16x1xf32> to vector<16x16x16xf32>
    %69 = vector.broadcast %67 : vector<1x1x16xf32> to vector<16x16x16xf32>
    %70 = arith.mulf %68, %69 : vector<16x16x16xf32>
    %71 = arith.addf %65, %70 : vector<16x16x16xf32>
    %72 = vector.shape_cast %9 : vector<1x16xf32> to vector<16xf32>
    %73 = vector.shape_cast %72 : vector<16xf32> to vector<1x1x16xf32>
    %74 = vector.broadcast %73 : vector<1x1x16xf32> to vector<16x16x16xf32>
    %75 = arith.addf %71, %74 : vector<16x16x16xf32>
    %cst_18 = arith.constant 0.000000e+00 : f32
    %76 = vector.broadcast %cst_18 : f32 to vector<16x16x16xf32>
    %77 = arith.maximumf %75, %76 : vector<16x16x16xf32>
    %78 = vector.shape_cast %77 : vector<16x16x16xf32> to vector<256x16xf32>
    %c0_19 = arith.constant 0 : index
    %c0_20 = arith.constant 0 : index
    %79 = vector.load %arg9[%c0_19, %c0_20] : memref<16x16xf32, #tpu.memory_space<vmem>>, vector<16x16xf32>
    %cst_21 = arith.constant dense<0.000000e+00> : vector<256x16xf32>
    %80 = tpu.matmul %78, %79, %cst_21 {dimension_numbers = #tpu.dot_dimension_numbers<[1], [0], [0], [1], [0, 0, 1, 1], [], []>} : vector<256x16xf32>, vector<16x16xf32>, vector<256x16xf32> -> vector<256x16xf32>
    %c0_22 = arith.constant 0 : index
    %c0_23 = arith.constant 0 : index
    %81 = vector.load %arg10[%c0_22, %c0_23] : memref<1x16xf32, #tpu.memory_space<vmem>>, vector<1x16xf32>
    %82 = vector.shape_cast %81 : vector<1x16xf32> to vector<16xf32>
    %83 = vector.shape_cast %82 : vector<16xf32> to vector<1x16xf32>
    %84 = vector.broadcast %83 : vector<1x16xf32> to vector<256x16xf32>
    %85 = arith.addf %80, %84 : vector<256x16xf32>
    %cst_24 = arith.constant 0.000000e+00 : f32
    %86 = vector.broadcast %cst_24 : f32 to vector<256x16xf32>
    %87 = arith.maximumf %85, %86 : vector<256x16xf32>
    %88 = vector.shape_cast %87 : vector<256x16xf32> to vector<16x16x16xf32>
    %c0_25 = arith.constant 0 : index
    %c0_26 = arith.constant 0 : index
    %89 = vector.load %arg11[%c0_25, %c0_26] : memref<16x16xf32, #tpu.memory_space<vmem>>, vector<16x16xf32>
    %c0_27 = arith.constant 0 : index
    %c0_28 = arith.constant 0 : index
    %90 = vector.load %arg12[%c0_27, %c0_28] : memref<16x16xf32, #tpu.memory_space<vmem>>, vector<16x16xf32>
    %c0_29 = arith.constant 0 : index
    %c0_30 = arith.constant 0 : index
    %91 = vector.load %arg13[%c0_29, %c0_30] : memref<16x16xf32, #tpu.memory_space<vmem>>, vector<16x16xf32>
    %c0_31 = arith.constant 0 : index
    %c0_32 = arith.constant 0 : index
    %92 = vector.load %arg14[%c0_31, %c0_32] : memref<16x16xf32, #tpu.memory_space<vmem>>, vector<16x16xf32>
    %c0_33 = arith.constant 0 : index
    %c0_34 = arith.constant 0 : index
    %93 = vector.load %arg15[%c0_33, %c0_34] : memref<16x32xf32, #tpu.memory_space<vmem>>, vector<16x32xf32>
    %c0_35 = arith.constant 0 : index
    %c0_36 = arith.constant 0 : index
    %94 = vector.load %arg16[%c0_35, %c0_36] : memref<16x32xf32, #tpu.memory_space<vmem>>, vector<16x32xf32>
    %c0_37 = arith.constant 0 : index
    %c0_38 = arith.constant 0 : index
    %95 = vector.load %arg17[%c0_37, %c0_38] : memref<1x32xf32, #tpu.memory_space<vmem>>, vector<1x32xf32>
    %96 = vector.shape_cast %5 : vector<16x16x16xf32> to vector<256x16xf32>
    %97 = vector.shape_cast %88 : vector<16x16x16xf32> to vector<256x16xf32>
    %cst_39 = arith.constant dense<0.000000e+00> : vector<256x16xf32>
    %98 = tpu.matmul %96, %89, %cst_39 {dimension_numbers = #tpu.dot_dimension_numbers<[1], [0], [0], [1], [0, 0, 1, 1], [], []>} : vector<256x16xf32>, vector<16x16xf32>, vector<256x16xf32> -> vector<256x16xf32>
    %cst_40 = arith.constant dense<0.000000e+00> : vector<256x16xf32>
    %99 = tpu.matmul %97, %90, %cst_40 {dimension_numbers = #tpu.dot_dimension_numbers<[1], [0], [0], [1], [0, 0, 1, 1], [], []>} : vector<256x16xf32>, vector<16x16xf32>, vector<256x16xf32> -> vector<256x16xf32>
    %100 = arith.addf %98, %99 : vector<256x16xf32>
    %101 = vector.shape_cast %100 : vector<256x16xf32> to vector<16x16x16xf32>
    %cst_41 = arith.constant dense<0.000000e+00> : vector<256x16xf32>
    %102 = tpu.matmul %96, %91, %cst_41 {dimension_numbers = #tpu.dot_dimension_numbers<[1], [0], [0], [1], [0, 0, 1, 1], [], []>} : vector<256x16xf32>, vector<16x16xf32>, vector<256x16xf32> -> vector<256x16xf32>
    %cst_42 = arith.constant dense<0.000000e+00> : vector<256x16xf32>
    %103 = tpu.matmul %97, %92, %cst_42 {dimension_numbers = #tpu.dot_dimension_numbers<[1], [0], [0], [1], [0, 0, 1, 1], [], []>} : vector<256x16xf32>, vector<16x16xf32>, vector<256x16xf32> -> vector<256x16xf32>
    %104 = arith.addf %102, %103 : vector<256x16xf32>
    %105 = vector.shape_cast %104 : vector<256x16xf32> to vector<16x16x16xf32>
    %cst_43 = arith.constant dense<0xFF800000> : vector<16x16xf32>
    %106 = vector.multi_reduction <maximumf>, %101, %cst_43 [1] : vector<16x16x16xf32> to vector<16x16xf32>
    %107 = vector.shape_cast %106 : vector<16x16xf32> to vector<16x1x16xf32>
    %108 = vector.broadcast %107 : vector<16x1x16xf32> to vector<16x16x16xf32>
    %109 = arith.subf %101, %108 : vector<16x16x16xf32>
    %110 = math.exp %109 : vector<16x16x16xf32>
    %cst_44 = arith.constant dense<0.000000e+00> : vector<16x16xf32>
    %111 = vector.multi_reduction <add>, %110, %cst_44 [1] : vector<16x16x16xf32> to vector<16x16xf32>
    %112 = vector.shape_cast %111 : vector<16x16xf32> to vector<16x1x16xf32>
    %113 = tpu.reciprocal %112 {approx = true} : vector<16x1x16xf32> -> vector<16x1x16xf32>
    %114 = vector.broadcast %113 : vector<16x1x16xf32> to vector<16x16x16xf32>
    %115 = arith.mulf %110, %114 : vector<16x16x16xf32>
    %116 = arith.mulf %5, %115 : vector<16x16x16xf32>
    %cst_45 = arith.constant dense<0.000000e+00> : vector<16x16xf32>
    %117 = vector.multi_reduction <add>, %116, %cst_45 [1] : vector<16x16x16xf32> to vector<16x16xf32>
    %cst_46 = arith.constant dense<0xFF800000> : vector<16x16xf32>
    %118 = vector.multi_reduction <maximumf>, %105, %cst_46 [1] : vector<16x16x16xf32> to vector<16x16xf32>
    %119 = vector.shape_cast %118 : vector<16x16xf32> to vector<16x1x16xf32>
    %120 = vector.broadcast %119 : vector<16x1x16xf32> to vector<16x16x16xf32>
    %121 = arith.subf %105, %120 : vector<16x16x16xf32>
    %122 = math.exp %121 : vector<16x16x16xf32>
    %cst_47 = arith.constant dense<0.000000e+00> : vector<16x16xf32>
    %123 = vector.multi_reduction <add>, %122, %cst_47 [1] : vector<16x16x16xf32> to vector<16x16xf32>
    %124 = vector.shape_cast %123 : vector<16x16xf32> to vector<16x1x16xf32>
    %125 = tpu.reciprocal %124 {approx = true} : vector<16x1x16xf32> -> vector<16x1x16xf32>
    %126 = vector.broadcast %125 : vector<16x1x16xf32> to vector<16x16x16xf32>
    %127 = arith.mulf %122, %126 : vector<16x16x16xf32>
    %128 = arith.mulf %88, %127 : vector<16x16x16xf32>
    %cst_48 = arith.constant dense<0.000000e+00> : vector<16x16xf32>
    %129 = vector.multi_reduction <add>, %128, %cst_48 [1] : vector<16x16x16xf32> to vector<16x16xf32>
    %cst_49 = arith.constant dense<0.000000e+00> : vector<16x32xf32>
    %130 = tpu.matmul %117, %93, %cst_49 {dimension_numbers = #tpu.dot_dimension_numbers<[1], [0], [0], [1], [0, 0, 1, 1], [], []>} : vector<16x16xf32>, vector<16x32xf32>, vector<16x32xf32> -> vector<16x32xf32>
    %cst_50 = arith.constant dense<0.000000e+00> : vector<16x32xf32>
    %131 = tpu.matmul %129, %94, %cst_50 {dimension_numbers = #tpu.dot_dimension_numbers<[1], [0], [0], [1], [0, 0, 1, 1], [], []>} : vector<16x16xf32>, vector<16x32xf32>, vector<16x32xf32> -> vector<16x32xf32>
    %132 = arith.addf %130, %131 : vector<16x32xf32>
    %133 = vector.shape_cast %95 : vector<1x32xf32> to vector<32xf32>
    %134 = vector.shape_cast %133 : vector<32xf32> to vector<1x32xf32>
    %135 = vector.broadcast %134 : vector<1x32xf32> to vector<16x32xf32>
    %136 = arith.addf %132, %135 : vector<16x32xf32>
    %cst_51 = arith.constant 0.000000e+00 : f32
    %137 = vector.broadcast %cst_51 : f32 to vector<16x32xf32>
    %138 = arith.maximumf %136, %137 : vector<16x32xf32>
    %c0_52 = arith.constant 0 : index
    %c0_53 = arith.constant 0 : index
    %c0_54 = arith.constant 0 : index
    %139 = vector.load %arg18[%c0_52, %c0_53, %c0_54] : memref<1x16x32xf32, #tpu.memory_space<vmem>>, vector<1x16x32xf32>
    %140 = vector.shape_cast %139 : vector<1x16x32xf32> to vector<16x32xf32>
    %141 = vector.shape_cast %138 : vector<16x32xf32> to vector<1x16x32xf32>
    tpu.vector_store %arg18[%c0_52, %c0_53, %c0_54], %141 {strides = array<i32>} : memref<1x16x32xf32, #tpu.memory_space<vmem>>, vector<1x16x32xf32>,
    return
  }
  func.func @transform_0(%arg0: i32, %arg1: i32) -> (i32, i32, i32) {
    %c0_i32 = arith.constant 0 : i32
    %c0_i32_0 = arith.constant 0 : i32
    return %arg0, %arg1, %c0_i32 : i32, i32, i32
  }
  func.func @transform_1(%arg0: i32, %arg1: i32) -> (i32, i32, i32, i32) {
    %c0_i32 = arith.constant 0 : i32
    %c0_i32_0 = arith.constant 0 : i32
    %c0_i32_1 = arith.constant 0 : i32
    return %arg0, %arg1, %c0_i32, %c0_i32_0 : i32, i32, i32, i32
  }
  func.func @transform_2(%arg0: i32, %arg1: i32) -> (i32, i32, i32, i32) {
    %c0_i32 = arith.constant 0 : i32
    %c0_i32_0 = arith.constant 0 : i32
    %c0_i32_1 = arith.constant 0 : i32
    return %arg0, %arg1, %c0_i32, %c0_i32_0 : i32, i32, i32, i32
  }
  func.func @transform_3(%arg0: i32, %arg1: i32) -> (i32, i32) {
    %c0_i32 = arith.constant 0 : i32
    %c0_i32_0 = arith.constant 0 : i32
    %c0_i32_1 = arith.constant 0 : i32
    return %c0_i32, %c0_i32_0 : i32, i32
  }
  func.func @transform_4(%arg0: i32, %arg1: i32) -> (i32, i32) {
    %c0_i32 = arith.constant 0 : i32
    %c0_i32_0 = arith.constant 0 : i32
    %c0_i32_1 = arith.constant 0 : i32
    return %c0_i32, %c0_i32_0 : i32, i32
  }
  func.func @transform_5(%arg0: i32, %arg1: i32) -> (i32, i32) {
    %c0_i32 = arith.constant 0 : i32
    %c0_i32_0 = arith.constant 0 : i32
    %c0_i32_1 = arith.constant 0 : i32
    return %c0_i32, %c0_i32_0 : i32, i32
  }
  func.func @transform_6(%arg0: i32, %arg1: i32) -> (i32, i32) {
    %c0_i32 = arith.constant 0 : i32
    %c0_i32_0 = arith.constant 0 : i32
    %c0_i32_1 = arith.constant 0 : i32
    return %c0_i32, %c0_i32_0 : i32, i32
  }
  func.func @transform_7(%arg0: i32, %arg1: i32) -> (i32, i32) {
    %c0_i32 = arith.constant 0 : i32
    %c0_i32_0 = arith.constant 0 : i32
    %c0_i32_1 = arith.constant 0 : i32
    return %c0_i32, %c0_i32_0 : i32, i32
  }
  func.func @transform_8(%arg0: i32, %arg1: i32) -> (i32, i32) {
    %c0_i32 = arith.constant 0 : i32
    %c0_i32_0 = arith.constant 0 : i32
    %c0_i32_1 = arith.constant 0 : i32
    return %c0_i32, %c0_i32_0 : i32, i32
  }
  func.func @transform_9(%arg0: i32, %arg1: i32) -> (i32, i32) {
    %c0_i32 = arith.constant 0 : i32
    %c0_i32_0 = arith.constant 0 : i32
    %c0_i32_1 = arith.constant 0 : i32
    return %c0_i32, %c0_i32_0 : i32, i32
  }
  func.func @transform_10(%arg0: i32, %arg1: i32) -> (i32, i32) {
    %c0_i32 = arith.constant 0 : i32
    %c0_i32_0 = arith.constant 0 : i32
    %c0_i32_1 = arith.constant 0 : i32
    return %c0_i32, %c0_i32_0 : i32, i32
  }
  func.func @transform_11(%arg0: i32, %arg1: i32) -> (i32, i32) {
    %c0_i32 = arith.constant 0 : i32
    %c0_i32_0 = arith.constant 0 : i32
    %c0_i32_1 = arith.constant 0 : i32
    return %c0_i32, %c0_i32_0 : i32, i32
  }
  func.func @transform_12(%arg0: i32, %arg1: i32) -> (i32, i32) {
    %c0_i32 = arith.constant 0 : i32
    %c0_i32_0 = arith.constant 0 : i32
    %c0_i32_1 = arith.constant 0 : i32
    return %c0_i32, %c0_i32_0 : i32, i32
  }
  func.func @transform_13(%arg0: i32, %arg1: i32) -> (i32, i32) {
    %c0_i32 = arith.constant 0 : i32
    %c0_i32_0 = arith.constant 0 : i32
    %c0_i32_1 = arith.constant 0 : i32
    return %c0_i32, %c0_i32_0 : i32, i32
  }
  func.func @transform_14(%arg0: i32, %arg1: i32) -> (i32, i32) {
    %c0_i32 = arith.constant 0 : i32
    %c0_i32_0 = arith.constant 0 : i32
    %c0_i32_1 = arith.constant 0 : i32
    return %c0_i32, %c0_i32_0 : i32, i32
  }
  func.func @transform_15(%arg0: i32, %arg1: i32) -> (i32, i32) {
    %c0_i32 = arith.constant 0 : i32
    %c0_i32_0 = arith.constant 0 : i32
    %c0_i32_1 = arith.constant 0 : i32
    return %c0_i32, %c0_i32_0 : i32, i32
  }
  func.func @transform_16(%arg0: i32, %arg1: i32) -> (i32, i32, i32) {
    %c0_i32 = arith.constant 0 : i32
    %c0_i32_0 = arith.constant 0 : i32
    return %arg0, %arg1, %c0_i32 : i32, i32, i32
  }
}

</mosaic_0001>

<bundles_post_ra>
// kernel: building_block_forward.2
= control target key start
LH: loop header
LB: loop body
LE: loop exit
PB: predicated region body
PF: predicated region fallthrough
CT: control target
= control target key end

     0   :  { %s5978_s29 = smov 0   ;;  %s5980_s30 = smov 0   ;;  %s8807_s0 = inlined_call_operand.vmem [shape: f32[2,64,3], index: 0, kind: input, shape index: {}]   ;;  %s8808_s1 = inlined_call_operand.vmem [shape: f32[2,64,16,3], index: 1, kind: input, shape index: {}]   ;;  %s8809_s2 = inlined_call_operand.vmem [shape: f32[2,64,16,16], index: 2, kind: input, shape index: {}]   ;;  %s8810_s3 = inlined_call_operand.vmem [shape: f32[3,16], index: 3, kind: input, shape index: {}]   ;;  %s8811_s4 = inlined_call_operand.vmem [shape: f32[3,16], index: 4, kind: input, shape index: {}]   ;;  %s8812_s5 = inlined_call_operand.vmem [shape: f32[1,16], index: 5, kind: input, shape index: {}]   ;;  %s8813_s6 = inlined_call_operand.vmem [shape: f32[1,16], index: 6, kind: input, shape index: {}]   ;;  %s8814_s7 = inlined_call_operand.vmem [shape: f32[16,16], index: 7, kind: input, shape index: {}]   ;;  %s8815_s8 = inlined_call_operand.vmem [shape: f32[16,16], index: 8, kind: input, shape index: {}]   ;;  %s8816_s9 = inlined_call_operand.vmem [shape: f32[16,16], index: 9, kind: input, shape index: {}]   ;;  %s8817_s10 = inlined_call_operand.vmem [shape: f32[16,16], index: 10, kind: input, shape index: {}]   ;;  %s8818_s11 = inlined_call_operand.vmem [shape: f32[16,16], index: 11, kind: input, shape index: {}]   ;;  %s8819_s12 = inlined_call_operand.vmem [shape: f32[16,16], index: 12, kind: input, shape index: {}]   ;;  %s8820_s13 = inlined_call_operand.vmem [shape: f32[1,16], index: 13, kind: input, shape index: {}]   ;;  %s8821_s14 = inlined_call_operand.vmem [shape: f32[2,64,16], index: 14, kind: output, shape index: {}]  }
   0x1   :  { %s5982_s15 = smov 0   ;;  %s5984_s16 = smov 0  }
   0x2   :  { %s5986_s17 = smov 0  }
   0x3 LB: > { %s33_s18 = sadd.s32 1, %s5889_s15  ;;  %s36_s19 = sadd.s32 1, %s5893_s16  ;;  %s5897_s17 = sphi %s5986_s17, %s24_s17   ;;  %s5893_s16 = sphi %s5984_s16, %s9241_s16   ;;  %s5889_s15 = sphi %s5982_s15, %s9240_s15   ;;  %s5885_s30 = sphi %s5980_s30, %s9239_s30   ;;  %s5881_s29 = sphi %s5978_s29, %s9238_s29  }
   0x4   : > { %p34_p0 = scmp.ge.s32.totalorder %s33_s18, 4  ;;  %p4901_p1 = scmp.ge.s32.totalorder %s5897_s17, 1 }
   0x5   : > { %p469_p2 = scmp.lt.s32.totalorder %s5897_s17, 9 }
   0x6   : > { %s9243_s18 = smov (%p34_p0, %s33_s18), 0  ;;  %s9245_s19 = smov (!%p34_p0, %s36_s19), %s5893_s16 }
   0x7   : > { %p470_p3 = pnand %p4901_p1, %p469_p2  ;;  %p38_p4 = scmp.ge.s32.totalorder %s9245_s19, 2 }
   0x9   : > { %s9247_s19 = smov (%p38_p4, %s9245_s19), 0  ;;  %473 = sbr.rel (%p470_p3) target bundleno = 1368 (0x558), region = 76 }
  0x10   : > { %s4902_s20 = sshll.u32 %s5881_s29, 1  ;;  %p544_p5 = scmp.lt.s32.totalorder %s5885_s30, 1  ;;  %v661_v0 = vlaneseq  ;;  %v5899_v1 = vmov 1966171168   ;;  %v8824_v3 = vmov 2   ;;  %vm899_vm0 = vcmask 23552  }
  0x11   : > { %p546_p6 = scmp.lt.s32.totalorder %s4902_s20, 7  ;;  %s4905_s21 = sshll.u32 %s5881_s29, 4  ;;  %v659_v2 = vunpack.c.l.s4 %v5899_v1  ;;  %5556 = vset.pattern.permute.xlu0 %v8824_v3  ;;  %5555 = vset.pattern.permute.xlu1 %v8824_v3 }
  0x12   : > { %s9249_s30 = smov (!%p544_p5, %s5885_s30), 1  ;;  %v6014_v4 = vshrl.u32 %v661_v0, 7  ;;  %p556_p7 = scmp.lt.s32.totalorder %s4905_s21, 63 }
  0x13   : > { %s9251_s20 = smov (!%p546_p6, %s4902_s20), 7  ;;  %v660_v5 = vunpack.c.0.s8 %v659_v2  ;;  %s4903_s22 = sshll.u32 %s9249_s30, 3 }
  0x14   : > { %s6016_s23 = sadd.s32 %s4903_s22, %s9251_s20  ;;  %s4907_s28 = sshll.u32 %s9249_s30, 7  ;;  %v6034_v10 = vsub.s32 0, %v6014_v4 }
  0x15   : > { %v6019_v6 = vsub.s32 %v660_v5, %v6014_v4  ;;  %s4904_s24 = sshll.u32 %s6016_s23, 3  ;;  %s9253_s21 = smov (!%p556_p7, %s4905_s21), 63 }
  0x16   : > { %s551_s27 = scalar_lea.vmem %s8807_s0, %s4904_s24  ;;  %s4906_s29 = sshll.u32 %s9253_s21, 1 }
  0x17   : > { %8912 = vst [vmem:[#allocation2_spill] sm:$0xff] %v6019_v6  ;;  %v6027_v7 = vld [vmem:[%s551_s27] sm:$0xff]  ;;  %v6029_v8 = vld [vmem:[%s551_s27 + $0x8] sm:$0xff]  ;;  %s6040_s20 = sadd.s32 %s4907_s28, %s4906_s29  ;;  %s583_s28 = scalar_lea.vmem %s8821_s14, %s4904_s24 }
  0x18   : > { %v664_v9 = vrot.slane %v6027_v7, %v6019_v6  ;;  %v706_v11 = vcombine.high %v6029_v8, %v6029_v8  ;;  %v657_v12 = vcombine.high %v6027_v7, %v6027_v7  ;;  %s4908_s30 = sshll.u32 %s6040_s20, 3  ;;  %v713_v61 = vrot.slane %v6029_v8, %v6019_v6 }
  0x19   : > { %s6052_s26 = scalar_lea.vmem %s8808_s1, %s4908_s30  ;;  %s7596_s21 = scalar_lea.vmem %s8809_s2, %s4908_s30 }
  0x1a   : > { %v680_v13 = vrot.slane %v664_v9, %v6019_v6  ;;  %v6044_v14 = vrot.slane %v706_v11, %v6019_v6  ;;  %v672_v15 = vcombine.high %v664_v9, %v664_v9  ;;  %v6059_v20 = vld [vmem:[%s6052_s26] sm:$0xff]  ;;  %v6062_v21 = vld [vmem:[%s6052_s26 + $0x8] sm:$0xff]  ;;  %v671_v22 = vrot.slane %v657_v12, %v6019_v6  ;;  %v6071_v26 = vld [vmem:[%s6052_s26 + $0x10] sm:$0xff] }
  0x1b   : > { %v6079_v33 = vld [vmem:[%s6052_s26 + $0x20] sm:$0xff]  ;;  %v6082_v34 = vld [vmem:[%s6052_s26 + $0xf0] sm:$0xff]  ;;  %v6085_v35 = vld [vmem:[%s6052_s26 + $0xf8] sm:$0xff] }
  0x1c   : > { %v758_v16 = vrot.slane %v680_v13, %v6034_v10  ;;  %v722_v17 = vcombine.high %v6044_v14, %v6044_v14  ;;  %v694_v18 = vrot.slane %v672_v15, %v6019_v6  ;;  %v702_v19 = vcombine.high %v680_v13, %v680_v13  ;;  %v6092_v41 = vld [vmem:[%s6052_s26 + $0x18] sm:$0xff]  ;;  %v6098_v47 = vld [vmem:[%s6052_s26 + $0x28] sm:$0xff]  ;;  %v6114_v60 = vld [vmem:[%s6052_s26 + $0x30] sm:$0xff] }
  0x1d   : > { %v687_v36 = vrot.slane %v671_v22, %v6019_v6  ;;  %v673_v39 = vcombine.high %v671_v22, %v671_v22  ;;  %v6103_v52 = vld [vmem:[%s6052_s26 + $0x48] sm:$0xff]  ;;  %v6122_v2 = vld [vmem:[%s6052_s26 + $0x58] sm:$0xff]  ;;  %v729_v13 = vrot.slane %v713_v61, %v6019_v6 }
  0x1e   : > { %v835_v23 = vsub.f32 %v758_v16, %v6059_v20  ;;  %v836_v24 = vsub.f32 %v758_v16, %v6062_v21  ;;  %v6068_v25 = vrot.slane %v722_v17, %v6019_v6  ;;  %v762_v27 = vrot.slane %v694_v18, %v6034_v10  ;;  %v6127_v12 = vld [vmem:[%s6052_s26 + $0x38] sm:$0xff] }
  0x1f   : > { %v766_v28 = vrot.slane %v702_v19, %v6034_v10  ;;  %v704_v42 = vcombine.high %v694_v18, %v694_v18  ;;  %v774_v48 = vrot.slane %v687_v36, %v6034_v10  ;;  %v6106_v53 = vrot.slane %v673_v39, %v6019_v6  ;;  %v6134_v19 = vld [vmem:[%s6052_s26 + $0x68] sm:$0xff] }
  0x20   : > { %v867_v29 = vmul.f32 %v835_v23, %v835_v23  ;;  %v868_v30 = vmul.f32 %v836_v24, %v836_v24  ;;  %v754_v31 = vcombine.high %v6068_v25, %v6068_v25  ;;  %v837_v32 = vsub.f32 %v762_v27, %v6071_v26 }
  0x21   : > { %v839_v40 = vsub.f32 %v766_v28, %v6079_v33  ;;  %v838_v51 = vsub.f32 %v762_v27, %v6092_v41  ;;  %v840_v54 = vsub.f32 %v766_v28, %v6098_v47  ;;  %v770_v58 = vrot.slane %v704_v42, %v6034_v10  ;;  %v6139_v27 = vld [vmem:[%s6052_s26 + $0x40] sm:$0xff]  ;;  %v6151_v42 = vld [vmem:[%s6052_s26 + $0x50] sm:$0xff] }
  0x22   : > { %v900_v37 = vsel %vm899_vm0, %v867_v29, 0.0  ;;  %v818_v38 = vrot.slane %v754_v31, %v6034_v10  ;;  %v903_v43 = vsel %vm899_vm0, %v868_v30, 0.0  ;;  %v869_v45 = vmul.f32 %v837_v32, %v837_v32  ;;  %v6145_v32 = vld [vmem:[%s6052_s26 + $0x80] sm:$0xff] }
  0x23   : > { %901 = vadd.xlane.f32.xlu1 %v900_v37  ;;  %v871_v57 = vmul.f32 %v839_v40, %v839_v40  ;;  %v844_v59 = vsub.f32 %v774_v48, %v6103_v52  ;;  %v870_v63 = vmul.f32 %v838_v51, %v838_v51  ;;  %v778_v0 = vrot.slane %v6106_v53, %v6034_v10 }
  0x24   : > { %v865_v44 = vsub.f32 %v818_v38, %v6082_v34  ;;  %v866_v46 = vsub.f32 %v818_v38, %v6085_v35  ;;  %v906_v56 = vsel %vm899_vm0, %v869_v45, 0.0  ;;  %v703_v1 = vcombine.high %v687_v36, %v687_v36 }
  0x25   : > { %v912_v5 = vsel %vm899_vm0, %v871_v57, 0.0  ;;  %v872_v9 = vmul.f32 %v840_v54, %v840_v54  ;;  %v841_v11 = vsub.f32 %v770_v58, %v6114_v60  ;;  %v909_v15 = vsel %vm899_vm0, %v870_v63, 0.0 }
  0x26   : > { %v897_v49 = vmul.f32 %v865_v44, %v865_v44  ;;  %v898_v50 = vmul.f32 %v866_v46, %v866_v46  ;;  %v876_v16 = vmul.f32 %v844_v59, %v844_v59  ;;  %v846_v17 = vsub.f32 %v778_v0, %v6122_v2  ;;  %v6156_v46 = vld [vmem:[%s6052_s26 + $0x88] sm:$0xff] }
  0x27   : > { %904 = vadd.xlane.f32.xlu1 %v903_v43  ;;  %v782_v18 = vrot.slane %v703_v1, %v6034_v10  ;;  %v915_v22 = vsel %vm899_vm0, %v872_v9, 0.0  ;;  %v873_v23 = vmul.f32 %v841_v11, %v841_v11  ;;  %v842_v24 = vsub.f32 %v770_v58, %v6127_v12 }
  0x28   : > { %v990_v55 = vsel %vm899_vm0, %v897_v49, 0.0  ;;  %v993_v62 = vsel %vm899_vm0, %v898_v50, 0.0  ;;  %v790_v28 = vrot.slane %v729_v13, %v6034_v10  ;;  %v927_v29 = vsel %vm899_vm0, %v876_v16, 0.0  ;;  %v6181_v16 = vld [vmem:[%s6052_s26 + $0xa8] sm:$0xff] }
  0x29   : > { %991 = vadd.xlane.f32.xlu0 %v990_v55  ;;  %v878_v30 = vmul.f32 %v846_v17, %v846_v17  ;;  %v848_v31 = vsub.f32 %v782_v18, %v6134_v19  ;;  %v721_v36 = vcombine.high %v713_v61, %v713_v61  ;;  %v918_v37 = vsel %vm899_vm0, %v873_v23, 0.0  ;;  %v6163_v55 = vld [vmem:[%s6052_s26 + $0x60] sm:$0xff]  ;;  %v6169_v61 = vld [vmem:[%s6052_s26 + $0x98] sm:$0xff] }
  0x2a   : > { %v874_v38 = vmul.f32 %v842_v24, %v842_v24  ;;  %v843_v39 = vsub.f32 %v774_v48, %v6139_v27  ;;  %v851_v40 = vsub.f32 %v790_v28, %v6145_v32  ;;  %v845_v51 = vsub.f32 %v778_v0, %v6151_v42  ;;  %v6186_v23 = vld [vmem:[%s6052_s26 + $0x78] sm:$0xff] }
  0x2b   : > { %907 = vadd.xlane.f32.xlu1 %v906_v56  ;;  %v933_v43 = vsel %vm899_vm0, %v878_v30, 0.0  ;;  %v880_v44 = vmul.f32 %v848_v31, %v848_v31  ;;  %v743_v45 = vrot.slane %v721_v36, %v6019_v6  ;;  %v705_v48 = vcombine.high %v6106_v53, %v6106_v53  ;;  %v6192_v31 = vld [vmem:[%s6052_s26 + $0xb8] sm:$0xff] }
  0x2c   : > { %v921_v49 = vsel %vm899_vm0, %v874_v38, 0.0  ;;  %v875_v50 = vmul.f32 %v843_v39, %v843_v39  ;;  %v883_v54 = vmul.f32 %v851_v40, %v851_v40  ;;  %v852_v57 = vsub.f32 %v790_v28, %v6156_v46  ;;  %v6197_v39 = vld [vmem:[%s6052_s26 + $0x90] sm:$0xff] }
  0x2d   : > { %994 = vadd.xlane.f32.xlu0 %v993_v62  ;;  %v939_v56 = vsel %vm899_vm0, %v880_v44, 0.0  ;;  %v794_v58 = vrot.slane %v743_v45, %v6034_v10  ;;  %v751_v59 = vcombine.high %v729_v13, %v729_v13  ;;  %v877_v63 = vmul.f32 %v845_v51, %v845_v51  ;;  %v6204_v51 = vld [vmem:[%s6052_s26 + $0xa0] sm:$0xff] }
  0x2e   : > { %v924_v62 = vsel %vm899_vm0, %v875_v50, 0.0  ;;  %v847_v53 = vsub.f32 %v782_v18, %v6163_v55  ;;  %v786_v0 = vrot.slane %v705_v48, %v6034_v10  ;;  %v948_v1 = vsel %vm899_vm0, %v883_v54, 0.0 }
  0x2f   : > { %913 = vadd.xlane.f32.xlu1 %v912_v5  ;;  %v6176_v5 = vld [vmem:[%s6052_s26 + $0x70] sm:$0xff]  ;;  %v884_v9 = vmul.f32 %v852_v57, %v852_v57  ;;  %v854_v11 = vsub.f32 %v794_v58, %v6169_v61  ;;  %v798_v13 = vrot.slane %v751_v59, %v6034_v10  ;;  %v930_v17 = vsel %vm899_vm0, %v877_v63, 0.0 }
  0x30   : > { %v879_v18 = vmul.f32 %v847_v53, %v847_v53  ;;  %v850_v38 = vsub.f32 %v786_v0, %v6186_v23  ;;  %v853_v50 = vsub.f32 %v794_v58, %v6197_v39 }
  0x31   : > { %910 = vadd.xlane.f32.xlu0 %v909_v15  ;;  %v753_v15 = vcombine.high %v743_v45, %v743_v45  ;;  %v951_v24 = vsel %vm899_vm0, %v884_v9, 0.0  ;;  %v886_v28 = vmul.f32 %v854_v11, %v854_v11  ;;  %v855_v59 = vsub.f32 %v798_v13, %v6204_v51 }
  0x32   : > { %v936_v36 = vsel %vm899_vm0, %v879_v18, 0.0  ;;  %v885_v57 = vmul.f32 %v853_v50, %v853_v50 }
  0x33   : > { %916 = vadd.xlane.f32.xlu1 %v915_v22  ;;  %v849_v22 = vsub.f32 %v786_v0, %v6176_v5  ;;  %v802_v30 = vrot.slane %v753_v15, %v6034_v10  ;;  %v957_v40 = vsel %vm899_vm0, %v886_v28, 0.0  ;;  %v887_v53 = vmul.f32 %v855_v59, %v855_v59 }
  0x34   : > { %v954_v58 = vsel %vm899_vm0, %v885_v57, 0.0  ;;  %v736_v15 = vrot.slane %v6044_v14, %v6019_v6  ;;  %v6252_v14 = vld [vmem:[%s6052_s26 + $0xe8] sm:$0xff] }
  0x35   : > { %928 = vadd.xlane.f32.xlu0 %v927_v29  ;;  %v856_v29 = vsub.f32 %v798_v13, %v6181_v16  ;;  %v858_v44 = vsub.f32 %v802_v30, %v6192_v31  ;;  %v8822_v13 = vmov 1   ;;  %8913 = vst [vmem:[#allocation3_spill] sm:$0xff] %v6252_v14 }
  0x36   : > { %v752_v18 = vcombine.high %v736_v15, %v736_v15 }
  0x37   : > { %919 = vadd.xlane.f32.xlu1 %v918_v37  ;;  %v881_v37 = vmul.f32 %v849_v22, %v849_v22  ;;  %v890_v54 = vmul.f32 %v858_v44, %v858_v44  ;;  %v6244_v22 = vld [vmem:[%s6052_s26 + $0xd0] sm:$0xff] }
  0x38   : > { %v6248_v28 = vrot.slane %v752_v18, %v6034_v10 }
  0x39   : > { %934 = vadd.xlane.f32.xlu0 %v933_v43  ;;  %v888_v43 = vmul.f32 %v856_v29, %v856_v29  ;;  %v942_v45 = vsel %vm899_vm0, %v881_v37, 0.0  ;;  %v969_v63 = vsel %vm899_vm0, %v890_v54, 0.0 }
  0x3b   : > { %922 = vadd.xlane.f32.xlu1 %v921_v49  ;;  %v882_v49 = vmul.f32 %v850_v38, %v850_v38  ;;  %v963_v48 = vsel %vm899_vm0, %v888_v43, 0.0  ;;  %v6263_v43 = vld [vmem:[%s6052_s26 + $0xc0] sm:$0xff] }
  0x3d   : > { %940 = vadd.xlane.f32.xlu0 %v939_v56  ;;  %v945_v56 = vsel %vm899_vm0, %v882_v49, 0.0  ;;  %v6269_v49 = vld [vmem:[%s6052_s26 + $0xc8] sm:$0xff] }
  0x3f   : > { %925 = vadd.xlane.f32.xlu1 %v924_v62  ;;  %v6210_v62 = vld [vmem:[%s6052_s26 + $0xb0] sm:$0xff] }
  0x40   : > { %v857_v0 = vsub.f32 %v802_v30, %v6210_v62 }
  0x41   : > { %949 = vadd.xlane.f32.xlu0 %v948_v1  ;;  %v960_v1 = vsel %vm899_vm0, %v887_v53, 0.0 }
  0x42   : > { %v889_v9 = vmul.f32 %v857_v0, %v857_v0 }
  0x43   : > { %931 = vadd.xlane.f32.xlu1 %v930_v17  ;;  %v810_v17 = vrot.slane %v6068_v25, %v6034_v10  ;;  %v864_v25 = vsub.f32 %v6248_v28, %v6252_v14 }
  0x44   : > { %v966_v11 = vsel %vm899_vm0, %v889_v9, 0.0 }
  0x45   : > { %952 = vadd.xlane.f32.xlu0 %v951_v24  ;;  %v861_v24 = vsub.f32 %v810_v17, %v6244_v22 }
  0x47   : > { %937 = vadd.xlane.f32.xlu1 %v936_v36  ;;  %v893_v29 = vmul.f32 %v861_v24, %v861_v24  ;;  %v896_v36 = vmul.f32 %v864_v25, %v864_v25 }
  0x49   : > { %958 = vadd.xlane.f32.xlu0 %v957_v40  ;;  %v978_v30 = vsel %vm899_vm0, %v893_v29, 0.0  ;;  %v987_v37 = vsel %vm899_vm0, %v896_v36, 0.0  ;;  %v806_v40 = vrot.slane %v736_v15, %v6034_v10 }
  0x4b   : > { %943 = vadd.xlane.f32.xlu1 %v942_v45  ;;  %v859_v45 = vsub.f32 %v806_v40, %v6263_v43  ;;  %v860_v54 = vsub.f32 %v806_v40, %v6269_v49 }
  0x4d   : > { %964 = vadd.xlane.f32.xlu0 %v963_v48  ;;  %v891_v48 = vmul.f32 %v859_v45, %v859_v45 }
  0x4f   : > { %946 = vadd.xlane.f32.xlu1 %v945_v56  ;;  %v6275_v56 = vld [vmem:[%s6052_s26 + $0xd8] sm:$0xff] }
  0x50   : > { %v862_v53 = vsub.f32 %v810_v17, %v6275_v56 }
  0x51   : > { %970 = vadd.xlane.f32.xlu0 %v969_v63  ;;  %v972_v63 = vsel %vm899_vm0, %v891_v48, 0.0 }
  0x52   : > { %v894_v9 = vmul.f32 %v862_v53, %v862_v53 }
  0x53   : > { %955 = vadd.xlane.f32.xlu1 %v954_v58  ;;  %v892_v58 = vmul.f32 %v860_v54, %v860_v54 }
  0x54   : > { %v981_v18 = vsel %vm899_vm0, %v894_v9, 0.0  ;;  %v8828_v9 = vmov 0  }
  0x57   : > { %961 = vadd.xlane.f32.xlu1 %v960_v1  ;;  %v975_v1 = vsel %vm899_vm0, %v892_v58, 0.0 }
  0x5b   : > { %967 = vadd.xlane.f32.xlu1 %v966_v11 }
  0x67   : > { %1255 = vperm.xlu0 %5556, %v6029_v8  }
  0x6b   : > { %1251 = vperm.xlu0 %5556, %v6027_v7  }
  0x6c   : > { %1659 = vperm.xlu1 %5555, %v6059_v20  }
  0x6f   : > { %1779 = vperm.xlu0 %5556, %v6082_v34  }
  0x70   : > { %1663 = vperm.xlu1 %5555, %v6062_v21  }
  0x73   : > { %1783 = vperm.xlu0 %5556, %v6085_v35  }
  0x74   : > { %1671 = vperm.xlu1 %5555, %v6092_v41  }
  0x77   : > { %1667 = vperm.xlu0 %5556, %v6071_v26  }
  0x78   : > { %1675 = vperm.xlu1 %5555, %v6079_v33  }
  0x7b   : > { %1683 = vperm.xlu0 %5556, %v6114_v60  }
  0x7c   : > { %1679 = vperm.xlu1 %5555, %v6098_v47  }
  0x7f   : > { %1687 = vperm.xlu0 %5556, %v6127_v12  }
  0x80   : > { %1691 = vperm.xlu1 %5555, %v6139_v27  }
  0x83   : > { %1723 = vperm.xlu0 %5556, %v6145_v32  }
  0x84   : > { %1695 = vperm.xlu1 %5555, %v6103_v52  }
  0x87   : > { %1727 = vperm.xlu0 %5556, %v6156_v46  }
  0x88   : > { %1699 = vperm.xlu1 %5555, %v6151_v42  }
  0x8b   : > { %5560 = vset.pattern.permute.xlu0 %v8822_v13 }
  0x8c   : > { %1703 = vperm.xlu1 %5555, %v6122_v2  }
  0x90   : > { %1707 = vperm.xlu1 %5555, %v6163_v55  }
  0x94   : > { %1711 = vperm.xlu1 %5555, %v6134_v19  }
  0x98   : > { %1715 = vperm.xlu1 %5555, %v6176_v5  }
  0x9c   : > { %1719 = vperm.xlu1 %5555, %v6186_v23  }
  0xa0   : > { %5557 = vset.pattern.permute.xlu1 %v8822_v13 }
  0xa6   : > { %979 = vadd.xlane.f32.xlu0 %v978_v30 }
  0xaa   : > { %988 = vadd.xlane.f32.xlu0 %v987_v37 }
  0xb0   : > { %v6259_v38 = vpop.xlane.xlu1 %901 }
  0xb1   : > { %5579 = vrsqrt.f32 %v6259_v38  ;;  %vm998_vm2 = vcmp.eq.f32.partialorder %v6259_v38, inf  ;;  %vm1000_vm3 = vcmp.eq.f32.partialorder %v6259_v38, 0.0 }
  0xb4   : > { %v6265_v44 = vpop.xlane.xlu1 %904 }
  0xb5   : > { %5581 = vrsqrt.f32 %v6265_v44  ;;  %vm1005_vm1 = vcmp.eq.f32.partialorder %v6265_v44, inf  ;;  %vm1007_vm5 = vcmp.eq.f32.partialorder %v6265_v44, 0.0 }
  0xb6   : > { %v6277_v57 = vpop.xlane.xlu0 %991 }
  0xb7   : > { %vm1208_vm14 = vcmp.eq.f32.partialorder %v6277_v57, inf }
  0xb8   : > { %v6271_v50 = vpop.xlane.xlu1 %907 }
  0xb9   : > { %5583 = vrsqrt.f32 %v6271_v50  ;;  %vm1012_vm4 = vcmp.eq.f32.partialorder %v6271_v50, inf  ;;  %vm1014_vm6 = vcmp.eq.f32.partialorder %v6271_v50, 0.0 }
  0xba   : > { %v6287_v11 = vpop.xlane.xlu0 %994 }
  0xbb   : > { %vm1215_vm8 = vcmp.eq.f32.partialorder %v6287_v11, inf }
  0xbc   : > { %v6279_v59 = vpop.xlane.xlu1 %913 }
  0xbd   : > { %5585 = vrsqrt.f32 %v6279_v59  ;;  %vm1026_vm7 = vcmp.eq.f32.partialorder %v6279_v59, inf  ;;  %vm1028_vm9 = vcmp.eq.f32.partialorder %v6279_v59, 0.0 }
  0xbe   : > { %v6293_v24 = vpop.xlane.xlu0 %910  ;;  %5587 = vrsqrt.f32 %v6277_v57 }
  0xbf   : > { %5589 = vrsqrt.f32 %v6293_v24  ;;  %vm1019_vm10 = vcmp.eq.f32.partialorder %v6293_v24, inf }
  0xc0   : > { %v6283_v0 = vpop.xlane.xlu1 %916  ;;  %1239 = vperm.xlu0 %5560, %v6029_v8   ;;  %973 = vadd.xlane.f32.xlu1 %v972_v63 }
  0xc1   : > { %5591 = vrsqrt.f32 %v6283_v0  ;;  %vm1033_vm11 = vcmp.eq.f32.partialorder %v6283_v0, inf  ;;  %vm1035_vm12 = vcmp.eq.f32.partialorder %v6283_v0, 0.0 }
  0xc2   : > { %v6299_v29 = vpop.xlane.xlu0 %928  ;;  %5593 = vrsqrt.f32 %v6287_v11 }
  0xc3   : > { %5595 = vrsqrt.f32 %v6299_v29  ;;  %vm1061_vm13 = vcmp.eq.f32.partialorder %v6299_v29, inf }
  0xc4   : > { %1583 = vperm.xlu0 %5560, %v6082_v34   ;;  %976 = vadd.xlane.f32.xlu1 %v975_v1  ;;  %v6290_v15 = vpop.xlane.xlu1 %919 }
  0xc5   : > { %5597 = vrsqrt.f32 %v6290_v15  ;;  %vm1040_vm15 = vcmp.eq.f32.partialorder %v6290_v15, inf }
  0xc6   : > { %v6304_v30 = vpop.xlane.xlu0 %934 }
  0xc8   : > { %1463 = vperm.xlu0 %5560, %v6059_v20   ;;  %982 = vadd.xlane.f32.xlu1 %v981_v18  ;;  %v6296_v17 = vpop.xlane.xlu1 %922 }
  0xca   : > { %v6311_v37 = vpop.xlane.xlu0 %940 }
  0xcc   : > { %1467 = vperm.xlu0 %5560, %v6062_v21   ;;  %v6302_v25 = vpop.xlane.xlu1 %925 }
  0xcd   : > { %5599 = vrsqrt.f32 %v6302_v25 }
  0xce   : > { %v6317_v45 = vpop.xlane.xlu0 %949  ;;  %5601 = vrsqrt.f32 %v6304_v30 }
  0xcf   : > { %5603 = vrsqrt.f32 %v6296_v17 }
  0xd0   : > { %1471 = vperm.xlu0 %5560, %v6071_v26   ;;  %v6307_v36 = vpop.xlane.xlu1 %931  ;;  %5605 = vrsqrt.f32 %v6311_v37 }
  0xd1   : > { %5607 = vrsqrt.f32 %v6317_v45 }
  0xd2   : > { %v6325_v54 = vpop.xlane.xlu0 %952  ;;  %5609 = vrsqrt.f32 %v6307_v36 }
  0xd4   : > { %1479 = vperm.xlu0 %5560, %v6079_v33   ;;  %v6314_v40 = vpop.xlane.xlu1 %937 }
  0xd6   : > { %v6331_v58 = vpop.xlane.xlu0 %958 }
  0xd8   : > { %1491 = vperm.xlu0 %5560, %v6127_v12   ;;  %v6321_v48 = vpop.xlane.xlu1 %943 }
  0xd9   : > { %1235 = vperm.xlu1 %5557, %v6027_v7  }
  0xda   : > { %v6339_v1 = vpop.xlane.xlu0 %964 }
  0xdb   : > { %8915 = vst [vmem:[#allocation5_spill] sm:$0xff] %v6339_v1 }
  0xdc   : > { %1499 = vperm.xlu0 %5560, %v6103_v52   ;;  %v6328_v63 = vpop.xlane.xlu1 %946 }
  0xdd   : > { %1587 = vperm.xlu1 %5557, %v6085_v35  }
  0xde   : > { %v6346_v13 = vpop.xlane.xlu0 %970 }
  0xdf   : > { %8917 = vst [vmem:[#allocation7_spill] sm:$0xff] %v6346_v13 }
  0xe0   : > { %1511 = vperm.xlu0 %5560, %v6163_v55   ;;  %v6335_v53 = vpop.xlane.xlu1 %955 }
  0xe1   : > { %1475 = vperm.xlu1 %5557, %v6092_v41   ;;  %8914 = vst [vmem:[#allocation4_spill] sm:$0xff] %v6335_v53 }
  0xe4   : > { %1527 = vperm.xlu0 %5560, %v6145_v32   ;;  %v6342_v18 = vpop.xlane.xlu1 %961 }
  0xe5   : > { %1483 = vperm.xlu1 %5557, %v6098_v47   ;;  %8916 = vst [vmem:[#allocation6_spill] sm:$0xff] %v6342_v18  ;;  %v8925_v18 = vmov 0  }
  0xe6   : > { %v6354_v6 = vpop.permute.xlu0 %1255 }
  0xe8   : > { %1543 = vperm.xlu0 %5560, %v6204_v51   ;;  %v6350_v3 = vpop.xlane.xlu1 %967 }
  0xe9   : > { %1487 = vperm.xlu1 %5557, %v6114_v60   ;;  %8918 = vst [vmem:[#allocation8_spill] sm:$0xff] %v6350_v3 }
  0xec   : > { %1547 = vperm.xlu0 %5560, %v6181_v16  }
  0xed   : > { %1495 = vperm.xlu1 %5557, %v6139_v27  }
  0xf0   : > { %1555 = vperm.xlu0 %5560, %v6192_v31  }
  0xf1   : > { %1503 = vperm.xlu1 %5557, %v6151_v42  }
  0xf4   : > { %5565 = vset.pattern.permute.xlu0 %v8828_v9  ;;  %v6356_v9 = vpop.permute.xlu1 %1659 }
  0xf5   : > { %1418 = vperm.xlu0 %5565, %v6082_v34   ;;  %1507 = vperm.xlu1 %5557, %v6122_v2   ;;  %v6360_v34 = vpop.permute.xlu0 %1251 }
  0xf9   : > { %1423 = vperm.xlu0 %5565, %v6085_v35   ;;  %1515 = vperm.xlu1 %5557, %v6134_v19   ;;  %v6364_v35 = vpop.permute.xlu1 %1663 }
  0xfa   : > { %8919 = vst [vmem:[#allocation9_spill] sm:$0xff] %v6364_v35 }
  0xfd   : > { %1268 = vperm.xlu0 %5565, %v6059_v20   ;;  %1519 = vperm.xlu1 %5557, %v6176_v5   ;;  %v6368_v20 = vpop.permute.xlu0 %1779  ;;  %v6370_v3 = vpop.permute.xlu1 %1671 }
  0xfe   : > { %8920 = vst [vmem:[#allocation10_spill] sm:$0xff] %v6370_v3 }
 0x101   : > { %1278 = vperm.xlu0 %5565, %v6071_v26   ;;  %1523 = vperm.xlu1 %5557, %v6186_v23   ;;  %v6374_v26 = vpop.permute.xlu0 %1783  ;;  %v6379_v13 = vpop.permute.xlu1 %1675 }
 0x102   : > { %8922 = vst [vmem:[#allocation11_spill] sm:$0xff] %v6379_v13 }
 0x105   : > { %1298 = vperm.xlu0 %5565, %v6114_v60   ;;  %1531 = vperm.xlu1 %5557, %v6156_v46   ;;  %v8921_v60 = vmov 2  }
 0x109   : > { %1303 = vperm.xlu0 %5565, %v6127_v12   ;;  %1535 = vperm.xlu1 %5557, %v6197_v39   ;;  %v6382_v12 = vpop.permute.xlu0 %1667 }
 0x10a   : > { %8923 = vst [vmem:[#allocation12_spill] sm:$0xff] %v6382_v12 }
 0x10d   : > { %1318 = vperm.xlu0 %5565, %v6151_v42   ;;  %1539 = vperm.xlu1 %5557, %v6169_v61   ;;  %v6385_v42 = vpop.permute.xlu1 %1679 }
 0x10e   : > { %8924 = vst [vmem:[#allocation13_spill] sm:$0xff] %v6385_v42  ;;  %v6406_v42 = vld [vmem:[%s6052_s26 + $0xe0] sm:$0xff] }
 0x111   : > { %1328 = vperm.xlu0 %5565, %v6163_v55   ;;  %5558 = vset.pattern.permute.xlu1 %v8921_v60  ;;  %v6389_v55 = vpop.permute.xlu0 %1683  ;;  %v6392_v3 = vpop.permute.xlu1 %1691 }
 0x112   : > { %1731 = vperm.xlu1 %5558, %v6197_v39   ;;  %8926 = vst [vmem:[#allocation14_spill] sm:$0xff] %v6392_v3 }
 0x115   : > { %1338 = vperm.xlu0 %5565, %v6176_v5   ;;  %v6395_v5 = vpop.permute.xlu0 %1687  ;;  %v6397_v13 = vpop.permute.xlu1 %1695 }
 0x116   : > { %1735 = vperm.xlu1 %5558, %v6169_v61   ;;  %8927 = vst [vmem:[#allocation15_spill] sm:$0xff] %v6395_v5  ;;  %8928 = vst [vmem:[#allocation16_spill] sm:$0xff] %v6397_v13 }
 0x119   : > { %1348 = vperm.xlu0 %5565, %v6145_v32   ;;  %v6400_v12 = vpop.permute.xlu0 %1723  ;;  %v6403_v32 = vpop.permute.xlu1 %1699 }
 0x11a   : > { %5559 = vset.pattern.permute.xlu1 %v8925_v18  ;;  %8929 = vst [vmem:[#allocation17_spill] sm:$0xff] %v6400_v12  ;;  %8930 = vst [vmem:[#allocation18_spill] sm:$0xff] %v6403_v32 }
 0x11d   : > { %1353 = vperm.xlu0 %5565, %v6156_v46   ;;  %v6408_v35 = vpop.permute.xlu0 %1727  ;;  %v863_v46 = vsub.f32 %v6248_v28, %v6406_v42 }
 0x11f   : > { %v895_v12 = vmul.f32 %v863_v46, %v863_v46 }
 0x121   : > { %1363 = vperm.xlu0 %5565, %v6169_v61   ;;  %v6413_v61 = vpop.permute.xlu1 %1703  ;;  %v984_v3 = vsel %vm899_vm0, %v895_v12, 0.0  ;;  %vm1075_vm0 = vcmp.eq.f32.partialorder %v6304_v30, inf }
 0x122   : > { %8931 = vst [vmem:[#allocation19_spill] sm:$0xff] %v6413_v61 }
 0x125   : > { %1368 = vperm.xlu0 %5565, %v6204_v51   ;;  %v6420_v32 = vpop.permute.xlu1 %1707 }
 0x126   : > { %8933 = vst [vmem:[#allocation21_spill] sm:$0xff] %v6420_v32 }
 0x129   : > { %1393 = vperm.xlu0 %5565, %v6269_v49   ;;  %v6426_v28 = vpop.permute.xlu1 %1711 }
 0x12a   : > { %8935 = vst [vmem:[#allocation23_spill] sm:$0xff] %v6426_v28 }
 0x12d   : > { %1403 = vperm.xlu0 %5565, %v6275_v56   ;;  %v6432_v46 = vpop.permute.xlu1 %1715 }
 0x131   : > { %1413 = vperm.xlu0 %5565, %v6252_v14   ;;  %v6438_v12 = vpop.permute.xlu1 %1719 }
 0x132   : > { %8938 = vst [vmem:[#allocation26_spill] sm:$0xff] %v6438_v12 }
 0x133   : > { %v6416_v13 = vpop.xlane.xlu0 %979 }
 0x134   : > { %8932 = vst [vmem:[#allocation20_spill] sm:$0xff] %v6416_v13 }
 0x135   : > { %5575 = vset.pattern.permute.xlu0 %v8921_v60 }
 0x136   : > { %1751 = vperm.xlu0 %5575, %v6192_v31  }
 0x137   : > { %v6423_v5 = vpop.xlane.xlu0 %988 }
 0x138   : > { %8934 = vst [vmem:[#allocation22_spill] sm:$0xff] %v6423_v5 }
 0x13a   : > { %985 = vadd.xlane.f32.xlu1 %v984_v3  ;;  %1759 = vperm.xlu0 %5575, %v6269_v49  }
 0x13e   : > { %1767 = vperm.xlu0 %5575, %v6275_v56  }
 0x13f   : > { %v6429_v61 = vpop.permute.xlu0 %1239 }
 0x140   : > { %8936 = vst [vmem:[#allocation24_spill] sm:$0xff] %v6429_v61 }
 0x142   : > { %1775 = vperm.xlu0 %5575, %v6252_v14  }
 0x143   : > { %v6434_v13 = vpop.permute.xlu0 %1583 }
 0x144   : > { %8937 = vst [vmem:[#allocation25_spill] sm:$0xff] %v6434_v13 }
 0x147   : > { %v6436_v32 = vpop.permute.xlu0 %1463 }
 0x14b   : > { %1225 = vperm.xlu1 %5559, %v6029_v8   ;;  %v6441_v3 = vpop.permute.xlu0 %1467 }
 0x14d   : > { %v6443_v5 = vpop.xlane.xlu1 %973 }
 0x14e   : > { %8939 = vst [vmem:[#allocation27_spill] sm:$0xff] %v6443_v5 }
 0x14f   : > { %1221 = vperm.xlu1 %5559, %v6027_v7   ;;  %v6446_v28 = vpop.permute.xlu0 %1471 }
 0x151   : > { %v6448_v61 = vpop.xlane.xlu1 %976 }
 0x152   : > { %8940 = vst [vmem:[#allocation28_spill] sm:$0xff] %v6448_v61 }
 0x153   : > { %1273 = vperm.xlu1 %5559, %v6062_v21   ;;  %v6451_v14 = vpop.permute.xlu0 %1479  ;;  %v2208_v21 = vld [vmem:[%s8815_s8] sm:$0xff] }
 0x155   : > { %v6453_v13 = vpop.xlane.xlu1 %982 }
 0x156   : > { %8941 = vst [vmem:[#allocation29_spill] sm:$0xff] %v6453_v13 }
 0x157   : > { %1283 = vperm.xlu1 %5559, %v6092_v41   ;;  %v6456_v12 = vpop.permute.xlu0 %1491  ;;  %v2209_v41 = vld [vmem:[%s8815_s8 + $0x8] sm:$0xff] }
 0x158   : > { %8942 = vst [vmem:[#allocation30_spill] sm:$0xff] %v6456_v12  ;;  %v5419_v13 = vpack.c.bf16 %v2209_v41, %v2208_v21 }
 0x159   : > { %v6458_v8 = vpop.permute.xlu1 %1235 }
 0x15a   : > { %8943 = vst [vmem:[#allocation31_spill] sm:$0xff] %v6458_v8  ;;  %5420 = vmatprep.subr.bf16.mxu0 %v5419_v13  ;;  %5443 = vmatprep.subr.bf16.mxu1 %v5419_v13 }
 0x15b   : > { %1288 = vperm.xlu1 %5559, %v6079_v33   ;;  %v6461_v5 = vpop.permute.xlu0 %1499  ;;  %5422 = vmatpush3.bf16.msra.mxu0 %v5419_v13 }
 0x15c   : > { %8944 = vst [vmem:[#allocation32_spill] sm:$0xff] %v6461_v5  ;;  %5444 = vmatpush3.bf16.msra.mxu1 %v5419_v13 }
 0x15d   : > { %v1588_v7 = vpop.permute.xlu1 %1587 }
 0x15f   : > { %1293 = vperm.xlu1 %5559, %v6098_v47   ;;  %v6464_v61 = vpop.permute.xlu0 %1511 }
 0x160   : > { %8945 = vst [vmem:[#allocation33_spill] sm:$0xff] %v6464_v61  ;;  %v2212_v61 = vld [vmem:[%s8817_s10] sm:$0xff] }
 0x161   : > { %v6475_v33 = vpop.permute.xlu1 %1475 }
 0x162   : > { %8947 = vst [vmem:[#allocation35_spill] sm:$0xff] %v6475_v33 }
 0x163   : > { %1308 = vperm.xlu1 %5559, %v6139_v27   ;;  %v6473_v8 = vpop.permute.xlu0 %1527  ;;  %v2213_v27 = vld [vmem:[%s8817_s10 + $0x8] sm:$0xff] }
 0x164   : > { %8946 = vst [vmem:[#allocation34_spill] sm:$0xff] %v6473_v8  ;;  %v6486_v21 = vpack.c.bf16 %v2213_v27, %v2212_v61  ;;  %v8840_v8 = vsub.s32 1, %v6014_v4  ;;  %v652_v61 = vld [vmem:[%s8811_s4] sm:$0x7] }
 0x165   : > { %v6488_v41 = vpop.permute.xlu1 %1483 }
 0x166   : > { %8949 = vst [vmem:[#allocation37_spill] sm:$0xff] %v6486_v21  ;;  %8950 = vst [vmem:[#allocation38_spill] sm:$0xff] %v6488_v41  ;;  %5428 = vmatprep.subr.bf16.mxu1 %v6486_v21  ;;  %v1260_v21 = vsub.s32 2, %v6014_v4 }
 0x167   : > { %1313 = vperm.xlu1 %5559, %v6103_v52   ;;  %v6478_v47 = vpop.permute.xlu0 %1543 }
 0x168   : > { %8948 = vst [vmem:[#allocation36_spill] sm:$0xff] %v6478_v47 }
 0x169   : > { %v1488_v47 = vpop.permute.xlu1 %1487 }
 0x16b   : > { %1323 = vperm.xlu1 %5559, %v6122_v2   ;;  %v6492_v13 = vpop.permute.xlu0 %1547  ;;  %v6507_v2 = vrot.slane %v652_v61, %v8840_v8 }
 0x16c   : > { %8951 = vst [vmem:[#allocation39_spill] sm:$0xff] %v6492_v13  ;;  %v6515_v13 = vrot.slane %v652_v61, %v1260_v21 }
 0x16d   : > { %v1625_v41 = vmul.f32 %v6507_v2, %v1588_v7 }
 0x16e   : > { %v1821_v5 = vmul.f32 %v6515_v13, %v6374_v26  ;;  %v1600_v26 = vmul.f32 %v6507_v2, %v1488_v47 }
 0x16f   : > { %1333 = vperm.xlu1 %5559, %v6134_v19   ;;  %v6495_v52 = vpop.permute.xlu0 %1555  ;;  %v6509_v19 = vpop.permute.xlu1 %1495 }
 0x170   : > { %8952 = vst [vmem:[#allocation40_spill] sm:$0xff] %v6495_v52  ;;  %8954 = vst [vmem:[#allocation42_spill] sm:$0xff] %v6509_v19  ;;  %v6512_v52 = vrot.slane %v652_v61, %v6034_v10 }
 0x173   : > { %1343 = vperm.xlu1 %5559, %v6186_v23   ;;  %v6522_v8 = vpop.permute.xlu1 %1503 }
 0x174   : > { %v6502_v27 = vpop.permute.xlu0 %1418  ;;  %8955 = vst [vmem:[#allocation43_spill] sm:$0xff] %v6522_v8  ;;  %v1001_v8 = vand.u32 2147483648, %v6259_v38 }
 0x175   : > { %8953 = vst [vmem:[#allocation41_spill] sm:$0xff] %v6502_v27 }
 0x177   : > { %1358 = vperm.xlu1 %5559, %v6197_v39   ;;  %v6532_v7 = vpop.permute.xlu1 %1507 }
 0x178   : > { %v1424_v23 = vpop.permute.xlu0 %1423  ;;  %8958 = vst [vmem:[#allocation46_spill] sm:$0xff] %v6532_v7 }
 0x179   : > { %v1461_v33 = vmul.f32 %v6512_v52, %v1424_v23 }
 0x17b   : > { %v1657_v12 = vadd.f32 %v1625_v41, %v1461_v33  ;;  %1373 = vperm.xlu1 %5559, %v6181_v16   ;;  %v1796_v41 = vmul.f32 %v6515_v13, %v6389_v55 }
 0x17c   : > { %v6524_v19 = vpop.permute.xlu0 %1268 }
 0x17d   : > { %v6526_v27 = vadd.f32 %v1821_v5, %v1657_v12  ;;  %v6539_v12 = vpop.permute.xlu1 %1515 }
 0x17e   : > { %8959 = vst [vmem:[#allocation47_spill] sm:$0xff] %v6539_v12 }
 0x17f   : > { %8956 = vst [vmem:[#allocation44_spill] sm:$0xff] %v6526_v27  ;;  %5561 = vset.pattern.permute.xlu1 %v8921_v60 }
 0x180   : > { %v6529_v39 = vpop.permute.xlu0 %1278  ;;  %1739 = vperm.xlu1 %5561, %v6204_v51  }
 0x181   : > { %8957 = vst [vmem:[#allocation45_spill] sm:$0xff] %v6529_v39  ;;  %v6551_v47 = vpop.permute.xlu1 %1519 }
 0x182   : > { %8964 = vst [vmem:[#allocation51_spill] sm:$0xff] %v6551_v47 }
 0x184   : > { %v1299_v61 = vpop.permute.xlu0 %1298  ;;  %1743 = vperm.xlu1 %5561, %v6181_v16   ;;  %v8963_v16 = vmov 1  }
 0x185   : > { %v1436_v33 = vmul.f32 %v6512_v52, %v1299_v61  ;;  %v6560_v61 = vpop.permute.xlu1 %1523 }
 0x186   : > { %8966 = vst [vmem:[#allocation53_spill] sm:$0xff] %v6560_v61  ;;  %v6577_v61 = vld [vmem:[%s8810_s3] sm:$0x7] }
 0x187   : > { %v1632_v5 = vadd.f32 %v1600_v26, %v1436_v33  ;;  %v5580_v33 = vpop.eup %5579  ;;  %5611 = vrsqrt.f32 %v6314_v40 }
 0x188   : > { %v6541_v23 = vpop.permute.xlu0 %1303  ;;  %5562 = vset.pattern.permute.xlu1 %v8925_v18 }
 0x189   : > { %8960 = vst [vmem:[#allocation48_spill] sm:$0xff] %v6541_v23  ;;  %v6544_v51 = vadd.f32 %v1796_v41, %v1632_v5  ;;  %1378 = vperm.xlu1 %5562, %v6210_v62   ;;  %v5582_v5 = vpop.eup %5581  ;;  %v1532_v12 = vpop.permute.xlu1 %1531  ;;  %5613 = vrsqrt.f32 %v6321_v48 }
 0x18a   : > { %v1004_v7 = vmul.f32 %v5582_v5, %v6265_v44 }
 0x18b   : > { %8961 = vst [vmem:[#allocation49_spill] sm:$0xff] %v6544_v51 }
 0x18c   : > { %v6547_v27 = vpop.permute.xlu0 %1318 }
 0x18d   : > { %8962 = vst [vmem:[#allocation50_spill] sm:$0xff] %v6547_v27  ;;  %5563 = vset.pattern.permute.xlu1 %v8963_v16  ;;  %v1015_v27 = vand.u32 2147483648, %v6271_v50 }
 0x18e   : > { %1551 = vperm.xlu1 %5563, %v6210_v62  }
 0x190   : > { %v6555_v55 = vpop.permute.xlu0 %1328 }
 0x191   : > { %8965 = vst [vmem:[#allocation52_spill] sm:$0xff] %v6555_v55 }
 0x192   : > { %5564 = vset.pattern.permute.xlu1 %v8925_v18 }
 0x193   : > { %1383 = vperm.xlu1 %5564, %v6192_v31   ;;  %v997_v31 = vmul.f32 %v5580_v33, %v6259_v38  ;;  %v1611_v33 = vmul.f32 %v6507_v2, %v1532_v12 }
 0x194   : > { %v6562_v26 = vpop.permute.xlu0 %1338 }
 0x195   : > { %8967 = vst [vmem:[#allocation54_spill] sm:$0xff] %v6562_v26  ;;  %v1008_v26 = vand.u32 2147483648, %v6265_v44  ;;  %v999_v12 = vsel %vm998_vm2, %v6259_v38, %v997_v31  ;;  %v6614_v31 = vld [vmem:[%s8812_s5] ss:$0 sm:$0xff]  ;;  %vm1021_vm2 = vcmp.eq.f32.partialorder %v6293_v24, 0.0 }
 0x196   : > { %8970 = vst [vmem:[#allocation57_spill] sm:$0xff] %v6614_v31 }
 0x197   : > { %5566 = vset.pattern.permute.xlu1 %v8921_v60 }
 0x198   : > { %v6566_v41 = vpop.permute.xlu0 %1348  ;;  %1747 = vperm.xlu1 %5566, %v6210_v62   ;;  %v5584_v62 = vpop.eup %5583  ;;  %5615 = vrsqrt.f32 %v6325_v54 }
 0x199   : > { %8968 = vst [vmem:[#allocation55_spill] sm:$0xff] %v6566_v41  ;;  %v6582_v41 = vrot.slane %v6577_v61, %v1260_v21  ;;  %v1807_v21 = vmul.f32 %v6515_v13, %v6408_v35  ;;  %v5586_v55 = vpop.eup %5585  ;;  %v1006_v35 = vsel %vm1005_vm1, %v6265_v44, %v1004_v7  ;;  %vm1210_vm1 = vcmp.eq.f32.partialorder %v6277_v57, 0.0 }
 0x19a   : > { %v1025_v7 = vmul.f32 %v5586_v55, %v6279_v59  ;;  %v1009_v38 = vsel %vm1007_vm5, %v1008_v26, %v1006_v35  ;;  %5617 = vrsqrt.f32 %v6328_v63  ;;  %vm1042_vm5 = vcmp.eq.f32.partialorder %v6290_v15, 0.0 }
 0x19c   : > { %v1354_v51 = vpop.permute.xlu0 %1353  ;;  %5567 = vset.pattern.permute.xlu1 %v8925_v18  ;;  %v1027_v35 = vsel %vm1026_vm7, %v6279_v59, %v1025_v7  ;;  %vm1056_vm7 = vcmp.eq.f32.partialorder %v6302_v25, 0.0 }
 0x19d   : > { %v1447_v47 = vmul.f32 %v6512_v52, %v1354_v51  ;;  %1388 = vperm.xlu1 %5567, %v6263_v43   ;;  %v1011_v51 = vmul.f32 %v5584_v62, %v6271_v50  ;;  %v1002_v62 = vsel %vm1000_vm3, %v1001_v8, %v999_v12  ;;  %v1036_v12 = vand.u32 2147483648, %v6283_v0 }
 0x19e   : > { %vm1054_vm3 = vcmp.eq.f32.partialorder %v6302_v25, inf }
 0x19f   : > { %v1643_v5 = vadd.f32 %v1611_v33, %v1447_v47  ;;  %v5588_v33 = vpop.eup %5587  ;;  %v1013_v8 = vsel %vm1012_vm4, %v6271_v50, %v1011_v51  ;;  %v1022_v47 = vand.u32 2147483648, %v6293_v24  ;;  %v6643_v51 = vmul.f32 %v6614_v31, %v1009_v38 }
 0x1a0   : > { %v1207_v44 = vmul.f32 %v5588_v33, %v6277_v57  ;;  %5619 = vrsqrt.f32 %v6331_v58  ;;  %vm1217_vm4 = vcmp.eq.f32.partialorder %v6287_v11, 0.0 }
 0x1a1   : > { %v6600_v23 = vadd.f32 %v1807_v21, %v1643_v5  ;;  %5568 = vset.pattern.permute.xlu1 %v8963_v16  ;;  %v1029_v21 = vand.u32 2147483648, %v6279_v59  ;;  %v5590_v5 = vpop.eup %5589  ;;  %5621 = vrsqrt.f32 %v6335_v53 }
 0x1a2   : > { %1559 = vperm.xlu1 %5568, %v6263_v43   ;;  %v5592_v55 = vpop.eup %5591  ;;  %v1018_v26 = vmul.f32 %v5590_v5, %v6293_v24  ;;  %5623 = vrsqrt.f32 %v6339_v1 }
 0x1a3   : > { %8969 = vst [vmem:[#allocation56_spill] sm:$0xff] %v6600_v23  ;;  %v6634_v23 = vmul.f32 %v6614_v31, %v1002_v62  ;;  %v5594_v39 = vpop.eup %5593  ;;  %v1016_v62 = vsel %vm1014_vm6, %v1015_v27, %v1013_v8  ;;  %v1032_v33 = vmul.f32 %v5592_v55, %v6283_v0  ;;  %v8971_v27 = vsub.s32 1, %v6014_v4 }
 0x1a4   : > { %v1214_v38 = vmul.f32 %v5594_v39, %v6287_v11  ;;  %v1030_v8 = vsel %vm1028_vm9, %v1029_v21, %v1027_v35  ;;  %v5596_v55 = vpop.eup %5595  ;;  %v6674_v39 = vmul.f32 %v6614_v31, %v1016_v62  ;;  %v1209_v4 = vsel %vm1208_vm14, %v6277_v57, %v1207_v44 }
 0x1a5   : > { %v6664_v5 = vrot.slane %v6577_v61, %v8971_v27  ;;  %v5598_v59 = vpop.eup %5597  ;;  %v1020_v21 = vsel %vm1019_vm10, %v6293_v24, %v1018_v26  ;;  %v1211_v35 = vand.u32 2147483648, %v6277_v57  ;;  %v6692_v27 = vmul.f32 %v6614_v31, %v1030_v8  ;;  %v2207_v57 = vld [vmem:[%s8814_s7 + $0x8] sm:$0xff] }
 0x1a6   : > { %1563 = vperm.xlu1 %5568, %v6269_v49   ;;  %v5600_v62 = vpop.eup %5599  ;;  %v1060_v24 = vmul.f32 %v5596_v55, %v6299_v29  ;;  %v1023_v44 = vsel %vm1021_vm2, %v1022_v47, %v1020_v21  ;;  %v1039_v49 = vmul.f32 %v5598_v59, %v6290_v15  ;;  %vm1047_vm6 = vcmp.eq.f32.partialorder %v6296_v17, inf  ;;  %v6718_v21 = vpop.permute.xlu1 %1535 }
 0x1a7   : > { %8972 = vst [vmem:[#allocation58_spill] sm:$0xff] %v6692_v27  ;;  %v5602_v50 = vpop.eup %5601  ;;  %v1053_v55 = vmul.f32 %v5600_v62, %v6302_v25  ;;  %v1212_v47 = vsel %vm1210_vm1, %v1211_v35, %v1209_v4  ;;  %vm1110_vm9 = vcmp.eq.f32.partialorder %v6317_v45, inf  ;;  %8973 = vst [vmem:[#allocation59_spill] sm:$0xff] %v6718_v21  ;;  %vm1068_vm10 = vcmp.eq.f32.partialorder %v6307_v36, inf }
 0x1a8   : > { %v5604_v7 = vpop.eup %5603  ;;  %v8975_v62 = vand.u32 2147483648, %v6287_v11  ;;  %v6741_v27 = vmul.f32 %v6614_v31, %v1212_v47  ;;  %vm1049_vm14 = vcmp.eq.f32.partialorder %v6296_v17, 0.0  ;;  %v1085_v47 = vand.u32 2147483648, %v6314_v40 }
 0x1a9   : > { %vm1131_vm1 = vcmp.eq.f32.partialorder %v6331_v58, inf  ;;  %vm1112_vm2 = vcmp.eq.f32.partialorder %v6317_v45, 0.0 }
 0x1aa   : > { %5569 = vset.pattern.permute.xlu1 %v8921_v60 }
 0x1ab   : > { %1755 = vperm.xlu1 %5569, %v6263_v43   ;;  %v1034_v43 = vsel %vm1033_vm11, %v6283_v0, %v1032_v33  ;;  %v1216_v33 = vsel %vm1215_vm8, %v6287_v11, %v1214_v38  ;;  %v5606_v0 = vpop.eup %5605  ;;  %v1074_v38 = vmul.f32 %v5602_v50, %v6304_v30  ;;  %vm1089_vm8 = vcmp.eq.f32.partialorder %v6311_v37, inf }
 0x1ac   : > { %v1037_v8 = vsel %vm1035_vm12, %v1036_v12, %v1034_v43  ;;  %v2206_v43 = vld [vmem:[%s8814_s7] sm:$0xff]  ;;  %v5608_v4 = vpop.eup %5607  ;;  %v6728_v50 = vmul.f32 %v6614_v31, %v1023_v44  ;;  %v1219_v59 = vsel %vm1217_vm4, %v8975_v62, %v1216_v33  ;;  %v1062_v44 = vsel %vm1061_vm13, %v6299_v29, %v1060_v24 }
 0x1ad   : > { %v6731_v35 = vmul.f32 %v6614_v31, %v1037_v8  ;;  %v6737_v12 = vpack.c.bf16 %v2207_v57, %v2206_v43  ;;  %v5610_v26 = vpop.eup %5609  ;;  %vm1063_vm11 = vcmp.eq.f32.partialorder %v6299_v29, 0.0  ;;  %vm1082_vm12 = vcmp.eq.f32.partialorder %v6314_v40, inf }
 0x1ae   : > { %v5612_v8 = vpop.eup %5611  ;;  %v1055_v11 = vsel %vm1054_vm3, %v6302_v25, %v1053_v55  ;;  %v1041_v33 = vsel %vm1040_vm15, %v6290_v15, %v1039_v49  ;;  %vm1117_vm13 = vcmp.eq.f32.partialorder %v6325_v54, inf  ;;  %v6764_v55 = vmul.f32 %v6614_v31, %v1219_v59 }
 0x1af   : > { %5570 = vset.pattern.permute.xlu1 %v8925_v18  ;;  %8974 = vst [vmem:[#allocation60_spill] sm:$0xff] %v6731_v35  ;;  %8976 = vst [vmem:[#allocation61_spill] sm:$0xff] %v6737_v12  ;;  %v1046_v35 = vmul.f32 %v5604_v7, %v6296_v17  ;;  %5424 = vmatprep.subr.bf16.mxu0 %v6737_v12  ;;  %v5614_v24 = vpop.eup %5613  ;;  %v1088_v7 = vmul.f32 %v5606_v0, %v6311_v37  ;;  %vm1070_vm15 = vcmp.eq.f32.partialorder %v6307_v36, 0.0  ;;  %v6779_v12 = vpop.permute.xlu1 %1539 }
 0x1b0   : > { %1398 = vperm.xlu1 %5570, %v6244_v22   ;;  %8977 = vst [vmem:[#allocation62_spill] sm:$0xff] %v6764_v55  ;;  %v1109_v49 = vmul.f32 %v5608_v4, %v6317_v45  ;;  %v8978_v43 = vand.u32 2147483648, %v6299_v29  ;;  %v1076_v57 = vsel %vm1075_vm0, %v6304_v30, %v1074_v38  ;;  %v5616_v62 = vpop.eup %5615  ;;  %v1067_v59 = vmul.f32 %v5610_v26, %v6307_v36 }
 0x1b1   : > { %v1081_v21 = vmul.f32 %v5612_v8, %v6314_v40  ;;  %v8979_v4 = vand.u32 2147483648, %v6302_v25  ;;  %vm1077_vm3 = vcmp.eq.f32.partialorder %v6304_v30, 0.0  ;;  %v5618_v29 = vpop.eup %5617  ;;  %vm1133_vm4 = vcmp.eq.f32.partialorder %v6331_v58, 0.0 }
 0x1b2   : > { %v1065_v0 = vsel %vm1063_vm11, %v8978_v43, %v1062_v44  ;;  %v1095_v44 = vmul.f32 %v5614_v24, %v6321_v48  ;;  %v1134_v38 = vand.u32 2147483648, %v6331_v58  ;;  %v8980_v26 = vand.u32 2147483648, %v6290_v15  ;;  %v5620_v43 = vpop.eup %5619 }
 0x1b3   : > { %v1058_v55 = vsel %vm1056_vm7, %v8979_v4, %v1055_v11  ;;  %vm1096_vm0 = vcmp.eq.f32.partialorder %v6321_v48, inf  ;;  %v1099_v25 = vand.u32 2147483648, %v6321_v48  ;;  %v6797_v11 = vmul.f32 %v6614_v31, %v1065_v0 }
 0x1b4   : > { %5571 = vset.pattern.permute.xlu1 %v8963_v16  ;;  %v1044_v8 = vsel %vm1042_vm5, %v8980_v26, %v1041_v33  ;;  %v1048_v24 = vsel %vm1047_vm6, %v6296_v17, %v1046_v35  ;;  %v1111_v4 = vsel %vm1110_vm9, %v6317_v45, %v1109_v49  ;;  %vm1119_vm5 = vcmp.eq.f32.partialorder %v6325_v54, 0.0 }
 0x1b5   : > { %1567 = vperm.xlu1 %5571, %v6244_v22   ;;  %8981 = vst [vmem:[#allocation63_spill] sm:$0xff] %v6797_v11  ;;  %v6808_v15 = vmul.f32 %v6614_v31, %v1058_v55  ;;  %v1102_v0 = vmul.f32 %v5618_v29, %v6328_v63  ;;  %v1116_v35 = vmul.f32 %v5616_v62, %v6325_v54  ;;  %vm1091_vm6 = vcmp.eq.f32.partialorder %v6311_v37, 0.0  ;;  %v6832_v62 = vpop.permute.xlu1 %1731  ;;  %v9036_v11 = vld [vmem:[#allocation52_spill] sm:$0xff] }
 0x1b6   : > { %v1069_v49 = vsel %vm1068_vm10, %v6307_v36, %v1067_v59  ;;  %v1083_v26 = vsel %vm1082_vm12, %v6314_v40, %v1081_v21  ;;  %v1130_v55 = vmul.f32 %v5620_v43, %v6331_v58  ;;  %v1090_v1 = vsel %vm1089_vm8, %v6311_v37, %v1088_v7  ;;  %8984 = vst [vmem:[#allocation65_spill] sm:$0xff] %v6832_v62 }
 0x1b7   : > { %8982 = vst [vmem:[#allocation64_spill] sm:$0xff] %v6808_v15  ;;  %vm1103_vm7 = vcmp.eq.f32.partialorder %v6328_v63, inf  ;;  %v8985_v21 = vand.u32 2147483648, %v6296_v17  ;;  %vm1084_vm8 = vcmp.eq.f32.partialorder %v6314_v40, 0.0  ;;  %v6842_v7 = vmul.f32 %v6614_v31, %v1044_v8  ;;  %v9039_v15 = vld [vmem:[#allocation51_spill] sm:$0xff] }
 0x1b8   : > { %v8987_v29 = vand.u32 2147483648, %v6307_v36  ;;  %v1086_v43 = vsel %vm1084_vm8, %v1085_v47, %v1083_v26  ;;  %vm1098_vm9 = vcmp.eq.f32.partialorder %v6321_v48, 0.0  ;;  %v1104_v17 = vsel %vm1103_vm7, %v6328_v63, %v1102_v0  ;;  %v8999_v26 = vld [vmem:[#allocation9_spill] sm:$0xff] }
 0x1b9   : > { %1571 = vperm.xlu1 %5571, %v6275_v56   ;;  %v8983_v56 = vand.u32 2147483648, %v6304_v30  ;;  %v1097_v30 = vsel %vm1096_vm0, %v6321_v48, %v1095_v44  ;;  %v1051_v59 = vsel %vm1049_vm14, %v8985_v21, %v1048_v24  ;;  %8986 = vst [vmem:[#allocation66_spill] sm:$0xff] %v6842_v7  ;;  %vm1105_vm10 = vcmp.eq.f32.partialorder %v6328_v63, 0.0  ;;  %v9003_v21 = vld [vmem:[#allocation11_spill] sm:$0xff] }
 0x1ba   : > { %v1072_v44 = vsel %vm1070_vm15, %v8987_v29, %v1069_v49  ;;  %v1100_v40 = vsel %vm1098_vm9, %v1099_v25, %v1097_v30  ;;  %v1118_v8 = vsel %vm1117_vm13, %v6325_v54, %v1116_v35  ;;  %v1132_v36 = vsel %vm1131_vm1, %v6331_v58, %v1130_v55  ;;  %v9000_v30 = vld [vmem:[#allocation10_spill] sm:$0xff]  ;;  %v9005_v29 = vld [vmem:[#allocation15_spill] sm:$0xff] }
 0x1bb   : > { %v1079_v33 = vsel %vm1077_vm3, %v8983_v56, %v1076_v57  ;;  %v1106_v57 = vand.u32 2147483648, %v6328_v63  ;;  %v8988_v56 = vand.u32 2147483648, %v6311_v37  ;;  %v6863_v37 = vmul.f32 %v6614_v31, %v1051_v59 }
 0x1bc   : > { %v6860_v47 = vmul.f32 %v6614_v31, %v1079_v33  ;;  %v6867_v48 = vmul.f32 %v6582_v41, %v6354_v6  ;;  %v6870_v63 = vmul.f32 %v6614_v31, %v1072_v44  ;;  %v8993_v25 = vand.u32 2147483648, %v6317_v45 }
 0x1bd   : > { %5572 = vset.pattern.permute.xlu1 %v8921_v60  ;;  %v1093_v62 = vsel %vm1091_vm6, %v8988_v56, %v1090_v1  ;;  %8990 = vst [vmem:[#allocation68_spill] sm:$0xff] %v6863_v37  ;;  %v6873_v1 = vmul.f32 %v6614_v31, %v1086_v43  ;;  %v6881_v33 = vmul.f32 %v6582_v41, %v6360_v34  ;;  %v9006_v43 = vand.u32 2147483648, %v6325_v54 }
 0x1be   : > { %1763 = vperm.xlu1 %5572, %v6244_v22   ;;  %v5622_v22 = vpop.eup %5621  ;;  %8989 = vst [vmem:[#allocation67_spill] sm:$0xff] %v6860_v47  ;;  %8991 = vst [vmem:[#allocation69_spill] sm:$0xff] %v6870_v63  ;;  %v1114_v24 = vsel %vm1112_vm2, %v8993_v25, %v1111_v4  ;;  %v6885_v6 = vmul.f32 %v6614_v31, %v1093_v62  ;;  %v6887_v0 = vsel %vm1105_vm10, %v1106_v57, %v1104_v17  ;;  %v9001_v57 = vld [vmem:[#allocation12_spill] sm:$0xff]  ;;  %v9008_v17 = vld [vmem:[#allocation14_spill] sm:$0xff]  ;;  %vm2219_vm11 = vcmask 130048  }
 0x1bf   : > { %8992 = vst [vmem:[#allocation70_spill] sm:$0xff] %v6873_v1  ;;  %8995 = vst [vmem:[#allocation72_spill] sm:$0xff] %v6887_v0  ;;  %v6890_v35 = vmul.f32 %v6614_v31, %v1100_v40  ;;  %v6893_v49 = vmul.f32 %v5622_v22, %v6335_v53  ;;  %v6897_v45 = vmul.f32 %v6515_v13, %v6356_v9  ;;  %v6908_v4 = vpop.eup %5623  ;;  %v9010_v22 = vld [vmem:[#allocation16_spill] sm:$0xff]  ;;  %v9012_v25 = vld [vmem:[#allocation17_spill] sm:$0xff] }
 0x1c0   : > { %8994 = vst [vmem:[#allocation71_spill] sm:$0xff] %v6885_v6  ;;  %v6901_v34 = vmul.f32 %v6515_v13, %v6368_v20  ;;  %v1135_v41 = vsel %vm1133_vm4, %v1134_v38, %v1132_v36  ;;  %8998 = vst [vmem:[#allocation75_spill] sm:$0xff] %v6908_v4  ;;  %v6912_v55 = vmul.f32 %v6515_v13, %v8999_v26  ;;  %v9004_v38 = vld [vmem:[#allocation13_spill] sm:$0xff]  ;;  %v9023_v4 = vld [vmem:[#allocation31_spill] sm:$0xff] }
 0x1c1   : > { %8996 = vst [vmem:[#allocation73_spill] sm:$0xff] %v6890_v35  ;;  %8997 = vst [vmem:[#allocation74_spill] sm:$0xff] %v6893_v49  ;;  %v6916_v9 = vmul.f32 %v6515_v13, %v9000_v30  ;;  %v6920_v20 = vmul.f32 %v6515_v13, %v9001_v57  ;;  %v6923_v62 = vmul.f32 %v6614_v31, %v1114_v24  ;;  %v9014_v30 = vld [vmem:[#allocation18_spill] sm:$0xff]  ;;  %v9024_v0 = vld [vmem:[#allocation32_spill] sm:$0xff] }
 0x1c2   : > { %5573 = vset.pattern.permute.xlu1 %v8925_v18  ;;  %v6903_v18 = vpop.permute.xlu1 %1735  ;;  %v6927_v58 = vmul.f32 %v6515_v13, %v9003_v21  ;;  %v6931_v59 = vmul.f32 %v6515_v13, %v9004_v38  ;;  %v6935_v44 = vmul.f32 %v6515_v13, %v9005_v29  ;;  %v6941_v56 = vsel %vm1119_vm5, %v9006_v43, %v1118_v8  ;;  %v9015_v8 = vld [vmem:[#allocation19_spill] sm:$0xff]  ;;  %v9017_v21 = vld [vmem:[#allocation21_spill] sm:$0xff]  ;;  %v9032_v49 = vld [vmem:[#allocation50_spill] sm:$0xff] }
 0x1c3   : > { %1408 = vperm.xlu1 %5573, %v6406_v42   ;;  %9002 = vst [vmem:[#allocation9_spill] sm:$0xff] %v6923_v62  ;;  %9007 = vst [vmem:[#allocation10_spill] sm:$0xff] %v6941_v56  ;;  %v6945_v40 = vmul.f32 %v6515_v13, %v9008_v17  ;;  %v6949_v36 = vmul.f32 %v6515_v13, %v9010_v22  ;;  %v6953_v24 = vmul.f32 %v6515_v13, %v9012_v25  ;;  %v9020_v22 = vld [vmem:[#allocation25_spill] sm:$0xff]  ;;  %v9027_v35 = vld [vmem:[#allocation35_spill] sm:$0xff]  ;;  %v1364_v62 = vpop.permute.xlu0 %1363 }
 0x1c4   : > { %v6956_v26 = vmul.f32 %v6614_v31, %v1135_v41  ;;  %v1800_v54 = vmul.f32 %v6515_v13, %v9014_v30  ;;  %v6962_v57 = vmul.f32 %v6515_v13, %v9015_v8  ;;  %v6966_v38 = vmul.f32 %v6515_v13, %v9017_v21  ;;  %v9019_v41 = vld [vmem:[#allocation24_spill] sm:$0xff]  ;;  %v9026_v6 = vld [vmem:[#allocation33_spill] sm:$0xff]  ;;  %v9030_v31 = vld [vmem:[#allocation34_spill] sm:$0xff] }
 0x1c5   : > { %9009 = vst [vmem:[#allocation12_spill] sm:$0xff] %v6945_v40  ;;  %9011 = vst [vmem:[#allocation11_spill] sm:$0xff] %v6949_v36  ;;  %v6970_v29 = vmul.f32 %v6515_v13, %v6432_v46  ;;  %v1247_v17 = vmul.f32 %v6664_v5, %v9019_v41  ;;  %v1624_v25 = vmul.f32 %v6507_v2, %v9020_v22  ;;  %v9021_v41 = vld [vmem:[#allocation41_spill] sm:$0xff]  ;;  %v9031_v56 = vld [vmem:[#allocation38_spill] sm:$0xff] }
 0x1c6   : > { %9013 = vst [vmem:[#allocation13_spill] sm:$0xff] %v6956_v26  ;;  %9016 = vst [vmem:[#allocation15_spill] sm:$0xff] %v6962_v57  ;;  %v1594_v30 = vmul.f32 %v6507_v2, %v6436_v32  ;;  %v1231_v8 = vrot.slane %v6577_v61, %v6034_v10  ;;  %v6986_v46 = vmul.f32 %v6507_v2, %v6441_v3  ;;  %v9022_v32 = vld [vmem:[#allocation30_spill] sm:$0xff]  ;;  %v9028_v47 = vld [vmem:[#allocation45_spill] sm:$0xff] }
 0x1c7   : > { %5574 = vset.pattern.permute.xlu1 %v8963_v16  ;;  %v6973_v43 = vpop.xlane.xlu1 %985  ;;  %v1596_v16 = vmul.f32 %v6507_v2, %v6446_v28  ;;  %v6992_v21 = vmul.f32 %v6507_v2, %v6451_v14  ;;  %v1460_v22 = vmul.f32 %v6512_v52, %v9021_v41  ;;  %v1246_v61 = vmul.f32 %v6664_v5, %v9023_v4  ;;  %v9029_v26 = vld [vmem:[#allocation48_spill] sm:$0xff]  ;;  %v9034_v57 = vld [vmem:[#allocation42_spill] sm:$0xff] }
 0x1c8   : > { %9018 = vst [vmem:[#allocation14_spill] sm:$0xff] %v6973_v43  ;;  %1575 = vperm.xlu1 %5574, %v6406_v42   ;;  %v1601_v43 = vmul.f32 %v6507_v2, %v9022_v32  ;;  %v7002_v3 = vmul.f32 %v6507_v2, %v9024_v0  ;;  %v1606_v28 = vmul.f32 %v6507_v2, %v9026_v6 }
 0x1c9   : > { %v7008_v14 = vmul.f32 %v6507_v2, %v9027_v35  ;;  %v1430_v41 = vmul.f32 %v6512_v52, %v6524_v19  ;;  %v1432_v32 = vmul.f32 %v6512_v52, %v9028_v47  ;;  %v1437_v5 = vmul.f32 %v6512_v52, %v9029_v26  ;;  %v9033_v19 = vld [vmem:[#allocation3_spill] sm:$0xff] }
 0x1ca   : > { %9025 = vst [vmem:[#allocation16_spill] sm:$0xff] %v7002_v3  ;;  %v1610_v0 = vmul.f32 %v6507_v2, %v9030_v31  ;;  %v7020_v6 = vmul.f32 %v6507_v2, %v9031_v56  ;;  %v1440_v35 = vmul.f32 %v6512_v52, %v9032_v49  ;;  %v7027_v47 = vmul.f32 %v6507_v2, %v9034_v57  ;;  %v9037_v31 = vld [vmem:[#allocation54_spill] sm:$0xff]  ;;  %v9038_v56 = vld [vmem:[#allocation43_spill] sm:$0xff] }
 0x1cb   : > { %v1226_v4 = vpop.permute.xlu1 %1225  ;;  %v1656_v26 = vadd.f32 %v1624_v25, %v1460_v22  ;;  %v1442_v53 = vmul.f32 %v6512_v52, %v9036_v11  ;;  %v1444_v63 = vmul.f32 %v6512_v52, %v9037_v31  ;;  %v1604_v36 = vmul.f32 %v6507_v2, %v9038_v56  ;;  %v9041_v11 = vld [vmem:[#allocation46_spill] sm:$0xff] }
 0x1cc   : > { %v1233_v1 = vmul.f32 %v1231_v8, %v1226_v4  ;;  %1579 = vperm.xlu1 %5574, %v9033_v19   ;;  %9035 = vst [vmem:[#allocation17_spill] sm:$0xff] %v7027_v47  ;;  %v1608_v49 = vmul.f32 %v6507_v2, %v9039_v15  ;;  %v9040_v4 = vld [vmem:[#allocation55_spill] sm:$0xff]  ;;  %v1626_v3 = vadd.f32 %v1594_v30, %v1430_v41 }
 0x1cd   : > { %v1446_v19 = vmul.f32 %v6512_v52, %v9040_v4  ;;  %v1628_v57 = vadd.f32 %v1596_v16, %v1432_v32  ;;  %v1633_v7 = vadd.f32 %v1601_v43, %v1437_v5  ;;  %v1449_v25 = vmul.f32 %v6512_v52, %v1364_v62  ;;  %v9042_v16 = vld [vmem:[#allocation2_spill] sm:$0xff] }
 0x1ce   : > { %v1249_v37 = vadd.f32 %v1247_v17, %v1233_v1  ;;  %v7042_v40 = vmul.f32 %v6507_v2, %v9041_v11  ;;  %v1636_v31 = vadd.f32 %v1604_v36, %v1440_v35  ;;  %v7047_v15 = vadd.f32 %v6901_v34, %v1656_v26 }
 0x1cf   : > { %v1222_v22 = vpop.permute.xlu1 %1221  ;;  %v1613_v1 = vmul.f32 %v6507_v2, %v6779_v12  ;;  %v1638_v43 = vadd.f32 %v1606_v28, %v1442_v53  ;;  %v1640_v17 = vadd.f32 %v1608_v49, %v1444_v63  ;;  %v1642_v62 = vadd.f32 %v1610_v0, %v1446_v19  ;;  %v2210_v63 = vld [vmem:[%s8816_s9] sm:$0xff] }
 0x1d0   : > { %v1265_v56 = vadd.f32 %v6867_v48, %v1249_v37  ;;  %v1232_v47 = vmul.f32 %v1231_v8, %v1222_v22  ;;  %5576 = vset.pattern.permute.xlu1 %v8921_v60  ;;  %v1822_v37 = vadd.f32 %v6897_v45, %v1626_v3  ;;  %v1824_v48 = vadd.f32 %v6920_v20, %v1628_v57  ;;  %v2211_v45 = vld [vmem:[%s8816_s9 + $0x8] sm:$0xff] }
 0x1d1   : > { %1771 = vperm.xlu1 %5576, %v6406_v42   ;;  %v7056_v60 = vadd.f32 %v6935_v44, %v1633_v7  ;;  %v1645_v34 = vadd.f32 %v1613_v1, %v1449_v25  ;;  %v7058_v32 = vadd.f32 %v1800_v54, %v1636_v31  ;;  %v7071_v7 = vadd.f32 %v6966_v38, %v1638_v43 }
 0x1d2   : > { %v1905_v30 = vcombine.high %v1265_v56, %v1265_v56  ;;  %v1912_v41 = vrot.slane %v1265_v56, %v9042_v16  ;;  %v1248_v36 = vadd.f32 %v1246_v61, %v1232_v47  ;;  %v7074_v20 = vadd.f32 %v6970_v29, %v1640_v17 }
 0x1d3   : > { %v1274_v8 = vpop.permute.xlu1 %1273  ;;  %v1809_v44 = vmul.f32 %v6515_v13, %v6903_v18  ;;  %v7089_v35 = vpack.c.bf16 %v2211_v45, %v2210_v63 }
 0x1d4   : > { %v7061_v53 = vrot.slane %v1905_v30, %v9042_v16  ;;  %v1920_v42 = vcombine.high %v1912_v41, %v1912_v41  ;;  %v1264_v12 = vadd.f32 %v6881_v33, %v1248_v36  ;;  %v1431_v54 = vmul.f32 %v6512_v52, %v1274_v8 }
 0x1d5   : > { %v7080_v33 = vadd.f32 %v6953_v24, %v1642_v62  ;;  %v1841_v5 = vadd.f32 %v1809_v44, %v1645_v34  ;;  %v7097_v49 = vrot.slane %v1912_v41, %v9042_v16 }
 0x1d6   : > { %v1921_v61 = vcombine.high %v7061_v53, %v7061_v53  ;;  %v1856_v3 = vcombine.high %v1264_v12, %v1264_v12  ;;  %v1863_v28 = vrot.slane %v1264_v12, %v9042_v16  ;;  %v1627_v38 = vadd.f32 %v6986_v46, %v1431_v54 }
 0x1d7   : > { %v1284_v0 = vpop.permute.xlu1 %1283  ;;  %v7087_v29 = vrot.slane %v1920_v42, %v9042_v16 }
 0x1d8   : > { %v7092_v18 = vrot.slane %v1921_v61, %v9042_v16  ;;  %v1870_v24 = vrot.slane %v1856_v3, %v9042_v16  ;;  %v1871_v47 = vcombine.high %v1863_v28, %v1863_v28  ;;  %v1879_v26 = vrot.slane %v1863_v28, %v9042_v16 }
 0x1d9   : > { %v1823_v4 = vadd.f32 %v6912_v55, %v1627_v38  ;;  %v1433_v46 = vmul.f32 %v6512_v52, %v1284_v0  ;;  %v7103_v19 = vrot.slane %v7087_v29, %v6034_v10 }
 0x1da   : > { %v1872_v57 = vcombine.high %v1870_v24, %v1870_v24  ;;  %v1957_v25 = vrot.slane %v1879_v26, %v6034_v10  ;;  %v1893_v22 = vrot.slane %v1871_v47, %v9042_v16  ;;  %v1901_v11 = vcombine.high %v1879_v26, %v1879_v26 }
 0x1db   : > { %v1629_v31 = vadd.f32 %v7008_v14, %v1433_v46  ;;  %v1289_v56 = vpop.permute.xlu1 %1288  ;;  %v7109_v1 = vrot.slane %v1870_v24, %v9042_v16  ;;  %v1953_v55 = vcombine.high %v7092_v18, %v7092_v18  ;;  %v7114_v43 = vadd.f32 %v7103_v19, %v1841_v5  ;;  %v9043_v24 = vld [vmem:[#allocation44_spill] sm:$0xff] }
 0x1dc   : > { %v2035_v17 = vadd.f32 %v1957_v25, %v1823_v4  ;;  %v1903_v62 = vcombine.high %v1893_v22, %v1893_v22  ;;  %v1961_v30 = vrot.slane %v1893_v22, %v6034_v10  ;;  %v1965_v41 = vrot.slane %v1901_v11, %v6034_v10 }
 0x1dd   : > { %v1825_v36 = vadd.f32 %v6916_v9, %v1629_v31  ;;  %v1434_v14 = vmul.f32 %v6512_v52, %v1289_v56  ;;  %v7122_v34 = vrot.slane %v7109_v1, %v6034_v10  ;;  %v2034_v8 = vadd.f32 %v1957_v25, %v1822_v37  ;;  %v7133_v9 = vld [vmem:[%s8813_s6] ss:$0 sm:$0xff] }
 0x1de   : > { %v2105_v42 = vadd.f32 %v6643_v51, %v2035_v17  ;;  %v2036_v12 = vadd.f32 %v1961_v30, %v1824_v48  ;;  %v2017_v63 = vrot.slane %v1953_v55, %v6034_v10  ;;  %v7127_v45 = vrot.slane %v1872_v57, %v9042_v16  ;;  %v9045_v56 = vld [vmem:[#allocation58_spill] sm:$0xff] }
 0x1df   : > { %v2037_v44 = vadd.f32 %v1961_v30, %v1825_v36  ;;  %v1630_v54 = vadd.f32 %v6992_v21, %v1434_v14  ;;  %v1294_v61 = vpop.permute.xlu1 %1293  ;;  %v2104_v3 = vadd.f32 %v6634_v23, %v2034_v8  ;;  %v1969_v37 = vrot.slane %v1903_v62, %v6034_v10  ;;  %v9046_v30 = vld [vmem:[#allocation17_spill] sm:$0xff] }
 0x1e0   : > { %v1435_v51 = vmul.f32 %v6512_v52, %v1294_v61  ;;  %v2143_v48 = vadd.f32 %v7133_v9, %v2105_v42  ;;  %v2106_v28 = vadd.f32 %v6674_v39, %v2036_v12  ;;  %v2064_v5 = vadd.f32 %v2017_v63, %v7047_v15  ;;  %v9044_v15 = vld [vmem:[#allocation62_spill] sm:$0xff]  ;;  %v9048_v8 = vld [vmem:[#allocation49_spill] sm:$0xff] }
 0x1e1   : > { %v2107_v21 = vadd.f32 %v6728_v50, %v2037_v44  ;;  %v1826_v38 = vadd.f32 %v6927_v58, %v1630_v54  ;;  %v2142_v0 = vadd.f32 %v7133_v9, %v2104_v3  ;;  %v2065_v47 = vadd.f32 %v2017_v63, %v9043_v24  ;;  %v9050_v61 = vld [vmem:[#allocation61_spill] sm:$0xff]  ;;  %v9051_v3 = vld [vmem:[#allocation60_spill] sm:$0xff] }
 0x1e2   : > { %v1631_v23 = vadd.f32 %v7020_v6, %v1435_v51  ;;  %v7146_v26 = vmax.f32 %v2143_v48, 0.0  ;;  %v2144_v4 = vadd.f32 %v7133_v9, %v2106_v28  ;;  %v2134_v46 = vadd.f32 %v6741_v27, %v2064_v5  ;;  %v9052_v48 = vld [vmem:[#allocation12_spill] sm:$0xff] }
 0x1e3   : > { %v2038_v57 = vadd.f32 %v1965_v41, %v1826_v38  ;;  %v1309_v39 = vpop.permute.xlu1 %1308  ;;  %v7150_v25 = vmax.f32 %v2142_v0, 0.0  ;;  %v2135_v50 = vadd.f32 %v9044_v15, %v2065_v47  ;;  %v2145_v58 = vadd.f32 %v7133_v9, %v2107_v21  ;;  %v9053_v21 = vld [vmem:[#allocation66_spill] sm:$0xff] }
 0x1e4   : > { %v1827_v22 = vadd.f32 %v6931_v59, %v1631_v23  ;;  %v1438_v11 = vmul.f32 %v6512_v52, %v1309_v39  ;;  %v7156_v31 = vmax.f32 %v2144_v4, 0.0  ;;  %v2172_v6 = vadd.f32 %v7133_v9, %v2134_v46  ;;  %v9054_v47 = vld [vmem:[#allocation6_spill] sm:$0xff]  ;;  %v9055_v4 = vld [vmem:[#allocation16_spill] sm:$0xff] }
 0x1e5   : > { %v2108_v55 = vadd.f32 %v9045_v56, %v2038_v57  ;;  %5201 = vmatprep.mubr.msk.f32.mxu0 %vm2219_vm11, %v7150_v25  ;;  %v2173_v27 = vadd.f32 %v7133_v9, %v2135_v50  ;;  %v7163_v17 = vmax.f32 %v2145_v58, 0.0  ;;  %v7167_v62 = vrot.slane %v7127_v45, %v6034_v10  ;;  %v9056_v57 = vld [vmem:[#allocation37_spill] sm:$0xff] }
 0x1e6   : > { %v2039_v59 = vadd.f32 %v1965_v41, %v1827_v22  ;;  %v1634_v36 = vadd.f32 %v9046_v30, %v1438_v11  ;;  %5202 = vmatmul.mubr.msk.f32.vlgmr.msra.gmra.mrb[0].mxu0 %vm2219_vm11, %v7146_v26  ;;  %v7172_v14 = vmax.f32 %v2172_v6, 0.0  ;;  %v2040_v42 = vadd.f32 %v1969_v37, %v9048_v8  ;;  %v9058_v22 = vld [vmem:[#allocation64_spill] sm:$0xff]  ;;  %v9059_v6 = vld [vmem:[#allocation11_spill] sm:$0xff]  ;;  %v9060_v8 = vld [vmem:[#allocation69_spill] sm:$0xff] }
 0x1e7   : > { %5204 = vmatprep.mubr.msk.f32.mxu0 %vm2219_vm11, %v7156_v31  ;;  %v7177_v12 = vmax.f32 %v2173_v27, 0.0  ;;  %v1314_v63 = vpop.permute.xlu1 %1313  ;;  %v2146_v44 = vadd.f32 %v7133_v9, %v2108_v55  ;;  %v2044_v41 = vadd.f32 %v7167_v62, %v7058_v32  ;;  %v1902_v54 = vcombine.high %v7109_v1, %v7109_v1  ;;  %5426 = vmatpush3.bf16.msra.mxu0 %v9050_v61 }
 0x1e8   : > { %9047 = vst [vmem:[#allocation18_spill] sm:$0xff] %v7172_v14  ;;  %v2109_v51 = vadd.f32 %v9051_v3, %v2039_v59  ;;  %v1830_v28 = vadd.f32 %v9052_v48, %v1634_v36  ;;  %5246 = vmatprep.mubr.msk.f32.mxu1 %vm2219_vm11, %v7172_v14  ;;  %v1439_v5 = vmul.f32 %v6512_v52, %v1314_v63  ;;  %5625 = vrsqrt.f32 %v9054_v47  ;;  %v9062_v3 = vld [vmem:[#allocation4_spill] sm:$0xff]  ;;  %v9064_v48 = vld [vmem:[#allocation47_spill] sm:$0xff] }
 0x1e9   : > { %9049 = vst [vmem:[#allocation19_spill] sm:$0xff] %v7177_v12  ;;  %v2110_v38 = vadd.f32 %v9053_v21, %v2040_v42  ;;  %5247 = vmatmul.mubr.msk.f32.vlgmr.msra.gmra.mrb[0].mxu1 %vm2219_vm11, %v7177_v12  ;;  %v7193_v32 = vmax.f32 %v2146_v44, 0.0  ;;  %v7196_v1 = vrot.slane %v1902_v54, %v6034_v10  ;;  %v2041_v0 = vadd.f32 %v1969_v37, %v7056_v60  ;;  %v9057_v37 = vld [vmem:[#allocation68_spill] sm:$0xff] }
 0x1ea   : > { %v1904_v24 = vcombine.high %v7127_v45, %v7127_v45  ;;  %v2042_v23 = vadd.f32 %v7122_v34, %v1830_v28  ;;  %v1635_v46 = vadd.f32 %v9055_v4, %v1439_v5  ;;  %5430 = vmatpush3.bf16.msra.mxu1 %v9056_v57  ;;  %5305 = vmatprep.mubr.msk.f32.mxu1 %vm2219_vm11, %v7150_v25  ;;  %vm1124_vm12 = vcmp.eq.f32.partialorder %v9062_v3, inf  ;;  %v9066_v5 = vld [vmem:[#allocation15_spill] sm:$0xff]  ;;  %v9070_v4 = vld [vmem:[#allocation9_spill] sm:$0xff] }
 0x1eb   : > { %v2147_v39 = vadd.f32 %v7133_v9, %v2109_v51  ;;  %v1989_v15 = vrot.slane %v7097_v49, %v6034_v10  ;;  %5205 = vmatmul.mubr.msk.f32.gmra.mrb[2].mxu0 %vm2219_vm11, %v7163_v17  ;;  %v1324_v60 = vpop.permute.xlu1 %1323  ;;  %v2148_v45 = vadd.f32 %v7133_v9, %v2110_v38  ;;  %v2111_v50 = vadd.f32 %v9057_v37, %v2041_v0 }
 0x1ec   : > { %v7215_v58 = vrot.slane %v1904_v24, %v6034_v10  ;;  %v2112_v11 = vadd.f32 %v9058_v22, %v2042_v23  ;;  %v1831_v56 = vadd.f32 %v9059_v6, %v1635_v46  ;;  %5207 = vmatprep.mubr.msk.f32.mxu0 %vm2219_vm11, %v7193_v32  ;;  %v1441_v55 = vmul.f32 %v6512_v52, %v1324_v60  ;;  %v9069_v23 = vld [vmem:[#allocation70_spill] sm:$0xff] }
 0x1ed   : > { %v7222_v27 = vmax.f32 %v2147_v39, 0.0  ;;  %5432 = vmatprep.subr.bf16.mxu1 %v7089_v35  ;;  %5306 = vmatmul.mubr.msk.f32.vlgmr.msra.gmra.mrb[2].mxu1 %vm2219_vm11, %v7146_v26  ;;  %v2046_v59 = vadd.f32 %v7196_v1, %v7071_v7  ;;  %v2149_v30 = vadd.f32 %v7133_v9, %v2111_v50  ;;  %v2114_v42 = vadd.f32 %v9060_v8, %v2044_v41  ;;  %v9063_v7 = vld [vmem:[#allocation23_spill] sm:$0xff]  ;;  %v9072_v50 = vld [vmem:[#allocation53_spill] sm:$0xff]  ;;  %v9073_v6 = vld [vmem:[#allocation74_spill] sm:$0xff] }
 0x1ee   : > { %v2048_v36 = vadd.f32 %v7215_v58, %v7074_v20  ;;  %v2043_v63 = vadd.f32 %v7122_v34, %v1831_v56  ;;  %v1637_v44 = vadd.f32 %v7042_v40, %v1441_v55  ;;  %5308 = vmatprep.mubr.msk.f32.mxu1 %vm2219_vm11, %v7156_v31  ;;  %v7237_v54 = vmax.f32 %v2148_v45, 0.0  ;;  %5434 = vmatpush3.bf16.msra.mxu1 %v7089_v35  ;;  %v9065_v41 = vld [vmem:[#allocation63_spill] sm:$0xff]  ;;  %v9071_v45 = vld [vmem:[#allocation56_spill] sm:$0xff]  ;;  %v9074_v56 = vld [vmem:[#allocation10_spill] sm:$0xff] }
 0x1ef   : > { %v2150_v61 = vadd.f32 %v7133_v9, %v2112_v11  ;;  %v1803_v51 = vmul.f32 %v6515_v13, %v9063_v7  ;;  %v1607_v20 = vmul.f32 %v6507_v2, %v9064_v48  ;;  %5208 = vmatmul.mubr.msk.f32.gmra.mrb[4].mxu0 %vm2219_vm11, %v7222_v27  ;;  %v1334_v34 = vpop.permute.xlu1 %1333  ;;  %v2050_v40 = vadd.f32 %v1989_v15, %v7080_v33  ;;  %v9075_v55 = vld [vmem:[#allocation57_spill] sm:$0xff]  ;;  %v9079_v48 = vld [vmem:[#allocation26_spill] sm:$0xff] }
 0x1f0   : > { %9061 = vst [vmem:[#allocation21_spill] sm:$0xff] %v7237_v54  ;;  %v2113_v28 = vadd.f32 %v9065_v41, %v2043_v63  ;;  %v1833_v21 = vadd.f32 %v9066_v5, %v1637_v44  ;;  %5210 = vmatprep.mubr.msk.f32.mxu0 %vm2219_vm11, %v7237_v54  ;;  %v1443_v38 = vmul.f32 %v6512_v52, %v1334_v34  ;;  %v7258_v24 = vmax.f32 %v2149_v30, 0.0  ;;  %v9076_v30 = vld [vmem:[#allocation13_spill] sm:$0xff] }
 0x1f1   : > { %v7254_v0 = vmax.f32 %v2150_v61, 0.0  ;;  %5309 = vmatmul.mubr.msk.f32.gmra.mrb[4].mxu1 %vm2219_vm11, %v7163_v17  ;;  %v2152_v33 = vadd.f32 %v7133_v9, %v2114_v42  ;;  %v2116_v35 = vadd.f32 %v9069_v23, %v2046_v59  ;;  %v7263_v46 = vadd.f32 %v9070_v4, %v2050_v40  ;;  %v9077_v42 = vld [vmem:[#allocation67_spill] sm:$0xff] }
 0x1f2   : > { %9068 = vst [vmem:[#allocation25_spill] sm:$0xff] %v7258_v24  ;;  %v2045_v57 = vadd.f32 %v7167_v62, %v1833_v21  ;;  %v1639_v39 = vadd.f32 %v1607_v20, %v1443_v38  ;;  %5311 = vmatprep.mubr.msk.f32.mxu1 %vm2219_vm11, %v7193_v32  ;;  %v2151_v60 = vadd.f32 %v7133_v9, %v2113_v28  ;;  %v1127_v23 = vand.u32 2147483648, %v9062_v3  ;;  %v9083_v4 = vld [vmem:[#allocation59_spill] sm:$0xff] }
 0x1f3   : > { %9067 = vst [vmem:[#allocation24_spill] sm:$0xff] %v7254_v0  ;;  %v2051_v37 = vadd.f32 %v1989_v15, %v9071_v45  ;;  %v1609_v22 = vmul.f32 %v6507_v2, %v9072_v50  ;;  %5211 = vmatmul.mubr.msk.f32.gmra.mrb[6].mxu0 %vm2219_vm11, %v7258_v24  ;;  %v1344_v11 = vpop.permute.xlu1 %1343  ;;  %v1125_v62 = vsel %vm1124_vm12, %v9062_v3, %v9073_v6  ;;  %v5626_v15 = vpop.eup %5625  ;;  %v7294_v34 = vmax.f32 %v2152_v33, 0.0  ;;  %v9086_v50 = vld [vmem:[#allocation65_spill] sm:$0xff] }
 0x1f4   : > { %v2089_v59 = vmul.f32 %v9075_v55, %v9074_v56  ;;  %v7282_v8 = vadd.f32 %v9076_v30, %v7114_v43  ;;  %v2115_v63 = vadd.f32 %v9077_v42, %v2045_v57  ;;  %v1835_v44 = vadd.f32 %v1803_v51, %v1639_v39  ;;  %5213 = vmatprep.mubr.msk.f32.mxu0 %vm2219_vm11, %v7254_v0  ;;  %v9081_v43 = vld [vmem:[#allocation73_spill] sm:$0xff]  ;;  %v1369_v57 = vpop.permute.xlu0 %1368  ;;  %v9084_v39 = vld [vmem:[#allocation71_spill] sm:$0xff] }
 0x1f5   : > { %v1445_v61 = vmul.f32 %v6512_v52, %v1344_v11  ;;  %v7288_v7 = vmax.f32 %v2151_v60, 0.0  ;;  %v1805_v20 = vmul.f32 %v6515_v13, %v9079_v48  ;;  %5312 = vmatmul.mubr.msk.f32.gmra.mrb[6].mxu1 %vm2219_vm11, %v7222_v27  ;;  %9080 = vst [vmem:[#allocation30_spill] sm:$0xff] %v7294_v34  ;;  %v2118_v40 = vadd.f32 %v9081_v43, %v2048_v36  ;;  %v9082_v51 = vld [vmem:[#allocation5_spill] sm:$0xff]  ;;  %v9087_v11 = vld [vmem:[#allocation72_spill] sm:$0xff] }
 0x1f6   : > { %v7297_v41 = vadd.f32 %v2089_v59, %v2051_v37  ;;  %vm1145_vm14 = vcmp.eq.f32.partialorder %v9082_v51, inf  ;;  %v2047_v28 = vadd.f32 %v7196_v1, %v1835_v44  ;;  %5314 = vmatprep.mubr.msk.f32.mxu1 %vm2219_vm11, %v7237_v54  ;;  %v2153_v21 = vadd.f32 %v7133_v9, %v2115_v63  ;;  %v9089_v63 = vld [vmem:[#allocation75_spill] sm:$0xff] }
 0x1f7   : > { %9078 = vst [vmem:[#allocation41_spill] sm:$0xff] %v7288_v7  ;;  %v1641_v5 = vadd.f32 %v1609_v22, %v1445_v61  ;;  %v2154_v38 = vadd.f32 %v7133_v9, %v2116_v35  ;;  %v1137_v33 = vmul.f32 %v5626_v15, %v9054_v47  ;;  %v1612_v36 = vmul.f32 %v6507_v2, %v9083_v4  ;;  %v1359_v1 = vpop.permute.xlu1 %1358  ;;  %v9090_v61 = vld [vmem:[#allocation36_spill] sm:$0xff] }
 0x1f8   : > { %5214 = vmatmul.mubr.msk.f32.gmra.mrb[8].mxu0 %vm2219_vm11, %v7288_v7  ;;  %vm1126_vm13 = vcmp.eq.f32.partialorder %v9062_v3, 0.0  ;;  %v2117_v60 = vadd.f32 %v9084_v39, %v2047_v28  ;;  %v1448_v35 = vmul.f32 %v6512_v52, %v1359_v1  ;;  %v7316_v37 = vmax.f32 %v2153_v21, 0.0 }
 0x1f9   : > { %v1837_v45 = vadd.f32 %v1805_v20, %v1641_v5  ;;  %5216 = vmatprep.mubr.msk.f32.mxu0 %vm2219_vm11, %v7294_v34  ;;  %v1808_v22 = vmul.f32 %v6515_v13, %v9086_v50  ;;  %v2087_v6 = vmul.f32 %v9075_v55, %v9087_v11  ;;  %5315 = vmatmul.mubr.msk.f32.gmra.mrb[8].mxu1 %vm2219_vm11, %v7258_v24  ;;  %v7328_v15 = vmax.f32 %v2154_v38, 0.0  ;;  %v9095_v50 = vld [vmem:[#allocation39_spill] sm:$0xff] }
 0x1fa   : > { %9085 = vst [vmem:[#allocation31_spill] sm:$0xff] %v7316_v37  ;;  %v1128_v3 = vsel %vm1126_vm13, %v1127_v23, %v1125_v62  ;;  %v2156_v56 = vadd.f32 %v7133_v9, %v2118_v40  ;;  %v1644_v30 = vadd.f32 %v1612_v36, %v1448_v35  ;;  %5317 = vmatprep.mubr.msk.f32.mxu1 %vm2219_vm11, %v7254_v0  ;;  %vm1138_vm1 = vcmp.eq.f32.partialorder %v9054_v47, inf }
 0x1fb   : > { %v2049_v59 = vadd.f32 %v7215_v58, %v1837_v45  ;;  %9088 = vst [vmem:[#allocation32_spill] sm:$0xff] %v7328_v15  ;;  %v2155_v42 = vadd.f32 %v7133_v9, %v2117_v60  ;;  %v1144_v44 = vmul.f32 %v9089_v63, %v9082_v51  ;;  %v1614_v48 = vmul.f32 %v6507_v2, %v9090_v61  ;;  %v1374_v58 = vpop.permute.xlu1 %1373  ;;  %v7364_v45 = vpop.permute.xlu0 %1393 }
 0x1fc   : > { %v1450_v62 = vmul.f32 %v6512_v52, %v1369_v57  ;;  %5217 = vmatmul.mubr.msk.f32.gmra.mrb[10].mxu0 %vm2219_vm11, %v7316_v37  ;;  %v1840_v43 = vadd.f32 %v1808_v22, %v1644_v30  ;;  %v1139_v28 = vsel %vm1138_vm1, %v9054_v47, %v1137_v33  ;;  %v2090_v5 = vmul.f32 %v9075_v55, %v1128_v3  ;;  %v9093_v57 = vld [vmem:[#allocation7_spill] sm:$0xff] }
 0x1fd   : > { %v2119_v20 = vadd.f32 %v2087_v6, %v2049_v59  ;;  %5219 = vmatprep.mubr.msk.f32.mxu0 %vm2219_vm11, %v7328_v15  ;;  %v7341_v40 = vmax.f32 %v2155_v42, 0.0  ;;  %5318 = vmatmul.mubr.msk.f32.gmra.mrb[10].mxu1 %vm2219_vm11, %v7288_v7  ;;  %vm1140_vm15 = vcmp.eq.f32.partialorder %v9054_v47, 0.0  ;;  %v1141_v21 = vand.u32 2147483648, %v9054_v47 }
 0x1fe   : > { %v1950_v38 = vcombine.high %v7097_v49, %v7097_v49  ;;  %v2052_v23 = vadd.f32 %v7103_v19, %v1840_v43  ;;  %5320 = vmatprep.mubr.msk.f32.mxu1 %vm2219_vm11, %v7294_v34  ;;  %v7354_v4 = vmax.f32 %v2156_v56, 0.0  ;;  %v2158_v36 = vadd.f32 %v7133_v9, %v7263_v46 }
 0x1ff   : > { %9091 = vst [vmem:[#allocation33_spill] sm:$0xff] %v7341_v40  ;;  %v2157_v33 = vadd.f32 %v7133_v9, %v2119_v20  ;;  %v1148_v1 = vand.u32 2147483648, %v9082_v51  ;;  %5627 = vrsqrt.f32 %v9093_v57  ;;  %v1646_v47 = vadd.f32 %v1614_v48, %v1450_v62  ;;  %v1740_v19 = vpop.permute.xlu1 %1739  ;;  %v9098_v62 = vld [vmem:[#allocation8_spill] sm:$0xff] }
 0x200   : > { %9092 = vst [vmem:[#allocation35_spill] sm:$0xff] %v7354_v4  ;;  %5220 = vmatmul.mubr.msk.f32.gmra.mrb[12].mxu0 %vm2219_vm11, %v7341_v40  ;;  %v1142_v49 = vsel %vm1140_vm15, %v1141_v21, %v1139_v28  ;;  %v2122_v39 = vadd.f32 %v2090_v5, %v2052_v23  ;;  %v1451_v60 = vmul.f32 %v6512_v52, %v1374_v58  ;;  %vm1147_vm2 = vcmp.eq.f32.partialorder %v9082_v51, 0.0  ;;  %v7404_v28 = vpop.permute.xlu0 %1403 }
 0x201   : > { %5222 = vmatprep.mubr.msk.f32.mxu0 %vm2219_vm11, %v7354_v4  ;;  %v1810_v46 = vmul.f32 %v6515_v13, %v1740_v19  ;;  %v7369_v35 = vmax.f32 %v2157_v33, 0.0  ;;  %v1615_v22 = vmul.f32 %v6507_v2, %v9095_v50  ;;  %5321 = vmatmul.mubr.msk.f32.gmra.mrb[12].mxu1 %vm2219_vm11, %v7316_v37  ;;  %v1146_v11 = vsel %vm1145_vm14, %v9082_v51, %v1144_v44  ;;  %v7413_v51 = vld [vmem:[%s8812_s5] ss:$0 sm:$0xff] }
 0x202   : > { %v2159_v6 = vadd.f32 %v7133_v9, %v7297_v41  ;;  %v1997_v3 = vrot.slane %v1950_v38, %v6034_v10  ;;  %5323 = vmatprep.mubr.msk.f32.mxu1 %vm2219_vm11, %v7328_v15  ;;  %v7384_v59 = vmax.f32 %v2158_v36, 0.0  ;;  %v2160_v30 = vadd.f32 %v7133_v9, %v2122_v39 }
 0x203   : > { %9094 = vst [vmem:[#allocation45_spill] sm:$0xff] %v7369_v35  ;;  %v1842_v56 = vadd.f32 %v1810_v46, %v1646_v47  ;;  %v2092_v42 = vmul.f32 %v9075_v55, %v1142_v49  ;;  %v1744_v63 = vpop.permute.xlu1 %1743  ;;  %v1647_v44 = vadd.f32 %v1615_v22, %v1451_v60  ;;  %5629 = vrsqrt.f32 %v9098_v62 }
 0x204   : > { %9096 = vst [vmem:[#allocation48_spill] sm:$0xff] %v7384_v59  ;;  %5223 = vmatmul.mubr.msk.f32.gmra.mrb[14].mxu0 %vm2219_vm11, %v7369_v35  ;;  %v1811_v41 = vmul.f32 %v6515_v13, %v1744_v63  ;;  %v7393_v48 = vmax.f32 %v2160_v30, 0.0  ;;  %v1149_v55 = vsel %vm1147_vm2, %v1148_v1, %v1146_v11  ;;  %v7400_v58 = vmax.f32 %v2159_v6, 0.0  ;;  %v7429_v49 = vpop.permute.xlu0 %1413  ;;  %v9103_v30 = vld [vmem:[#allocation40_spill] sm:$0xff] }
 0x205   : > { %v2054_v61 = vadd.f32 %v1997_v3, %v1842_v56  ;;  %5225 = vmatprep.mubr.msk.f32.mxu0 %vm2219_vm11, %v7384_v59  ;;  %5324 = vmatmul.mubr.msk.f32.gmra.mrb[14].mxu1 %vm2219_vm11, %v7341_v40  ;;  %v2161_v20 = vadd.f32 %v7133_v9, %v7282_v8  ;;  %v2093_v21 = vmul.f32 %v7413_v51, %v1149_v55  ;;  %vm1159_vm3 = vcmp.eq.f32.partialorder %v9093_v57, inf }
 0x206   : > { %9097 = vst [vmem:[#allocation34_spill] sm:$0xff] %v7393_v48  ;;  %9099 = vst [vmem:[#allocation38_spill] sm:$0xff] %v7400_v58  ;;  %v1843_v5 = vadd.f32 %v1811_v41, %v1647_v44  ;;  %5326 = vmatprep.mubr.msk.f32.mxu1 %vm2219_vm11, %v7354_v4  ;;  %v1162_v6 = vand.u32 2147483648, %v9093_v57  ;;  %vm1161_vm4 = vcmp.eq.f32.partialorder %v9093_v57, 0.0  ;;  %v9104_v41 = vld [vmem:[#allocation28_spill] sm:$0xff]  ;;  %vm1152_vm0 = vcmp.eq.f32.partialorder %v9098_v62, inf }
 0x207   : > { %v2124_v43 = vadd.f32 %v2092_v42, %v2054_v61  ;;  %v7421_v36 = vmax.f32 %v2161_v20, 0.0  ;;  %v1617_v42 = vmul.f32 %v6507_v2, %v9103_v30  ;;  %v1952_v61 = vcombine.high %v7087_v29, %v7087_v29 }
 0x208   : > { %5226 = vmatmul.mubr.msk.f32.gmra.mrb[16].mxu0 %vm2219_vm11, %v7400_v58  ;;  %v2055_v38 = vadd.f32 %v1997_v3, %v1843_v5  ;;  %v1379_v8 = vpop.permute.xlu1 %1378  ;;  %v1752_v22 = vpop.permute.xlu0 %1751  ;;  %5631 = vrsqrt.f32 %v9104_v41  ;;  %v1155_v29 = vand.u32 2147483648, %v9098_v62  ;;  %vm1154_vm5 = vcmp.eq.f32.partialorder %v9098_v62, 0.0 }
 0x209   : > { %5228 = vmatprep.mubr.msk.f32.mxu0 %vm2219_vm11, %v7393_v48  ;;  %v2162_v23 = vadd.f32 %v7133_v9, %v2124_v43  ;;  %v5628_v33 = vpop.eup %5627  ;;  %5327 = vmatmul.mubr.msk.f32.gmra.mrb[16].mxu1 %vm2219_vm11, %v7369_v35  ;;  %9100 = vst [vmem:[#allocation50_spill] sm:$0xff] %v7421_v36  ;;  %v1813_v44 = vmul.f32 %v6515_v13, %v1752_v22  ;;  %vm1173_vm6 = vcmp.eq.f32.partialorder %v9104_v41, inf  ;;  %vm1175_vm7 = vcmp.eq.f32.partialorder %v9104_v41, 0.0 }
 0x20a   : > { %v2125_v1 = vadd.f32 %v2093_v21, %v2055_v38  ;;  %5329 = vmatprep.mubr.msk.f32.mxu1 %vm2219_vm11, %v7384_v59  ;;  %v1158_v60 = vmul.f32 %v5628_v33, %v9093_v57  ;;  %v2001_v38 = vrot.slane %v1952_v61, %v6034_v10  ;;  %v9105_v33 = vld [vmem:[#allocation27_spill] sm:$0xff] }
 0x20b   : > { %v7425_v47 = vmax.f32 %v2162_v23, 0.0  ;;  %5633 = vrsqrt.f32 %v9105_v33  ;;  %vm1166_vm8 = vcmp.eq.f32.partialorder %v9105_v33, inf  ;;  %vm1168_vm9 = vcmp.eq.f32.partialorder %v9105_v33, 0.0 }
 0x20c   : > { %5229 = vmatmul.mubr.msk.f32.gmra.mrb[18].mxu0 %vm2219_vm11, %v7421_v36  ;;  %v2163_v19 = vadd.f32 %v7133_v9, %v2125_v1  ;;  %v1160_v56 = vsel %vm1159_vm3, %v9093_v57, %v1158_v60  ;;  %v1452_v57 = vmul.f32 %v6512_v52, %v1379_v8 }
 0x20d   : > { %9101 = vst [vmem:[#allocation3_spill] sm:$0xff] %v7425_v47  ;;  %5231 = vmatprep.mubr.msk.f32.mxu0 %vm2219_vm11, %v7425_v47  ;;  %5330 = vmatmul.mubr.msk.f32.gmra.mrb[18].mxu1 %vm2219_vm11, %v7400_v58  ;;  %v1552_v39 = vpop.permute.xlu1 %1551  ;;  %v5630_v50 = vpop.eup %5629  ;;  %v1163_v43 = vsel %vm1161_vm4, %v1162_v6, %v1160_v56  ;;  %vm4544_vm4 = vcmask 1041409  }
 0x20e   : > { %5332 = vmatprep.mubr.msk.f32.mxu1 %vm2219_vm11, %v7393_v48  ;;  %v7439_v46 = vmax.f32 %v2163_v19, 0.0  ;;  %v1151_v11 = vmul.f32 %v5630_v50, %v9098_v62  ;;  %v1616_v55 = vmul.f32 %v6507_v2, %v1552_v39  ;;  %v2095_v39 = vmul.f32 %v7413_v51, %v1163_v43 }
 0x210   : > { %9102 = vst [vmem:[#allocation42_spill] sm:$0xff] %v7439_v46  ;;  %5232 = vmatmul.mubr.msk.f32.gmra.mrb[20].mxu0 %vm2219_vm11, %v7439_v46  ;;  %v1153_v5 = vsel %vm1152_vm0, %v9098_v62, %v1151_v11  ;;  %v1648_v1 = vadd.f32 %v1616_v55, %v1452_v57  ;;  %v1760_v57 = vpop.permute.xlu0 %1759  ;;  %vm4546_vm0 = vcmask 1042434  }
 0x211   : > { %5333 = vmatmul.mubr.msk.f32.gmra.mrb[20].mxu1 %vm2219_vm11, %v7421_v36  ;;  %v1156_v8 = vsel %vm1154_vm5, %v1155_v29, %v1153_v5  ;;  %vm4548_vm5 = vcmask 1043459  }
 0x212   : > { %5335 = vmatprep.mubr.msk.f32.mxu1 %vm2219_vm11, %v7425_v47  ;;  %v1384_v3 = vpop.permute.xlu1 %1383  ;;  %v2094_v11 = vmul.f32 %v7413_v51, %v1156_v8  ;;  %v5632_v56 = vpop.eup %5631 }
 0x213   : > { %v1453_v63 = vmul.f32 %v6512_v52, %v1384_v3  ;;  %v1172_v62 = vmul.f32 %v5632_v56, %v9104_v41  ;;  %v9109_v56 = vld [vmem:[#allocation20_spill] sm:$0xff] }
 0x214   : > { %vm1180_vm10 = vcmp.eq.f32.partialorder %v9109_v56, inf  ;;  %vm1182_vm13 = vcmp.eq.f32.partialorder %v9109_v56, 0.0 }
 0x215   : > { %v1649_v20 = vadd.f32 %v1617_v42, %v1453_v63  ;;  %5336 = vmatmul.mubr.msk.f32.gmra.mrb[22].mxu1 %vm2219_vm11, %v7439_v46  ;;  %v5634_v61 = vpop.eup %5633 }
 0x216   : > { %v1165_v43 = vmul.f32 %v5634_v61, %v9105_v33 }
 0x217   : > { %v1845_v21 = vadd.f32 %v1813_v44, %v1649_v20  ;;  %v1748_v23 = vpop.permute.xlu1 %1747 }
 0x218   : > { %v1812_v19 = vmul.f32 %v6515_v13, %v1748_v23  ;;  %v1815_v23 = vmul.f32 %v6515_v13, %v1760_v57 }
 0x219   : > { %v2057_v60 = vadd.f32 %v2001_v38, %v1845_v21  ;;  %v1174_v21 = vsel %vm1173_vm6, %v9104_v41, %v1172_v62  ;;  %vm4550_vm6 = vcmask 1044484  }
 0x21a   : > { %v1844_v50 = vadd.f32 %v1812_v19, %v1648_v1  ;;  %v7496_v1 = vrot.slane %v7061_v53, %v9042_v16  ;;  %v1169_v53 = vand.u32 2147483648, %v9105_v33 }
 0x21b   : > { %v2127_v22 = vadd.f32 %v2095_v39, %v2057_v60  ;;  %v1176_v39 = vand.u32 2147483648, %v9104_v41  ;;  %v9108_v60 = vld [vmem:[#allocation29_spill] sm:$0xff] }
 0x21c   : > { %v2056_v6 = vadd.f32 %v2001_v38, %v1844_v50  ;;  %v1389_v3 = vpop.permute.xlu1 %1388  ;;  %v1455_v38 = vmul.f32 %v6512_v52, %v7364_v45  ;;  %5635 = vrsqrt.f32 %v9108_v60  ;;  %v2005_v16 = vrot.slane %v7496_v1, %v6034_v10 }
 0x21d   : > { %v2165_v42 = vadd.f32 %v7133_v9, %v2127_v22  ;;  %v1454_v45 = vmul.f32 %v6512_v52, %v1389_v3  ;;  %v1177_v50 = vsel %vm1175_vm7, %v1176_v39, %v1174_v21  ;;  %v1167_v22 = vsel %vm1166_vm8, %v9105_v33, %v1165_v43 }
 0x21e   : > { %v2126_v30 = vadd.f32 %v2094_v11, %v2056_v6  ;;  %5637 = vrsqrt.f32 %v9109_v56  ;;  %v2097_v3 = vmul.f32 %v7413_v51, %v1177_v50  ;;  %vm1187_vm12 = vcmp.eq.f32.partialorder %v9108_v60, inf }
 0x21f   : > { %v7477_v20 = vmax.f32 %v2165_v42, 0.0  ;;  %vm1189_vm14 = vcmp.eq.f32.partialorder %v9108_v60, 0.0  ;;  %vm4552_vm7 = vcmask 1045509   ;;  %vm4554_vm8 = vcmask 1046534  }
 0x220   : > { %v2164_v63 = vadd.f32 %v7133_v9, %v2126_v30 }
 0x221   : > { %v1560_v44 = vpop.permute.xlu1 %1559  ;;  %9107 = vst [vmem:[#allocation54_spill] sm:$0xff] %v7477_v20 }
 0x222   : > { %v7475_v55 = vmax.f32 %v2164_v63, 0.0  ;;  %v1618_v19 = vmul.f32 %v6507_v2, %v1560_v44  ;;  %v1170_v63 = vsel %vm1168_vm9, %v1169_v53, %v1167_v22  ;;  %vm4556_vm9 = vcmask 1047559  }
 0x223   : > { %v2096_v61 = vmul.f32 %v7413_v51, %v1170_v63 }
 0x224   : > { %9106 = vst [vmem:[#allocation52_spill] sm:$0xff] %v7475_v55  ;;  %5234 = vmatprep.mubr.msk.f32.mxu0 %vm2219_vm11, %v7475_v55  ;;  %5338 = vmatprep.mubr.msk.f32.mxu1 %vm2219_vm11, %v7475_v55  ;;  %v1650_v30 = vadd.f32 %v1618_v19, %v1454_v45  ;;  %v1768_v45 = vpop.permute.xlu0 %1767 }
 0x225   : > { %5235 = vmatmul.mubr.msk.f32.gmra.mrb[22].mxu0 %vm2219_vm11, %v7477_v20  ;;  %5339 = vmatmul.mubr.msk.f32.gmra.mrb[24].mxu1 %vm2219_vm11, %v7477_v20  ;;  %v1564_v5 = vpop.permute.xlu1 %1563 }
 0x226   : > { %v1619_v29 = vmul.f32 %v6507_v2, %v1564_v5  ;;  %v5636_v21 = vpop.eup %5635 }
 0x227   : > { %v1186_v19 = vmul.f32 %v5636_v21, %v9108_v60  ;;  %v9113_v21 = vld [vmem:[#allocation14_spill] sm:$0xff] }
 0x228   : > { %v1651_v8 = vadd.f32 %v1619_v29, %v1455_v38  ;;  %v5638_v33 = vpop.eup %5637  ;;  %vm1194_vm2 = vcmp.eq.f32.partialorder %v9113_v21, inf  ;;  %vm1196_vm3 = vcmp.eq.f32.partialorder %v9113_v21, 0.0 }
 0x229   : > { %v1179_v50 = vmul.f32 %v5638_v33, %v9109_v56  ;;  %v1188_v53 = vsel %vm1187_vm12, %v9108_v60, %v1186_v19 }
 0x22a   : > { %v1847_v11 = vadd.f32 %v1815_v23, %v1651_v8  ;;  %v1756_v6 = vpop.permute.xlu1 %1755 }
 0x22b   : > { %v1814_v41 = vmul.f32 %v6515_v13, %v1756_v6  ;;  %v1817_v6 = vmul.f32 %v6515_v13, %v1768_v45 }
 0x22c   : > { %v2059_v42 = vadd.f32 %v2005_v16, %v1847_v11  ;;  %v1457_v11 = vmul.f32 %v6512_v52, %v7404_v28 }
 0x22d   : > { %v1846_v62 = vadd.f32 %v1814_v41, %v1650_v30  ;;  %v1190_v30 = vand.u32 2147483648, %v9108_v60 }
 0x22e   : > { %v2129_v44 = vadd.f32 %v2097_v3, %v2059_v42  ;;  %v1183_v42 = vand.u32 2147483648, %v9109_v56  ;;  %v9112_v3 = vld [vmem:[#allocation22_spill] sm:$0xff] }
 0x22f   : > { %v2058_v57 = vadd.f32 %v2005_v16, %v1846_v62  ;;  %v1399_v43 = vpop.permute.xlu1 %1398  ;;  %5639 = vrsqrt.f32 %v9112_v3  ;;  %v1191_v28 = vsel %vm1189_vm14, %v1190_v30, %v1188_v53  ;;  %vm1201_vm1 = vcmp.eq.f32.partialorder %v9112_v3, inf }
 0x230   : > { %v2167_v38 = vadd.f32 %v7133_v9, %v2129_v44  ;;  %v1456_v62 = vmul.f32 %v6512_v52, %v1399_v43  ;;  %v1181_v44 = vsel %vm1180_vm10, %v9109_v56, %v1179_v50  ;;  %5641 = vrsqrt.f32 %v9113_v21 }
 0x231   : > { %v2128_v5 = vadd.f32 %v2096_v61, %v2058_v57  ;;  %v2009_v57 = vrot.slane %v7092_v18, %v6034_v10  ;;  %v2099_v43 = vmul.f32 %v7413_v51, %v1191_v28  ;;  %vm1203_vm15 = vcmp.eq.f32.partialorder %v9112_v3, 0.0  ;;  %v1776_v28 = vpop.permute.xlu0 %1775 }
 0x232   : > { %v7518_v8 = vmax.f32 %v2167_v38, 0.0 }
 0x233   : > { %v2166_v29 = vadd.f32 %v7133_v9, %v2128_v5 }
 0x234   : > { %v1568_v23 = vpop.permute.xlu1 %1567  ;;  %9111 = vst [vmem:[#allocation51_spill] sm:$0xff] %v7518_v8 }
 0x235   : > { %v7516_v39 = vmax.f32 %v2166_v29, 0.0  ;;  %v1620_v41 = vmul.f32 %v6507_v2, %v1568_v23  ;;  %v1184_v23 = vsel %vm1182_vm13, %v1183_v42, %v1181_v44 }
 0x236   : > { %v2098_v45 = vmul.f32 %v7413_v51, %v1184_v23 }
 0x237   : > { %9110 = vst [vmem:[#allocation43_spill] sm:$0xff] %v7516_v39  ;;  %5237 = vmatprep.mubr.msk.f32.mxu0 %vm2219_vm11, %v7516_v39  ;;  %5341 = vmatprep.mubr.msk.f32.mxu1 %vm2219_vm11, %v7516_v39  ;;  %v1652_v38 = vadd.f32 %v1620_v41, %v1456_v62 }
 0x238   : > { %5238 = vmatmul.mubr.msk.f32.gmra.mrb[24].mxu0 %vm2219_vm11, %v7518_v8  ;;  %5342 = vmatmul.mubr.msk.f32.gmra.mrb[26].mxu1 %vm2219_vm11, %v7518_v8  ;;  %v1572_v22 = vpop.permute.xlu1 %1571 }
 0x239   : > { %v1621_v16 = vmul.f32 %v6507_v2, %v1572_v22 }
 0x23b   : > { %v1653_v63 = vadd.f32 %v1621_v16, %v1457_v11  ;;  %v5640_v11 = vpop.eup %5639 }
 0x23c   : > { %v1200_v30 = vmul.f32 %v5640_v11, %v9112_v3 }
 0x23d   : > { %v1849_v61 = vadd.f32 %v1817_v6, %v1653_v63  ;;  %v1764_v5 = vpop.permute.xlu1 %1763  ;;  %v5642_v6 = vpop.eup %5641  ;;  %v1204_v63 = vand.u32 2147483648, %v9112_v3 }
 0x23e   : > { %v1816_v29 = vmul.f32 %v6515_v13, %v1764_v5  ;;  %v1193_v62 = vmul.f32 %v5642_v6, %v9113_v21  ;;  %v1951_v5 = vcombine.high %v7496_v1, %v7496_v1 }
 0x23f   : > { %v2061_v60 = vadd.f32 %v2009_v57, %v1849_v61  ;;  %v1202_v61 = vsel %vm1201_vm1, %v9112_v3, %v1200_v30 }
 0x240   : > { %v1848_v33 = vadd.f32 %v1816_v29, %v1652_v38  ;;  %v2013_v1 = vrot.slane %v1951_v5, %v6034_v10  ;;  %v627_v5 = vld [vmem:[%s7596_s21 + $0x40] sm:$0xff] }
 0x241   : > { %v2131_v19 = vadd.f32 %v2099_v43, %v2061_v60  ;;  %v1819_v60 = vmul.f32 %v6515_v13, %v1776_v28  ;;  %v7636_v28 = vld [vmem:[%s7596_s21 + $0x20] sm:$0xff] }
 0x242   : > { %v2060_v50 = vadd.f32 %v2009_v57, %v1848_v33  ;;  %v1409_v56 = vpop.permute.xlu1 %1408  ;;  %v1459_v57 = vmul.f32 %v6512_v52, %v7429_v49  ;;  %v1205_v33 = vsel %vm1203_vm15, %v1204_v63, %v1202_v61  ;;  %v1197_v49 = vand.u32 2147483648, %v9113_v21  ;;  %v7622_v63 = vld [vmem:[%s7596_s21 + $0x10] sm:$0xff] }
 0x243   : > { %v2169_v18 = vadd.f32 %v7133_v9, %v2131_v19  ;;  %v1458_v23 = vmul.f32 %v6512_v52, %v1409_v56  ;;  %v1195_v19 = vsel %vm1194_vm2, %v9113_v21, %v1193_v62  ;;  %v2101_v11 = vmul.f32 %v7413_v51, %v1205_v33  ;;  %v7604_v21 = vld [vmem:[%s7596_s21] sm:$0xff]  ;;  %v7633_v62 = vld [vmem:[%s7596_s21 + $0x18] sm:$0xff]  ;;  %v7650_v61 = vld [vmem:[%s7596_s21 + $0x30] sm:$0xff] }
 0x244   : > { %v2130_v22 = vadd.f32 %v2098_v45, %v2060_v50  ;;  %v1198_v56 = vsel %vm1196_vm3, %v1197_v49, %v1195_v19  ;;  %v633_v33 = vld [vmem:[%s7596_s21 + $0x70] sm:$0xff]  ;;  %v634_v19 = vld [vmem:[%s7596_s21 + $0x78] sm:$0xff]  ;;  %v635_v49 = vld [vmem:[%s7596_s21 + $0x80] sm:$0xff] }
 0x245   : > { %v7558_v42 = vmax.f32 %v2169_v18, 0.0 }
 0x246   : > { %v2168_v16 = vadd.f32 %v7133_v9, %v2130_v22 }
 0x247   : > { %v1576_v53 = vpop.permute.xlu1 %1575  ;;  %9115 = vst [vmem:[#allocation46_spill] sm:$0xff] %v7558_v42 }
 0x248   : > { %v7555_v41 = vmax.f32 %v2168_v16, 0.0  ;;  %v1622_v29 = vmul.f32 %v6507_v2, %v1576_v53  ;;  %v2100_v16 = vmul.f32 %v7413_v51, %v1198_v56  ;;  %v643_v56 = vld [vmem:[%s7596_s21 + $0xc0] sm:$0xff] }
 0x24a   : > { %9114 = vst [vmem:[#allocation55_spill] sm:$0xff] %v7555_v41  ;;  %5240 = vmatprep.mubr.msk.f32.mxu0 %vm2219_vm11, %v7555_v41  ;;  %5344 = vmatprep.mubr.msk.f32.mxu1 %vm2219_vm11, %v7555_v41 }
 0x24b   : > { %5241 = vmatmul.mubr.msk.f32.gmra.mrb[26].mxu0 %vm2219_vm11, %v7558_v42  ;;  %5345 = vmatmul.mubr.msk.f32.gmra.mrb[28].mxu1 %vm2219_vm11, %v7558_v42  ;;  %v1580_v44 = vpop.permute.xlu1 %1579 }
 0x24c   : > { %v1623_v38 = vmul.f32 %v6507_v2, %v1580_v44  ;;  %v1654_v2 = vadd.f32 %v1622_v29, %v1458_v23  ;;  %v7647_v44 = vld [vmem:[%s7596_s21 + $0x28] sm:$0xff]  ;;  %v629_v29 = vld [vmem:[%s7596_s21 + $0x50] sm:$0xff] }
 0x24d   : > { %v632_v23 = vld [vmem:[%s7596_s21 + $0x68] sm:$0xff] }
 0x24e   : > { %v1655_v43 = vadd.f32 %v1623_v38, %v1459_v57  ;;  %v7661_v57 = vld [vmem:[%s7596_s21 + $0x38] sm:$0xff]  ;;  %v7672_v38 = vld [vmem:[%s7596_s21 + $0x48] sm:$0xff] }
 0x24f   : > { %9118 = vst [vmem:[#allocation62_spill] sm:$0xff] %v7672_v38 }
 0x250   : > { %v1851_v45 = vadd.f32 %v1819_v60, %v1655_v43  ;;  %v1772_v50 = vpop.permute.xlu1 %1771  ;;  %v630_v60 = vld [vmem:[%s7596_s21 + $0x58] sm:$0xff]  ;;  %v631_v43 = vld [vmem:[%s7596_s21 + $0x60] sm:$0xff] }
 0x251   : > { %v1818_v22 = vmul.f32 %v6515_v13, %v1772_v50  ;;  %v638_v50 = vld [vmem:[%s7596_s21 + $0x98] sm:$0xff] }
 0x252   : > { %v2063_v52 = vadd.f32 %v2013_v1, %v1851_v45  ;;  %v637_v45 = vld [vmem:[%s7596_s21 + $0x90] sm:$0xff] }
 0x253   : > { %v1850_v3 = vadd.f32 %v1818_v22, %v1654_v2  ;;  %v639_v2 = vld [vmem:[%s7596_s21 + $0xa0] sm:$0xff]  ;;  %v640_v22 = vld [vmem:[%s7596_s21 + $0xa8] sm:$0xff] }
 0x254   : > { %v2133_v18 = vadd.f32 %v2101_v11, %v2063_v52  ;;  %v641_v11 = vld [vmem:[%s7596_s21 + $0xb0] sm:$0xff]  ;;  %v642_v52 = vld [vmem:[%s7596_s21 + $0xb8] sm:$0xff] }
 0x255   : > { %v2062_v53 = vadd.f32 %v2013_v1, %v1850_v3  ;;  %v636_v1 = vld [vmem:[%s7596_s21 + $0x88] sm:$0xff] }
 0x256   : > { %v2171_v30 = vadd.f32 %v7133_v9, %v2133_v18  ;;  %v644_v3 = vld [vmem:[%s7596_s21 + $0xc8] sm:$0xff]  ;;  %v645_v18 = vld [vmem:[%s7596_s21 + $0xd0] sm:$0xff] }
 0x257   : > { %v2132_v6 = vadd.f32 %v2100_v16, %v2062_v53  ;;  %v646_v16 = vld [vmem:[%s7596_s21 + $0xd8] sm:$0xff]  ;;  %v647_v53 = vld [vmem:[%s7596_s21 + $0xe0] sm:$0xff] }
 0x258   : > { %v7601_v51 = vmax.f32 %v2171_v30, 0.0  ;;  %v649_v30 = vld [vmem:[%s7596_s21 + $0xf0] sm:$0xff] }
 0x259   : > { %v2170_v10 = vadd.f32 %v7133_v9, %v2132_v6  ;;  %v7619_v9 = vld [vmem:[%s7596_s21 + $0x8] sm:$0xff] }
 0x25a   : > { %9117 = vst [vmem:[#allocation44_spill] sm:$0xff] %v7601_v51  ;;  %v648_v6 = vld [vmem:[%s7596_s21 + $0xe8] sm:$0xff] }
 0x25b   : > { %v7599_v13 = vmax.f32 %v2170_v10, 0.0  ;;  %v650_v10 = vld [vmem:[%s7596_s21 + $0xf8] sm:$0xff] }
 0x25d   : > { %9116 = vst [vmem:[#allocation2_spill] sm:$0xff] %v7599_v13  ;;  %5243 = vmatprep.mubr.msk.f32.mxu0 %vm2219_vm11, %v7599_v13  ;;  %5347 = vmatprep.mubr.msk.f32.mxu1 %vm2219_vm11, %v7599_v13 }
 0x25e   : > { %5244 = vmatmul.mubr.msk.f32.gmra.mrb[28].mxu0 %vm2219_vm11, %v7601_v51  ;;  %5348 = vmatmul.mubr.msk.f32.gmra.mrb[30].mxu1 %vm2219_vm11, %v7601_v51 }
 0x25f   : > { %5350 = vmatprep.mubr.msk.f32.mxu1 %vm2219_vm11, %v7172_v14  ;;  %5253 = vmatprep.mubr.msk.f32.mxu0 %vm2219_vm11, %v7604_v21 }
 0x262   : > { %5254 = vmatmul.mubr.msk.f32.vlgmr.msra.gmra.mrb[0].mxu0 %vm2219_vm11, %v7619_v9  ;;  %5351 = vmatmul.mubr.msk.f32.gmra.mrb[32].mxu1 %vm2219_vm11, %v7177_v12 }
 0x263   : > { %5256 = vmatprep.mubr.msk.f32.mxu0 %vm2219_vm11, %v7622_v63  ;;  %5357 = vmatprep.mubr.msk.f32.mxu1 %vm2219_vm11, %v7604_v21 }
 0x266   : > { %5257 = vmatmul.mubr.msk.f32.gmra.mrb[2].mxu0 %vm2219_vm11, %v7633_v62  ;;  %5358 = vmatmul.mubr.msk.f32.vlgmr.msra.gmra.mrb[2].mxu1 %vm2219_vm11, %v7619_v9 }
 0x267   : > { %5259 = vmatprep.mubr.msk.f32.mxu0 %vm2219_vm11, %v7636_v28  ;;  %5360 = vmatprep.mubr.msk.f32.mxu1 %vm2219_vm11, %v7622_v63 }
 0x26a   : > { %5260 = vmatmul.mubr.msk.f32.gmra.mrb[4].mxu0 %vm2219_vm11, %v7647_v44  ;;  %5361 = vmatmul.mubr.msk.f32.gmra.mrb[4].mxu1 %vm2219_vm11, %v7633_v62 }
 0x26b   : > { %5262 = vmatprep.mubr.msk.f32.mxu0 %vm2219_vm11, %v7650_v61  ;;  %5363 = vmatprep.mubr.msk.f32.mxu1 %vm2219_vm11, %v7636_v28 }
 0x26e   : > { %5263 = vmatmul.mubr.msk.f32.gmra.mrb[6].mxu0 %vm2219_vm11, %v7661_v57  ;;  %5364 = vmatmul.mubr.msk.f32.gmra.mrb[6].mxu1 %vm2219_vm11, %v7647_v44 }
 0x26f   : > { %5265 = vmatprep.mubr.msk.f32.mxu0 %vm2219_vm11, %v627_v5  ;;  %5366 = vmatprep.mubr.msk.f32.mxu1 %vm2219_vm11, %v7650_v61 }
 0x272   : > { %5266 = vmatmul.mubr.msk.f32.gmra.mrb[8].mxu0 %vm2219_vm11, %v7672_v38  ;;  %5367 = vmatmul.mubr.msk.f32.gmra.mrb[8].mxu1 %vm2219_vm11, %v7661_v57 }
 0x273   : > { %5268 = vmatprep.mubr.msk.f32.mxu0 %vm2219_vm11, %v629_v29  ;;  %5369 = vmatprep.mubr.msk.f32.mxu1 %vm2219_vm11, %v627_v5 }
 0x276   : > { %5269 = vmatmul.mubr.msk.f32.gmra.mrb[10].mxu0 %vm2219_vm11, %v630_v60  ;;  %5370 = vmatmul.mubr.msk.f32.gmra.mrb[10].mxu1 %vm2219_vm11, %v7672_v38 }
 0x277   : > { %5271 = vmatprep.mubr.msk.f32.mxu0 %vm2219_vm11, %v631_v43  ;;  %5372 = vmatprep.mubr.msk.f32.mxu1 %vm2219_vm11, %v629_v29 }
 0x27a   : > { %5272 = vmatmul.mubr.msk.f32.gmra.mrb[12].mxu0 %vm2219_vm11, %v632_v23  ;;  %5373 = vmatmul.mubr.msk.f32.gmra.mrb[12].mxu1 %vm2219_vm11, %v630_v60 }
 0x27b   : > { %5274 = vmatprep.mubr.msk.f32.mxu0 %vm2219_vm11, %v633_v33  ;;  %5375 = vmatprep.mubr.msk.f32.mxu1 %vm2219_vm11, %v631_v43 }
 0x27e   : > { %5275 = vmatmul.mubr.msk.f32.gmra.mrb[14].mxu0 %vm2219_vm11, %v634_v19  ;;  %5376 = vmatmul.mubr.msk.f32.gmra.mrb[14].mxu1 %vm2219_vm11, %v632_v23 }
 0x27f   : > { %5277 = vmatprep.mubr.msk.f32.mxu0 %vm2219_vm11, %v635_v49  ;;  %5378 = vmatprep.mubr.msk.f32.mxu1 %vm2219_vm11, %v633_v33 }
 0x282   : > { %5278 = vmatmul.mubr.msk.f32.gmra.mrb[16].mxu0 %vm2219_vm11, %v636_v1  ;;  %5379 = vmatmul.mubr.msk.f32.gmra.mrb[16].mxu1 %vm2219_vm11, %v634_v19 }
 0x283   : > { %5280 = vmatprep.mubr.msk.f32.mxu0 %vm2219_vm11, %v637_v45  ;;  %5381 = vmatprep.mubr.msk.f32.mxu1 %vm2219_vm11, %v635_v49 }
 0x286   : > { %5281 = vmatmul.mubr.msk.f32.gmra.mrb[18].mxu0 %vm2219_vm11, %v638_v50  ;;  %5382 = vmatmul.mubr.msk.f32.gmra.mrb[18].mxu1 %vm2219_vm11, %v636_v1 }
 0x287   : > { %5283 = vmatprep.mubr.msk.f32.mxu0 %vm2219_vm11, %v639_v2  ;;  %5384 = vmatprep.mubr.msk.f32.mxu1 %vm2219_vm11, %v637_v45 }
 0x28a   : > { %5284 = vmatmul.mubr.msk.f32.gmra.mrb[20].mxu0 %vm2219_vm11, %v640_v22  ;;  %5385 = vmatmul.mubr.msk.f32.gmra.mrb[20].mxu1 %vm2219_vm11, %v638_v50 }
 0x28b   : > { %5286 = vmatprep.mubr.msk.f32.mxu0 %vm2219_vm11, %v641_v11  ;;  %5387 = vmatprep.mubr.msk.f32.mxu1 %vm2219_vm11, %v639_v2 }
 0x28e   : > { %5287 = vmatmul.mubr.msk.f32.gmra.mrb[22].mxu0 %vm2219_vm11, %v642_v52  ;;  %5388 = vmatmul.mubr.msk.f32.gmra.mrb[22].mxu1 %vm2219_vm11, %v640_v22 }
 0x28f   : > { %5289 = vmatprep.mubr.msk.f32.mxu0 %vm2219_vm11, %v643_v56  ;;  %5390 = vmatprep.mubr.msk.f32.mxu1 %vm2219_vm11, %v641_v11 }
 0x292   : > { %5290 = vmatmul.mubr.msk.f32.gmra.mrb[24].mxu0 %vm2219_vm11, %v644_v3  ;;  %5391 = vmatmul.mubr.msk.f32.gmra.mrb[24].mxu1 %vm2219_vm11, %v642_v52 }
 0x293   : > { %5292 = vmatprep.mubr.msk.f32.mxu0 %vm2219_vm11, %v645_v18  ;;  %5393 = vmatprep.mubr.msk.f32.mxu1 %vm2219_vm11, %v643_v56 }
 0x296   : > { %5293 = vmatmul.mubr.msk.f32.gmra.mrb[26].mxu0 %vm2219_vm11, %v646_v16  ;;  %5394 = vmatmul.mubr.msk.f32.gmra.mrb[26].mxu1 %vm2219_vm11, %v644_v3 }
 0x297   : > { %5295 = vmatprep.mubr.msk.f32.mxu0 %vm2219_vm11, %v647_v53  ;;  %5396 = vmatprep.mubr.msk.f32.mxu1 %vm2219_vm11, %v645_v18 }
 0x29a   : > { %5296 = vmatmul.mubr.msk.f32.gmra.mrb[28].mxu0 %vm2219_vm11, %v648_v6  ;;  %5397 = vmatmul.mubr.msk.f32.gmra.mrb[28].mxu1 %vm2219_vm11, %v646_v16 }
 0x29b   : > { %5298 = vmatprep.mubr.msk.f32.mxu0 %vm2219_vm11, %v649_v30  ;;  %5399 = vmatprep.mubr.msk.f32.mxu1 %vm2219_vm11, %v647_v53 }
 0x29e   : > { %5299 = vmatmul.mubr.msk.f32.gmra.mrb[30].mxu0 %vm2219_vm11, %v650_v10  ;;  %5400 = vmatmul.mubr.msk.f32.gmra.mrb[30].mxu1 %vm2219_vm11, %v648_v6 }
 0x29f   : > { %5402 = vmatprep.mubr.msk.f32.mxu1 %vm2219_vm11, %v649_v30 }
 0x2a2   : > { %5403 = vmatmul.mubr.msk.f32.gmra.mrb[32].mxu1 %vm2219_vm11, %v650_v10 }
 0x2bc   : > { %v7747_v5 = vpop.f32.mrb[0].mxu1 }
 0x2bd   : > { %9119 = vst [vmem:[#allocation58_spill] sm:$0xff] %v7747_v5  ;;  %v7749_v29 = vpop.f32.mrb[1].mxu1 }
 0x2be   : > { %9120 = vst [vmem:[#allocation17_spill] sm:$0xff] %v7749_v29 }
 0x335   : > { %v7751_v60 = vpop.f32.mrb[0].mxu0 }
 0x336   : > { %v3313_v43 = vsel %vm2219_vm11, %v7751_v60, -inf  ;;  %v2703_v23 = vpop.f32.mrb[1].mxu0 }
 0x337   : > { %v3312_v33 = vsel %vm2219_vm11, %v2703_v23, -inf }
 0x338   : > { %v3314_v19 = vmax.f32 %v3312_v33, %v3313_v43 }
 0x339   : > { %v7756_v49 = vpop.f32.mrb[2].mxu0  ;;  %v7758_v1 = vpop.f32.mrb[2].mxu1 }
 0x33a   : > { %v3315_v45 = vrot.slane %v3314_v19, 4  ;;  %v3322_v50 = vsel %vm2219_vm11, %v7756_v49, -inf  ;;  %v3921_v2 = vsel %vm2219_vm11, %v7758_v1, -inf  ;;  %v7764_v22 = vpop.f32.mrb[3].mxu0  ;;  %v7766_v11 = vpop.f32.mrb[3].mxu1 }
 0x33b   : > { %v3321_v52 = vsel %vm2219_vm11, %v7764_v22, -inf  ;;  %v3920_v56 = vsel %vm2219_vm11, %v7766_v11, -inf }
 0x33c   : > { %v3316_v3 = vmax.f32 %v3314_v19, %v3315_v45  ;;  %v3323_v18 = vmax.f32 %v3321_v52, %v3322_v50  ;;  %v3922_v16 = vmax.f32 %v3920_v56, %v3921_v2 }
 0x33d   : > { %v7772_v53 = vpop.f32.mrb[4].mxu0  ;;  %v7774_v6 = vpop.f32.mrb[4].mxu1 }
 0x33e   : > { %v3317_v30 = vrot.slane %v3316_v3, 2  ;;  %v3324_v10 = vrot.slane %v3323_v18, 4  ;;  %v3923_v43 = vrot.slane %v3922_v16, 4  ;;  %v3331_v33 = vsel %vm2219_vm11, %v7772_v53, -inf  ;;  %v7778_v12 = vpop.f32.mrb[5].mxu0  ;;  %v7780_v14 = vpop.f32.mrb[5].mxu1 }
 0x33f   : > { %v3930_v51 = vsel %vm2219_vm11, %v7774_v6, -inf  ;;  %v3330_v19 = vsel %vm2219_vm11, %v7778_v12, -inf  ;;  %v3929_v45 = vsel %vm2219_vm11, %v7780_v14, -inf }
 0x340   : > { %v3318_v50 = vmax.f32 %v3316_v3, %v3317_v30  ;;  %v3325_v2 = vmax.f32 %v3323_v18, %v3324_v10  ;;  %v3924_v52 = vmax.f32 %v3922_v16, %v3923_v43  ;;  %v3332_v56 = vmax.f32 %v3330_v19, %v3331_v33 }
 0x341   : > { %v3931_v13 = vmax.f32 %v3929_v45, %v3930_v51  ;;  %v7788_v42 = vpop.f32.mrb[6].mxu0  ;;  %v7790_v41 = vpop.f32.mrb[6].mxu1 }
 0x342   : > { %v3319_v8 = vrot.slane %v3318_v50, 1  ;;  %v3326_v39 = vrot.slane %v3325_v2, 2  ;;  %v3925_v35 = vrot.slane %v3924_v52, 2  ;;  %v3333_v40 = vrot.slane %v3332_v56, 4  ;;  %v7792_v20 = vpop.f32.mrb[7].mxu0  ;;  %v7794_v55 = vpop.f32.mrb[7].mxu1 }
 0x343   : > { %v3932_v29 = vrot.slane %v3931_v13, 4  ;;  %v3340_v3 = vsel %vm2219_vm11, %v7788_v42, -inf  ;;  %v3939_v18 = vsel %vm2219_vm11, %v7790_v41, -inf  ;;  %v3339_v51 = vsel %vm2219_vm11, %v7792_v20, -inf }
 0x344   : > { %v3320_v16 = vmax.f32 %v3318_v50, %v3319_v8  ;;  %v3327_v30 = vmax.f32 %v3325_v2, %v3326_v39  ;;  %v3926_v10 = vmax.f32 %v3924_v52, %v3925_v35  ;;  %v3334_v43 = vmax.f32 %v3332_v56, %v3333_v40 }
 0x345   : > { %v3933_v33 = vmax.f32 %v3931_v13, %v3932_v29  ;;  %v3341_v19 = vmax.f32 %v3339_v51, %v3340_v3  ;;  %v3938_v45 = vsel %vm2219_vm11, %v7794_v55, -inf  ;;  %v7804_v5 = vpop.f32.mrb[8].mxu0  ;;  %v7806_v46 = vpop.f32.mrb[8].mxu1 }
 0x346   : > { %v3456_v47 = vsub.f32 %v2703_v23, %v3320_v16  ;;  %v3457_v36 = vsub.f32 %v7751_v60, %v3320_v16  ;;  %v3328_v48 = vrot.slane %v3327_v30, 1  ;;  %v3927_v58 = vrot.slane %v3926_v10, 1  ;;  %v7809_v59 = vpop.f32.mrb[9].mxu0  ;;  %v7811_v8 = vpop.f32.mrb[9].mxu1 }
 0x347   : > { %v3335_v35 = vrot.slane %v3334_v43, 2  ;;  %v3934_v40 = vrot.slane %v3933_v33, 2  ;;  %v3342_v39 = vrot.slane %v3341_v19, 4  ;;  %v3940_v13 = vmax.f32 %v3938_v45, %v3939_v18 }
 0x348   : > { %v3488_v29 = vmul.f32 1.442695, %v3456_v47  ;;  %v3490_v50 = vmul.f32 1.442695, %v3457_v36  ;;  %v3329_v2 = vmax.f32 %v3327_v30, %v3328_v48  ;;  %v3928_v52 = vmax.f32 %v3926_v10, %v3927_v58 }
 0x349   : > { %v3336_v56 = vmax.f32 %v3334_v43, %v3335_v35  ;;  %v3935_v3 = vmax.f32 %v3933_v33, %v3934_v40  ;;  %v3343_v51 = vmax.f32 %v3341_v19, %v3342_v39  ;;  %v3941_v23 = vrot.slane %v3940_v13, 4  ;;  %v7813_v4 = vpop.f32.mrb[10].mxu0  ;;  %v7815_v60 = vpop.f32.mrb[10].mxu1 }
 0x34a   : > { %9121 = vst [vmem:[#allocation49_spill] sm:$0xff] %v7815_v60  ;;  %5643 = vpow2.f32 %v3488_v29  ;;  %v3458_v16 = vsub.f32 %v7764_v22, %v3329_v2  ;;  %v3459_v15 = vsub.f32 %v7756_v49, %v3329_v2  ;;  %v4064_v37 = vsub.f32 %v7766_v11, %v3928_v52  ;;  %v7820_v18 = vpop.f32.mrb[11].mxu0  ;;  %v7822_v36 = vpop.f32.mrb[11].mxu1 }
 0x34b   : > { %5645 = vpow2.f32 %v3490_v50  ;;  %v4065_v48 = vsub.f32 %v7758_v1, %v3928_v52  ;;  %v3337_v58 = vrot.slane %v3336_v56, 1  ;;  %v3936_v47 = vrot.slane %v3935_v3, 1 }
 0x34c   : > { %v3492_v30 = vmul.f32 1.442695, %v3458_v16  ;;  %v3494_v10 = vmul.f32 1.442695, %v3459_v15  ;;  %v4096_v43 = vmul.f32 1.442695, %v4064_v37  ;;  %v3942_v33 = vmax.f32 %v3940_v13, %v3941_v23 }
 0x34d   : > { %v4098_v19 = vmul.f32 1.442695, %v4065_v48  ;;  %v3338_v45 = vmax.f32 %v3336_v56, %v3337_v58  ;;  %v3937_v22 = vmax.f32 %v3935_v3, %v3936_v47  ;;  %v3344_v35 = vrot.slane %v3343_v51, 2  ;;  %v7825_v49 = vpop.f32.mrb[12].mxu0  ;;  %v7827_v11 = vpop.f32.mrb[12].mxu1 }
 0x34e   : > { %5647 = vpow2.f32 %v3492_v30  ;;  %v3943_v40 = vrot.slane %v3942_v33, 2  ;;  %v3349_v39 = vsel %vm2219_vm11, %v7804_v5, -inf  ;;  %v3948_v1 = vsel %vm2219_vm11, %v7806_v46, -inf  ;;  %v7833_v29 = vpop.f32.mrb[13].mxu0  ;;  %v7835_v37 = vpop.f32.mrb[13].mxu1 }
 0x34f   : > { %5649 = vpow2.f32 %v3494_v10  ;;  %v3460_v15 = vsub.f32 %v7778_v12, %v3338_v45  ;;  %v3461_v13 = vsub.f32 %v7772_v53, %v3338_v45  ;;  %v4066_v50 = vsub.f32 %v7780_v14, %v3937_v22 }
 0x350   : > { %5651 = vpow2.f32 %v4096_v43  ;;  %v4067_v2 = vsub.f32 %v7774_v6, %v3937_v22  ;;  %v3345_v52 = vmax.f32 %v3343_v51, %v3344_v35  ;;  %v3944_v56 = vmax.f32 %v3942_v33, %v3943_v40 }
 0x351   : > { %5653 = vpow2.f32 %v4098_v19  ;;  %v3496_v3 = vmul.f32 1.442695, %v3460_v15  ;;  %v3498_v23 = vmul.f32 1.442695, %v3461_v13  ;;  %v4100_v16 = vmul.f32 1.442695, %v4066_v50 }
 0x352   : > { %v4102_v48 = vmul.f32 1.442695, %v4067_v2  ;;  %v3346_v58 = vrot.slane %v3345_v52, 1  ;;  %v3945_v47 = vrot.slane %v3944_v56, 1  ;;  %v3348_v30 = vsel %vm2219_vm11, %v7809_v59, -inf  ;;  %v7843_v12 = vpop.f32.mrb[14].mxu0 }
 0x353   : > { %9122 = vst [vmem:[#allocation61_spill] sm:$0xff] %v7843_v12  ;;  %5655 = vpow2.f32 %v3496_v3  ;;  %v3350_v53 = vmax.f32 %v3348_v30, %v3349_v39  ;;  %v3947_v14 = vsel %vm2219_vm11, %v7811_v8, -inf  ;;  %v7849_v6 = vsel %vm2219_vm11, %v7813_v4, -inf  ;;  %v7851_v51 = vpop.f32.mrb[14].mxu1  ;;  %v7853_v10 = vpop.f32.mrb[15].mxu0 }
 0x354   : > { %9123 = vst [vmem:[#allocation60_spill] sm:$0xff] %v7851_v51  ;;  %9124 = vst [vmem:[#allocation12_spill] sm:$0xff] %v7853_v10  ;;  %v7855_v43 = vpop.eup %5643  ;;  %5657 = vpow2.f32 %v3498_v23  ;;  %v3347_v33 = vmax.f32 %v3345_v52, %v3346_v58  ;;  %v3946_v19 = vmax.f32 %v3944_v56, %v3945_v47  ;;  %v3949_v45 = vmax.f32 %v3947_v14, %v3948_v1  ;;  %v7857_v22 = vpop.f32.mrb[15].mxu1 }
 0x355   : > { %9125 = vst [vmem:[#allocation66_spill] sm:$0xff] %v7857_v22  ;;  %v7859_v35 = vpop.eup %5645  ;;  %v3552_v40 = vsel %vm2219_vm11, %v7855_v43, 0.0  ;;  %5659 = vpow2.f32 %v4100_v16  ;;  %v3351_v39 = vrot.slane %v3350_v53, 4  ;;  %v7865_v15 = vsel %vm2219_vm11, %v7815_v60, -inf  ;;  %v7867_v13 = vpop.f32.mrb[16].mxu0 }
 0x356   : > { %9126 = vst [vmem:[#allocation6_spill] sm:$0xff] %v7867_v13  ;;  %v7869_v50 = vpop.f32.mrb[16].mxu1  ;;  %v3553_v1 = vsel %vm2219_vm11, %v7859_v35, 0.0  ;;  %5661 = vpow2.f32 %v4102_v48  ;;  %v3462_v2 = vsub.f32 %v7792_v20, %v3347_v33  ;;  %v3463_v52 = vsub.f32 %v7788_v42, %v3347_v33  ;;  %v7875_v56 = vpop.f32.mrb[17].mxu0 }
 0x357   : > { %9127 = vst [vmem:[#allocation16_spill] sm:$0xff] %v7869_v50  ;;  %9128 = vst [vmem:[#allocation37_spill] sm:$0xff] %v7875_v56  ;;  %v7877_v3 = vpop.f32.mrb[17].mxu1  ;;  %v3554_v23 = vadd.f32 %v3553_v1, %v3552_v40  ;;  %v4068_v16 = vsub.f32 %v7794_v55, %v3946_v19  ;;  %v4069_v58 = vsub.f32 %v7790_v41, %v3946_v19  ;;  %v3950_v7 = vrot.slane %v3949_v45, 4 }
 0x358   : > { %9129 = vst [vmem:[#allocation68_spill] sm:$0xff] %v7877_v3  ;;  %v3352_v47 = vmax.f32 %v3350_v53, %v3351_v39  ;;  %v7881_v30 = vpop.eup %5647  ;;  %v3500_v14 = vmul.f32 1.442695, %v3462_v2  ;;  %v3502_v34 = vmul.f32 1.442695, %v3463_v52  ;;  %v3357_v20 = vsel %vm2219_vm11, %v7820_v18, -inf }
 0x359   : > { %v7885_v48 = vpop.eup %5649  ;;  %v3555_v42 = vrot.slane %v3554_v23, 4  ;;  %v3561_v33 = vsel %vm2219_vm11, %v7881_v30, 0.0  ;;  %v4104_v40 = vmul.f32 1.442695, %v4068_v16  ;;  %v4106_v1 = vmul.f32 1.442695, %v4069_v58 }
 0x35a   : > { %v7889_v55 = vpop.eup %5651  ;;  %v3562_v41 = vsel %vm2219_vm11, %v7885_v48, 0.0  ;;  %5663 = vpow2.f32 %v3500_v14  ;;  %v3353_v53 = vrot.slane %v3352_v47, 2  ;;  %v3951_v19 = vmax.f32 %v3949_v45, %v3950_v7  ;;  %v7893_v39 = vpop.f32.mrb[18].mxu0 }
 0x35b   : > { %9130 = vst [vmem:[#allocation64_spill] sm:$0xff] %v7893_v39  ;;  %v7895_v2 = vpop.f32.mrb[18].mxu1  ;;  %v7897_v52 = vpop.eup %5653  ;;  %v3556_v0 = vadd.f32 %v3555_v42, %v3554_v23  ;;  %v3563_v24 = vadd.f32 %v3562_v41, %v3561_v33  ;;  %v4160_v16 = vsel %vm2219_vm11, %v7889_v55, 0.0  ;;  %5665 = vpow2.f32 %v3502_v34 }
 0x35c   : > { %9131 = vst [vmem:[#allocation11_spill] sm:$0xff] %v7895_v2  ;;  %v7901_v58 = vpop.f32.mrb[19].mxu0  ;;  %v7903_v54 = vpop.f32.mrb[19].mxu1  ;;  %v4161_v14 = vsel %vm2219_vm11, %v7897_v52, 0.0  ;;  %5667 = vpow2.f32 %v4104_v40  ;;  %v3354_v7 = vmax.f32 %v3352_v47, %v3353_v53  ;;  %v3952_v45 = vrot.slane %v3951_v19, 2 }
 0x35d   : > { %9132 = vst [vmem:[#allocation69_spill] sm:$0xff] %v7901_v58  ;;  %9133 = vst [vmem:[#allocation4_spill] sm:$0xff] %v7903_v54  ;;  %v7907_v39 = vpop.eup %5655  ;;  %v3557_v2 = vrot.slane %v3556_v0, 2  ;;  %v3564_v3 = vrot.slane %v3563_v24, 4  ;;  %v4162_v23 = vadd.f32 %v4161_v14, %v4160_v16  ;;  %5669 = vpow2.f32 %v4106_v1  ;;  %v7909_v42 = vpop.f32.mrb[20].mxu0 }
 0x35e   : > { %9134 = vst [vmem:[#allocation23_spill] sm:$0xff] %v7909_v42  ;;  %v7911_v33 = vpop.f32.mrb[20].mxu1  ;;  %v7913_v34 = vpop.eup %5657  ;;  %v3570_v41 = vsel %vm2219_vm11, %v7907_v39, 0.0  ;;  %v3355_v54 = vrot.slane %v3354_v7, 1  ;;  %v3953_v58 = vmax.f32 %v3951_v19, %v3952_v45  ;;  %v7918_v47 = vmax.f32 %v3357_v20, %v7849_v6 }
 0x35f   : > { %9135 = vst [vmem:[#allocation47_spill] sm:$0xff] %v7911_v33  ;;  %v7920_v40 = vpop.f32.mrb[21].mxu0  ;;  %v7922_v53 = vpop.f32.mrb[21].mxu1  ;;  %v3558_v1 = vadd.f32 %v3557_v2, %v3556_v0  ;;  %v3565_v14 = vadd.f32 %v3564_v3, %v3563_v24  ;;  %v4163_v42 = vrot.slane %v4162_v23, 4  ;;  %v3571_v33 = vsel %vm2219_vm11, %v7913_v34, 0.0 }
 0x360   : > { %9136 = vst [vmem:[#allocation63_spill] sm:$0xff] %v7920_v40  ;;  %9137 = vst [vmem:[#allocation15_spill] sm:$0xff] %v7922_v53  ;;  %v7924_v16 = vpop.eup %5659  ;;  %v3572_v38 = vadd.f32 %v3571_v33, %v3570_v41  ;;  %v3356_v6 = vmax.f32 %v3354_v7, %v3355_v54  ;;  %v3954_v20 = vrot.slane %v3953_v58, 1 }
 0x361   : > { %v7928_v56 = vpop.eup %5661  ;;  %v4169_v19 = vsel %vm2219_vm11, %v7924_v16, 0.0  ;;  %v3559_v45 = vrot.slane %v3558_v1, 1  ;;  %v3566_v40 = vrot.slane %v3565_v14, 2  ;;  %v4164_v50 = vadd.f32 %v4163_v42, %v4162_v23  ;;  %v7934_v0 = vpop.f32.mrb[22].mxu0 }
 0x362   : > { %v4170_v53 = vsel %vm2219_vm11, %v7928_v56, 0.0  ;;  %9138 = vst [vmem:[#allocation70_spill] sm:$0xff] %v7934_v0  ;;  %v7936_v24 = vpop.f32.mrb[22].mxu1  ;;  %v3573_v3 = vrot.slane %v3572_v38, 4  ;;  %v3464_v60 = vsub.f32 %v7809_v59, %v3356_v6  ;;  %v3465_v33 = vsub.f32 %v7804_v5, %v3356_v6  ;;  %v7940_v41 = vpop.f32.mrb[23].mxu0 }
 0x363   : > { %9139 = vst [vmem:[#allocation9_spill] sm:$0xff] %v7936_v24  ;;  %v4171_v2 = vadd.f32 %v4170_v53, %v4169_v19  ;;  %9140 = vst [vmem:[#allocation56_spill] sm:$0xff] %v7940_v41  ;;  %v7942_v54 = vpop.f32.mrb[23].mxu1  ;;  %v3560_v7 = vadd.f32 %v3559_v45, %v3558_v1  ;;  %v3567_v13 = vadd.f32 %v3566_v40, %v3565_v14  ;;  %v4165_v23 = vrot.slane %v4164_v50, 2 }
 0x364   : > { %9141 = vst [vmem:[#allocation53_spill] sm:$0xff] %v7942_v54  ;;  %v3955_v42 = vmax.f32 %v3953_v58, %v3954_v20  ;;  %v7944_v22 = vpop.eup %5663  ;;  %v3574_v10 = vadd.f32 %v3573_v3, %v3572_v38  ;;  %v3504_v51 = vmul.f32 1.442695, %v3464_v60  ;;  %v3506_v24 = vmul.f32 1.442695, %v3465_v33 }
 0x365   : > { %v4172_v0 = vrot.slane %v4171_v2, 4  ;;  %v7946_v12 = vpop.eup %5665  ;;  %5671 = vrcp.f32 %v3560_v7  ;;  %v3568_v59 = vrot.slane %v3567_v13, 1  ;;  %v4166_v53 = vadd.f32 %v4165_v23, %v4164_v50  ;;  %v7950_v19 = vpop.f32.mrb[24].mxu0 }
 0x366   : > { %v3579_v5 = vsel %vm2219_vm11, %v7944_v22, 0.0  ;;  %9142 = vst [vmem:[#allocation74_spill] sm:$0xff] %v7950_v19  ;;  %v7952_v1 = vpop.f32.mrb[24].mxu1  ;;  %v7954_v40 = vpop.eup %5667  ;;  %v3575_v58 = vrot.slane %v3574_v10, 2  ;;  %v3580_v38 = vsel %vm2219_vm11, %v7946_v12, 0.0  ;;  %5673 = vpow2.f32 %v3504_v51 }
 0x367   : > { %9143 = vst [vmem:[#allocation10_spill] sm:$0xff] %v7952_v1  ;;  %v4173_v14 = vadd.f32 %v4172_v0, %v4171_v2  ;;  %v7958_v60 = vpop.f32.mrb[25].mxu0  ;;  %v7960_v6 = vpop.f32.mrb[25].mxu1  ;;  %v3569_v20 = vadd.f32 %v3568_v59, %v3567_v13  ;;  %v4167_v45 = vrot.slane %v4166_v53, 1  ;;  %v3581_v3 = vadd.f32 %v3580_v38, %v3579_v5 }
 0x368   : > { %9144 = vst [vmem:[#allocation57_spill] sm:$0xff] %v7958_v60  ;;  %9145 = vst [vmem:[#allocation13_spill] sm:$0xff] %v7960_v6  ;;  %v7962_v50 = vpop.eup %5669  ;;  %v4178_v33 = vsel %vm2219_vm11, %v7954_v40, 0.0  ;;  %v3576_v7 = vadd.f32 %v3575_v58, %v3574_v10  ;;  %5675 = vpow2.f32 %v3506_v24  ;;  %v4070_v19 = vsub.f32 %v7811_v8, %v3955_v42 }
 0x369   : > { %v4174_v23 = vrot.slane %v4173_v14, 2  ;;  %v4179_v0 = vsel %vm2219_vm11, %v7962_v50, 0.0  ;;  %5677 = vrcp.f32 %v3569_v20  ;;  %v4168_v51 = vadd.f32 %v4167_v45, %v4166_v53  ;;  %v7974_v45 = vpop.f32.mrb[26].mxu0  ;;  %v7976_v8 = vpop.f32.mrb[26].mxu1 }
 0x36a   : > { %v3582_v2 = vrot.slane %v3581_v3, 4  ;;  %v4180_v60 = vadd.f32 %v4179_v0, %v4178_v33  ;;  %v3577_v1 = vrot.slane %v3576_v7, 1  ;;  %v4071_v13 = vsub.f32 %v7806_v46, %v3955_v42 }
 0x36b   : > { %v4175_v6 = vadd.f32 %v4174_v23, %v4173_v14  ;;  %5679 = vrcp.f32 %v4168_v51  ;;  %v3360_v10 = vrot.slane %v7918_v47, 4  ;;  %v4108_v54 = vmul.f32 1.442695, %v4070_v19  ;;  %v7983_v19 = vpop.f32.mrb[27].mxu0 }
 0x36c   : > { %v3583_v59 = vadd.f32 %v3582_v2, %v3581_v3  ;;  %v4181_v5 = vrot.slane %v4180_v60, 4  ;;  %v3578_v58 = vadd.f32 %v3577_v1, %v3576_v7  ;;  %v4110_v41 = vmul.f32 1.442695, %v4071_v13 }
 0x36d   : > { %v4176_v38 = vrot.slane %v4175_v6, 1  ;;  %v3361_v53 = vmax.f32 %v7918_v47, %v3360_v10  ;;  %v3956_v14 = vsel %vm2219_vm11, %v7822_v36, -inf  ;;  %v7981_v1 = vsel %vm2219_vm11, %v7825_v49, -inf }
 0x36e   : > { %v3584_v24 = vrot.slane %v3583_v59, 2  ;;  %v4182_v20 = vadd.f32 %v4181_v5, %v4180_v60  ;;  %5681 = vrcp.f32 %v3578_v58  ;;  %v3958_v42 = vmax.f32 %v3956_v14, %v7865_v15 }
 0x36f   : > { %v4177_v46 = vadd.f32 %v4176_v38, %v4175_v6  ;;  %v5672_v60 = vpop.eup %5671  ;;  %5683 = vpow2.f32 %v4108_v54  ;;  %v3362_v33 = vrot.slane %v3361_v53, 2 }
 0x370   : > { %v3585_v3 = vadd.f32 %v3584_v24, %v3583_v59  ;;  %v4183_v47 = vrot.slane %v4182_v20, 2  ;;  %v7985_v7 = vpop.eup %5673  ;;  %v3712_v23 = vmul.f32 %v5672_v60, %v7855_v43  ;;  %v3713_v0 = vmul.f32 %v5672_v60, %v7859_v35 }
 0x371   : > { %5685 = vrcp.f32 %v4177_v46  ;;  %v3959_v6 = vrot.slane %v3958_v42, 4  ;;  %v3588_v2 = vsel %vm2219_vm11, %v7985_v7, 0.0  ;;  %v7995_v5 = vmax.f32 %v3361_v53, %v3362_v33 }
 0x372   : > { %v3586_v15 = vrot.slane %v3585_v3, 1  ;;  %v4184_v51 = vadd.f32 %v4183_v47, %v4182_v20  ;;  %5687 = vpow2.f32 %v4110_v41  ;;  %v7991_v13 = vpop.eup %5675  ;;  %v3744_v59 = vmul.f32 %v3712_v23, %v7604_v21 }
 0x373   : > { %v3745_v54 = vmul.f32 %v3713_v0, %v7619_v9  ;;  %v7997_v10 = vmax.f32 %v3958_v42, %v3959_v6  ;;  %v5678_v43 = vpop.eup %5677  ;;  %v3589_v38 = vsel %vm2219_vm11, %v7991_v13, 0.0  ;;  %v8003_v24 = vsel %vm2219_vm11, %v7827_v11, -inf }
 0x374   : > { %v3587_v35 = vadd.f32 %v3586_v15, %v3585_v3  ;;  %v4185_v58 = vrot.slane %v4184_v51, 1  ;;  %v3776_v41 = vsel %vm2219_vm11, %v3744_v59, 0.0  ;;  %v3714_v9 = vmul.f32 %v5678_v43, %v7881_v30 }
 0x375   : > { %v3777_v21 = vsel %vm2219_vm11, %v3745_v54, 0.0  ;;  %v3715_v20 = vmul.f32 %v5678_v43, %v7885_v48  ;;  %v5680_v53 = vpop.eup %5679  ;;  %v3590_v42 = vadd.f32 %v3589_v38, %v3588_v2  ;;  %v3364_v30 = vrot.slane %v7995_v5, 1  ;;  %v8018_v2 = vpop.f32.mrb[27].mxu1 }
 0x376   : > { %v3778_v14 = vadd.f32 %v3777_v21, %v3776_v41  ;;  %5689 = vrcp.f32 %v3587_v35  ;;  %v4186_v46 = vadd.f32 %v4185_v58, %v4184_v51  ;;  %v3746_v60 = vmul.f32 %v3714_v9, %v7622_v63 }
 0x377   : > { %v3747_v3 = vmul.f32 %v3715_v20, %v7633_v62  ;;  %v4320_v47 = vmul.f32 %v5680_v53, %v7889_v55  ;;  %v4321_v33 = vmul.f32 %v5680_v53, %v7897_v52  ;;  %v3591_v0 = vrot.slane %v3590_v42, 4 }
 0x378   : > { %v3779_v23 = vrot.slane %v3778_v14, 4  ;;  %5691 = vrcp.f32 %v4186_v46  ;;  %v5682_v6 = vpop.eup %5681  ;;  %v3785_v48 = vsel %vm2219_vm11, %v3746_v60, 0.0 }
 0x379   : > { %v3786_v15 = vsel %vm2219_vm11, %v3747_v3, 0.0  ;;  %v4352_v51 = vmul.f32 %v4320_v47, %v7150_v25  ;;  %v4353_v63 = vmul.f32 %v4321_v33, %v7146_v26  ;;  %v8020_v62 = vpop.eup %5683  ;;  %v3716_v59 = vmul.f32 %v5682_v6, %v7907_v39 }
 0x37a   : > { %v3780_v55 = vadd.f32 %v3779_v23, %v3778_v14  ;;  %v3787_v52 = vadd.f32 %v3786_v15, %v3785_v48  ;;  %v3717_v54 = vmul.f32 %v5682_v6, %v7913_v34  ;;  %v3592_v38 = vadd.f32 %v3591_v0, %v3590_v42 }
 0x37b   : > { %v5686_v43 = vpop.eup %5685  ;;  %v4384_v35 = vsel %vm2219_vm11, %v4352_v51, 0.0  ;;  %v4385_v58 = vsel %vm2219_vm11, %v4353_v63, 0.0  ;;  %v4187_v25 = vsel %vm2219_vm11, %v8020_v62, 0.0  ;;  %v3748_v20 = vmul.f32 %v3716_v59, %v7636_v28 }
 0x37c   : > { %v8028_v26 = vpop.eup %5687  ;;  %v3781_v41 = vrot.slane %v3780_v55, 2  ;;  %v3788_v21 = vrot.slane %v3787_v52, 4  ;;  %v4386_v9 = vadd.f32 %v4385_v58, %v4384_v35  ;;  %v3749_v39 = vmul.f32 %v3717_v54, %v7647_v44  ;;  %v8048_v54 = vpop.f32.mrb[28].mxu0 }
 0x37d   : > { %v4322_v34 = vmul.f32 %v5686_v43, %v7924_v16  ;;  %v4323_v53 = vmul.f32 %v5686_v43, %v7928_v56  ;;  %v3593_v14 = vrot.slane %v3592_v38, 2  ;;  %v3794_v3 = vsel %vm2219_vm11, %v3748_v20, 0.0  ;;  %v8050_v43 = vpop.f32.mrb[28].mxu1 }
 0x37e   : > { %v8034_v46 = vadd.f32 %v3781_v41, %v3780_v55  ;;  %v3789_v42 = vadd.f32 %v3788_v21, %v3787_v52  ;;  %v4387_v60 = vrot.slane %v4386_v9, 4  ;;  %v3795_v47 = vsel %vm2219_vm11, %v3749_v39, 0.0  ;;  %v8056_v41 = vpop.f32.mrb[29].mxu0 }
 0x37f   : > { %v4354_v33 = vmul.f32 %v4322_v34, %v7156_v31  ;;  %v4355_v23 = vmul.f32 %v4323_v53, %v7163_v17  ;;  %v3594_v28 = vadd.f32 %v3593_v14, %v3592_v38  ;;  %v3796_v16 = vadd.f32 %v3795_v47, %v3794_v3 }
 0x380   : > { %9146 = vst [vmem:[#allocation67_spill] sm:$0xff] %v8034_v46  ;;  %v5690_v0 = vpop.eup %5689  ;;  %v3790_v44 = vrot.slane %v3789_v42, 2  ;;  %v4388_v6 = vadd.f32 %v4387_v60, %v4386_v9  ;;  %v4188_v56 = vsel %vm2219_vm11, %v8028_v26, 0.0  ;;  %v3365_v47 = vmax.f32 %v7995_v5, %v3364_v30  ;;  %v8081_v5 = vpop.f32.mrb[29].mxu1 }
 0x381   : > { %v4393_v48 = vsel %vm2219_vm11, %v4354_v33, 0.0  ;;  %v4394_v15 = vsel %vm2219_vm11, %v4355_v23, 0.0  ;;  %v3718_v51 = vmul.f32 %v5690_v0, %v7944_v22  ;;  %v3719_v63 = vmul.f32 %v5690_v0, %v7946_v12 }
 0x382   : > { %v5692_v55 = vpop.eup %5691  ;;  %v8046_v31 = vadd.f32 %v3790_v44, %v3789_v42  ;;  %v4389_v17 = vrot.slane %v4388_v6, 2  ;;  %v3797_v52 = vrot.slane %v3796_v16, 4  ;;  %v4395_v59 = vadd.f32 %v4394_v15, %v4393_v48 }
 0x383   : > { %v3750_v35 = vmul.f32 %v3718_v51, %v7650_v61  ;;  %v3751_v58 = vmul.f32 %v3719_v63, %v7661_v57  ;;  %v4324_v38 = vmul.f32 %v5692_v55, %v7954_v40  ;;  %v4325_v22 = vmul.f32 %v5692_v55, %v7962_v50  ;;  %v9152_v55 = vld [vmem:[#allocation61_spill] sm:$0xff] }
 0x384   : > { %9147 = vst [vmem:[#allocation26_spill] sm:$0xff] %v8046_v31  ;;  %v8058_v12 = vadd.f32 %v4389_v17, %v4388_v6  ;;  %v8060_v21 = vadd.f32 %v3797_v52, %v3796_v16  ;;  %v4396_v9 = vrot.slane %v4395_v59, 4  ;;  %v3595_v20 = vrot.slane %v3594_v28, 1 }
 0x385   : > { %v3803_v39 = vsel %vm2219_vm11, %v3750_v35, 0.0  ;;  %v3804_v34 = vsel %vm2219_vm11, %v3751_v58, 0.0  ;;  %v4356_v61 = vmul.f32 %v4324_v38, %v7193_v32  ;;  %v4357_v57 = vmul.f32 %v4325_v22, %v7222_v27 }
 0x386   : > { %9148 = vst [vmem:[#allocation73_spill] sm:$0xff] %v8060_v21  ;;  %v4397_v53 = vadd.f32 %v4396_v9, %v4395_v59  ;;  %v3805_v50 = vadd.f32 %v3804_v34, %v3803_v39  ;;  %v3596_v14 = vadd.f32 %v3595_v20, %v3594_v28  ;;  %v4189_v3 = vadd.f32 %v4188_v56, %v4187_v25  ;;  %v9154_v39 = vld [vmem:[#allocation12_spill] sm:$0xff] }
 0x387   : > { %v4402_v42 = vsel %vm2219_vm11, %v4356_v61, 0.0  ;;  %v4403_v60 = vsel %vm2219_vm11, %v4357_v57, 0.0  ;;  %v3466_v27 = vsub.f32 %v7820_v18, %v3365_v47  ;;  %v3467_v44 = vsub.f32 %v7813_v4, %v3365_v47 }
 0x388   : > { %v4398_v33 = vrot.slane %v4397_v53, 2  ;;  %v3806_v23 = vrot.slane %v3805_v50, 4  ;;  %v4404_v0 = vadd.f32 %v4403_v60, %v4402_v42  ;;  %5693 = vrcp.f32 %v3596_v14  ;;  %v9156_v14 = vld [vmem:[#allocation6_spill] sm:$0xff] }
 0x389   : > { %v4190_v32 = vrot.slane %v4189_v3, 4  ;;  %v3961_v28 = vrot.slane %v7997_v10, 2  ;;  %v3366_v56 = vsel %vm2219_vm11, %v7833_v29, -inf  ;;  %v3508_v48 = vmul.f32 1.442695, %v3466_v27 }
 0x38a   : > { %v8075_v6 = vadd.f32 %v4398_v33, %v4397_v53  ;;  %v8077_v16 = vadd.f32 %v3806_v23, %v3805_v50  ;;  %v4405_v25 = vrot.slane %v4404_v0, 4  ;;  %v3510_v15 = vmul.f32 1.442695, %v3467_v44  ;;  %v9155_v53 = vld [vmem:[#allocation66_spill] sm:$0xff]  ;;  %v9158_v44 = vld [vmem:[#allocation16_spill] sm:$0xff] }
 0x38b   : > { %v4191_v30 = vadd.f32 %v4190_v32, %v4189_v3  ;;  %v3962_v51 = vmax.f32 %v7997_v10, %v3961_v28  ;;  %v3368_v4 = vmax.f32 %v3366_v56, %v7981_v1  ;;  %v3965_v63 = vsel %vm2219_vm11, %v7835_v37, -inf  ;;  %v9153_v10 = vld [vmem:[#allocation60_spill] sm:$0xff]  ;;  %v9157_v3 = vld [vmem:[#allocation49_spill] sm:$0xff] }
 0x38c   : > { %9149 = vst [vmem:[#allocation5_spill] sm:$0xff] %v8075_v6  ;;  %9150 = vst [vmem:[#allocation59_spill] sm:$0xff] %v8077_v16  ;;  %v8084_v18 = vadd.f32 %v4405_v25, %v4404_v0  ;;  %v3376_v17 = vsel %vm2219_vm11, %v9152_v55, -inf  ;;  %5695 = vpow2.f32 %v3508_v48  ;;  %v3967_v35 = vmax.f32 %v3965_v63, %v8003_v24  ;;  %v8107_v63 = vpop.f32.mrb[30].mxu0  ;;  %v5842_v6 = vld [vmem:[%s7596_s21 + $0x88] sm:$0xff] }
 0x38d   : > { %v4192_v52 = vrot.slane %v4191_v30, 2  ;;  %v3963_v59 = vrot.slane %v3962_v51, 1  ;;  %5697 = vpow2.f32 %v3510_v15  ;;  %v3369_v38 = vrot.slane %v3368_v4, 4 }
 0x38e   : > { %9151 = vst [vmem:[#allocation71_spill] sm:$0xff] %v8084_v18  ;;  %v3975_v22 = vsel %vm2219_vm11, %v9153_v10, -inf  ;;  %v3968_v20 = vrot.slane %v3967_v35, 4  ;;  %v3375_v34 = vsel %vm2219_vm11, %v9154_v39, -inf  ;;  %v3974_v50 = vsel %vm2219_vm11, %v9155_v53, -inf  ;;  %v5841_v18 = vld [vmem:[%s7596_s21 + $0x80] sm:$0xff] }
 0x38f   : > { %v4193_v9 = vadd.f32 %v4192_v52, %v4191_v30  ;;  %v3964_v1 = vmax.f32 %v3962_v51, %v3963_v59  ;;  %v3370_v61 = vmax.f32 %v3368_v4, %v3369_v38  ;;  %v3377_v57 = vmax.f32 %v3375_v34, %v3376_v17  ;;  %v8109_v17 = vpop.f32.mrb[30].mxu1  ;;  %v5836_v52 = vld [vmem:[%s7596_s21 + $0x40] sm:$0xff] }
 0x390   : > { %v3385_v24 = vsel %vm2219_vm11, %v9156_v14, -inf  ;;  %v3969_v33 = vmax.f32 %v3967_v35, %v3968_v20  ;;  %v3976_v27 = vmax.f32 %v3974_v50, %v3975_v22  ;;  %v3984_v28 = vsel %vm2219_vm11, %v9158_v44, -inf  ;;  %v9159_v35 = vld [vmem:[#allocation62_spill] sm:$0xff] }
 0x391   : > { %v4194_v42 = vrot.slane %v4193_v9, 1  ;;  %v4072_v60 = vsub.f32 %v7822_v36, %v3964_v1  ;;  %v4073_v47 = vsub.f32 %v9157_v3, %v3964_v1  ;;  %v3371_v0 = vrot.slane %v3370_v61, 2  ;;  %v8113_v1 = vpop.f32.mrb[31].mxu0 }
 0x392   : > { %v5694_v23 = vpop.eup %5693  ;;  %v3378_v32 = vrot.slane %v3377_v57, 4  ;;  %v3970_v36 = vrot.slane %v3969_v33, 2  ;;  %v3977_v22 = vrot.slane %v3976_v27, 4 }
 0x393   : > { %v3720_v25 = vmul.f32 %v5694_v23, %v7985_v7  ;;  %v3721_v56 = vmul.f32 %v5694_v23, %v7991_v13  ;;  %v4195_v30 = vadd.f32 %v4194_v42, %v4193_v9  ;;  %v4112_v48 = vmul.f32 1.442695, %v4072_v60 }
 0x394   : > { %v4114_v15 = vmul.f32 1.442695, %v4073_v47  ;;  %v3372_v51 = vmax.f32 %v3370_v61, %v3371_v0  ;;  %v3379_v4 = vmax.f32 %v3377_v57, %v3378_v32  ;;  %v3971_v13 = vmax.f32 %v3969_v33, %v3970_v36  ;;  %v9161_v32 = vld [vmem:[#allocation37_spill] sm:$0xff] }
 0x395   : > { %v3752_v59 = vmul.f32 %v5836_v52, %v3720_v25  ;;  %v3753_v38 = vmul.f32 %v3721_v56, %v9159_v35  ;;  %5699 = vrcp.f32 %v4195_v30  ;;  %v3978_v57 = vmax.f32 %v3976_v27, %v3977_v22  ;;  %v8129_v56 = vpop.f32.mrb[31].mxu1 }
 0x396   : > { %5701 = vpow2.f32 %v4112_v48  ;;  %v3373_v7 = vrot.slane %v3372_v51, 1  ;;  %v3380_v9 = vrot.slane %v3379_v4, 2  ;;  %v8115_v20 = vpop.eup %5695  ;;  %v3972_v47 = vrot.slane %v3971_v13, 1 }
 0x397   : > { %v3812_v34 = vsel %vm2219_vm11, %v3752_v59, 0.0  ;;  %v3813_v61 = vsel %vm2219_vm11, %v3753_v38, 0.0  ;;  %5703 = vpow2.f32 %v4114_v15  ;;  %v8119_v50 = vpop.eup %5697  ;;  %v3597_v60 = vsel %vm2219_vm11, %v8115_v20, 0.0  ;;  %v9162_v59 = vld [vmem:[#allocation68_spill] sm:$0xff] }
 0x398   : > { %v8121_v42 = vadd.f32 %v3813_v61, %v3812_v34  ;;  %v3374_v3 = vmax.f32 %v3372_v51, %v3373_v7  ;;  %v3598_v33 = vsel %vm2219_vm11, %v8119_v50, 0.0  ;;  %v3381_v23 = vmax.f32 %v3379_v4, %v3380_v9 }
 0x399   : > { %v3979_v0 = vrot.slane %v3978_v57, 2  ;;  %v3384_v25 = vsel %vm2219_vm11, %v9161_v32, -inf  ;;  %v3599_v27 = vadd.f32 %v3598_v33, %v3597_v60  ;;  %v3973_v15 = vmax.f32 %v3971_v13, %v3972_v47 }
 0x39a   : > { %9160 = vst [vmem:[#allocation65_spill] sm:$0xff] %v8121_v42  ;;  %v3468_v30 = vsub.f32 %v7833_v29, %v3374_v3  ;;  %v3469_v48 = vsub.f32 %v7825_v49, %v3374_v3  ;;  %v3382_v36 = vrot.slane %v3381_v23, 1  ;;  %v3386_v51 = vmax.f32 %v3384_v25, %v3385_v24 }
 0x39b   : > { %v3980_v52 = vmax.f32 %v3978_v57, %v3979_v0  ;;  %v3983_v35 = vsel %vm2219_vm11, %v9162_v59, -inf  ;;  %v3600_v38 = vrot.slane %v3599_v27, 4  ;;  %v4074_v7 = vsub.f32 %v7835_v37, %v3973_v15 }
 0x39c   : > { %v3512_v4 = vmul.f32 1.442695, %v3468_v30  ;;  %v3514_v22 = vmul.f32 1.442695, %v3469_v48  ;;  %v4075_v9 = vsub.f32 %v7827_v11, %v3973_v15  ;;  %v3383_v34 = vmax.f32 %v3381_v23, %v3382_v36  ;;  %v8147_v30 = vpop.f32.mrb[32].mxu1  ;;  %v9164_v48 = vld [vmem:[#allocation25_spill] sm:$0xff] }
 0x39d   : > { %v3981_v61 = vrot.slane %v3980_v52, 1  ;;  %v3387_v60 = vrot.slane %v3386_v51, 4  ;;  %v3601_v29 = vadd.f32 %v3600_v38, %v3599_v27  ;;  %v4116_v49 = vmul.f32 1.442695, %v4074_v7 }
 0x39e   : > { %5705 = vpow2.f32 %v3512_v4  ;;  %v3985_v13 = vmax.f32 %v3983_v35, %v3984_v28  ;;  %v4118_v24 = vmul.f32 1.442695, %v4075_v9  ;;  %v3470_v57 = vsub.f32 %v9154_v39, %v3383_v34  ;;  %v9163_v39 = vld [vmem:[#allocation21_spill] sm:$0xff] }
 0x39f   : > { %v5700_v3 = vpop.eup %5699  ;;  %5707 = vpow2.f32 %v3514_v22  ;;  %v3471_v47 = vsub.f32 %v9152_v55, %v3383_v34  ;;  %v3602_v23 = vrot.slane %v3601_v29, 2  ;;  %v3982_v38 = vmax.f32 %v3980_v52, %v3981_v61 }
 0x3a0   : > { %v8139_v33 = vpop.eup %5701  ;;  %v4326_v37 = vmul.f32 %v5700_v3, %v8020_v62  ;;  %v4327_v11 = vmul.f32 %v5700_v3, %v8028_v26  ;;  %5709 = vpow2.f32 %v4116_v49  ;;  %v3516_v25 = vmul.f32 1.442695, %v3470_v57  ;;  %v8153_v26 = vpop.f32.mrb[33].mxu1 }
 0x3a1   : > { %v8143_v0 = vpop.eup %5703  ;;  %v4196_v28 = vsel %vm2219_vm11, %v8139_v33, 0.0  ;;  %5711 = vpow2.f32 %v4118_v24  ;;  %v3518_v27 = vmul.f32 1.442695, %v3471_v47  ;;  %v3603_v36 = vadd.f32 %v3602_v23, %v3601_v29 }
 0x3a2   : > { %v4358_v55 = vmul.f32 %v4326_v37, %v9163_v39  ;;  %v4359_v15 = vmul.f32 %v4327_v11, %v9164_v48  ;;  %v4197_v62 = vsel %vm2219_vm11, %v8143_v0, 0.0  ;;  %5713 = vpow2.f32 %v3516_v25  ;;  %v9165_v37 = vld [vmem:[#allocation64_spill] sm:$0xff] }
 0x3a3   : > { %v4198_v35 = vadd.f32 %v4197_v62, %v4196_v28  ;;  %v3388_v4 = vmax.f32 %v3386_v51, %v3387_v60  ;;  %v3604_v9 = vrot.slane %v3603_v36, 1  ;;  %5715 = vpow2.f32 %v3518_v27  ;;  %v9166_v27 = vld [vmem:[#allocation11_spill] sm:$0xff] }
 0x3a4   : > { %v4411_v22 = vsel %vm2219_vm11, %v4358_v55, 0.0  ;;  %v4412_v7 = vsel %vm2219_vm11, %v4359_v15, 0.0  ;;  %v4076_v3 = vsub.f32 %v9155_v53, %v3982_v38  ;;  %v4077_v29 = vsub.f32 %v9153_v10, %v3982_v38 }
 0x3a5   : > { %v4413_v34 = vadd.f32 %v4412_v7, %v4411_v22  ;;  %v4199_v49 = vrot.slane %v4198_v35, 4  ;;  %v3605_v24 = vadd.f32 %v3604_v9, %v3603_v36  ;;  %v3389_v57 = vrot.slane %v3388_v4, 2  ;;  %v9168_v7 = vld [vmem:[#allocation69_spill] sm:$0xff] }
 0x3a6   : > { %v3986_v47 = vrot.slane %v3985_v13, 4  ;;  %v3394_v11 = vsel %vm2219_vm11, %v9165_v37, -inf  ;;  %v4120_v61 = vmul.f32 1.442695, %v4076_v3  ;;  %v4122_v60 = vmul.f32 1.442695, %v4077_v29 }
 0x3a7   : > { %v4414_v52 = vrot.slane %v4413_v34, 4  ;;  %v4200_v51 = vadd.f32 %v4199_v49, %v4198_v35  ;;  %5717 = vrcp.f32 %v3605_v24  ;;  %v3390_v28 = vmax.f32 %v3388_v4, %v3389_v57 }
 0x3a8   : > { %v8161_v23 = vpop.eup %5705  ;;  %v3987_v25 = vmax.f32 %v3985_v13, %v3986_v47  ;;  %v8165_v53 = vsel %vm2219_vm11, %v9166_v27, -inf  ;;  %5719 = vpow2.f32 %v4120_v61  ;;  %v3393_v9 = vsel %vm2219_vm11, %v9168_v7, -inf  ;;  %v9169_v61 = vld [vmem:[#allocation4_spill] sm:$0xff] }
 0x3a9   : > { %v8167_v10 = vpop.eup %5707  ;;  %v8169_v39 = vadd.f32 %v4414_v52, %v4413_v34  ;;  %v4201_v55 = vrot.slane %v4200_v51, 2  ;;  %v3606_v48 = vsel %vm2219_vm11, %v8161_v23, 0.0  ;;  %5721 = vpow2.f32 %v4122_v60 }
 0x3aa   : > { %v8173_v15 = vpop.eup %5709  ;;  %v3607_v36 = vsel %vm2219_vm11, %v8167_v10, 0.0  ;;  %v3391_v13 = vrot.slane %v3390_v28, 1  ;;  %v3988_v62 = vrot.slane %v3987_v25, 2  ;;  %v3395_v29 = vmax.f32 %v3393_v9, %v3394_v11 }
 0x3ab   : > { %9167 = vst [vmem:[#allocation72_spill] sm:$0xff] %v8169_v39  ;;  %v8177_v35 = vpop.eup %5711  ;;  %v4202_v38 = vadd.f32 %v4201_v55, %v4200_v51  ;;  %v3608_v4 = vadd.f32 %v3607_v36, %v3606_v48  ;;  %v4205_v22 = vsel %vm2219_vm11, %v8173_v15, 0.0  ;;  %v3992_v51 = vsel %vm2219_vm11, %v9169_v61, -inf }
 0x3ac   : > { %v4206_v34 = vsel %vm2219_vm11, %v8177_v35, 0.0  ;;  %v3392_v49 = vmax.f32 %v3390_v28, %v3391_v13  ;;  %v3989_v3 = vmax.f32 %v3987_v25, %v3988_v62  ;;  %v8185_v24 = vpop.eup %5713  ;;  %v3396_v16 = vrot.slane %v3395_v29, 4 }
 0x3ad   : > { %v4203_v57 = vrot.slane %v4202_v38, 1  ;;  %v3609_v47 = vrot.slane %v3608_v4, 4  ;;  %v4207_v52 = vadd.f32 %v4206_v34, %v4205_v22  ;;  %v8189_v60 = vpop.eup %5715  ;;  %v3615_v55 = vsel %vm2219_vm11, %v8185_v24, 0.0 }
 0x3ae   : > { %v3472_v48 = vsub.f32 %v9161_v32, %v3392_v49  ;;  %v3473_v36 = vsub.f32 %v9156_v14, %v3392_v49  ;;  %v3990_v28 = vrot.slane %v3989_v3, 1  ;;  %v3616_v62 = vsel %vm2219_vm11, %v8189_v60, 0.0 }
 0x3af   : > { %v4204_v25 = vadd.f32 %v4203_v57, %v4202_v38  ;;  %v3610_v11 = vadd.f32 %v3609_v47, %v3608_v4  ;;  %v4208_v13 = vrot.slane %v4207_v52, 4  ;;  %v3617_v22 = vadd.f32 %v3616_v62, %v3615_v55 }
 0x3b0   : > { %v3520_v9 = vmul.f32 1.442695, %v3472_v48  ;;  %v3522_v34 = vmul.f32 1.442695, %v3473_v36  ;;  %v3991_v40 = vmax.f32 %v3989_v3, %v3990_v28  ;;  %v5837_v28 = vld [vmem:[%s7596_s21 + $0x50] sm:$0xff] }
 0x3b1   : > { %5723 = vrcp.f32 %v4204_v25  ;;  %v3611_v58 = vrot.slane %v3610_v11, 2  ;;  %v4209_v42 = vadd.f32 %v4208_v13, %v4207_v52  ;;  %v5718_v21 = vpop.eup %5717  ;;  %v3618_v32 = vrot.slane %v3617_v22, 4  ;;  %v5838_v25 = vld [vmem:[%s7596_s21 + $0x58] sm:$0xff] }
 0x3b2   : > { %5725 = vpow2.f32 %v3520_v9  ;;  %v4078_v14 = vsub.f32 %v9162_v59, %v3991_v40  ;;  %v4079_v38 = vsub.f32 %v9158_v44, %v3991_v40  ;;  %v8199_v4 = vpop.eup %5719  ;;  %v3722_v49 = vmul.f32 %v5718_v21, %v8115_v20 }
 0x3b3   : > { %v3723_v57 = vmul.f32 %v5718_v21, %v8119_v50  ;;  %v3612_v3 = vadd.f32 %v3611_v58, %v3610_v11  ;;  %v4210_v47 = vrot.slane %v4209_v42, 2  ;;  %v8203_v55 = vpop.eup %5721  ;;  %v3619_v52 = vadd.f32 %v3618_v32, %v3617_v22 }
 0x3b4   : > { %v4214_v48 = vsel %vm2219_vm11, %v8199_v4, 0.0  ;;  %5727 = vpow2.f32 %v3522_v34  ;;  %v4124_v36 = vmul.f32 1.442695, %v4078_v14  ;;  %v3754_v59 = vmul.f32 %v5837_v28, %v3722_v49  ;;  %v9172_v49 = vld [vmem:[#allocation23_spill] sm:$0xff] }
 0x3b5   : > { %v8209_v40 = vmul.f32 %v5838_v25, %v3723_v57  ;;  %v3613_v44 = vrot.slane %v3612_v3, 1  ;;  %v4211_v13 = vadd.f32 %v4210_v47, %v4209_v42  ;;  %v3620_v20 = vrot.slane %v3619_v52, 2  ;;  %v9173_v28 = vld [vmem:[#allocation47_spill] sm:$0xff] }
 0x3b6   : > { %v4215_v21 = vsel %vm2219_vm11, %v8203_v55, 0.0  ;;  %5729 = vpow2.f32 %v4124_v36  ;;  %v4126_v58 = vmul.f32 1.442695, %v4079_v38  ;;  %v8214_v50 = vsel %vm2219_vm11, %v3754_v59, 0.0 }
 0x3b7   : > { %9170 = vst [vmem:[#allocation75_spill] sm:$0xff] %v8209_v40  ;;  %9171 = vst [vmem:[#allocation36_spill] sm:$0xff] %v8214_v50  ;;  %v3614_v11 = vadd.f32 %v3613_v44, %v3612_v3  ;;  %v4212_v62 = vrot.slane %v4211_v13, 1  ;;  %v4216_v22 = vadd.f32 %v4215_v21, %v4214_v48  ;;  %v3621_v9 = vadd.f32 %v3620_v20, %v3619_v52  ;;  %v9174_v52 = vld [vmem:[#allocation63_spill] sm:$0xff]  ;;  %v9177_v50 = vld [vmem:[#allocation41_spill] sm:$0xff] }
 0x3b8   : > { %5731 = vpow2.f32 %v4126_v58  ;;  %v3397_v34 = vmax.f32 %v3395_v29, %v3396_v16  ;;  %v3994_v32 = vmax.f32 %v3992_v51, %v8165_v53  ;;  %v3403_v57 = vsel %vm2219_vm11, %v9172_v49, -inf  ;;  %v9175_v29 = vld [vmem:[#allocation15_spill] sm:$0xff] }
 0x3b9   : > { %5733 = vrcp.f32 %v3614_v11  ;;  %v4213_v14 = vadd.f32 %v4212_v62, %v4211_v13  ;;  %v4217_v42 = vrot.slane %v4216_v22, 4  ;;  %v3622_v47 = vrot.slane %v3621_v9, 1 }
 0x3ba   : > { %v3398_v36 = vrot.slane %v3397_v34, 2  ;;  %v3995_v38 = vrot.slane %v3994_v32, 4  ;;  %v4002_v59 = vsel %vm2219_vm11, %v9173_v28, -inf  ;;  %v3402_v16 = vsel %vm2219_vm11, %v9174_v52, -inf }
 0x3bb   : > { %v5724_v3 = vpop.eup %5723  ;;  %5735 = vrcp.f32 %v4213_v14  ;;  %v4218_v48 = vadd.f32 %v4217_v42, %v4216_v22  ;;  %v4001_v53 = vsel %vm2219_vm11, %v9175_v29, -inf  ;;  %v3623_v13 = vadd.f32 %v3622_v47, %v3621_v9  ;;  %v9176_v14 = vld [vmem:[#allocation24_spill] sm:$0xff] }
 0x3bc   : > { %v8225_v51 = vpop.eup %5725  ;;  %v4328_v25 = vmul.f32 %v5724_v3, %v8139_v33  ;;  %v4329_v44 = vmul.f32 %v5724_v3, %v8143_v0  ;;  %v3399_v20 = vmax.f32 %v3397_v34, %v3398_v36  ;;  %v3996_v11 = vmax.f32 %v3994_v32, %v3995_v38 }
 0x3bd   : > { %v4219_v21 = vrot.slane %v4218_v48, 2  ;;  %v3624_v58 = vsel %vm2219_vm11, %v8225_v51, 0.0  ;;  %v3404_v62 = vmax.f32 %v3402_v16, %v3403_v57  ;;  %5737 = vrcp.f32 %v3623_v13 }
 0x3be   : > { %v8231_v22 = vpop.eup %5727  ;;  %v4360_v42 = vmul.f32 %v4328_v25, %v9176_v14  ;;  %v4361_v40 = vmul.f32 %v4329_v44, %v9177_v50  ;;  %v3400_v31 = vrot.slane %v3399_v20, 1  ;;  %v3997_v0 = vrot.slane %v3996_v11, 2 }
 0x3bf   : > { %v4220_v46 = vadd.f32 %v4219_v21, %v4218_v48  ;;  %v3625_v33 = vsel %vm2219_vm11, %v8231_v22, 0.0  ;;  %v3405_v9 = vrot.slane %v3404_v62, 4 }
 0x3c0   : > { %v8237_v34 = vpop.eup %5729  ;;  %v4420_v47 = vsel %vm2219_vm11, %v4360_v42, 0.0  ;;  %v4421_v32 = vsel %vm2219_vm11, %v4361_v40, 0.0  ;;  %v3626_v57 = vadd.f32 %v3625_v33, %v3624_v58  ;;  %v3401_v36 = vmax.f32 %v3399_v20, %v3400_v31 }
 0x3c1   : > { %v8241_v38 = vadd.f32 %v4421_v32, %v4420_v47  ;;  %v4221_v3 = vrot.slane %v4220_v46, 1  ;;  %v4223_v50 = vsel %vm2219_vm11, %v8237_v34, 0.0  ;;  %v3998_v48 = vmax.f32 %v3996_v11, %v3997_v0 }
 0x3c2   : > { %v8245_v16 = vpop.eup %5731  ;;  %v3627_v25 = vrot.slane %v3626_v57, 4  ;;  %v3474_v44 = vsub.f32 %v9168_v7, %v3401_v36  ;;  %v3475_v13 = vsub.f32 %v9165_v37, %v3401_v36  ;;  %v3406_v21 = vmax.f32 %v3404_v62, %v3405_v9  ;;  %v5839_v62 = vld [vmem:[%s7596_s21 + $0x60] sm:$0xff] }
 0x3c3   : > { %9178 = vst [vmem:[#allocation7_spill] sm:$0xff] %v8241_v38  ;;  %v5734_v14 = vpop.eup %5733  ;;  %v4222_v40 = vadd.f32 %v4221_v3, %v4220_v46  ;;  %v4224_v31 = vsel %vm2219_vm11, %v8245_v16, 0.0  ;;  %v3999_v20 = vrot.slane %v3998_v48, 1  ;;  %v4003_v58 = vmax.f32 %v4001_v53, %v4002_v59  ;;  %v9181_v3 = vld [vmem:[#allocation30_spill] sm:$0xff] }
 0x3c4   : > { %v3724_v42 = vmul.f32 %v5734_v14, %v8161_v23  ;;  %v8253_v11 = vmul.f32 %v5734_v14, %v8167_v10  ;;  %v3628_v33 = vadd.f32 %v3627_v25, %v3626_v57  ;;  %v4225_v0 = vadd.f32 %v4224_v31, %v4223_v50  ;;  %v9182_v25 = vld [vmem:[#allocation31_spill] sm:$0xff] }
 0x3c5   : > { %v5736_v47 = vpop.eup %5735  ;;  %5739 = vrcp.f32 %v4222_v40  ;;  %v3524_v7 = vmul.f32 1.442695, %v3474_v44  ;;  %v3526_v37 = vmul.f32 1.442695, %v3475_v13  ;;  %v4000_v32 = vmax.f32 %v3998_v48, %v3999_v20  ;;  %v5840_v20 = vld [vmem:[%s7596_s21 + $0x70] sm:$0xff] }
 0x3c6   : > { %9179 = vst [vmem:[#allocation39_spill] sm:$0xff] %v8253_v11  ;;  %v8256_v9 = vmul.f32 %v5839_v62, %v3724_v42  ;;  %v4330_v46 = vmul.f32 %v5736_v47, %v8173_v15  ;;  %v4331_v36 = vmul.f32 %v5736_v47, %v8177_v35  ;;  %v3629_v59 = vrot.slane %v3628_v33, 2  ;;  %v9188_v62 = vld [vmem:[#allocation9_spill] sm:$0xff] }
 0x3c7   : > { %v4226_v53 = vrot.slane %v4225_v0, 4  ;;  %5741 = vpow2.f32 %v3524_v7  ;;  %v4080_v23 = vsub.f32 %v9169_v61, %v4000_v32  ;;  %v4081_v10 = vsub.f32 %v9166_v27, %v4000_v32  ;;  %v5738_v57 = vpop.eup %5737 }
 0x3c8   : > { %9180 = vst [vmem:[#allocation8_spill] sm:$0xff] %v8256_v9  ;;  %v4362_v50 = vmul.f32 %v4330_v46, %v9181_v3  ;;  %v8264_v48 = vmul.f32 %v4331_v36, %v9182_v25  ;;  %v3630_v44 = vadd.f32 %v3629_v59, %v3628_v33  ;;  %5743 = vpow2.f32 %v3526_v37  ;;  %v9187_v37 = vld [vmem:[#allocation70_spill] sm:$0xff]  ;;  %v9189_v36 = vld [vmem:[#allocation56_spill] sm:$0xff]  ;;  %v9195_v9 = vld [vmem:[#allocation57_spill] sm:$0xff] }
 0x3c9   : > { %v3726_v15 = vmul.f32 %v5738_v57, %v8185_v24  ;;  %v8268_v35 = vmul.f32 %v5738_v57, %v8189_v60  ;;  %v4227_v13 = vadd.f32 %v4226_v53, %v4225_v0  ;;  %v4128_v14 = vmul.f32 1.442695, %v4080_v23 }
 0x3ca   : > { %9183 = vst [vmem:[#allocation40_spill] sm:$0xff] %v8264_v48  ;;  %v8271_v40 = vsel %vm2219_vm11, %v4362_v50, 0.0  ;;  %v3631_v61 = vrot.slane %v3630_v44, 1  ;;  %v4130_v27 = vmul.f32 1.442695, %v4081_v10  ;;  %v3407_v31 = vrot.slane %v3406_v21, 2 }
 0x3cb   : > { %9184 = vst [vmem:[#allocation28_spill] sm:$0xff] %v8268_v35  ;;  %9185 = vst [vmem:[#allocation27_spill] sm:$0xff] %v8271_v40  ;;  %v8274_v42 = vmul.f32 %v5840_v20, %v3726_v15  ;;  %v4228_v47 = vrot.slane %v4227_v13, 2  ;;  %5745 = vpow2.f32 %v4128_v14  ;;  %v4004_v33 = vrot.slane %v4003_v58, 4  ;;  %v9190_v10 = vld [vmem:[#allocation53_spill] sm:$0xff] }
 0x3cc   : > { %v3632_v7 = vadd.f32 %v3631_v61, %v3630_v44  ;;  %5747 = vpow2.f32 %v4130_v27  ;;  %v3408_v24 = vmax.f32 %v3406_v21, %v3407_v31  ;;  %v3412_v60 = vsel %vm2219_vm11, %v9187_v37, -inf  ;;  %v9191_v44 = vld [vmem:[#allocation74_spill] sm:$0xff] }
 0x3cd   : > { %9186 = vst [vmem:[#allocation29_spill] sm:$0xff] %v8274_v42  ;;  %v4229_v0 = vadd.f32 %v4228_v47, %v4227_v13  ;;  %v4005_v32 = vmax.f32 %v4003_v58, %v4004_v33  ;;  %v4011_v46 = vsel %vm2219_vm11, %v9188_v62, -inf  ;;  %v3411_v59 = vsel %vm2219_vm11, %v9189_v36, -inf  ;;  %v9192_v33 = vld [vmem:[#allocation10_spill] sm:$0xff] }
 0x3ce   : > { %5749 = vrcp.f32 %v3632_v7  ;;  %v3409_v53 = vrot.slane %v3408_v24, 1  ;;  %v3413_v23 = vmax.f32 %v3411_v59, %v3412_v60  ;;  %v4010_v57 = vsel %vm2219_vm11, %v9190_v10, -inf }
 0x3cf   : > { %v5740_v3 = vpop.eup %5739  ;;  %v4230_v50 = vrot.slane %v4229_v0, 1  ;;  %v4006_v21 = vrot.slane %v4005_v32, 2  ;;  %v4012_v25 = vmax.f32 %v4010_v57, %v4011_v46  ;;  %v3421_v15 = vsel %vm2219_vm11, %v9191_v44, -inf  ;;  %v9193_v46 = vld [vmem:[#allocation32_spill] sm:$0xff] }
 0x3d0   : > { %v4332_v58 = vmul.f32 %v5740_v3, %v8199_v4  ;;  %v8288_v13 = vmul.f32 %v5740_v3, %v8203_v55  ;;  %v3410_v14 = vmax.f32 %v3408_v24, %v3409_v53  ;;  %v3414_v61 = vrot.slane %v3413_v23, 4 }
 0x3d1   : > { %v8290_v27 = vpop.eup %5741  ;;  %v4231_v31 = vadd.f32 %v4230_v50, %v4229_v0  ;;  %v4007_v20 = vmax.f32 %v4005_v32, %v4006_v21  ;;  %v4013_v47 = vrot.slane %v4012_v25, 4  ;;  %v8294_v7 = vsel %vm2219_vm11, %v9192_v33, -inf }
 0x3d2   : > { %v8296_v60 = vpop.eup %5743  ;;  %v8299_v59 = vmul.f32 %v4332_v58, %v9193_v46  ;;  %v3633_v4 = vsel %vm2219_vm11, %v8290_v27, 0.0  ;;  %v3476_v55 = vsub.f32 %v9174_v52, %v3410_v14  ;;  %v3477_v24 = vsub.f32 %v9172_v49, %v3410_v14  ;;  %v9196_v52 = vld [vmem:[#allocation13_spill] sm:$0xff] }
 0x3d3   : > { %5751 = vrcp.f32 %v4231_v31  ;;  %v3634_v0 = vsel %vm2219_vm11, %v8296_v60, 0.0  ;;  %v4008_v32 = vrot.slane %v4007_v20, 1  ;;  %v3415_v53 = vmax.f32 %v3413_v23, %v3414_v61 }
 0x3d4   : > { %9194 = vst [vmem:[#allocation20_spill] sm:$0xff] %v8299_v59  ;;  %v3635_v57 = vadd.f32 %v3634_v0, %v3633_v4  ;;  %v3528_v3 = vmul.f32 1.442695, %v3476_v55  ;;  %v3530_v50 = vmul.f32 1.442695, %v3477_v24  ;;  %v4014_v21 = vmax.f32 %v4012_v25, %v4013_v47 }
 0x3d5   : > { %v8307_v42 = vpop.eup %5745  ;;  %v4009_v58 = vmax.f32 %v4007_v20, %v4008_v32  ;;  %v3416_v46 = vrot.slane %v3415_v53, 2  ;;  %v3420_v35 = vsel %vm2219_vm11, %v9195_v9, -inf  ;;  %v8313_v49 = vsel %vm2219_vm11, %v9196_v52, -inf }
 0x3d6   : > { %v8315_v14 = vpop.eup %5747  ;;  %v3636_v31 = vrot.slane %v3635_v57, 4  ;;  %v4232_v23 = vsel %vm2219_vm11, %v8307_v42, 0.0  ;;  %5753 = vpow2.f32 %v3528_v3  ;;  %v4015_v61 = vrot.slane %v4014_v21, 2 }
 0x3d7   : > { %v4233_v25 = vsel %vm2219_vm11, %v8315_v14, 0.0  ;;  %5755 = vpow2.f32 %v3530_v50  ;;  %v4082_v20 = vsub.f32 %v9175_v29, %v4009_v58  ;;  %v4083_v47 = vsub.f32 %v9173_v28, %v4009_v58 }
 0x3d8   : > { %v5750_v4 = vpop.eup %5749  ;;  %v3637_v55 = vadd.f32 %v3636_v31, %v3635_v57  ;;  %v4234_v24 = vadd.f32 %v4233_v25, %v4232_v23  ;;  %v3417_v0 = vmax.f32 %v3415_v53, %v3416_v46  ;;  %v4016_v32 = vmax.f32 %v4014_v21, %v4015_v61 }
 0x3d9   : > { %v3728_v11 = vmul.f32 %v5750_v4, %v8225_v51  ;;  %v3729_v3 = vmul.f32 %v5750_v4, %v8231_v22  ;;  %v4132_v40 = vmul.f32 1.442695, %v4082_v20  ;;  %v4134_v59 = vmul.f32 1.442695, %v4083_v47 }
 0x3da   : > { %v3638_v48 = vrot.slane %v3637_v55, 2  ;;  %v4235_v38 = vrot.slane %v4234_v24, 4  ;;  %v3418_v50 = vrot.slane %v3417_v0, 1  ;;  %v4017_v39 = vrot.slane %v4016_v32, 1 }
 0x3db   : > { %v3760_v29 = vmul.f32 %v5841_v18, %v3728_v11  ;;  %v3761_v28 = vmul.f32 %v5842_v6, %v3729_v3  ;;  %5757 = vpow2.f32 %v4132_v40  ;;  %v3422_v58 = vmax.f32 %v3420_v35, %v3421_v15 }
 0x3dc   : > { %v3639_v57 = vadd.f32 %v3638_v48, %v3637_v55  ;;  %v4236_v31 = vadd.f32 %v4235_v38, %v4234_v24  ;;  %5759 = vpow2.f32 %v4134_v59  ;;  %v3419_v53 = vmax.f32 %v3417_v0, %v3418_v50  ;;  %v9197_v59 = vld [vmem:[#allocation35_spill] sm:$0xff] }
 0x3dd   : > { %v5752_v21 = vpop.eup %5751  ;;  %v3848_v51 = vsel %vm2219_vm11, %v3760_v29, 0.0  ;;  %v3849_v22 = vsel %vm2219_vm11, %v3761_v28, 0.0  ;;  %v4018_v46 = vmax.f32 %v4016_v32, %v4017_v39  ;;  %v3423_v23 = vrot.slane %v3422_v58, 4 }
 0x3de   : > { %v3850_v61 = vadd.f32 %v3849_v22, %v3848_v51  ;;  %v4334_v25 = vmul.f32 %v5752_v21, %v8237_v34  ;;  %v8331_v18 = vmul.f32 %v5752_v21, %v8245_v16  ;;  %v3640_v6 = vrot.slane %v3639_v57, 1 }
 0x3df   : > { %v4237_v11 = vrot.slane %v4236_v31, 2  ;;  %v3478_v48 = vsub.f32 %v9189_v36, %v3419_v53  ;;  %v3479_v38 = vsub.f32 %v9187_v37, %v3419_v53  ;;  %v4084_v35 = vsub.f32 %v9190_v10, %v4018_v46 }
 0x3e0   : > { %v8336_v40 = vpop.eup %5753  ;;  %v3851_v15 = vrot.slane %v3850_v61, 4  ;;  %v8339_v39 = vmul.f32 %v4334_v25, %v9197_v59  ;;  %v3641_v20 = vadd.f32 %v3640_v6, %v3639_v57  ;;  %v4085_v34 = vsub.f32 %v9188_v62, %v4018_v46 }
 0x3e1   : > { %v8342_v47 = vpop.eup %5755  ;;  %v4238_v16 = vadd.f32 %v4237_v11, %v4236_v31  ;;  %v3642_v4 = vsel %vm2219_vm11, %v8336_v40, 0.0  ;;  %v3532_v36 = vmul.f32 1.442695, %v3478_v48  ;;  %v3534_v55 = vmul.f32 1.442695, %v3479_v38 }
 0x3e2   : > { %v3852_v37 = vadd.f32 %v3851_v15, %v3850_v61  ;;  %5761 = vrcp.f32 %v3641_v20  ;;  %v3643_v10 = vsel %vm2219_vm11, %v8342_v47, 0.0  ;;  %v4136_v24 = vmul.f32 1.442695, %v4084_v35 }
 0x3e3   : > { %v4239_v0 = vrot.slane %v4238_v16, 1  ;;  %v3644_v32 = vadd.f32 %v3643_v10, %v3642_v4  ;;  %5763 = vpow2.f32 %v3532_v36  ;;  %v4138_v3 = vmul.f32 1.442695, %v4085_v34 }
 0x3e4   : > { %v3853_v50 = vrot.slane %v3852_v37, 2  ;;  %5765 = vpow2.f32 %v3534_v55  ;;  %v3424_v62 = vmax.f32 %v3422_v58, %v3423_v23  ;;  %v4021_v29 = vmax.f32 %v8313_v49, %v8294_v7 }
 0x3e5   : > { %v8350_v28 = vpop.eup %5757  ;;  %v4240_v57 = vadd.f32 %v4239_v0, %v4238_v16  ;;  %v3645_v31 = vrot.slane %v3644_v32, 4  ;;  %5767 = vpow2.f32 %v4136_v24  ;;  %v3430_v53 = vsel %vm2219_vm11, %v7974_v45, -inf }
 0x3e6   : > { %v8354_v21 = vpop.eup %5759  ;;  %v8356_v51 = vadd.f32 %v3853_v50, %v3852_v37  ;;  %v4241_v22 = vsel %vm2219_vm11, %v8350_v28, 0.0  ;;  %5769 = vpow2.f32 %v4138_v3  ;;  %v3425_v58 = vrot.slane %v3424_v62, 2 }
 0x3e7   : > { %5771 = vrcp.f32 %v4240_v57  ;;  %v3646_v46 = vadd.f32 %v3645_v31, %v3644_v32  ;;  %v4242_v7 = vsel %vm2219_vm11, %v8354_v21, 0.0  ;;  %v4022_v49 = vrot.slane %v4021_v29, 4 }
 0x3e8   : > { %v3855_v23 = vrot.slane %v8356_v51, 1  ;;  %v4243_v61 = vadd.f32 %v4242_v7, %v4241_v22  ;;  %v3426_v25 = vmax.f32 %v3424_v62, %v3425_v58  ;;  %v4029_v6 = vsel %vm2219_vm11, %v7976_v8, -inf }
 0x3e9   : > { %v3647_v11 = vrot.slane %v3646_v46, 2  ;;  %v4023_v48 = vmax.f32 %v4021_v29, %v4022_v49  ;;  %v3429_v38 = vsel %vm2219_vm11, %v7983_v19, -inf  ;;  %v4028_v35 = vsel %vm2219_vm11, %v8018_v2, -inf  ;;  %v5843_v49 = vld [vmem:[%s7596_s21 + $0x90] sm:$0xff] }
 0x3ea   : > { %v4244_v15 = vrot.slane %v4243_v61, 4  ;;  %v3427_v59 = vrot.slane %v3426_v25, 1  ;;  %v8369_v20 = vmax.f32 %v3429_v38, %v3430_v53  ;;  %v8371_v34 = vmax.f32 %v4028_v35, %v4029_v6 }
 0x3eb   : > { %v3648_v16 = vadd.f32 %v3647_v11, %v3646_v46  ;;  %v4024_v4 = vrot.slane %v4023_v48, 2  ;;  %v8375_v36 = vsel %vm2219_vm11, %v8048_v54, -inf  ;;  %v8379_v55 = vsel %vm2219_vm11, %v8050_v43, -inf }
 0x3ec   : > { %v5762_v37 = vpop.eup %5761  ;;  %v4245_v10 = vadd.f32 %v4244_v15, %v4243_v61  ;;  %v3428_v24 = vmax.f32 %v3426_v25, %v3427_v59  ;;  %v3432_v0 = vrot.slane %v8369_v20, 4  ;;  %v4031_v32 = vrot.slane %v8371_v34, 4  ;;  %v5844_v25 = vld [vmem:[%s7596_s21 + $0x98] sm:$0xff] }
 0x3ed   : > { %v8383_v3 = vpop.eup %5763  ;;  %v3730_v50 = vmul.f32 %v5762_v37, %v8290_v27  ;;  %v3731_v62 = vmul.f32 %v5762_v37, %v8296_v60  ;;  %v3649_v29 = vrot.slane %v3648_v16, 1  ;;  %v4025_v57 = vmax.f32 %v4023_v48, %v4024_v4 }
 0x3ee   : > { %v8387_v31 = vpop.eup %5765  ;;  %v4246_v53 = vrot.slane %v4245_v10, 2  ;;  %v3651_v22 = vsel %vm2219_vm11, %v8383_v3, 0.0  ;;  %v3480_v58 = vsub.f32 %v9195_v9, %v3428_v24  ;;  %v3481_v46 = vsub.f32 %v9191_v44, %v3428_v24 }
 0x3ef   : > { %v8393_v7 = vpop.eup %5767  ;;  %v3762_v61 = vmul.f32 %v5843_v49, %v3730_v50  ;;  %v3763_v27 = vmul.f32 %v5844_v25, %v3731_v62  ;;  %v3650_v6 = vadd.f32 %v3649_v29, %v3648_v16  ;;  %v3652_v60 = vsel %vm2219_vm11, %v8387_v31, 0.0  ;;  %v9199_v49 = vld [vmem:[#allocation38_spill] sm:$0xff] }
 0x3f0   : > { %v8399_v11 = vpop.eup %5769  ;;  %v4247_v48 = vadd.f32 %v4246_v53, %v4245_v10  ;;  %v3653_v38 = vadd.f32 %v3652_v60, %v3651_v22  ;;  %v4250_v35 = vsel %vm2219_vm11, %v8393_v7, 0.0  ;;  %v3536_v9 = vmul.f32 1.442695, %v3480_v58  ;;  %v9198_v22 = vld [vmem:[#allocation48_spill] sm:$0xff] }
 0x3f1   : > { %v5772_v15 = vpop.eup %5771  ;;  %v3857_v44 = vsel %vm2219_vm11, %v3762_v61, 0.0  ;;  %v3858_v59 = vsel %vm2219_vm11, %v3763_v27, 0.0  ;;  %5773 = vrcp.f32 %v3650_v6  ;;  %v4251_v16 = vsel %vm2219_vm11, %v8399_v11, 0.0 }
 0x3f2   : > { %v3859_v4 = vadd.f32 %v3858_v59, %v3857_v44  ;;  %v4336_v37 = vmul.f32 %v5772_v15, %v8307_v42  ;;  %v4337_v24 = vmul.f32 %v5772_v15, %v8315_v14  ;;  %v4248_v10 = vrot.slane %v4247_v48, 1 }
 0x3f3   : > { %v3654_v50 = vrot.slane %v3653_v38, 4  ;;  %v4252_v62 = vadd.f32 %v4251_v16, %v4250_v35  ;;  %5775 = vpow2.f32 %v3536_v9  ;;  %v3538_v29 = vmul.f32 1.442695, %v3481_v46 }
 0x3f4   : > { %v3860_v53 = vrot.slane %v3859_v4, 4  ;;  %v4368_v58 = vmul.f32 %v4336_v37, %v9198_v22  ;;  %v4369_v61 = vmul.f32 %v4337_v24, %v9199_v49  ;;  %v4249_v25 = vadd.f32 %v4248_v10, %v4247_v48 }
 0x3f5   : > { %v3655_v27 = vadd.f32 %v3654_v50, %v3653_v38  ;;  %v4253_v6 = vrot.slane %v4252_v62, 4  ;;  %5777 = vpow2.f32 %v3538_v29  ;;  %v4026_v60 = vrot.slane %v4025_v57, 1 }
 0x3f6   : > { %v3861_v44 = vadd.f32 %v3860_v53, %v3859_v4  ;;  %v4456_v42 = vsel %vm2219_vm11, %v4368_v58, 0.0  ;;  %v4457_v14 = vsel %vm2219_vm11, %v4369_v61, 0.0  ;;  %5779 = vrcp.f32 %v4249_v25 }
 0x3f7   : > { %v4458_v15 = vadd.f32 %v4457_v14, %v4456_v42  ;;  %v3656_v35 = vrot.slane %v3655_v27, 2  ;;  %v4254_v9 = vadd.f32 %v4253_v6, %v4252_v62  ;;  %v4027_v46 = vmax.f32 %v4025_v57, %v4026_v60  ;;  %v5845_v6 = vld [vmem:[%s7596_s21 + $0xa0] sm:$0xff] }
 0x3f8   : > { %v3862_v59 = vrot.slane %v3861_v44, 2  ;;  %v3433_v16 = vmax.f32 %v8369_v20, %v3432_v0  ;;  %v4032_v37 = vmax.f32 %v8371_v34, %v4031_v32  ;;  %v3438_v48 = vsel %vm2219_vm11, %v8056_v41, -inf }
 0x3f9   : > { %v4459_v38 = vrot.slane %v4458_v15, 4  ;;  %v3657_v24 = vadd.f32 %v3656_v35, %v3655_v27  ;;  %v4255_v4 = vrot.slane %v4254_v9, 2  ;;  %v4086_v10 = vsub.f32 %v9196_v52, %v4027_v46 }
 0x3fa   : > { %v8418_v50 = vadd.f32 %v3862_v59, %v3861_v44  ;;  %v4087_v29 = vsub.f32 %v9192_v33, %v4027_v46  ;;  %v3434_v53 = vrot.slane %v3433_v16, 2  ;;  %v4033_v57 = vrot.slane %v4032_v37, 2  ;;  %v5846_v44 = vld [vmem:[%s7596_s21 + $0xa8] sm:$0xff] }
 0x3fb   : > { %v5774_v62 = vpop.eup %5773  ;;  %v4460_v20 = vadd.f32 %v4459_v38, %v4458_v15  ;;  %v3658_v0 = vrot.slane %v3657_v24, 1  ;;  %v4256_v34 = vadd.f32 %v4255_v4, %v4254_v9  ;;  %v4140_v32 = vmul.f32 1.442695, %v4086_v10 }
 0x3fc   : > { %v3864_v22 = vrot.slane %v8418_v50, 1  ;;  %v3732_v58 = vmul.f32 %v5774_v62, %v8336_v40  ;;  %v3733_v49 = vmul.f32 %v5774_v62, %v8342_v47  ;;  %v4142_v52 = vmul.f32 1.442695, %v4087_v29 }
 0x3fd   : > { %v8424_v61 = vpop.eup %5775  ;;  %v4461_v25 = vrot.slane %v4460_v20, 2  ;;  %v3659_v33 = vadd.f32 %v3658_v0, %v3657_v24  ;;  %v4257_v27 = vrot.slane %v4256_v34, 1  ;;  %5781 = vpow2.f32 %v4140_v32  ;;  %v9200_v32 = vld [vmem:[#allocation34_spill] sm:$0xff] }
 0x3fe   : > { %v3764_v60 = vmul.f32 %v5845_v6, %v3732_v58  ;;  %v3765_v42 = vmul.f32 %v5846_v44, %v3733_v49  ;;  %v3660_v14 = vsel %vm2219_vm11, %v8424_v61, 0.0  ;;  %5783 = vpow2.f32 %v4142_v52  ;;  %v9201_v49 = vld [vmem:[#allocation50_spill] sm:$0xff] }
 0x3ff   : > { %v8430_v15 = vpop.eup %5777  ;;  %v4462_v40 = vadd.f32 %v4461_v25, %v4460_v20  ;;  %5785 = vrcp.f32 %v3659_v33  ;;  %v4258_v47 = vadd.f32 %v4257_v27, %v4256_v34  ;;  %v3435_v35 = vmax.f32 %v3433_v16, %v3434_v53 }
 0x400   : > { %v5780_v9 = vpop.eup %5779  ;;  %v3866_v46 = vsel %vm2219_vm11, %v3764_v60, 0.0  ;;  %v3867_v59 = vsel %vm2219_vm11, %v3765_v42, 0.0  ;;  %v3661_v38 = vsel %vm2219_vm11, %v8430_v15, 0.0  ;;  %v4034_v24 = vmax.f32 %v4032_v37, %v4033_v57 }
 0x401   : > { %v4463_v4 = vrot.slane %v4462_v40, 1  ;;  %v3868_v10 = vadd.f32 %v3867_v59, %v3866_v46  ;;  %v4338_v29 = vmul.f32 %v5780_v9, %v8350_v28  ;;  %v4339_v62 = vmul.f32 %v5780_v9, %v8354_v21 }
 0x402   : > { %5787 = vrcp.f32 %v4258_v47  ;;  %v3662_v20 = vadd.f32 %v3661_v38, %v3660_v14  ;;  %v3436_v0 = vrot.slane %v3435_v35, 1  ;;  %v4035_v34 = vrot.slane %v4034_v24, 1 }
 0x403   : > { %v8438_v16 = vadd.f32 %v4463_v4, %v4462_v40  ;;  %v3869_v53 = vrot.slane %v3868_v10, 4  ;;  %v4370_v58 = vmul.f32 %v4338_v29, %v9200_v32  ;;  %v4371_v52 = vmul.f32 %v4339_v62, %v9201_v49  ;;  %v5847_v49 = vld [vmem:[%s7596_s21 + $0xb0] sm:$0xff] }
 0x404   : > { %v3663_v25 = vrot.slane %v3662_v20, 4  ;;  %v3437_v33 = vmax.f32 %v3435_v35, %v3436_v0  ;;  %v4036_v37 = vmax.f32 %v4034_v24, %v4035_v34  ;;  %v3440_v57 = vmax.f32 %v3438_v48, %v8375_v36 }
 0x405   : > { %v3870_v27 = vadd.f32 %v3869_v53, %v3868_v10  ;;  %v4465_v28 = vsel %vm2219_vm11, %v4370_v58, 0.0  ;;  %v4466_v21 = vsel %vm2219_vm11, %v4371_v52, 0.0  ;;  %v4037_v6 = vsel %vm2219_vm11, %v8081_v5, -inf }
 0x406   : > { %v4467_v60 = vadd.f32 %v4466_v21, %v4465_v28  ;;  %v3664_v44 = vadd.f32 %v3663_v25, %v3662_v20  ;;  %v3482_v42 = vsub.f32 %v7983_v19, %v3437_v33  ;;  %v3483_v14 = vsub.f32 %v7974_v45, %v3437_v33  ;;  %v5848_v25 = vld [vmem:[%s7596_s21 + $0xb8] sm:$0xff] }
 0x407   : > { %v8449_v40 = vpop.eup %5781  ;;  %v3871_v47 = vrot.slane %v3870_v27, 2  ;;  %v4088_v35 = vsub.f32 %v8018_v2, %v4036_v37  ;;  %v4089_v36 = vsub.f32 %v7976_v8, %v4036_v37  ;;  %v3441_v48 = vrot.slane %v3440_v57, 4 }
 0x408   : > { %v8453_v9 = vpop.eup %5783  ;;  %v4468_v46 = vrot.slane %v4467_v60, 4  ;;  %v3665_v59 = vrot.slane %v3664_v44, 2  ;;  %v4259_v38 = vsel %vm2219_vm11, %v8449_v40, 0.0  ;;  %v3540_v24 = vmul.f32 1.442695, %v3482_v42  ;;  %v9202_v42 = vld [vmem:[#allocation3_spill] sm:$0xff] }
 0x409   : > { %v5786_v19 = vpop.eup %5785  ;;  %v8457_v4 = vadd.f32 %v3871_v47, %v3870_v27  ;;  %v4260_v45 = vsel %vm2219_vm11, %v8453_v9, 0.0  ;;  %v3542_v2 = vmul.f32 1.442695, %v3483_v14  ;;  %v4144_v10 = vmul.f32 1.442695, %v4088_v35  ;;  %v9203_v47 = vld [vmem:[#allocation42_spill] sm:$0xff] }
 0x40a   : > { %v4469_v8 = vadd.f32 %v4468_v46, %v4467_v60  ;;  %v3734_v29 = vmul.f32 %v5786_v19, %v8383_v3  ;;  %v3735_v62 = vmul.f32 %v5786_v19, %v8387_v31  ;;  %v3666_v20 = vadd.f32 %v3665_v59, %v3664_v44 }
 0x40b   : > { %v4261_v0 = vadd.f32 %v4260_v45, %v4259_v38  ;;  %5789 = vpow2.f32 %v3540_v24  ;;  %v4146_v34 = vmul.f32 1.442695, %v4089_v36  ;;  %v3442_v53 = vmax.f32 %v3440_v57, %v3441_v48 }
 0x40c   : > { %v5788_v32 = vpop.eup %5787  ;;  %v4470_v58 = vrot.slane %v4469_v8, 2  ;;  %v3766_v52 = vmul.f32 %v5847_v49, %v3734_v29  ;;  %v3767_v33 = vmul.f32 %v5848_v25, %v3735_v62  ;;  %v3667_v37 = vrot.slane %v3666_v20, 1 }
 0x40d   : > { %v4340_v27 = vmul.f32 %v5788_v32, %v8393_v7  ;;  %v4341_v28 = vmul.f32 %v5788_v32, %v8399_v11  ;;  %v4262_v21 = vrot.slane %v4261_v0, 4  ;;  %5791 = vpow2.f32 %v3542_v2  ;;  %v9204_v32 = vld [vmem:[#allocation58_spill] sm:$0xff] }
 0x40e   : > { %v4471_v3 = vadd.f32 %v4470_v58, %v4469_v8  ;;  %v3875_v31 = vsel %vm2219_vm11, %v3766_v52, 0.0  ;;  %v3876_v60 = vsel %vm2219_vm11, %v3767_v33, 0.0  ;;  %v3668_v44 = vadd.f32 %v3667_v37, %v3666_v20  ;;  %v9205_v52 = vld [vmem:[#allocation17_spill] sm:$0xff] }
 0x40f   : > { %v3877_v57 = vadd.f32 %v3876_v60, %v3875_v31  ;;  %v4372_v14 = vmul.f32 %v4340_v27, %v9202_v42  ;;  %v4373_v35 = vmul.f32 %v4341_v28, %v9203_v47  ;;  %v4263_v36 = vadd.f32 %v4262_v21, %v4261_v0 }
 0x410   : > { %v4472_v48 = vrot.slane %v4471_v3, 1  ;;  %5793 = vrcp.f32 %v3668_v44  ;;  %v3443_v46 = vrot.slane %v3442_v53, 2  ;;  %v4039_v7 = vmax.f32 %v4037_v6, %v8379_v55 }
 0x411   : > { %v3878_v11 = vrot.slane %v3877_v57, 4  ;;  %v4474_v59 = vsel %vm2219_vm11, %v4372_v14, 0.0  ;;  %v4475_v38 = vsel %vm2219_vm11, %v4373_v35, 0.0  ;;  %v4264_v24 = vrot.slane %v4263_v36, 2 }
 0x412   : > { %v8474_v19 = vadd.f32 %v4472_v48, %v4471_v3  ;;  %v4476_v45 = vadd.f32 %v4475_v38, %v4474_v59  ;;  %5795 = vpow2.f32 %v4144_v10  ;;  %v3444_v2 = vmax.f32 %v3442_v53, %v3443_v46 }
 0x413   : > { %v8476_v8 = vadd.f32 %v3878_v11, %v3877_v57  ;;  %v4265_v29 = vadd.f32 %v4264_v24, %v4263_v36  ;;  %5797 = vpow2.f32 %v4146_v34  ;;  %v4040_v62 = vrot.slane %v4039_v7, 4 }
 0x414   : > { %v4477_v20 = vrot.slane %v4476_v45, 4  ;;  %v3445_v0 = vrot.slane %v3444_v2, 1  ;;  %v8480_v55 = vadd.f32 %v8107_v63, %v9204_v32  ;;  %v4047_v6 = vsel %vm2219_vm11, %v8109_v17, -inf }
 0x415   : > { %v8484_v58 = vpop.eup %5789  ;;  %v3880_v49 = vrot.slane %v8476_v8, 2  ;;  %v4266_v10 = vrot.slane %v4265_v29, 1  ;;  %v4041_v53 = vmax.f32 %v4039_v7, %v4040_v62  ;;  %v8489_v25 = vadd.f32 %v8113_v1, %v9205_v52  ;;  %v5849_v62 = vld [vmem:[%s7596_s21 + $0xc0] sm:$0xff] }
 0x416   : > { %v4478_v34 = vadd.f32 %v4477_v20, %v4476_v45  ;;  %v3669_v33 = vsel %vm2219_vm11, %v8484_v58, 0.0  ;;  %v3446_v37 = vmax.f32 %v3444_v2, %v3445_v0  ;;  %v3448_v63 = vsel %vm2219_vm11, %v8480_v55, -inf  ;;  %v5850_v0 = vld [vmem:[%s7596_s21 + $0xc8] sm:$0xff] }
 0x417   : > { %v8495_v27 = vpop.eup %5791  ;;  %v4267_v28 = vadd.f32 %v4266_v10, %v4265_v29  ;;  %v4042_v21 = vrot.slane %v4041_v53, 2  ;;  %v3447_v3 = vsel %vm2219_vm11, %v8489_v25, -inf  ;;  %v4046_v31 = vsel %vm2219_vm11, %v8129_v56, -inf }
 0x418   : > { %v4479_v1 = vrot.slane %v4478_v34, 2  ;;  %v3670_v60 = vsel %vm2219_vm11, %v8495_v27, 0.0  ;;  %v3484_v44 = vsub.f32 %v8056_v41, %v3446_v37  ;;  %v3485_v57 = vsub.f32 %v8048_v54, %v3446_v37 }
 0x419   : > { %5799 = vrcp.f32 %v4267_v28  ;;  %v3671_v42 = vadd.f32 %v3670_v60, %v3669_v33  ;;  %v4043_v14 = vmax.f32 %v4041_v53, %v4042_v21  ;;  %v3449_v47 = vmax.f32 %v3447_v3, %v3448_v63 }
 0x41a   : > { %v5794_v35 = vpop.eup %5793  ;;  %v8505_v36 = vadd.f32 %v4479_v1, %v4478_v34  ;;  %v3544_v48 = vmul.f32 1.442695, %v3484_v44  ;;  %v3546_v46 = vmul.f32 1.442695, %v3485_v57  ;;  %v4048_v7 = vmax.f32 %v4046_v31, %v4047_v6 }
 0x41b   : > { %v3736_v11 = vmul.f32 %v5794_v35, %v8424_v61  ;;  %v3737_v59 = vmul.f32 %v5794_v35, %v8430_v15  ;;  %v3672_v38 = vrot.slane %v3671_v42, 4  ;;  %v4044_v41 = vrot.slane %v4043_v14, 1 }
 0x41c   : > { %v8509_v24 = vpop.eup %5795  ;;  %v4481_v54 = vrot.slane %v8505_v36, 1  ;;  %5801 = vpow2.f32 %v3544_v48  ;;  %v3450_v45 = vrot.slane %v3449_v47, 4  ;;  %v4049_v2 = vrot.slane %v4048_v7, 4 }
 0x41d   : > { %v8512_v29 = vpop.eup %5797  ;;  %v3768_v20 = vmul.f32 %v5849_v62, %v3736_v11  ;;  %v3769_v32 = vmul.f32 %v5850_v0, %v3737_v59  ;;  %v3673_v6 = vadd.f32 %v3672_v38, %v3671_v42  ;;  %v4268_v61 = vsel %vm2219_vm11, %v8509_v24, 0.0  ;;  %v9206_v62 = vld [vmem:[#allocation52_spill] sm:$0xff]  ;;  %v9207_v0 = vld [vmem:[#allocation54_spill] sm:$0xff] }
 0x41e   : > { %v4269_v15 = vsel %vm2219_vm11, %v8512_v29, 0.0  ;;  %5803 = vpow2.f32 %v3546_v46  ;;  %v4045_v10 = vmax.f32 %v4043_v14, %v4044_v41  ;;  %v3451_v53 = vmax.f32 %v3449_v47, %v3450_v45 }
 0x41f   : > { %v3884_v52 = vsel %vm2219_vm11, %v3768_v20, 0.0  ;;  %v3885_v34 = vsel %vm2219_vm11, %v3769_v32, 0.0  ;;  %v3674_v33 = vrot.slane %v3673_v6, 2  ;;  %v4270_v37 = vadd.f32 %v4269_v15, %v4268_v61 }
 0x420   : > { %v3886_v63 = vadd.f32 %v3885_v34, %v3884_v52  ;;  %v4090_v28 = vsub.f32 %v8081_v5, %v4045_v10  ;;  %v4091_v21 = vsub.f32 %v8050_v43, %v4045_v10  ;;  %v3452_v3 = vrot.slane %v3451_v53, 2 }
 0x421   : > { %v3675_v31 = vadd.f32 %v3674_v33, %v3673_v6  ;;  %v4271_v1 = vrot.slane %v4270_v37, 4  ;;  %v4050_v60 = vmax.f32 %v4048_v7, %v4049_v2  ;;  %v4056_v44 = vsel %vm2219_vm11, %v8147_v30, -inf }
 0x422   : > { %v3887_v57 = vrot.slane %v3886_v63, 4  ;;  %v4148_v42 = vmul.f32 1.442695, %v4090_v28  ;;  %v4150_v14 = vmul.f32 1.442695, %v4091_v21  ;;  %v3453_v47 = vmax.f32 %v3451_v53, %v3452_v3 }
 0x423   : > { %v5800_v35 = vpop.eup %5799  ;;  %v3676_v48 = vrot.slane %v3675_v31, 1  ;;  %v4272_v46 = vadd.f32 %v4271_v1, %v4270_v37  ;;  %v4051_v11 = vrot.slane %v4050_v60, 2  ;;  %v4055_v5 = vsel %vm2219_vm11, %v8153_v26, -inf  ;;  %v2216_v37 = vld [vmem:[%s8819_s12] sm:$0xff] }
 0x424   : > { %v8528_v59 = vadd.f32 %v3887_v57, %v3886_v63  ;;  %v4342_v43 = vmul.f32 %v5800_v35, %v8449_v40  ;;  %v4343_v7 = vmul.f32 %v5800_v35, %v8453_v9  ;;  %5805 = vpow2.f32 %v4148_v42  ;;  %v2217_v63 = vld [vmem:[%s8819_s12 + $0x8] sm:$0xff] }
 0x425   : > { %v3677_v38 = vadd.f32 %v3676_v48, %v3675_v31  ;;  %v4273_v41 = vrot.slane %v4272_v46, 2  ;;  %5807 = vpow2.f32 %v4150_v14  ;;  %v3454_v45 = vrot.slane %v3453_v47, 1 }
 0x426   : > { %v8532_v2 = vpop.eup %5801  ;;  %v4374_v20 = vmul.f32 %v4342_v43, %v9206_v62  ;;  %v4375_v32 = vmul.f32 %v4343_v7, %v9207_v0  ;;  %v4052_v6 = vmax.f32 %v4050_v60, %v4051_v11  ;;  %v4057_v61 = vmax.f32 %v4055_v5, %v4056_v44 }
 0x427   : > { %5809 = vrcp.f32 %v3677_v38  ;;  %v4274_v15 = vadd.f32 %v4273_v41, %v4272_v46  ;;  %v3678_v40 = vsel %vm2219_vm11, %v8532_v2, 0.0  ;;  %v3455_v10 = vmax.f32 %v3453_v47, %v3454_v45 }
 0x428   : > { %v8538_v9 = vpop.eup %5803  ;;  %v4483_v53 = vsel %vm2219_vm11, %v4374_v20, 0.0  ;;  %v4484_v52 = vsel %vm2219_vm11, %v4375_v32, 0.0  ;;  %v4053_v34 = vrot.slane %v4052_v6, 1  ;;  %v4058_v33 = vrot.slane %v4057_v61, 4 }
 0x429   : > { %v4485_v28 = vadd.f32 %v4484_v52, %v4483_v53  ;;  %v4275_v21 = vrot.slane %v4274_v15, 1  ;;  %v3679_v3 = vsel %vm2219_vm11, %v8538_v9, 0.0  ;;  %v3486_v31 = vsub.f32 %v8489_v25, %v3455_v10  ;;  %v9208_v25 = vld [vmem:[#allocation33_spill] sm:$0xff] }
 0x42a   : > { %v3680_v1 = vadd.f32 %v3679_v3, %v3678_v40  ;;  %v3487_v60 = vsub.f32 %v8480_v55, %v3455_v10  ;;  %v4054_v44 = vmax.f32 %v4052_v6, %v4053_v34  ;;  %v4059_v57 = vmax.f32 %v4057_v61, %v4058_v33  ;;  %v9209_v6 = vld [vmem:[#allocation45_spill] sm:$0xff] }
 0x42b   : > { %v4486_v42 = vrot.slane %v4485_v28, 4  ;;  %v4276_v14 = vadd.f32 %v4275_v21, %v4274_v15  ;;  %v3548_v47 = vmul.f32 1.442695, %v3486_v31  ;;  %v5435_v35 = vpack.c.bf16 %v2217_v63, %v2216_v37  ;;  %v9210_v21 = vld [vmem:[#allocation5_spill] sm:$0xff] }
 0x42c   : > { %v3681_v48 = vrot.slane %v3680_v1, 4  ;;  %v3550_v46 = vmul.f32 1.442695, %v3487_v60  ;;  %v4092_v11 = vsub.f32 %v8129_v56, %v4054_v44  ;;  %v4093_v5 = vsub.f32 %v8109_v17, %v4054_v44  ;;  %v5851_v60 = vld [vmem:[%s7596_s21 + $0xd0] sm:$0xff] }
 0x42d   : > { %v4487_v43 = vadd.f32 %v4486_v42, %v4485_v28  ;;  %5811 = vrcp.f32 %v4276_v14  ;;  %v4060_v7 = vrot.slane %v4059_v57, 2  ;;  %5436 = vmatprep.subr.bf16.mxu0 %v5435_v35  ;;  %v8556_v38 = vmul.f32 %v8288_v13, %v9208_v25 }
 0x42e   : > { %v8558_v55 = vpop.eup %5805  ;;  %v3682_v41 = vadd.f32 %v3681_v48, %v3680_v1  ;;  %5813 = vpow2.f32 %v3548_v47  ;;  %v4152_v45 = vmul.f32 1.442695, %v4092_v11  ;;  %v4154_v62 = vmul.f32 1.442695, %v4093_v5  ;;  %5438 = vmatpush3.bf16.msra.mxu0 %v5435_v35 }
 0x42f   : > { %v8560_v20 = vpop.eup %5807  ;;  %v4488_v56 = vrot.slane %v4487_v43, 2  ;;  %v4277_v17 = vsel %vm2219_vm11, %v8558_v55, 0.0  ;;  %5815 = vpow2.f32 %v3550_v46  ;;  %v4061_v0 = vmax.f32 %v4059_v57, %v4060_v7  ;;  %v5852_v57 = vld [vmem:[%s7596_s21 + $0xd8] sm:$0xff] }
 0x430   : > { %v3683_v32 = vrot.slane %v3682_v41, 2  ;;  %v4278_v13 = vsel %vm2219_vm11, %v8560_v20, 0.0  ;;  %5817 = vpow2.f32 %v4152_v45  ;;  %v8568_v61 = vmul.f32 %v8331_v18, %v9209_v6  ;;  %v9211_v18 = vld [vmem:[#allocation71_spill] sm:$0xff] }
 0x431   : > { %v5810_v15 = vpop.eup %5809  ;;  %v8570_v40 = vadd.f32 %v4488_v56, %v4487_v43  ;;  %v4279_v10 = vadd.f32 %v4278_v13, %v4277_v17  ;;  %5819 = vpow2.f32 %v4154_v62  ;;  %v4062_v53 = vrot.slane %v4061_v0, 1  ;;  %v9213_v13 = vld [vmem:[#allocation72_spill] sm:$0xff] }
 0x432   : > { %v3738_v52 = vmul.f32 %v5810_v15, %v8484_v58  ;;  %v3739_v34 = vmul.f32 %v5810_v15, %v8495_v27  ;;  %v3684_v33 = vadd.f32 %v3683_v32, %v3682_v41  ;;  %v4391_v37 = vrot.slane %v8058_v12, 1 }
 0x433   : > { %v4280_v63 = vrot.slane %v4279_v10, 4  ;;  %v4063_v28 = vmax.f32 %v4061_v0, %v4062_v53  ;;  %v4400_v3 = vrot.slane %v9210_v21, 1  ;;  %v9212_v31 = vrot.slane %v9211_v18, 2 }
 0x434   : > { %v3770_v44 = vmul.f32 %v5851_v60, %v3738_v52  ;;  %v3771_v42 = vmul.f32 %v5852_v57, %v3739_v34  ;;  %v3685_v14 = vrot.slane %v3684_v33, 1  ;;  %v8582_v58 = vadd.f32 %v4391_v37, %v8058_v12  ;;  %v9215_v52 = vld [vmem:[#allocation51_spill] sm:$0xff] }
 0x435   : > { %v4408_v1 = vadd.f32 %v9212_v31, %v9211_v18  ;;  %v4281_v27 = vadd.f32 %v4280_v63, %v4279_v10  ;;  %v4094_v47 = vsub.f32 %v8153_v26, %v4063_v28  ;;  %v4095_v35 = vsub.f32 %v8147_v30, %v4063_v28  ;;  %v9214_v10 = vld [vmem:[#allocation43_spill] sm:$0xff] }
 0x436   : > { %v8587_v48 = vadd.f32 %v4400_v3, %v9210_v21  ;;  %v3893_v46 = vsel %vm2219_vm11, %v3770_v44, 0.0  ;;  %v3894_v11 = vsel %vm2219_vm11, %v3771_v42, 0.0  ;;  %v3686_v5 = vadd.f32 %v3685_v14, %v3684_v33  ;;  %v9216_v31 = vld [vmem:[#allocation7_spill] sm:$0xff] }
 0x437   : > { %v4409_v43 = vrot.slane %v4408_v1, 1  ;;  %v5812_v7 = vpop.eup %5811  ;;  %v8591_v25 = vadd.f32 %v3894_v11, %v3893_v46  ;;  %v4282_v41 = vrot.slane %v4281_v27, 2  ;;  %v4156_v12 = vmul.f32 1.442695, %v4094_v47  ;;  %v9217_v47 = vld [vmem:[#allocation40_spill] sm:$0xff] }
 0x438   : > { %v4158_v45 = vmul.f32 1.442695, %v4095_v35  ;;  %v8593_v62 = vpop.eup %5813  ;;  %v4344_v26 = vmul.f32 %v5812_v7, %v8509_v24  ;;  %v4345_v30 = vmul.f32 %v5812_v7, %v8512_v29  ;;  %5821 = vrcp.f32 %v3686_v5  ;;  %v9218_v46 = vld [vmem:[#allocation20_spill] sm:$0xff] }
 0x439   : > { %v8597_v56 = vadd.f32 %v4409_v43, %v4408_v1  ;;  %v8599_v17 = vpop.eup %5815  ;;  %v4283_v0 = vadd.f32 %v4282_v41, %v4281_v27  ;;  %v3687_v32 = vsel %vm2219_vm11, %v8593_v62, 0.0  ;;  %5823 = vpow2.f32 %v4156_v12 }
 0x43a   : > { %v4416_v6 = vrot.slane %v9213_v13, 2  ;;  %v8604_v15 = vpop.eup %5817  ;;  %v4376_v53 = vmul.f32 %v4344_v26, %v9214_v10  ;;  %v4377_v24 = vmul.f32 %v4345_v30, %v9215_v52  ;;  %v3688_v29 = vsel %vm2219_vm11, %v8599_v17, 0.0 }
 0x43b   : > { %5825 = vpow2.f32 %v4158_v45  ;;  %v8610_v34 = vpop.eup %5819  ;;  %v4284_v33 = vrot.slane %v4283_v0, 1  ;;  %v3689_v37 = vadd.f32 %v3688_v29, %v3687_v32  ;;  %v4286_v63 = vsel %vm2219_vm11, %v8604_v15, 0.0  ;;  %v9219_v45 = vld [vmem:[#allocation27_spill] sm:$0xff] }
 0x43c   : > { %v4417_v28 = vadd.f32 %v4416_v6, %v9213_v13  ;;  %v4492_v21 = vsel %vm2219_vm11, %v4376_v53, 0.0  ;;  %v4493_v3 = vsel %vm2219_vm11, %v4377_v24, 0.0  ;;  %v4287_v18 = vsel %vm2219_vm11, %v8610_v34, 0.0 }
 0x43d   : > { %v4423_v1 = vrot.slane %v9216_v31, 4  ;;  %v4494_v60 = vadd.f32 %v4493_v3, %v4492_v21  ;;  %v4285_v44 = vadd.f32 %v4284_v33, %v4283_v0  ;;  %v3690_v57 = vrot.slane %v3689_v37, 4 }
 0x43e   : > { %v4288_v42 = vadd.f32 %v4287_v18, %v4286_v63  ;;  %v4418_v14 = vrot.slane %v4417_v28, 1  ;;  %v4430_v35 = vsel %vm2219_vm11, %v9217_v47, 0.0  ;;  %v4438_v11 = vsel %vm2219_vm11, %v9218_v46, 0.0 }
 0x43f   : > { %v4424_v27 = vadd.f32 %v4423_v1, %v9216_v31  ;;  %v4495_v5 = vrot.slane %v4494_v60, 4  ;;  %5827 = vrcp.f32 %v4285_v44  ;;  %v3691_v43 = vadd.f32 %v3690_v57, %v3689_v37  ;;  %v5853_v1 = vld [vmem:[%s7596_s21 + $0xe0] sm:$0xff] }
 0x440   : > { %v4289_v7 = vrot.slane %v4288_v42, 4  ;;  %v8625_v41 = vadd.f32 %v4418_v14, %v4417_v28  ;;  %v4431_v26 = vadd.f32 %v4430_v35, %v9219_v45  ;;  %v4439_v30 = vsel %vm2219_vm11, %v8556_v38, 0.0 }
 0x441   : > { %v4425_v12 = vrot.slane %v4424_v27, 2  ;;  %v8630_v0 = vadd.f32 %v4495_v5, %v4494_v60  ;;  %v3692_v32 = vrot.slane %v3691_v43, 2  ;;  %v4440_v6 = vadd.f32 %v4439_v30, %v4438_v11 }
 0x442   : > { %v4290_v13 = vadd.f32 %v4289_v7, %v4288_v42  ;;  %v5822_v10 = vpop.eup %5821  ;;  %v4432_v52 = vrot.slane %v4431_v26, 4  ;;  %v4447_v24 = vsel %vm2219_vm11, %v8339_v39, 0.0  ;;  %v4448_v29 = vsel %vm2219_vm11, %v8568_v61, 0.0  ;;  %v5854_v61 = vld [vmem:[%s7596_s21 + $0xe8] sm:$0xff] }
 0x443   : > { %v4426_v53 = vadd.f32 %v4425_v12, %v4424_v27  ;;  %v8636_v33 = vpop.eup %5823  ;;  %v4497_v38 = vrot.slane %v8630_v0, 2  ;;  %v3740_v37 = vmul.f32 %v5822_v10, %v8532_v2  ;;  %v3741_v63 = vmul.f32 %v5822_v10, %v8538_v9 }
 0x444   : > { %v3693_v28 = vadd.f32 %v3692_v32, %v3691_v43  ;;  %v4291_v3 = vrot.slane %v4290_v13, 2  ;;  %v4295_v18 = vsel %vm2219_vm11, %v8636_v33, 0.0  ;;  %v4433_v39 = vadd.f32 %v4432_v52, %v4431_v26 }
 0x445   : > { %v8641_v21 = vpop.eup %5825  ;;  %v4427_v31 = vrot.slane %v4426_v53, 1  ;;  %v3772_v60 = vmul.f32 %v5853_v1, %v3740_v37  ;;  %v8647_v44 = vmul.f32 %v5854_v61, %v3741_v63  ;;  %v4441_v46 = vrot.slane %v4440_v6, 4  ;;  %v9220_v37 = vld [vmem:[#allocation55_spill] sm:$0xff] }
 0x446   : > { %v3694_v57 = vrot.slane %v3693_v28, 1  ;;  %v4296_v2 = vsel %vm2219_vm11, %v8641_v21, 0.0  ;;  %v4292_v42 = vadd.f32 %v4291_v3, %v4290_v13  ;;  %v4434_v27 = vrot.slane %v4433_v39, 2 }
 0x447   : > { %v4297_v9 = vadd.f32 %v4296_v2, %v4295_v18  ;;  %v4428_v14 = vadd.f32 %v4427_v31, %v4426_v53  ;;  %v8652_v47 = vsel %vm2219_vm11, %v3772_v60, 0.0  ;;  %v4449_v11 = vadd.f32 %v4448_v29, %v4447_v24  ;;  %v2214_v2 = vld [vmem:[%s8818_s11] sm:$0xff] }
 0x448   : > { %v3695_v35 = vadd.f32 %v3694_v57, %v3693_v28  ;;  %v4293_v5 = vrot.slane %v4292_v42, 1  ;;  %v4435_v7 = vadd.f32 %v4434_v27, %v4433_v39  ;;  %v4442_v45 = vadd.f32 %v4441_v46, %v4440_v6  ;;  %v9221_v28 = vld [vmem:[#allocation46_spill] sm:$0xff] }
 0x449   : > { %v4298_v43 = vrot.slane %v4297_v9, 4  ;;  %v5828_v12 = vpop.eup %5827  ;;  %v4450_v26 = vrot.slane %v4449_v11, 4  ;;  %v4545_v30 = vsel %vm4544_vm4, %v8587_v48, %v8582_v58 }
 0x44a   : > { %5829 = vrcp.f32 %v3695_v35  ;;  %v4346_v32 = vmul.f32 %v5828_v12, %v8558_v55  ;;  %v4347_v13 = vmul.f32 %v5828_v12, %v8560_v20  ;;  %v4294_v10 = vadd.f32 %v4293_v5, %v4292_v42 }
 0x44b   : > { %v4299_v53 = vadd.f32 %v4298_v43, %v4297_v9  ;;  %v4436_v52 = vrot.slane %v4435_v7, 1  ;;  %v4443_v24 = vrot.slane %v4442_v45, 2  ;;  %v4451_v29 = vadd.f32 %v4450_v26, %v4449_v11 }
 0x44c   : > { %v4378_v63 = vmul.f32 %v4346_v32, %v9220_v37  ;;  %v4379_v3 = vmul.f32 %v4347_v13, %v9221_v28  ;;  %5831 = vrcp.f32 %v4294_v10  ;;  %v4547_v55 = vsel %vm4546_vm0, %v8597_v56, %v4545_v30  ;;  %v2215_v56 = vld [vmem:[%s8818_s11 + $0x8] sm:$0xff] }
 0x44d   : > { %v4300_v6 = vrot.slane %v4299_v53, 2  ;;  %v4437_v18 = vadd.f32 %v4436_v52, %v4435_v7  ;;  %v4444_v31 = vadd.f32 %v4443_v24, %v4442_v45  ;;  %v4452_v39 = vrot.slane %v4451_v29, 2  ;;  %v9222_v37 = vld [vmem:[#allocation39_spill] sm:$0xff] }
 0x44e   : > { %v4501_v20 = vsel %vm2219_vm11, %v4378_v63, 0.0  ;;  %v4502_v58 = vsel %vm2219_vm11, %v4379_v3, 0.0  ;;  %v4549_v57 = vsel %vm4548_vm5, %v8625_v41, %v4547_v55  ;;  %v8675_v5 = vpack.c.bf16 %v2215_v56, %v2214_v2  ;;  %v9225_v55 = vld [vmem:[#allocation26_spill] sm:$0xff] }
 0x44f   : > { %v4301_v48 = vadd.f32 %v4300_v6, %v4299_v53  ;;  %v4503_v1 = vadd.f32 %v4502_v58, %v4501_v20  ;;  %v4445_v60 = vrot.slane %v4444_v31, 1  ;;  %v4453_v61 = vadd.f32 %v4452_v39, %v4451_v29  ;;  %v5856_v29 = vld [vmem:[%s7596_s21 + $0x68] sm:$0xff]  ;;  %v9223_v6 = vld [vmem:[#allocation28_spill] sm:$0xff]  ;;  %v9226_v20 = vld [vmem:[#allocation2_spill] sm:$0xff] }
 0x450   : > { %v4551_v46 = vsel %vm4550_vm6, %v4428_v14, %v4549_v57  ;;  %v4482_v26 = vadd.f32 %v4481_v54, %v8505_v36  ;;  %5440 = vmatprep.subr.bf16.mxu0 %v8675_v5  ;;  %v4490_v32 = vrot.slane %v8570_v40, 1  ;;  %v4498_v10 = vadd.f32 %v4497_v38, %v8630_v0  ;;  %v9228_v57 = vld [vmem:[#allocation73_spill] sm:$0xff] }
 0x451   : > { %v4302_v42 = vrot.slane %v4301_v48, 1  ;;  %v4504_v9 = vrot.slane %v4503_v1, 4  ;;  %v4446_v27 = vadd.f32 %v4445_v60, %v4444_v31  ;;  %v4454_v35 = vrot.slane %v4453_v61, 1  ;;  %v9224_v31 = vld [vmem:[#allocation67_spill] sm:$0xff] }
 0x452   : > { %v4553_v41 = vsel %vm4552_vm7, %v4437_v18, %v4551_v46  ;;  %v4558_v36 = vsel %vm4544_vm4, %v8474_v19, %v8438_v16  ;;  %v4491_v52 = vadd.f32 %v4490_v32, %v8570_v40  ;;  %v3757_v63 = vmul.f32 %v5856_v29, %v9222_v37  ;;  %v5857_v19 = vld [vmem:[%s7596_s21 + $0x78] sm:$0xff] }
 0x453   : > { %v4303_v11 = vadd.f32 %v4302_v42, %v4301_v48  ;;  %v4505_v7 = vadd.f32 %v4504_v9, %v4503_v1  ;;  %v4455_v12 = vadd.f32 %v4454_v35, %v4453_v61  ;;  %v4555_v45 = vsel %vm4554_vm8, %v4446_v27, %v4553_v41  ;;  %v9227_v48 = vld [vmem:[#allocation44_spill] sm:$0xff]  ;;  %v9230_v42 = vld [vmem:[#allocation59_spill] sm:$0xff] }
 0x454   : > { %v5830_v43 = vpop.eup %5829  ;;  %v4559_v24 = vsel %vm4546_vm0, %v4482_v26, %v4558_v36  ;;  %v4499_v28 = vrot.slane %v4498_v10, 1  ;;  %v3759_v18 = vmul.f32 %v5857_v19, %v9223_v6  ;;  %v3783_v39 = vrot.slane %v9224_v31, 1  ;;  %v9235_v6 = vld [vmem:[#allocation29_spill] sm:$0xff] }
 0x455   : > { %v3742_v30 = vmul.f32 %v5830_v43, %v8593_v62  ;;  %v8683_v14 = vmul.f32 %v5830_v43, %v8599_v17  ;;  %5833 = vrcp.f32 %v4303_v11  ;;  %v4557_v13 = vsel %vm4556_vm9, %v4455_v12, %v4555_v45  ;;  %v5855_v62 = vld [vmem:[%s7596_s21 + $0xf0] sm:$0xff]  ;;  %v9231_v12 = vld [vmem:[#allocation65_spill] sm:$0xff] }
 0x456   : > { %v4506_v53 = vrot.slane %v4505_v7, 2  ;;  %v5832_v54 = vpop.eup %5831  ;;  %5409 = vmatprep.mubr.msk.f32.mxu0 %vm2219_vm11, %v4557_v13  ;;  %v4560_v16 = vsel %vm4548_vm5, %v4491_v52, %v4559_v24  ;;  %v3792_v40 = vrot.slane %v9225_v55, 1  ;;  %v4500_v60 = vadd.f32 %v4499_v28, %v4498_v10  ;;  %v9233_v13 = vld [vmem:[#allocation8_spill] sm:$0xff] }
 0x457   : > { %v8695_v17 = vmul.f32 %v5855_v62, %v3742_v30  ;;  %v4348_v0 = vmul.f32 %v5832_v54, %v8604_v15  ;;  %v4349_v38 = vmul.f32 %v5832_v54, %v8610_v34  ;;  %v3784_v15 = vadd.f32 %v3783_v39, %v9224_v31  ;;  %v9232_v30 = vld [vmem:[#allocation75_spill] sm:$0xff] }
 0x458   : > { %v4507_v3 = vadd.f32 %v4506_v53, %v4505_v7  ;;  %v3793_v34 = vadd.f32 %v3792_v40, %v9225_v55  ;;  %v9229_v2 = vrot.slane %v9228_v57, 2  ;;  %v3808_v9 = vrot.slane %v9230_v42, 2  ;;  %v9237_v55 = vld [vmem:[#allocation19_spill] sm:$0xff] }
 0x459   : > { %v4380_v58 = vmul.f32 %v4348_v0, %v9226_v20  ;;  %v4381_v1 = vmul.f32 %v4349_v38, %v9227_v48  ;;  %v4561_v11 = vsel %vm4550_vm6, %v4500_v60, %v4560_v16  ;;  %v3815_v45 = vrot.slane %v9231_v12, 4  ;;  %v9234_v0 = vld [vmem:[#allocation36_spill] sm:$0xff] }
 0x45a   : > { %v4508_v61 = vrot.slane %v4507_v3, 1  ;;  %v3800_v56 = vadd.f32 %v9229_v2, %v9228_v57  ;;  %v3809_v7 = vadd.f32 %v3808_v9, %v9230_v42  ;;  %v3822_v32 = vsel %vm2219_vm11, %v9232_v30, 0.0 }
 0x45b   : > { %v4510_v27 = vsel %vm2219_vm11, %v4380_v58, 0.0  ;;  %v4511_v35 = vsel %vm2219_vm11, %v4381_v1, 0.0  ;;  %v3830_v10 = vsel %vm2219_vm11, %v9233_v13, 0.0  ;;  %v3831_v53 = vsel %vm2219_vm11, %v3757_v63, 0.0  ;;  %v9236_v63 = vld [vmem:[#allocation18_spill] sm:$0xff] }
 0x45c   : > { %v4509_v46 = vadd.f32 %v4508_v61, %v4507_v3  ;;  %v4512_v41 = vadd.f32 %v4511_v35, %v4510_v27  ;;  %v3801_v43 = vrot.slane %v3800_v56, 1  ;;  %v3810_v52 = vrot.slane %v3809_v7, 1 }
 0x45d   : > { %v3816_v24 = vadd.f32 %v3815_v45, %v9231_v12  ;;  %v3823_v38 = vadd.f32 %v3822_v32, %v9234_v0  ;;  %v3832_v28 = vadd.f32 %v3831_v53, %v3830_v10  ;;  %v3839_v31 = vsel %vm2219_vm11, %v9235_v6, 0.0 }
 0x45e   : > { %v4562_v26 = vsel %vm4552_vm7, %v4509_v46, %v4561_v11  ;;  %v4513_v54 = vrot.slane %v4512_v41, 4  ;;  %v3802_v62 = vadd.f32 %v3801_v43, %v3800_v56  ;;  %v3811_v16 = vadd.f32 %v3810_v52, %v3809_v7 }
 0x45f   : > { %v5834_v36 = vpop.eup %5833  ;;  %v3817_v19 = vrot.slane %v3816_v24, 2  ;;  %v3824_v20 = vrot.slane %v3823_v38, 4  ;;  %v3833_v58 = vrot.slane %v3832_v28, 4  ;;  %v4660_v1 = vsel %vm4544_vm4, %v3793_v34, %v3784_v15 }
 0x460   : > { %v4350_v29 = vmul.f32 %v5834_v36, %v8636_v33  ;;  %v4351_v37 = vmul.f32 %v5834_v36, %v8641_v21  ;;  %v4514_v3 = vadd.f32 %v4513_v54, %v4512_v41  ;;  %v3840_v21 = vsel %vm2219_vm11, %v3759_v18, 0.0  ;;  %v5858_v41 = vld [vmem:[%s7596_s21 + $0xf8] sm:$0xff] }
 0x461   : > { %v3818_v33 = vadd.f32 %v3817_v19, %v3816_v24  ;;  %v3825_v57 = vadd.f32 %v3824_v20, %v3823_v38  ;;  %v3834_v2 = vadd.f32 %v3833_v58, %v3832_v28  ;;  %v3841_v27 = vadd.f32 %v3840_v21, %v3839_v31 }
 0x462   : > { %v4382_v39 = vmul.f32 %v4350_v29, %v9236_v63  ;;  %v4383_v40 = vmul.f32 %v4351_v37, %v9237_v55  ;;  %v4515_v48 = vrot.slane %v4514_v3, 2  ;;  %v4661_v11 = vsel %vm4546_vm0, %v3802_v62, %v4660_v1 }
 0x463   : > { %v3819_v9 = vrot.slane %v3818_v33, 1  ;;  %v3826_v35 = vrot.slane %v3825_v57, 2  ;;  %v3835_v46 = vrot.slane %v3834_v2, 2  ;;  %v3775_v43 = vmul.f32 %v5858_v41, %v8683_v14 }
 0x464   : > { %v4519_v60 = vsel %vm2219_vm11, %v4382_v39, 0.0  ;;  %v4520_v61 = vsel %vm2219_vm11, %v4383_v40, 0.0  ;;  %v4516_v42 = vadd.f32 %v4515_v48, %v4514_v3  ;;  %v3842_v34 = vrot.slane %v3841_v27, 4 }
 0x465   : > { %v4521_v56 = vadd.f32 %v4520_v61, %v4519_v60  ;;  %v3820_v15 = vadd.f32 %v3819_v9, %v3818_v33  ;;  %v3827_v12 = vadd.f32 %v3826_v35, %v3825_v57  ;;  %v3836_v45 = vadd.f32 %v3835_v46, %v3834_v2 }
 0x466   : > { %v4517_v18 = vrot.slane %v4516_v42, 1  ;;  %v4662_v30 = vsel %vm4548_vm5, %v3811_v16, %v4661_v11  ;;  %v3856_v32 = vadd.f32 %v3855_v23, %v8356_v51  ;;  %v3843_v53 = vadd.f32 %v3842_v34, %v3841_v27 }
 0x467   : > { %v4522_v7 = vrot.slane %v4521_v56, 4  ;;  %v4663_v36 = vsel %vm4550_vm6, %v3820_v15, %v4662_v30  ;;  %v3828_v54 = vrot.slane %v3827_v12, 1  ;;  %v3837_v62 = vrot.slane %v3836_v45, 1 }
 0x468   : > { %v4518_v13 = vadd.f32 %v4517_v18, %v4516_v42  ;;  %v3865_v14 = vadd.f32 %v3864_v22, %v8418_v50  ;;  %v3873_v52 = vrot.slane %v8457_v4, 1  ;;  %v3844_v37 = vrot.slane %v3843_v53, 2 }
 0x469   : > { %v4523_v10 = vadd.f32 %v4522_v7, %v4521_v56  ;;  %v3881_v51 = vadd.f32 %v3880_v49, %v8476_v8  ;;  %v3829_v23 = vadd.f32 %v3828_v54, %v3827_v12  ;;  %v3838_v0 = vadd.f32 %v3837_v62, %v3836_v45  ;;  %v5050_v45 = vld [vmem:[%s8820_s13] ss:$0 sm:$0xff] }
 0x46a   : > { %v4563_v29 = vsel %vm4554_vm8, %v4518_v13, %v4562_v26  ;;  %v3874_v38 = vadd.f32 %v3873_v52, %v8457_v4  ;;  %v3889_v28 = vrot.slane %v8528_v59, 2  ;;  %v3845_v16 = vadd.f32 %v3844_v37, %v3843_v53 }
 0x46b   : > { %v4524_v24 = vrot.slane %v4523_v10, 2  ;;  %v3882_v19 = vrot.slane %v3881_v51, 1  ;;  %v3896_v50 = vrot.slane %v8591_v25, 4  ;;  %v4664_v22 = vsel %vm4552_vm7, %v3829_v23, %v4663_v36 }
 0x46c   : > { %v3890_v26 = vadd.f32 %v3889_v28, %v8528_v59  ;;  %v3903_v6 = vsel %vm2219_vm11, %v8647_v44, 0.0  ;;  %v3911_v8 = vsel %vm2219_vm11, %v8695_v17, 0.0  ;;  %v3846_v31 = vrot.slane %v3845_v16, 1 }
 0x46d   : > { %v4525_v3 = vadd.f32 %v4524_v24, %v4523_v10  ;;  %v4665_v4 = vsel %vm4554_vm8, %v3838_v0, %v4664_v22  ;;  %v3883_v63 = vadd.f32 %v3882_v19, %v3881_v51  ;;  %v3897_v55 = vadd.f32 %v3896_v50, %v8591_v25 }
 0x46e   : > { %v3891_v39 = vrot.slane %v3890_v26, 1  ;;  %v3904_v40 = vadd.f32 %v3903_v6, %v8652_v47  ;;  %v3912_v20 = vsel %vm2219_vm11, %v3775_v43, 0.0  ;;  %v3847_v59 = vadd.f32 %v3846_v31, %v3845_v16 }
 0x46f   : > { %v4526_v49 = vrot.slane %v4525_v3, 1  ;;  %v3913_v48 = vadd.f32 %v3912_v20, %v3911_v8  ;;  %v4667_v44 = vsel %vm4544_vm4, %v3865_v14, %v3856_v32  ;;  %v3898_v21 = vrot.slane %v3897_v55, 2 }
 0x470   : > { %v3892_v33 = vadd.f32 %v3891_v39, %v3890_v26  ;;  %v3905_v17 = vrot.slane %v3904_v40, 4  ;;  %v4668_v1 = vsel %vm4546_vm0, %v3874_v38, %v4667_v44  ;;  %v4666_v61 = vsel %vm4556_vm9, %v3847_v59, %v4665_v4 }
 0x471   : > { %v4527_v58 = vadd.f32 %v4526_v49, %v4525_v3  ;;  %v3914_v57 = vrot.slane %v3913_v48, 4  ;;  %v4669_v25 = vsel %vm4548_vm5, %v3883_v63, %v4668_v1  ;;  %v3899_v47 = vadd.f32 %v3898_v21, %v3897_v55 }
 0x472   : > { %v3906_v2 = vadd.f32 %v3905_v17, %v3904_v40  ;;  %v4670_v56 = vsel %vm4550_vm6, %v3892_v33, %v4669_v25 }
 0x473   : > { %v4564_v60 = vsel %vm4556_vm9, %v4527_v58, %v4563_v29  ;;  %v3915_v42 = vadd.f32 %v3914_v57, %v3913_v48  ;;  %v3900_v9 = vrot.slane %v3899_v47, 1 }
 0x474   : > { %5410 = vmatmul.mubr.msk.f32.vlgmr.msra.gmra.mrb[32].mxu0 %vm2219_vm11, %v4564_v60  ;;  %v3907_v27 = vrot.slane %v3906_v2, 2 }
 0x475   : > { %5442 = vmatpush3.bf16.msra.mxu0 %v8675_v5  ;;  %5416 = vmatprep.mubr.msk.f32.mxu0 %vm2219_vm11, %v4666_v61  ;;  %v3916_v35 = vrot.slane %v3915_v42, 2  ;;  %v3901_v46 = vadd.f32 %v3900_v9, %v3899_v47 }
 0x476   : > { %v3908_v11 = vadd.f32 %v3907_v27, %v3906_v2 }
 0x477   : > { %v3917_v41 = vadd.f32 %v3916_v35, %v3915_v42  ;;  %v4671_v18 = vsel %vm4552_vm7, %v3901_v46, %v4670_v56 }
 0x478   : > { %v3909_v43 = vrot.slane %v3908_v11, 1 }
 0x479   : > { %v3918_v7 = vrot.slane %v3917_v41, 1 }
 0x47a   : > { %v3910_v15 = vadd.f32 %v3909_v43, %v3908_v11 }
 0x47b   : > { %v3919_v34 = vadd.f32 %v3918_v7, %v3917_v41 }
 0x47c   : > { %v4672_v12 = vsel %vm4554_vm8, %v3910_v15, %v4671_v18 }
 0x47d   : > { %v4673_v5 = vsel %vm4556_vm9, %v3919_v34, %v4672_v12 }
 0x47e   : > { %5417 = vmatmul.mubr.msk.f32.vlgmr.msra.gmra.mrb[32].mxu0 %vm2219_vm11, %v4673_v5 }
 0x551   : > { %v5418_v30 = vpop.f32.mrb[32].mxu0 }
 0x552   : > { %v4760_v32 = vadd.f32 %v5418_v30, %v5050_v45  ;;  %v4744_v13 = vpop.f32.mrb[33].mxu0 }
 0x553   : > { %v4759_v10 = vadd.f32 %v5050_v45, %v4744_v13 }
 0x554   : > { %v4762_v53 = vmax.f32 %v4760_v32, 0.0 }
 0x555   : > { %v4761_v36 = vmax.f32 %v4759_v10, 0.0 }
 0x556   : > { %4764 = vst.msk [vmem:[%s583_s28 + $0x8] sm:$0xff] %vm2219_vm11, %v4762_v53 }
 0x557   : > { %4763 = vst.msk [vmem:[%s583_s28] sm:$0xff] %vm2219_vm11, %v4761_v36 }
 0x558 PF: > { %s24_s17 = sadd.s32 1, %s5897_s17   ;;  %s9238_s29 = smov %s5889_s15 }
 0x559   : > { %p21_p8 = scmp.ge.s32.totalorder %s24_s17, 10   ;;  %s9239_s30 = smov %s5893_s16 }
 0x55a   : > { %s9240_s15 = smov %s9243_s18  ;;  %s9241_s16 = smov %s9247_s19 }
 0x55b   :  { %23 = sbr.rel (!%p21_p8) target bundleno = 3 (0x3), region = 112 }

// kernel: building_block_forward.3
= control target key start
LH: loop header
LB: loop body
LE: loop exit
PB: predicated region body
PF: predicated region fallthrough
CT: control target
= control target key end

     0   :  { %s6527_s21 = smov 0   ;;  %s6529_s22 = smov 0   ;;  %s9333_s0 = inlined_call_operand.vmem [shape: f32[2,64,3], index: 0, kind: input, shape index: {}]   ;;  %s9334_s1 = inlined_call_operand.vmem [shape: f32[2,64,16,3], index: 1, kind: input, shape index: {}]   ;;  %s9335_s2 = inlined_call_operand.vmem [shape: f32[2,64,16,16], index: 2, kind: input, shape index: {}]   ;;  %s9336_s3 = inlined_call_operand.vmem [shape: f32[3,16], index: 3, kind: input, shape index: {}]   ;;  %s9337_s4 = inlined_call_operand.vmem [shape: f32[3,16], index: 4, kind: input, shape index: {}]   ;;  %s9338_s5 = inlined_call_operand.vmem [shape: f32[1,16], index: 5, kind: input, shape index: {}]   ;;  %s9339_s6 = inlined_call_operand.vmem [shape: f32[1,16], index: 6, kind: input, shape index: {}]   ;;  %s9340_s7 = inlined_call_operand.vmem [shape: f32[16,16], index: 7, kind: input, shape index: {}]   ;;  %s9341_s8 = inlined_call_operand.vmem [shape: f32[1,16], index: 8, kind: input, shape index: {}]   ;;  %s9342_s9 = inlined_call_operand.vmem [shape: f32[16,16], index: 9, kind: input, shape index: {}]   ;;  %s9343_s10 = inlined_call_operand.vmem [shape: f32[16,16], index: 10, kind: input, shape index: {}]   ;;  %s9344_s11 = inlined_call_operand.vmem [shape: f32[16,16], index: 11, kind: input, shape index: {}]   ;;  %s9345_s12 = inlined_call_operand.vmem [shape: f32[16,16], index: 12, kind: input, shape index: {}]   ;;  %s9346_s13 = inlined_call_operand.vmem [shape: f32[16,32], index: 13, kind: input, shape index: {}]   ;;  %s9347_s14 = inlined_call_operand.vmem [shape: f32[16,32], index: 14, kind: input, shape index: {}]   ;;  %s9348_s15 = inlined_call_operand.vmem [shape: f32[1,32], index: 15, kind: input, shape index: {}]   ;;  %s9349_s16 = inlined_call_operand.vmem [shape: f32[2,64,32], index: 16, kind: output, shape index: {}]  }
   0x1   :  { %9442 = sst [smem:[#allocation77_spill]] %s9333_s0  ;;  %s6531_s23 = smov 0  }
   0x2   :  { %9443 = sst [smem:[#allocation78_spill]] %s9334_s1  ;;  %s6533_s24 = smov 0  }
   0x3   :  { %s6535_s25 = smov 0  }
   0x4 LB: > { %s35_s26 = sadd.s32 1, %s6428_s23  ;;  %s38_s27 = sadd.s32 1, %s6432_s24  ;;  %s6436_s25 = sphi %s6535_s25, %s26_s25   ;;  %s6432_s24 = sphi %s6533_s24, %s9750_s24   ;;  %s6428_s23 = sphi %s6531_s23, %s9749_s23   ;;  %s6424_s22 = sphi %s6529_s22, %s9748_s22   ;;  %s6420_s21 = sphi %s6527_s21, %s9747_s21  }
   0x5   : > { %p36_p0 = scmp.ge.s32.totalorder %s35_s26, 4  ;;  %p5318_p1 = scmp.ge.s32.totalorder %s6436_s25, 1 }
   0x6   : > { %p519_p2 = scmp.lt.s32.totalorder %s6436_s25, 9 }
   0x7   : > { %s9752_s26 = smov (%p36_p0, %s35_s26), 0  ;;  %s9754_s27 = smov (!%p36_p0, %s38_s27), %s6432_s24 }
   0x8   : > { %p520_p3 = pnand %p5318_p1, %p519_p2  ;;  %p40_p4 = scmp.ge.s32.totalorder %s9754_s27, 2 }
   0xa   : > { %s9756_s27 = smov (%p40_p4, %s9754_s27), 0  ;;  %523 = sbr.rel (%p520_p3) target bundleno = 1604 (0x644), region = 84 }
   0xb   : > { %9444 = sst [smem:[#allocation2_spill]] %s9756_s27 }
  0x11   : > { %s5319_s28 = sshll.u32 %s6420_s21, 1  ;;  %p598_p5 = scmp.lt.s32.totalorder %s6424_s22, 1  ;;  %v715_v0 = vlaneseq  ;;  %v6438_v1 = vmov 1966171168   ;;  %v9357_v3 = vmov 2   ;;  %vm953_vm0 = vcmask 23552  }
  0x12   : > { %p600_p6 = scmp.lt.s32.totalorder %s5319_s28, 7  ;;  %s5322_s29 = sshll.u32 %s6420_s21, 4  ;;  %v713_v2 = vunpack.c.l.s4 %v6438_v1  ;;  %6096 = vset.pattern.permute.xlu0 %v9357_v3  ;;  %6095 = vset.pattern.permute.xlu1 %v9357_v3 }
  0x13   : > { %s9758_s22 = smov (!%p598_p5, %s6424_s22), 1  ;;  %v6563_v4 = vshrl.u32 %v715_v0, 7  ;;  %p610_p7 = scmp.lt.s32.totalorder %s5322_s29, 63 }
  0x14   : > { %s9760_s28 = smov (!%p600_p6, %s5319_s28), 7  ;;  %v714_v5 = vunpack.c.0.s8 %v713_v2  ;;  %s5320_s30 = sshll.u32 %s9758_s22, 3 }
  0x15   : > { %s6565_s0 = sadd.s32 %s5320_s30, %s9760_s28  ;;  %s9446_s20 = sld [smem:[#allocation77_spill]]  ;;  %v6584_v9 = vsub.s32 0, %v6563_v4 }
  0x16   : > { %v6568_v6 = vsub.s32 %v714_v5, %v6563_v4  ;;  %s9381_s17 = sshll.u32 %s6565_s0, 3  ;;  %s5324_s27 = sshll.u32 %s9758_s22, 7 }
  0x17   : > { %s9762_s29 = smov (!%p610_p7, %s5322_s29), 63  ;;  %9447 = vst [vmem:[#allocation4_spill] sm:$0xff] %v6584_v9  ;;  %s9448_s1 = sld [smem:[#allocation78_spill]] }
  0x18   : > { %9445 = vst [vmem:[#allocation3_spill] sm:$0xff] %v6568_v6  ;;  %s5323_s28 = sshll.u32 %s9762_s29, 1 }
  0x19   : > { %s6588_s30 = sadd.s32 %s5324_s27, %s5323_s28 }
  0x1a   : > { %s9382_s22 = sshll.u32 %s6588_s30, 3 }
  0x1b   : > { %s6576_s21 = scalar_lea.vmem %s9446_s20, %s9381_s17 }
  0x1c   : > { %v6579_v7 = vld [vmem:[%s6576_s21] sm:$0xff]  ;;  %v6646_v50 = vld [vmem:[%s6576_s21 + $0x8] sm:$0xff] }
  0x1d   : > { %v718_v8 = vrot.slane %v6579_v7, %v6568_v6  ;;  %v711_v10 = vcombine.high %v6579_v7, %v6579_v7  ;;  %s6598_s20 = scalar_lea.vmem %s9448_s1, %s9382_s22  ;;  %v767_v57 = vrot.slane %v6646_v50, %v6568_v6  ;;  %s9635_s1 = sshll.u32 %s6588_s30, 3 }
  0x1e   : > { %v6603_v18 = vld [vmem:[%s6598_s20] sm:$0xff]  ;;  %v6606_v19 = vld [vmem:[%s6598_s20 + $0x10] sm:$0xff]  ;;  %v6609_v20 = vld [vmem:[%s6598_s20 + $0x8] sm:$0xff]  ;;  %s8140_s27 = scalar_lea.vmem %s9335_s2, %s9635_s1 }
  0x1f   : > { %v734_v11 = vrot.slane %v718_v8, %v6568_v6  ;;  %v726_v12 = vcombine.high %v718_v8, %v718_v8  ;;  %v725_v13 = vrot.slane %v711_v10, %v6568_v6  ;;  %v6615_v24 = vld [vmem:[%s6598_s20 + $0x18] sm:$0xff]  ;;  %v6618_v25 = vld [vmem:[%s6598_s20 + $0x20] sm:$0xff]  ;;  %v6622_v27 = vld [vmem:[%s6598_s20 + $0x28] sm:$0xff]  ;;  %v783_v5 = vrot.slane %v767_v57, %v6568_v6 }
  0x20   : > { %v6630_v36 = vld [vmem:[%s6598_s20 + $0x38] sm:$0xff]  ;;  %v6636_v42 = vld [vmem:[%s6598_s20 + $0x30] sm:$0xff]  ;;  %v6653_v56 = vld [vmem:[%s6598_s20 + $0x40] sm:$0xff] }
  0x21   : > { %v812_v14 = vrot.slane %v734_v11, %v6584_v9  ;;  %v748_v15 = vrot.slane %v726_v12, %v6568_v6  ;;  %v756_v16 = vcombine.high %v734_v11, %v734_v11  ;;  %v727_v17 = vcombine.high %v725_v13, %v725_v13  ;;  %v6643_v49 = vld [vmem:[%s6598_s20 + $0x50] sm:$0xff]  ;;  %v6660_v62 = vld [vmem:[%s6598_s20 + $0x68] sm:$0xff] }
  0x22   : > { %v741_v30 = vrot.slane %v725_v13, %v6568_v6  ;;  %v6665_v2 = vld [vmem:[%s6598_s20 + $0x48] sm:$0xff]  ;;  %v6672_v13 = vld [vmem:[%s6598_s20 + $0x78] sm:$0xff] }
  0x23   : > { %v889_v21 = vsub.f32 %v812_v14, %v6603_v18  ;;  %v816_v22 = vrot.slane %v748_v15, %v6584_v9  ;;  %v890_v23 = vsub.f32 %v812_v14, %v6609_v20  ;;  %v820_v26 = vrot.slane %v756_v16, %v6584_v9 }
  0x24   : > { %v758_v28 = vcombine.high %v748_v15, %v748_v15  ;;  %v755_v29 = vrot.slane %v727_v17, %v6568_v6  ;;  %v757_v44 = vcombine.high %v741_v30, %v741_v30  ;;  %v828_v54 = vrot.slane %v741_v30, %v6584_v9  ;;  %v6677_v17 = vld [vmem:[%s6598_s20 + $0x58] sm:$0xff] }
  0x25   : > { %v921_v31 = vmul.f32 %v889_v21, %v889_v21  ;;  %v891_v32 = vsub.f32 %v816_v22, %v6606_v19  ;;  %v922_v33 = vmul.f32 %v890_v23, %v890_v23  ;;  %v892_v34 = vsub.f32 %v816_v22, %v6615_v24 }
  0x26   : > { %v893_v35 = vsub.f32 %v820_v26, %v6618_v25  ;;  %v824_v37 = vrot.slane %v758_v28, %v6584_v9  ;;  %v894_v41 = vsub.f32 %v820_v26, %v6622_v27  ;;  %v832_v43 = vrot.slane %v755_v29, %v6584_v9 }
  0x27   : > { %v954_v38 = vsel %vm953_vm0, %v921_v31, 0.0  ;;  %v923_v39 = vmul.f32 %v891_v32, %v891_v32  ;;  %v924_v40 = vmul.f32 %v892_v34, %v892_v34  ;;  %v957_v46 = vsel %vm953_vm0, %v922_v33, 0.0 }
  0x28   : > { %955 = vadd.xlane.f32.xlu0 %v954_v38  ;;  %v925_v47 = vmul.f32 %v893_v35, %v893_v35  ;;  %v896_v48 = vsub.f32 %v824_v37, %v6630_v36  ;;  %v926_v52 = vmul.f32 %v894_v41, %v894_v41  ;;  %v895_v53 = vsub.f32 %v824_v37, %v6636_v42  ;;  %v6689_v35 = vld [vmem:[%s6598_s20 + $0x60] sm:$0xff] }
  0x29   : > { %v960_v45 = vsel %vm953_vm0, %v923_v39, 0.0  ;;  %v963_v51 = vsel %vm953_vm0, %v924_v40, 0.0  ;;  %v899_v55 = vsub.f32 %v832_v43, %v6643_v49  ;;  %v836_v60 = vrot.slane %v757_v44, %v6584_v9  ;;  %v6697_v44 = vld [vmem:[%s6598_s20 + $0xa0] sm:$0xff] }
  0x2a   : > { %961 = vadd.xlane.f32.xlu1 %v960_v45  ;;  %v966_v58 = vsel %vm953_vm0, %v925_v47, 0.0  ;;  %v928_v59 = vmul.f32 %v896_v48, %v896_v48  ;;  %v759_v61 = vcombine.high %v755_v29, %v755_v29  ;;  %v969_v63 = vsel %vm953_vm0, %v926_v52, 0.0  ;;  %v6683_v29 = vld [vmem:[%s6598_s20 + $0x88] sm:$0xff]  ;;  %v6702_v48 = vld [vmem:[%s6598_s20 + $0x70] sm:$0xff] }
  0x2b   : > { %v927_v0 = vmul.f32 %v895_v53, %v895_v53  ;;  %v897_v1 = vsub.f32 %v828_v54, %v6653_v56  ;;  %v931_v10 = vmul.f32 %v899_v55, %v899_v55  ;;  %v902_v11 = vsub.f32 %v836_v60, %v6660_v62  ;;  %v6707_v53 = vld [vmem:[%s6598_s20 + $0xa8] sm:$0xff] }
  0x2c   : > { %958 = vadd.xlane.f32.xlu0 %v957_v46  ;;  %v975_v8 = vsel %vm953_vm0, %v928_v59, 0.0  ;;  %v840_v12 = vrot.slane %v759_v61, %v6584_v9  ;;  %v898_v16 = vsub.f32 %v828_v54, %v6665_v2  ;;  %v844_v21 = vrot.slane %v783_v5, %v6584_v9 }
  0x2d   : > { %v972_v14 = vsel %vm953_vm0, %v927_v0, 0.0  ;;  %v929_v15 = vmul.f32 %v897_v1, %v897_v1  ;;  %v775_v22 = vcombine.high %v767_v57, %v767_v57  ;;  %v984_v23 = vsel %vm953_vm0, %v931_v10, 0.0  ;;  %v6722_v10 = vld [vmem:[%s6598_s20 + $0xb8] sm:$0xff] }
  0x2e   : > { %964 = vadd.xlane.f32.xlu1 %v963_v51  ;;  %v934_v26 = vmul.f32 %v902_v11, %v902_v11  ;;  %v904_v28 = vsub.f32 %v840_v12, %v6672_v13  ;;  %v805_v30 = vcombine.high %v783_v5, %v783_v5  ;;  %v930_v32 = vmul.f32 %v898_v16, %v898_v16 }
  0x2f   : > { %v978_v31 = vsel %vm953_vm0, %v929_v15, 0.0  ;;  %v900_v33 = vsub.f32 %v832_v43, %v6677_v17  ;;  %v906_v34 = vsub.f32 %v844_v21, %v6683_v29  ;;  %v760_v37 = vcombine.high %v6646_v50, %v6646_v50 }
  0x30   : > { %967 = vadd.xlane.f32.xlu0 %v966_v58  ;;  %v993_v38 = vsel %vm953_vm0, %v934_v26, 0.0  ;;  %v936_v39 = vmul.f32 %v904_v28, %v904_v28  ;;  %v852_v40 = vrot.slane %v805_v30, %v6584_v9  ;;  %v797_v41 = vrot.slane %v775_v22, %v6568_v6  ;;  %v6728_v22 = vld [vmem:[%s6598_s20 + $0x90] sm:$0xff] }
  0x31   : > { %v981_v43 = vsel %vm953_vm0, %v930_v32, 0.0  ;;  %v932_v45 = vmul.f32 %v900_v33, %v900_v33  ;;  %v901_v46 = vsub.f32 %v836_v60, %v6689_v35  ;;  %v938_v47 = vmul.f32 %v906_v34, %v906_v34  ;;  %v6743_v34 = vld [vmem:[%s6598_s20 + $0x98] sm:$0xff] }
  0x32   : > { %970 = vadd.xlane.f32.xlu1 %v969_v63  ;;  %v999_v51 = vsel %vm953_vm0, %v936_v39, 0.0  ;;  %v909_v52 = vsub.f32 %v852_v40, %v6697_v44  ;;  %v807_v54 = vcombine.high %v797_v41, %v797_v41  ;;  %v774_v55 = vrot.slane %v760_v37, %v6568_v6  ;;  %v6715_v63 = vld [vmem:[%s6598_s20 + $0x80] sm:$0xff] }
  0x33   : > { %v987_v57 = vsel %vm953_vm0, %v932_v45, 0.0  ;;  %v933_v58 = vmul.f32 %v901_v46, %v901_v46  ;;  %v903_v59 = vsub.f32 %v840_v12, %v6702_v48  ;;  %v1005_v60 = vsel %vm953_vm0, %v938_v47, 0.0  ;;  %v6755_v47 = vld [vmem:[%s6598_s20 + $0xb0] sm:$0xff] }
  0x34   : > { %976 = vadd.xlane.f32.xlu0 %v975_v8  ;;  %v910_v61 = vsub.f32 %v852_v40, %v6707_v53  ;;  %v941_v0 = vmul.f32 %v909_v52, %v909_v52  ;;  %v856_v1 = vrot.slane %v807_v54, %v6584_v9  ;;  %v6719_v5 = vrot.slane %v774_v55, %v6568_v6 }
  0x35   : > { %v776_v8 = vcombine.high %v774_v55, %v774_v55  ;;  %v990_v11 = vsel %vm953_vm0, %v933_v58, 0.0  ;;  %v935_v12 = vmul.f32 %v903_v59, %v903_v59  ;;  %v848_v15 = vrot.slane %v797_v41, %v6584_v9  ;;  %v6750_v41 = vld [vmem:[%s6598_s20 + $0xd8] sm:$0xff]  ;;  %v6762_v59 = vld [vmem:[%s6598_s20 + $0xc0] sm:$0xff] }
  0x36   : > { %973 = vadd.xlane.f32.xlu1 %v972_v14  ;;  %v905_v14 = vsub.f32 %v844_v21, %v6715_v63  ;;  %v942_v16 = vmul.f32 %v910_v61, %v910_v61  ;;  %v912_v26 = vsub.f32 %v856_v1, %v6722_v10  ;;  %v860_v28 = vrot.slane %v6719_v5, %v6584_v9 }
  0x37   : > { %v6735_v30 = vrot.slane %v776_v8, %v6568_v6  ;;  %v996_v21 = vsel %vm953_vm0, %v935_v12, 0.0  ;;  %v907_v33 = vsub.f32 %v848_v15, %v6728_v22  ;;  %v908_v46 = vsub.f32 %v848_v15, %v6743_v34  ;;  %v6768_v12 = vld [vmem:[%s6598_s20 + $0xd0] sm:$0xff] }
  0x38   : > { %985 = vadd.xlane.f32.xlu0 %v984_v23  ;;  %v1014_v23 = vsel %vm953_vm0, %v941_v0, 0.0  ;;  %v937_v32 = vmul.f32 %v905_v14, %v905_v14  ;;  %v1017_v37 = vsel %vm953_vm0, %v942_v16, 0.0  ;;  %v911_v58 = vsub.f32 %v856_v1, %v6755_v47 }
  0x39   : > { %v864_v40 = vrot.slane %v6735_v30, %v6584_v9  ;;  %v939_v45 = vmul.f32 %v907_v33, %v907_v33 }
  0x3a   : > { %979 = vadd.xlane.f32.xlu1 %v978_v31  ;;  %v6738_v31 = vld [vmem:[%s6598_s20 + $0xc8] sm:$0xff]  ;;  %v943_v8 = vmul.f32 %v911_v58, %v911_v58 }
  0x3b   : > { %v914_v39 = vsub.f32 %v860_v28, %v6738_v31  ;;  %v916_v54 = vsub.f32 %v864_v40, %v6750_v41  ;;  %v1008_v55 = vsel %vm953_vm0, %v939_v45, 0.0  ;;  %v915_v16 = vsub.f32 %v864_v40, %v6768_v12 }
  0x3c   : > { %994 = vadd.xlane.f32.xlu0 %v993_v38  ;;  %v944_v38 = vmul.f32 %v912_v26, %v912_v26  ;;  %v1020_v1 = vsel %vm953_vm0, %v943_v8, 0.0  ;;  %v806_v45 = vcombine.high %v6719_v5, %v6719_v5 }
  0x3d   : > { %v946_v52 = vmul.f32 %v914_v39, %v914_v39  ;;  %v948_v61 = vmul.f32 %v916_v54, %v916_v54  ;;  %v947_v26 = vmul.f32 %v915_v16, %v915_v16 }
  0x3e   : > { %982 = vadd.xlane.f32.xlu1 %v981_v43  ;;  %v1002_v43 = vsel %vm953_vm0, %v937_v32, 0.0  ;;  %v808_v32 = vcombine.high %v6735_v30, %v6735_v30 }
  0x3f   : > { %v1035_v14 = vsel %vm953_vm0, %v948_v61, 0.0 }
  0x40   : > { %1000 = vadd.xlane.f32.xlu0 %v999_v51  ;;  %v1023_v51 = vsel %vm953_vm0, %v944_v38, 0.0  ;;  %v6797_v33 = vrot.slane %v808_v32, %v6584_v9 }
  0x42   : > { %988 = vadd.xlane.f32.xlu1 %v987_v57  ;;  %v940_v57 = vmul.f32 %v908_v46, %v908_v46  ;;  %v868_v46 = vrot.slane %v806_v45, %v6584_v9  ;;  %v9353_v45 = vmov 1  }
  0x44   : > { %1006 = vadd.xlane.f32.xlu0 %v1005_v60  ;;  %v1029_v60 = vsel %vm953_vm0, %v946_v52, 0.0  ;;  %v1011_v0 = vsel %vm953_vm0, %v940_v57, 0.0  ;;  %v6824_v52 = vld [vmem:[%s6598_s20 + $0xe0] sm:$0xff] }
  0x45   : > { %v917_v54 = vsub.f32 %v868_v46, %v6824_v52 }
  0x46   : > { %991 = vadd.xlane.f32.xlu1 %v990_v11  ;;  %v913_v11 = vsub.f32 %v860_v28, %v6762_v59  ;;  %v9350_v28 = vmov 0  }
  0x47   : > { %v949_v58 = vmul.f32 %v917_v54, %v917_v54 }
  0x48   : > { %1015 = vadd.xlane.f32.xlu0 %v1014_v23  ;;  %v945_v15 = vmul.f32 %v913_v11, %v913_v11 }
  0x4a   : > { %997 = vadd.xlane.f32.xlu1 %v996_v21  ;;  %v1026_v23 = vsel %vm953_vm0, %v945_v15, 0.0  ;;  %v1032_v21 = vsel %vm953_vm0, %v947_v26, 0.0 }
  0x4c   : > { %1018 = vadd.xlane.f32.xlu0 %v1017_v37  ;;  %v6801_v37 = vld [vmem:[%s6598_s20 + $0xf0] sm:$0xff] }
  0x4d   : > { %9449 = vst [vmem:[#allocation5_spill] sm:$0xff] %v6801_v37  ;;  %v919_v38 = vsub.f32 %v6797_v33, %v6801_v37 }
  0x4e   : > { %1003 = vadd.xlane.f32.xlu1 %v1002_v43 }
  0x4f   : > { %v951_v39 = vmul.f32 %v919_v38, %v919_v38 }
  0x50   : > { %1024 = vadd.xlane.f32.xlu0 %v1023_v51 }
  0x51   : > { %v1044_v30 = vsel %vm953_vm0, %v951_v39, 0.0 }
  0x52   : > { %1009 = vadd.xlane.f32.xlu1 %v1008_v55  ;;  %v6829_v55 = vld [vmem:[%s6598_s20 + $0xe8] sm:$0xff] }
  0x53   : > { %v918_v5 = vsub.f32 %v868_v46, %v6829_v55 }
  0x54   : > { %1030 = vadd.xlane.f32.xlu0 %v1029_v60  ;;  %v1038_v60 = vsel %vm953_vm0, %v949_v58, 0.0 }
  0x55   : > { %v950_v61 = vmul.f32 %v918_v5, %v918_v5 }
  0x56   : > { %1012 = vadd.xlane.f32.xlu1 %v1011_v0 }
  0x57   : > { %v1041_v8 = vsel %vm953_vm0, %v950_v61, 0.0 }
  0x58   : > { %1036 = vadd.xlane.f32.xlu0 %v1035_v14 }
  0x5a   : > { %1021 = vadd.xlane.f32.xlu1 %v1020_v1 }
  0x5e   : > { %1027 = vadd.xlane.f32.xlu1 %v1026_v23 }
  0x62   : > { %1033 = vadd.xlane.f32.xlu1 %v1032_v21 }
  0x6e   : > { %1305 = vperm.xlu0 %6096, %v6579_v7  }
  0x72   : > { %1713 = vperm.xlu0 %6096, %v6603_v18  }
  0x73   : > { %1717 = vperm.xlu1 %6095, %v6609_v20  }
  0x76   : > { %1737 = vperm.xlu0 %6096, %v6636_v42  }
  0x77   : > { %1721 = vperm.xlu1 %6095, %v6606_v19  }
  0x7a   : > { %1753 = vperm.xlu0 %6096, %v6643_v49  }
  0x7b   : > { %1725 = vperm.xlu1 %6095, %v6615_v24  }
  0x7e   : > { %1757 = vperm.xlu0 %6096, %v6677_v17  }
  0x7f   : > { %1729 = vperm.xlu1 %6095, %v6618_v25  }
  0x82   : > { %1309 = vperm.xlu0 %6096, %v6646_v50  }
  0x83   : > { %1733 = vperm.xlu1 %6095, %v6622_v27  }
  0x86   : > { %1793 = vperm.xlu0 %6096, %v6697_v44  }
  0x87   : > { %1741 = vperm.xlu1 %6095, %v6630_v36  }
  0x8a   : > { %1797 = vperm.xlu0 %6096, %v6707_v53  }
  0x8b   : > { %1745 = vperm.xlu1 %6095, %v6653_v56  }
  0x8e   : > { %6098 = vset.pattern.permute.xlu0 %v9350_v28 }
  0x8f   : > { %1749 = vperm.xlu1 %6095, %v6665_v2  }
  0x93   : > { %1761 = vperm.xlu1 %6095, %v6689_v35  }
  0x97   : > { %1765 = vperm.xlu1 %6095, %v6660_v62  }
  0x9b   : > { %1769 = vperm.xlu1 %6095, %v6702_v48  }
  0x9f   : > { %1773 = vperm.xlu1 %6095, %v6672_v13  }
  0xa3   : > { %1777 = vperm.xlu1 %6095, %v6715_v63  }
  0xa7   : > { %1781 = vperm.xlu1 %6095, %v6683_v29  }
  0xa9   : > { %1045 = vadd.xlane.f32.xlu0 %v1044_v30 }
  0xab   : > { %1785 = vperm.xlu1 %6095, %v6728_v22  }
  0xaf   : > { %1789 = vperm.xlu1 %6095, %v6743_v34  }
  0xb3   : > { %6097 = vset.pattern.permute.xlu1 %v9350_v28 }
  0xb5   : > { %v6844_v14 = vpop.xlane.xlu0 %955 }
  0xb7   : > { %v6812_v40 = vpop.xlane.xlu1 %961 }
  0xb8   : > { %6117 = vrsqrt.f32 %v6812_v40  ;;  %vm1066_vm1 = vcmp.eq.f32.partialorder %v6812_v40, inf  ;;  %vm1068_vm2 = vcmp.eq.f32.partialorder %v6812_v40, 0.0 }
  0xb9   : > { %v6849_v15 = vpop.xlane.xlu0 %958 }
  0xbb   : > { %v6814_v43 = vpop.xlane.xlu1 %964 }
  0xbc   : > { %6119 = vrsqrt.f32 %v6814_v43  ;;  %vm1073_vm3 = vcmp.eq.f32.partialorder %v6814_v43, inf  ;;  %vm1075_vm4 = vcmp.eq.f32.partialorder %v6814_v43, 0.0 }
  0xbd   : > { %v6855_v23 = vpop.xlane.xlu0 %967 }
  0xbe   : > { %vm1080_vm6 = vcmp.eq.f32.partialorder %v6855_v23, inf }
  0xbf   : > { %1275 = vperm.xlu0 %6098, %v6579_v7   ;;  %v6821_v51 = vpop.xlane.xlu1 %970 }
  0xc0   : > { %6121 = vrsqrt.f32 %v6821_v51  ;;  %vm1087_vm5 = vcmp.eq.f32.partialorder %v6821_v51, inf  ;;  %vm1089_vm8 = vcmp.eq.f32.partialorder %v6821_v51, 0.0 }
  0xc1   : > { %v6861_v21 = vpop.xlane.xlu0 %976  ;;  %6123 = vrsqrt.f32 %v6849_v15 }
  0xc2   : > { %6125 = vrsqrt.f32 %v6855_v23  ;;  %vm1101_vm7 = vcmp.eq.f32.partialorder %v6861_v21, inf }
  0xc3   : > { %1327 = vperm.xlu0 %6098, %v6609_v20   ;;  %v6831_v57 = vpop.xlane.xlu1 %973 }
  0xc4   : > { %6127 = vrsqrt.f32 %v6831_v57  ;;  %vm1094_vm9 = vcmp.eq.f32.partialorder %v6831_v57, inf  ;;  %vm1096_vm10 = vcmp.eq.f32.partialorder %v6831_v57, 0.0 }
  0xc5   : > { %v6869_v38 = vpop.xlane.xlu0 %985  ;;  %6129 = vrsqrt.f32 %v6861_v21 }
  0xc6   : > { %vm1122_vm11 = vcmp.eq.f32.partialorder %v6869_v38, inf }
  0xc7   : > { %1337 = vperm.xlu0 %6098, %v6615_v24   ;;  %v6837_v0 = vpop.xlane.xlu1 %979 }
  0xc8   : > { %6131 = vrsqrt.f32 %v6837_v0  ;;  %vm1108_vm12 = vcmp.eq.f32.partialorder %v6837_v0, inf  ;;  %vm1110_vm13 = vcmp.eq.f32.partialorder %v6837_v0, 0.0 }
  0xc9   : > { %v6875_v30 = vpop.xlane.xlu0 %994  ;;  %6133 = vrsqrt.f32 %v6844_v14 }
  0xca   : > { %6135 = vrsqrt.f32 %v6869_v38  ;;  %vm1143_vm14 = vcmp.eq.f32.partialorder %v6875_v30, inf }
  0xcb   : > { %1342 = vperm.xlu0 %6098, %v6618_v25   ;;  %v6841_v11 = vpop.xlane.xlu1 %982  ;;  %6137 = vrsqrt.f32 %v6875_v30 }
  0xcc   : > { %6139 = vrsqrt.f32 %v6841_v11  ;;  %vm1115_vm15 = vcmp.eq.f32.partialorder %v6841_v11, inf }
  0xcd   : > { %v6884_v54 = vpop.xlane.xlu0 %1000 }
  0xcf   : > { %1352 = vperm.xlu0 %6098, %v6636_v42   ;;  %v6847_v1 = vpop.xlane.xlu1 %988 }
  0xd0   : > { %6141 = vrsqrt.f32 %v6847_v1 }
  0xd1   : > { %v6890_v5 = vpop.xlane.xlu0 %1006  ;;  %6143 = vrsqrt.f32 %v6884_v54 }
  0xd2   : > { %9451 = vst [vmem:[#allocation7_spill] sm:$0xff] %v6890_v5 }
  0xd3   : > { %1372 = vperm.xlu0 %6098, %v6643_v49   ;;  %1039 = vadd.xlane.f32.xlu1 %v1038_v60  ;;  %v6852_v16 = vpop.xlane.xlu1 %991 }
  0xd4   : > { %6145 = vrsqrt.f32 %v6852_v16 }
  0xd5   : > { %v6896_v60 = vpop.xlane.xlu0 %1015 }
  0xd7   : > { %1377 = vperm.xlu0 %6098, %v6677_v17   ;;  %1042 = vadd.xlane.f32.xlu1 %v1041_v8  ;;  %v6859_v26 = vpop.xlane.xlu1 %997 }
  0xd8   : > { %6147 = vrsqrt.f32 %v6859_v26 }
  0xdb   : > { %1392 = vperm.xlu0 %6098, %v6702_v48   ;;  %v6865_v32 = vpop.xlane.xlu1 %1003 }
  0xdf   : > { %1402 = vperm.xlu0 %6098, %v6715_v63   ;;  %v6873_v39 = vpop.xlane.xlu1 %1009 }
  0xe3   : > { %1412 = vperm.xlu0 %6098, %v6728_v22   ;;  %v6880_v46 = vpop.xlane.xlu1 %1012 }
  0xe7   : > { %1422 = vperm.xlu0 %6098, %v6697_v44   ;;  %v6888_v58 = vpop.xlane.xlu1 %1021 }
  0xe8   : > { %1322 = vperm.xlu1 %6097, %v6603_v18   ;;  %9450 = vst [vmem:[#allocation6_spill] sm:$0xff] %v6888_v58 }
  0xeb   : > { %1427 = vperm.xlu0 %6098, %v6707_v53  }
  0xec   : > { %1332 = vperm.xlu1 %6097, %v6606_v19  }
  0xef   : > { %1437 = vperm.xlu0 %6098, %v6722_v10  }
  0xf0   : > { %1347 = vperm.xlu1 %6097, %v6622_v27  }
  0xf3   : > { %1447 = vperm.xlu0 %6098, %v6738_v31  }
  0xf4   : > { %1357 = vperm.xlu1 %6097, %v6630_v36  }
  0xf7   : > { %6103 = vset.pattern.permute.xlu0 %v9353_v45 }
  0xf8   : > { %1533 = vperm.xlu0 %6103, %v6618_v25   ;;  %1362 = vperm.xlu1 %6097, %v6653_v56   ;;  %v6894_v25 = vpop.xlane.xlu1 %1027 }
  0xf9   : > { %9452 = vst [vmem:[#allocation8_spill] sm:$0xff] %v6894_v25 }
  0xfc   : > { %1537 = vperm.xlu0 %6103, %v6622_v27   ;;  %1367 = vperm.xlu1 %6097, %v6665_v2   ;;  %v6902_v27 = vpop.xlane.xlu1 %1033 }
  0xfd   : > { %9453 = vst [vmem:[#allocation9_spill] sm:$0xff] %v6902_v27 }
 0x100   : > { %1541 = vperm.xlu0 %6103, %v6636_v42   ;;  %1382 = vperm.xlu1 %6097, %v6689_v35   ;;  %v6904_v42 = vpop.xlane.xlu0 %1018 }
 0x101   : > { %9454 = vst [vmem:[#allocation10_spill] sm:$0xff] %v6904_v42 }
 0x104   : > { %1549 = vperm.xlu0 %6103, %v6653_v56   ;;  %1387 = vperm.xlu1 %6097, %v6660_v62   ;;  %v6908_v56 = vpop.permute.xlu1 %1717  ;;  %v6910_v61 = vpop.xlane.xlu0 %1024 }
 0x105   : > { %9455 = vst [vmem:[#allocation11_spill] sm:$0xff] %v6910_v61 }
 0x108   : > { %1561 = vperm.xlu0 %6103, %v6677_v17   ;;  %1279 = vperm.xlu1 %6097, %v6646_v50   ;;  %v6918_v17 = vpop.xlane.xlu0 %1030 }
 0x109   : > { %9457 = vst [vmem:[#allocation13_spill] sm:$0xff] %v6918_v17  ;;  %v6940_v17 = vld [vmem:[%s6598_s20 + $0xf8] sm:$0xff] }
 0x10a   : > { %9463 = vst [vmem:[#allocation19_spill] sm:$0xff] %v6940_v17 }
 0x10c   : > { %1569 = vperm.xlu0 %6103, %v6660_v62   ;;  %1397 = vperm.xlu1 %6097, %v6672_v13   ;;  %v6916_v62 = vpop.permute.xlu1 %1721  ;;  %v6924_v8 = vpop.xlane.xlu0 %1036 }
 0x10d   : > { %9456 = vst [vmem:[#allocation12_spill] sm:$0xff] %v6916_v62  ;;  %9459 = vst [vmem:[#allocation15_spill] sm:$0xff] %v6924_v8 }
 0x110   : > { %1581 = vperm.xlu0 %6103, %v6715_v63   ;;  %1407 = vperm.xlu1 %6097, %v6683_v29   ;;  %v6922_v63 = vpop.permute.xlu1 %1725  ;;  %v6931_v28 = vpop.permute.xlu0 %1305 }
 0x111   : > { %9458 = vst [vmem:[#allocation14_spill] sm:$0xff] %v6922_v63 }
 0x114   : > { %1417 = vperm.xlu1 %6097, %v6743_v34   ;;  %1597 = vperm.xlu0 %6103, %v6697_v44   ;;  %v6928_v44 = vpop.permute.xlu1 %1729 }
 0x115   : > { %9460 = vst [vmem:[#allocation16_spill] sm:$0xff] %v6928_v44 }
 0x118   : > { %1432 = vperm.xlu1 %6097, %v6755_v47   ;;  %1621 = vperm.xlu0 %6103, %v6768_v12   ;;  %v6934_v27 = vpop.permute.xlu1 %1733 }
 0x119   : > { %9461 = vst [vmem:[#allocation17_spill] sm:$0xff] %v6934_v27 }
 0x11c   : > { %6099 = vset.pattern.permute.xlu1 %v9353_v45  ;;  %1629 = vperm.xlu0 %6103, %v6824_v52   ;;  %v6936_v45 = vpop.permute.xlu0 %1713  ;;  %v6942_v8 = vpop.permute.xlu1 %1741 }
 0x11d   : > { %9462 = vst [vmem:[#allocation18_spill] sm:$0xff] %v6936_v45  ;;  %9464 = vst [vmem:[#allocation20_spill] sm:$0xff] %v6942_v8 }
 0x120   : > { %1637 = vperm.xlu0 %6103, %v6801_v37   ;;  %v6947_v25 = vpop.permute.xlu0 %1737  ;;  %v6949_v6 = vpop.permute.xlu1 %1745 }
 0x121   : > { %9465 = vst [vmem:[#allocation21_spill] sm:$0xff] %v6949_v6 }
 0x124   : > { %6112 = vset.pattern.permute.xlu0 %v9357_v3  ;;  %v920_v3 = vsub.f32 %v6797_v33, %v6940_v17  ;;  %v6951_v44 = vpop.permute.xlu0 %1753  ;;  %v6954_v63 = vpop.permute.xlu1 %1749 }
 0x125   : > { %1809 = vperm.xlu0 %6112, %v6762_v59   ;;  %9466 = vst [vmem:[#allocation22_spill] sm:$0xff] %v6951_v44  ;;  %9467 = vst [vmem:[#allocation23_spill] sm:$0xff] %v6954_v63 }
 0x126   : > { %v952_v58 = vmul.f32 %v920_v3, %v920_v3 }
 0x128   : > { %v1047_v27 = vsel %vm953_vm0, %v952_v58, 0.0  ;;  %v6956_v62 = vpop.permute.xlu0 %1757  ;;  %v6958_v8 = vpop.permute.xlu1 %1761  ;;  %vm1059_vm0 = vcmp.eq.f32.partialorder %v6849_v15, inf }
 0x129   : > { %1817 = vperm.xlu0 %6112, %v6768_v12   ;;  %9468 = vst [vmem:[#allocation24_spill] sm:$0xff] %v6958_v8 }
 0x12c   : > { %v6960_v45 = vpop.permute.xlu0 %1309  ;;  %v6962_v33 = vpop.permute.xlu1 %1765 }
 0x12d   : > { %1825 = vperm.xlu0 %6112, %v6824_v52   ;;  %9469 = vst [vmem:[#allocation25_spill] sm:$0xff] %v6960_v45  ;;  %9470 = vst [vmem:[#allocation26_spill] sm:$0xff] %v6962_v33 }
 0x130   : > { %v6964_v17 = vpop.permute.xlu0 %1793  ;;  %v6967_v3 = vpop.permute.xlu1 %1769 }
 0x131   : > { %1833 = vperm.xlu0 %6112, %v6801_v37   ;;  %9471 = vst [vmem:[#allocation27_spill] sm:$0xff] %v6964_v17  ;;  %9472 = vst [vmem:[#allocation28_spill] sm:$0xff] %v6967_v3  ;;  %v7082_v3 = vld [vmem:[%s9336_s3] sm:$0x7] }
 0x134   : > { %v6969_v44 = vpop.permute.xlu0 %1797  ;;  %v6972_v58 = vpop.permute.xlu1 %1773 }
 0x135   : > { %9473 = vst [vmem:[#allocation29_spill] sm:$0xff] %v6969_v44  ;;  %9474 = vst [vmem:[#allocation30_spill] sm:$0xff] %v6972_v58 }
 0x138   : > { %v6978_v45 = vpop.permute.xlu1 %1777 }
 0x139   : > { %9476 = vst [vmem:[#allocation32_spill] sm:$0xff] %v6978_v45  ;;  %v9501_v45 = vmov 1  }
 0x13c   : > { %1048 = vadd.xlane.f32.xlu1 %v1047_v27  ;;  %v6975_v27 = vpop.xlane.xlu0 %1045 }
 0x13d   : > { %9475 = vst [vmem:[#allocation31_spill] sm:$0xff] %v6975_v27 }
 0x140   : > { %v6980_v8 = vpop.permute.xlu0 %1275 }
 0x14d   : > { %1289 = vperm.xlu1 %6099, %v6579_v7   ;;  %v2260_v7 = vld [vmem:[%s9340_s7] sm:$0xff] }
 0x151   : > { %1517 = vperm.xlu1 %6099, %v6603_v18   ;;  %v2261_v18 = vld [vmem:[%s9340_s7 + $0x8] sm:$0xff] }
 0x152   : > { %v5955_v44 = vpack.c.bf16 %v2261_v18, %v2260_v7 }
 0x154   : > { %5956 = vmatprep.subr.bf16.mxu0 %v5955_v44  ;;  %5983 = vmatprep.subr.bf16.mxu1 %v5955_v44 }
 0x155   : > { %1521 = vperm.xlu1 %6099, %v6609_v20   ;;  %v6989_v20 = vpop.permute.xlu1 %1781  ;;  %5958 = vmatpush3.bf16.msra.mxu0 %v5955_v44 }
 0x156   : > { %9477 = vst [vmem:[#allocation33_spill] sm:$0xff] %v6989_v20  ;;  %5984 = vmatpush3.bf16.msra.mxu1 %v5955_v44  ;;  %v9499_v20 = vmov 0  }
 0x159   : > { %1525 = vperm.xlu1 %6099, %v6606_v19   ;;  %v6992_v19 = vpop.permute.xlu0 %1327 }
 0x15a   : > { %9478 = vst [vmem:[#allocation34_spill] sm:$0xff] %v6992_v19  ;;  %v1097_v19 = vand.u32 2147483648, %v6831_v57 }
 0x15d   : > { %1529 = vperm.xlu1 %6099, %v6615_v24   ;;  %v6995_v24 = vpop.permute.xlu1 %1785  ;;  %v6997_v27 = vpop.permute.xlu0 %1337 }
 0x15e   : > { %9479 = vst [vmem:[#allocation35_spill] sm:$0xff] %v6995_v24  ;;  %9480 = vst [vmem:[#allocation36_spill] sm:$0xff] %v6997_v27 }
 0x161   : > { %1545 = vperm.xlu1 %6099, %v6630_v36   ;;  %v7000_v58 = vpop.permute.xlu1 %1789  ;;  %v7003_v7 = vpop.permute.xlu0 %1342 }
 0x162   : > { %9481 = vst [vmem:[#allocation37_spill] sm:$0xff] %v7000_v58  ;;  %v9495_v58 = vmov 2  }
 0x165   : > { %1553 = vperm.xlu1 %6099, %v6665_v2   ;;  %v7005_v36 = vpop.xlane.xlu1 %1039  ;;  %v7008_v18 = vpop.permute.xlu0 %1352 }
 0x166   : > { %9482 = vst [vmem:[#allocation38_spill] sm:$0xff] %v7005_v36  ;;  %9483 = vst [vmem:[#allocation39_spill] sm:$0xff] %v7008_v18 }
 0x169   : > { %1557 = vperm.xlu1 %6099, %v6643_v49   ;;  %v7011_v2 = vpop.xlane.xlu1 %1042  ;;  %v7014_v44 = vpop.permute.xlu0 %1372 }
 0x16a   : > { %9484 = vst [vmem:[#allocation40_spill] sm:$0xff] %v7011_v2  ;;  %9485 = vst [vmem:[#allocation41_spill] sm:$0xff] %v7014_v44 }
 0x16d   : > { %1565 = vperm.xlu1 %6099, %v6689_v35   ;;  %v7016_v49 = vpop.permute.xlu1 %1322  ;;  %v7019_v35 = vpop.permute.xlu0 %1377 }
 0x16e   : > { %9486 = vst [vmem:[#allocation42_spill] sm:$0xff] %v7016_v49  ;;  %9487 = vst [vmem:[#allocation43_spill] sm:$0xff] %v7019_v35  ;;  %v7139_v49 = vld [vmem:[%s9338_s5] ss:$0 sm:$0xff] }
 0x171   : > { %1293 = vperm.xlu1 %6099, %v6646_v50   ;;  %v7022_v36 = vpop.permute.xlu1 %1332  ;;  %v7025_v50 = vpop.permute.xlu0 %1392 }
 0x172   : > { %9488 = vst [vmem:[#allocation44_spill] sm:$0xff] %v7022_v36  ;;  %9489 = vst [vmem:[#allocation45_spill] sm:$0xff] %v7025_v50 }
 0x175   : > { %1573 = vperm.xlu1 %6099, %v6702_v48   ;;  %v7027_v48 = vpop.permute.xlu1 %1347 }
 0x176   : > { %9490 = vst [vmem:[#allocation46_spill] sm:$0xff] %v7027_v48 }
 0x179   : > { %1577 = vperm.xlu1 %6099, %v6672_v13   ;;  %v7030_v13 = vpop.permute.xlu0 %1402  ;;  %v7033_v2 = vpop.permute.xlu1 %1357 }
 0x17a   : > { %9491 = vst [vmem:[#allocation47_spill] sm:$0xff] %v7030_v13  ;;  %9492 = vst [vmem:[#allocation48_spill] sm:$0xff] %v7033_v2 }
 0x17d   : > { %1585 = vperm.xlu1 %6099, %v6683_v29   ;;  %v7036_v29 = vpop.permute.xlu0 %1412 }
 0x17e   : > { %9493 = vst [vmem:[#allocation49_spill] sm:$0xff] %v7036_v29 }
 0x181   : > { %1589 = vperm.xlu1 %6099, %v6728_v22   ;;  %v7038_v22 = vpop.permute.xlu1 %1362 }
 0x182   : > { %9494 = vst [vmem:[#allocation50_spill] sm:$0xff] %v7038_v22 }
 0x185   : > { %1593 = vperm.xlu1 %6099, %v6743_v34   ;;  %v7042_v34 = vpop.permute.xlu0 %1422 }
 0x186   : > { %9496 = vst [vmem:[#allocation51_spill] sm:$0xff] %v7042_v34  ;;  %v7069_v34 = vld [vmem:[%s9337_s4] sm:$0x7] }
 0x189   : > { %1601 = vperm.xlu1 %6099, %v6707_v53   ;;  %v7045_v53 = vpop.permute.xlu1 %1367  ;;  %v7047_v24 = vpop.permute.xlu0 %1427 }
 0x18a   : > { %9497 = vst [vmem:[#allocation52_spill] sm:$0xff] %v7045_v53  ;;  %9498 = vst [vmem:[#allocation53_spill] sm:$0xff] %v7047_v24  ;;  %v1090_v53 = vand.u32 2147483648, %v6821_v51 }
 0x18d   : > { %1605 = vperm.xlu1 %6099, %v6755_v47   ;;  %v7052_v29 = vpop.permute.xlu1 %1382 }
 0x18e   : > { %9500 = vst [vmem:[#allocation54_spill] sm:$0xff] %v7052_v29  ;;  %v1069_v29 = vand.u32 2147483648, %v6812_v40 }
 0x191   : > { %1609 = vperm.xlu1 %6099, %v6722_v10   ;;  %v7063_v24 = vpop.permute.xlu1 %1387 }
 0x192   : > { %9503 = vst [vmem:[#allocation56_spill] sm:$0xff] %v7063_v24  ;;  %v7123_v24 = vrot.slane %v7082_v3, %v6584_v9 }
 0x194   : > { %9507 = vst [vmem:[#allocation60_spill] sm:$0xff] %v7123_v24 }
 0x195   : > { %6100 = vset.pattern.permute.xlu1 %v9495_v58  ;;  %v7094_v63 = vpop.permute.xlu1 %1279 }
 0x196   : > { %1801 = vperm.xlu1 %6100, %v6755_v47   ;;  %v7057_v47 = vpop.permute.xlu0 %1437  ;;  %9506 = vst [vmem:[#allocation59_spill] sm:$0xff] %v7094_v63 }
 0x197   : > { %9502 = vst [vmem:[#allocation55_spill] sm:$0xff] %v7057_v47  ;;  %v6118_v47 = vpop.eup %6117  ;;  %6149 = vrsqrt.f32 %v6890_v5 }
 0x198   : > { %v1065_v50 = vmul.f32 %v6118_v47, %v6812_v40 }
 0x199   : > { %v7134_v44 = vpop.permute.xlu1 %1397 }
 0x19a   : > { %1805 = vperm.xlu1 %6100, %v6722_v10   ;;  %v1314_v10 = vsub.s32 2, %v6563_v4  ;;  %v1067_v37 = vsel %vm1066_vm1, %v6812_v40, %v1065_v50  ;;  %v7127_v50 = vrot.slane %v7069_v34, %v6584_v9  ;;  %9508 = vst [vmem:[#allocation61_spill] sm:$0xff] %v7134_v44  ;;  %vm1117_vm1 = vcmp.eq.f32.partialorder %v6841_v11, 0.0 }
 0x19b   : > { %v1070_v22 = vsel %vm1068_vm2, %v1069_v29, %v1067_v37  ;;  %vm1129_vm2 = vcmp.eq.f32.partialorder %v6847_v1, inf }
 0x19c   : > { %v7077_v17 = vrot.slane %v7069_v34, %v1314_v10  ;;  %v7088_v13 = vrot.slane %v7082_v3, %v1314_v10  ;;  %v1076_v10 = vand.u32 2147483648, %v6814_v43 }
 0x19e   : > { %6101 = vset.pattern.permute.xlu1 %v9499_v20  ;;  %9505 = vst [vmem:[#allocation58_spill] sm:$0xff] %v7088_v13 }
 0x19f   : > { %1442 = vperm.xlu1 %6101, %v6762_v59  }
 0x1a3   : > { %6102 = vset.pattern.permute.xlu1 %v9501_v45 }
 0x1a4   : > { %1613 = vperm.xlu1 %6102, %v6762_v59   ;;  %v7073_v59 = vpop.permute.xlu0 %1447 }
 0x1a5   : > { %9504 = vst [vmem:[#allocation57_spill] sm:$0xff] %v7073_v59  ;;  %v6120_v59 = vpop.eup %6119  ;;  %6151 = vrsqrt.f32 %v6896_v60 }
 0x1a6   : > { %v6122_v47 = vpop.eup %6121  ;;  %v1072_v63 = vmul.f32 %v6120_v59, %v6814_v43  ;;  %6153 = vrsqrt.f32 %v6865_v32 }
 0x1a7   : > { %v1086_v27 = vmul.f32 %v6122_v47, %v6821_v51 }
 0x1a8   : > { %1617 = vperm.xlu1 %6102, %v6738_v31   ;;  %v7109_v2 = vpop.permute.xlu0 %1533 }
 0x1a9   : > { %v1088_v40 = vsel %vm1087_vm5, %v6821_v51, %v1086_v27  ;;  %vm1171_vm5 = vcmp.eq.f32.partialorder %v6890_v5, inf }
 0x1ac   : > { %6104 = vset.pattern.permute.xlu1 %v9495_v58 }
 0x1ad   : > { %1813 = vperm.xlu1 %6104, %v6738_v31   ;;  %v6124_v31 = vpop.eup %6123  ;;  %6155 = vrsqrt.f32 %v6904_v42 }
 0x1ae   : > { %v6126_v36 = vpop.eup %6125  ;;  %v7131_v47 = vmul.f32 %v6124_v31, %v6849_v15  ;;  %v1074_v31 = vsel %vm1073_vm3, %v6814_v43, %v1072_v63  ;;  %v7161_v63 = vpop.permute.xlu0 %1537  ;;  %vm1157_vm3 = vcmp.eq.f32.partialorder %v6884_v54, inf  ;;  %6157 = vrsqrt.f32 %v6910_v61 }
 0x1af   : > { %v6128_v59 = vpop.eup %6127  ;;  %v1079_v37 = vmul.f32 %v6126_v36, %v6855_v23  ;;  %9509 = vst [vmem:[#allocation62_spill] sm:$0xff] %v7161_v63  ;;  %v1077_v27 = vsel %vm1075_vm4, %v1076_v10, %v1074_v31  ;;  %v7184_v10 = vpop.permute.xlu1 %1407  ;;  %vm1082_vm4 = vcmp.eq.f32.partialorder %v6855_v23, 0.0  ;;  %6159 = vrsqrt.f32 %v6873_v39 }
 0x1b0   : > { %v6130_v9 = vpop.eup %6129  ;;  %v1093_v33 = vmul.f32 %v6128_v59, %v6831_v57  ;;  %v7165_v59 = vmul.f32 %v7139_v49, %v1070_v22  ;;  %v1091_v22 = vsel %vm1089_vm8, %v1090_v53, %v1088_v40  ;;  %9511 = vst [vmem:[#allocation64_spill] sm:$0xff] %v7184_v10  ;;  %v7194_v40 = vmul.f32 %v7139_v49, %v1077_v27 }
 0x1b1   : > { %6105 = vset.pattern.permute.xlu1 %v9499_v20  ;;  %v6132_v44 = vpop.eup %6131  ;;  %v1100_v48 = vmul.f32 %v6130_v9, %v6861_v21  ;;  %v1118_v9 = vand.u32 2147483648, %v6841_v11  ;;  %v7182_v43 = vsel %vm1080_vm6, %v6855_v23, %v1079_v37  ;;  %v1132_v37 = vand.u32 2147483648, %v6847_v1 }
 0x1b2   : > { %1452 = vperm.xlu1 %6105, %v6768_v12   ;;  %v7156_v29 = vpop.eup %6133  ;;  %v1111_v12 = vand.u32 2147483648, %v6837_v0  ;;  %9510 = vst [vmem:[#allocation63_spill] sm:$0xff] %v7165_v59  ;;  %v1107_v35 = vmul.f32 %v6132_v44, %v6837_v0  ;;  %v1095_v44 = vsel %vm1094_vm9, %v6831_v57, %v1093_v33  ;;  %9512 = vst [vmem:[#allocation65_spill] sm:$0xff] %v7194_v40  ;;  %v7211_v63 = vpop.permute.xlu0 %1541  ;;  %vm1131_vm6 = vcmp.eq.f32.partialorder %v6847_v1, 0.0 }
 0x1b3   : > { %v6136_v36 = vpop.eup %6135  ;;  %v7202_v33 = vsel %vm1101_vm7, %v6861_v21, %v1100_v48  ;;  %v1098_v10 = vsel %vm1096_vm10, %v1097_v19, %v1095_v44  ;;  %vm1136_vm7 = vcmp.eq.f32.partialorder %v6852_v16, inf  ;;  %v1139_v57 = vand.u32 2147483648, %v6852_v16  ;;  %v7233_v44 = vpop.permute.xlu1 %1417 }
 0x1b4   : > { %v6138_v6 = vpop.eup %6137  ;;  %v1121_v51 = vmul.f32 %v6136_v36, %v6869_v38  ;;  %v7207_v36 = vmul.f32 %v7139_v49, %v1091_v22  ;;  %v1109_v48 = vsel %vm1108_vm12, %v6837_v0, %v1107_v35  ;;  %vm1192_vm8 = vcmp.eq.f32.partialorder %v6896_v60, inf  ;;  %9514 = vst [vmem:[#allocation67_spill] sm:$0xff] %v7233_v44 }
 0x1b5   : > { %v6140_v59 = vpop.eup %6139  ;;  %v1142_v53 = vmul.f32 %v6138_v6, %v6875_v30  ;;  %vm1138_vm9 = vcmp.eq.f32.partialorder %v6852_v16, 0.0  ;;  %vm1150_vm10 = vcmp.eq.f32.partialorder %v6859_v26, inf  ;;  %v1051_v22 = vmul.f32 %v7156_v29, %v6844_v14 }
 0x1b6   : > { %1457 = vperm.xlu1 %6105, %v6750_v41   ;;  %v6142_v31 = vpop.eup %6141  ;;  %v1114_v27 = vmul.f32 %v6140_v59, %v6841_v11  ;;  %v7228_v19 = vsel %vm1122_vm11, %v6869_v38, %v1121_v51  ;;  %v1112_v51 = vsel %vm1110_vm13, %v1111_v12, %v1109_v48  ;;  %v1153_v12 = vand.u32 2147483648, %v6859_v26  ;;  %v7263_v48 = vpop.permute.xlu0 %1549 }
 0x1b7   : > { %v6144_v40 = vpop.eup %6143  ;;  %v1128_v18 = vmul.f32 %v6142_v31, %v6847_v1  ;;  %9513 = vst [vmem:[#allocation66_spill] sm:$0xff] %v7228_v19  ;;  %v7238_v31 = vmul.f32 %v7139_v49, %v1098_v10  ;;  %v7246_v35 = vsel %vm1143_vm14, %v6875_v30, %v1142_v53  ;;  %vm1103_vm11 = vcmp.eq.f32.partialorder %v6861_v21, 0.0 }
 0x1b8   : > { %v6146_v6 = vpop.eup %6145  ;;  %v1116_v10 = vsel %vm1115_vm15, %v6841_v11, %v1114_v27  ;;  %vm1052_vm12 = vcmp.eq.f32.partialorder %v6844_v14, inf  ;;  %v1156_v29 = vmul.f32 %v6144_v40, %v6884_v54  ;;  %v7266_v27 = vmul.f32 %v7139_v49, %v1112_v51 }
 0x1b9   : > { %v6148_v59 = vpop.eup %6147  ;;  %9515 = vst [vmem:[#allocation68_spill] sm:$0xff] %v7238_v31  ;;  %v1135_v0 = vmul.f32 %v6146_v6, %v6852_v16  ;;  %vm1152_vm13 = vcmp.eq.f32.partialorder %v6859_v26, 0.0  ;;  %v1055_v31 = vand.u32 2147483648, %v6844_v14  ;;  %v1053_v40 = vsel %vm1052_vm12, %v6844_v14, %v1051_v22 }
 0x1ba   : > { %6106 = vset.pattern.permute.xlu1 %v9501_v45  ;;  %v6150_v19 = vpop.eup %6149  ;;  %v1149_v53 = vmul.f32 %v6148_v59, %v6859_v26  ;;  %9516 = vst [vmem:[#allocation69_spill] sm:$0xff] %v7266_v27  ;;  %vm1054_vm14 = vcmp.eq.f32.partialorder %v6844_v14, 0.0  ;;  %v7281_v27 = vpop.permute.xlu1 %1432  ;;  %v1060_v11 = vsel %vm1059_vm0, %v6849_v15, %v7131_v47  ;;  %vm1061_vm15 = vcmp.eq.f32.partialorder %v6849_v15, 0.0 }
 0x1bb   : > { %1625 = vperm.xlu1 %6106, %v6750_v41   ;;  %v6152_v44 = vpop.eup %6151  ;;  %v1170_v6 = vmul.f32 %v6150_v19, %v6890_v5  ;;  %v1298_v19 = vsub.s32 1, %v6563_v4  ;;  %9517 = vst [vmem:[#allocation70_spill] sm:$0xff] %v7281_v27  ;;  %v1137_v14 = vsel %vm1136_vm7, %v6852_v16, %v1135_v0  ;;  %v7296_v4 = vsel %vm1157_vm3, %v6884_v54, %v1156_v29 }
 0x1bc   : > { %v1191_v59 = vmul.f32 %v6152_v44, %v6896_v60  ;;  %9518 = vst [vmem:[#allocation71_spill] sm:$0xff] %v7296_v4  ;;  %v1151_v47 = vsel %vm1150_vm10, %v6859_v26, %v1149_v53  ;;  %v1056_v22 = vsel %vm1054_vm14, %v1055_v31, %v1053_v40  ;;  %v9521_v0 = vand.u32 2147483648, %v6849_v15  ;;  %v9526_v40 = vld [vmem:[#allocation18_spill] sm:$0xff] }
 0x1bd   : > { %v9522_v53 = vand.u32 2147483648, %v6855_v23  ;;  %6161 = vrsqrt.f32 %v6880_v46  ;;  %v7332_v15 = vrot.slane %v7069_v34, %v1298_v19  ;;  %v7339_v23 = vsel %vm1152_vm13, %v1153_v12, %v1151_v47  ;;  %v9541_v4 = vld [vmem:[#allocation42_spill] sm:$0xff] }
 0x1be   : > { %v7329_v31 = vsel %vm1192_vm8, %v6896_v60, %v1191_v59  ;;  %v7350_v34 = vmul.f32 %v7139_v49, %v1056_v22  ;;  %v7354_v59 = vmul.f32 %v7077_v17, %v6908_v56  ;;  %v7358_v26 = vmul.f32 %v7077_v17, %v9526_v40  ;;  %v9533_v40 = vld [vmem:[#allocation62_spill] sm:$0xff] }
 0x1bf   : > { %6107 = vset.pattern.permute.xlu1 %v9495_v58  ;;  %v1084_v29 = vsel %vm1082_vm4, %v9522_v53, %v7182_v43  ;;  %9523 = vst [vmem:[#allocation74_spill] sm:$0xff] %v7329_v31  ;;  %v1316_v43 = vmul.f32 %v7088_v13, %v6931_v28  ;;  %v9527_v28 = vld [vmem:[#allocation12_spill] sm:$0xff]  ;;  %v1286_v56 = vmul.f32 %v7123_v24, %v6980_v8  ;;  %v9532_v53 = vld [vmem:[#allocation39_spill] sm:$0xff]  ;;  %v9540_v31 = vld [vmem:[#allocation50_spill] sm:$0xff]  ;;  %vm1145_vm0 = vcmp.eq.f32.partialorder %v6875_v30, 0.0 }
 0x1c0   : > { %1821 = vperm.xlu1 %6107, %v6750_v41   ;;  %v1130_v41 = vsel %vm1129_vm2, %v6847_v1, %v1128_v18  ;;  %v1119_v18 = vsel %vm1117_vm1, %v1118_v9, %v1116_v10  ;;  %v6154_v9 = vpop.eup %6153  ;;  %v1562_v10 = vpop.permute.xlu0 %1561  ;;  %v1652_v8 = vmul.f32 %v7332_v15, %v7109_v2  ;;  %vm1164_vm1 = vcmp.eq.f32.partialorder %v6865_v32, inf }
 0x1c1   : > { %v1133_v51 = vsel %vm1131_vm6, %v1132_v37, %v1130_v41  ;;  %v7307_v37 = vsel %vm1171_vm5, %v6890_v5, %v1170_v6  ;;  %v1063_v41 = vsel %vm1061_vm15, %v9521_v0, %v1060_v11  ;;  %v7323_v6 = vsel %vm1138_vm9, %v1139_v57, %v1137_v14  ;;  %v7381_v47 = vpop.eup %6155 }
 0x1c2   : > { %9519 = vst [vmem:[#allocation72_spill] sm:$0xff] %v7307_v37  ;;  %v7311_v44 = vmul.f32 %v7139_v49, %v1133_v51  ;;  %v7342_v16 = vmul.f32 %v6154_v9, %v6865_v32  ;;  %v7347_v57 = vrot.slane %v7082_v3, %v1298_v19  ;;  %v7361_v12 = vmul.f32 %v7139_v49, %v1063_v41  ;;  %v9530_v9 = vld [vmem:[#allocation14_spill] sm:$0xff]  ;;  %v7415_v37 = vpop.eup %6157 }
 0x1c3   : > { %v7364_v51 = vmul.f32 %v7139_v49, %v1084_v29  ;;  %v7368_v3 = vmul.f32 %v7077_v17, %v9527_v28  ;;  %v1850_v19 = vmul.f32 %v7077_v17, %v6947_v25  ;;  %v9528_v11 = vand.u32 2147483648, %v6861_v21  ;;  %9529 = vst [vmem:[#allocation18_spill] sm:$0xff] %v7381_v47  ;;  %9538 = vst [vmem:[#allocation12_spill] sm:$0xff] %v7415_v37  ;;  %v9543_v37 = vld [vmem:[#allocation34_spill] sm:$0xff] }
 0x1c4   : > { %6108 = vset.pattern.permute.xlu1 %v9499_v20  ;;  %9520 = vst [vmem:[#allocation73_spill] sm:$0xff] %v7311_v44  ;;  %9525 = vst [vmem:[#allocation76_spill] sm:$0xff] %v7347_v57  ;;  %v7385_v22 = vmul.f32 %v7077_v17, %v9530_v9  ;;  %v1855_v0 = vmul.f32 %v7077_v17, %v6956_v62  ;;  %v1488_v25 = vmul.f32 %v7127_v50, %v7003_v7  ;;  %v9534_v7 = vld [vmem:[#allocation43_spill] sm:$0xff]  ;;  %vm2269_vm2 = vcmask 130048  }
 0x1c5   : > { %1462 = vperm.xlu1 %6108, %v6824_v52   ;;  %v7299_v52 = vmul.f32 %v7139_v49, %v1119_v18  ;;  %v7379_v14 = vsel %vm1103_vm11, %v9528_v11, %v7202_v33  ;;  %v9531_v33 = vld [vmem:[#allocation16_spill] sm:$0xff]  ;;  %v1490_v29 = vmul.f32 %v7127_v50, %v9532_v53  ;;  %v1653_v28 = vmul.f32 %v7332_v15, %v9533_v40  ;;  %v1570_v11 = vpop.permute.xlu0 %1569  ;;  %v9535_v53 = vld [vmem:[#allocation17_spill] sm:$0xff] }
 0x1c6   : > { %v1848_v41 = vmul.f32 %v7077_v17, %v9531_v33  ;;  %v1495_v2 = vmul.f32 %v7127_v50, %v9534_v7  ;;  %v1654_v9 = vmul.f32 %v7332_v15, %v7211_v63  ;;  %v1656_v33 = vmul.f32 %v7332_v15, %v7263_v48  ;;  %v9536_v40 = vld [vmem:[#allocation21_spill] sm:$0xff]  ;;  %v9539_v7 = vld [vmem:[#allocation26_spill] sm:$0xff] }
 0x1c7   : > { %v1659_v1 = vmul.f32 %v7332_v15, %v1562_v10  ;;  %v1852_v27 = vmul.f32 %v7077_v17, %v9536_v40  ;;  %v1857_v63 = vmul.f32 %v7077_v17, %v9539_v7  ;;  %v1684_v42 = vadd.f32 %v1652_v8, %v1488_v25  ;;  %v9542_v7 = vld [vmem:[#allocation56_spill] sm:$0xff] }
 0x1c8   : > { %v1492_v48 = vmul.f32 %v7127_v50, %v9540_v31  ;;  %v1661_v10 = vmul.f32 %v7332_v15, %v1570_v11  ;;  %v1484_v40 = vmul.f32 %v7127_v50, %v9541_v4  ;;  %v1686_v25 = vadd.f32 %v1654_v9, %v1490_v29  ;;  %v9544_v4 = vld [vmem:[#allocation36_spill] sm:$0xff] }
 0x1c9   : > { %1467 = vperm.xlu1 %6108, %v6829_v55   ;;  %v7335_v18 = vpop.xlane.xlu1 %1048  ;;  %v1497_v31 = vmul.f32 %v7127_v50, %v9542_v7  ;;  %v1691_v11 = vadd.f32 %v1659_v1, %v1495_v2  ;;  %v1880_v29 = vadd.f32 %v1848_v41, %v1684_v42  ;;  %v9547_v41 = vld [vmem:[#allocation4_spill] sm:$0xff]  ;;  %vm1124_vm3 = vcmp.eq.f32.partialorder %v6869_v38, 0.0 }
 0x1ca   : > { %9524 = vst [vmem:[#allocation75_spill] sm:$0xff] %v7335_v18  ;;  %v1849_v18 = vmul.f32 %v7077_v17, %v9535_v53  ;;  %v7422_v53 = vpop.eup %6159  ;;  %v1688_v8 = vadd.f32 %v1656_v33, %v1492_v48  ;;  %v1882_v7 = vadd.f32 %v1850_v19, %v1686_v25  ;;  %vm1166_vm4 = vcmp.eq.f32.partialorder %v6865_v32, 0.0 }
 0x1cb   : > { %v1693_v9 = vadd.f32 %v1661_v10, %v1497_v31  ;;  %v1887_v24 = vadd.f32 %v1855_v0, %v1691_v11  ;;  %vm1178_vm5 = vcmp.eq.f32.partialorder %v6873_v39, inf  ;;  %vm1180_vm6 = vcmp.eq.f32.partialorder %v6873_v39, 0.0 }
 0x1cc   : > { %vm1159_vm7 = vcmp.eq.f32.partialorder %v6884_v54, 0.0  ;;  %vm1194_vm8 = vcmp.eq.f32.partialorder %v6896_v60, 0.0  ;;  %vm1185_vm10 = vcmp.eq.f32.partialorder %v6880_v46, inf  ;;  %vm1187_vm12 = vcmp.eq.f32.partialorder %v6880_v46, 0.0 }
 0x1cd   : > { %6109 = vset.pattern.permute.xlu1 %v9501_v45  ;;  %v1290_v21 = vpop.permute.xlu1 %1289 }
 0x1ce   : > { %v1300_v62 = vmul.f32 %v7347_v57, %v1290_v21  ;;  %1633 = vperm.xlu1 %6109, %v6829_v55   ;;  %v9537_v21 = vld [vmem:[#allocation46_spill] sm:$0xff]  ;;  %v1485_v57 = vmul.f32 %v7127_v50, %v9543_v37 }
 0x1cf   : > { %v1489_v61 = vmul.f32 %v7127_v50, %v9537_v21 }
 0x1d0   : > { %v1302_v47 = vadd.f32 %v1300_v62, %v1286_v56  ;;  %v7428_v62 = vpop.eup %6161 }
 0x1d1   : > { %v1518_v5 = vpop.permute.xlu1 %1517  ;;  %v1685_v13 = vadd.f32 %v1653_v28, %v1489_v61  ;;  %v1487_v61 = vmul.f32 %v7127_v50, %v9544_v4  ;;  %v9546_v28 = vld [vmem:[#allocation44_spill] sm:$0xff]  ;;  %v1884_v4 = vadd.f32 %v1852_v27, %v1688_v8 }
 0x1d2   : > { %v1318_v21 = vadd.f32 %v1316_v43, %v1302_v47  ;;  %v1648_v56 = vmul.f32 %v7332_v15, %v1518_v5  ;;  %6110 = vset.pattern.permute.xlu1 %v9495_v58  ;;  %v9545_v5 = vld [vmem:[#allocation3_spill] sm:$0xff]  ;;  %v1486_v44 = vmul.f32 %v7127_v50, %v9546_v28 }
 0x1d3   : > { %1829 = vperm.xlu1 %6110, %v6829_v55   ;;  %v1881_v1 = vadd.f32 %v1849_v18, %v1685_v13  ;;  %v1889_v18 = vadd.f32 %v1857_v63, %v1693_v9 }
 0x1d4   : > { %v1910_v43 = vcombine.high %v1318_v21, %v1318_v21  ;;  %v1917_v47 = vrot.slane %v1318_v21, %v9545_v5  ;;  %v1680_v33 = vadd.f32 %v1648_v56, %v1484_v40  ;;  %v9548_v40 = vld [vmem:[#allocation5_spill] sm:$0xff] }
 0x1d5   : > { %v1522_v48 = vpop.permute.xlu1 %1521 }
 0x1d6   : > { %v1924_v55 = vrot.slane %v1910_v43, %v9545_v5  ;;  %v1925_v2 = vcombine.high %v1917_v47, %v1917_v47  ;;  %v1933_v37 = vrot.slane %v1917_v47, %v9545_v5  ;;  %v1649_v21 = vmul.f32 %v7332_v15, %v1522_v48  ;;  %v9549_v47 = vld [vmem:[#allocation19_spill] sm:$0xff] }
 0x1d7   : > { %6111 = vset.pattern.permute.xlu1 %v9499_v20  ;;  %v1876_v56 = vadd.f32 %v7358_v26, %v1680_v33  ;;  %v7466_v33 = vld [vmem:[%s9339_s6] ss:$0 sm:$0xff] }
 0x1d8   : > { %v1926_v28 = vcombine.high %v1924_v55, %v1924_v55  ;;  %v1955_v42 = vcombine.high %v1933_v37, %v1933_v37  ;;  %v2011_v10 = vrot.slane %v1933_v37, %v9547_v41  ;;  %1472 = vperm.xlu1 %6111, %v9548_v40   ;;  %v1947_v13 = vrot.slane %v1925_v2, %v9545_v5 }
 0x1d9   : > { %v1681_v31 = vadd.f32 %v1649_v21, %v1485_v57  ;;  %v1526_v43 = vpop.permute.xlu1 %1525  ;;  %v1940_v27 = vrot.slane %v1924_v55, %v9545_v5 }
 0x1da   : > { %v2019_v19 = vrot.slane %v1955_v42, %v9547_v41  ;;  %v2015_v20 = vrot.slane %v1947_v13, %v9547_v41  ;;  %v1650_v0 = vmul.f32 %v7332_v15, %v1526_v43  ;;  %v1957_v25 = vcombine.high %v1947_v13, %v1947_v13 }
 0x1db   : > { %v1877_v8 = vadd.f32 %v7354_v59, %v1681_v31  ;;  %v2088_v11 = vadd.f32 %v2011_v10, %v1876_v56  ;;  %v7456_v63 = vrot.slane %v1940_v27, %v9547_v41  ;;  %v7459_v57 = vrot.slane %v1926_v28, %v9545_v5 }
 0x1dc   : > { %v1682_v26 = vadd.f32 %v1650_v0, %v1486_v44  ;;  %1477 = vperm.xlu1 %6111, %v9549_v47   ;;  %v2023_v9 = vrot.slane %v1957_v25, %v9547_v41  ;;  %v2092_v48 = vadd.f32 %v2019_v19, %v1880_v29  ;;  %v1956_v55 = vcombine.high %v1940_v27, %v1940_v27 }
 0x1dd   : > { %v2089_v59 = vadd.f32 %v2011_v10, %v1877_v8  ;;  %v1530_v2 = vpop.permute.xlu1 %1529  ;;  %v2158_v37 = vadd.f32 %v7350_v34, %v2088_v11  ;;  %v7470_v21 = vadd.f32 %v7456_v63, %v1884_v4  ;;  %v7474_v44 = vrot.slane %v7459_v57, %v9547_v41 }
 0x1de   : > { %v1878_v28 = vadd.f32 %v7368_v3, %v1682_v26  ;;  %v1651_v42 = vmul.f32 %v7332_v15, %v1530_v2  ;;  %v2094_v40 = vadd.f32 %v2023_v9, %v1882_v7  ;;  %v2162_v13 = vadd.f32 %v7364_v51, %v2092_v48 }
 0x1df   : > { %v2159_v29 = vadd.f32 %v7361_v12, %v2089_v59  ;;  %v2196_v10 = vadd.f32 %v7466_v33, %v2158_v37  ;;  %v7482_v34 = vadd.f32 %v7474_v44, %v1887_v24  ;;  %v7485_v4 = vrot.slane %v1956_v55, %v9547_v41  ;;  %v9554_v55 = vld [vmem:[#allocation52_spill] sm:$0xff] }
 0x1e0   : > { %v2090_v56 = vadd.f32 %v2015_v20, %v1878_v28  ;;  %v1683_v31 = vadd.f32 %v1651_v42, %v1487_v61  ;;  %6113 = vset.pattern.permute.xlu1 %v9501_v45  ;;  %v2093_v3 = vadd.f32 %v2019_v19, %v1881_v1  ;;  %v9550_v24 = vand.u32 2147483648, %v6875_v30  ;;  %v9551_v61 = vld [vmem:[#allocation48_spill] sm:$0xff]  ;;  %v9552_v1 = vld [vmem:[#allocation63_spill] sm:$0xff]  ;;  %v9555_v28 = vld [vmem:[#allocation65_spill] sm:$0xff] }
 0x1e1   : > { %1641 = vperm.xlu1 %6113, %v9549_v47   ;;  %v1546_v7 = vpop.permute.xlu1 %1545  ;;  %v2228_v51 = vmax.f32 %v2196_v10, 0.0  ;;  %v2197_v12 = vadd.f32 %v7466_v33, %v2159_v29  ;;  %v2101_v43 = vadd.f32 %v7485_v4, %v1889_v18  ;;  %v1491_v45 = vmul.f32 %v7127_v50, %v9551_v61 }
 0x1e2   : > { %v1147_v27 = vsel %vm1145_vm0, %v9550_v24, %v7246_v35  ;;  %v2160_v19 = vadd.f32 %v9552_v1, %v2090_v56  ;;  %v1879_v0 = vadd.f32 %v7385_v22, %v1683_v31  ;;  %v1655_v25 = vmul.f32 %v7332_v15, %v1546_v7  ;;  %v9553_v22 = vld [vmem:[#allocation20_spill] sm:$0xff]  ;;  %v9556_v56 = vld [vmem:[#allocation23_spill] sm:$0xff]  ;;  %v9557_v31 = vld [vmem:[#allocation41_spill] sm:$0xff] }
 0x1e3   : > { %v2133_v18 = vmul.f32 %v7139_v49, %v7379_v14  ;;  %5685 = vmatprep.mubr.msk.f32.mxu0 %vm2269_vm2, %v2228_v51  ;;  %v2229_v30 = vmax.f32 %v2197_v12, 0.0  ;;  %v1165_v35 = vsel %vm1164_vm1, %v6865_v32, %v7342_v16  ;;  %v1177_v8 = vmul.f32 %v7422_v53, %v6873_v39  ;;  %v9558_v7 = vld [vmem:[#allocation68_spill] sm:$0xff] }
 0x1e4   : > { %v1851_v11 = vmul.f32 %v7077_v17, %v9553_v22  ;;  %v2091_v26 = vadd.f32 %v2015_v20, %v1879_v0  ;;  %v1687_v48 = vadd.f32 %v1655_v25, %v1491_v45  ;;  %v2198_v14 = vadd.f32 %v7466_v33, %v2160_v19  ;;  %v9559_v22 = vld [vmem:[#allocation69_spill] sm:$0xff] }
 0x1e5   : > { %v1493_v59 = vmul.f32 %v7127_v50, %v9554_v55  ;;  %5686 = vmatmul.mubr.msk.f32.vlgmr.msra.gmra.mrb[0].mxu0 %vm2269_vm2, %v2229_v30  ;;  %6114 = vset.pattern.permute.xlu1 %v9495_v58  ;;  %v1554_v16 = vpop.permute.xlu1 %1553  ;;  %v2163_v2 = vadd.f32 %v7207_v36, %v2093_v3  ;;  %v2139_v53 = vmul.f32 %v7139_v49, %v1147_v27  ;;  %v1181_v37 = vand.u32 2147483648, %v6873_v39 }
 0x1e6   : > { %v2161_v42 = vadd.f32 %v9555_v28, %v2091_v26  ;;  %v1883_v20 = vadd.f32 %v1851_v11, %v1687_v48  ;;  %v1657_v29 = vmul.f32 %v7332_v15, %v1554_v16  ;;  %1837 = vperm.xlu1 %6114, %v9549_v47   ;;  %v2230_v10 = vmax.f32 %v2198_v14, 0.0  ;;  %v9561_v48 = vld [vmem:[#allocation22_spill] sm:$0xff] }
 0x1e7   : > { %v1853_v58 = vmul.f32 %v7077_v17, %v9556_v56  ;;  %v1494_v36 = vmul.f32 %v7127_v50, %v9557_v31  ;;  %v2200_v3 = vadd.f32 %v7466_v33, %v2162_v13  ;;  %v2164_v51 = vadd.f32 %v9558_v7, %v2094_v40 }
 0x1e8   : > { %v2095_v12 = vadd.f32 %v2023_v9, %v1883_v20  ;;  %v1689_v24 = vadd.f32 %v1657_v29, %v1493_v59  ;;  %5688 = vmatprep.mubr.msk.f32.mxu0 %vm2269_vm2, %v2230_v10  ;;  %v2199_v47 = vadd.f32 %v7466_v33, %v2161_v42  ;;  %v7536_v27 = vadd.f32 %v2139_v53, %v2101_v43  ;;  %v9562_v59 = vld [vmem:[#allocation6_spill] sm:$0xff] }
 0x1e9   : > { %v1188_v61 = vand.u32 2147483648, %v6880_v46  ;;  %v1558_v45 = vpop.permute.xlu1 %1557  ;;  %v7541_v1 = vmul.f32 %v7139_v49, %v7323_v6  ;;  %v2201_v13 = vadd.f32 %v7466_v33, %v2163_v2  ;;  %v7546_v40 = vmul.f32 %v7139_v49, %v7339_v23  ;;  %v9564_v2 = vld [vmem:[#allocation66_spill] sm:$0xff] }
 0x1ea   : > { %v2165_v9 = vadd.f32 %v2133_v18, %v2095_v12  ;;  %v1885_v19 = vadd.f32 %v1853_v58, %v1689_v24  ;;  %v1658_v0 = vmul.f32 %v7332_v15, %v1558_v45  ;;  %v2231_v25 = vmax.f32 %v2199_v47, 0.0  ;;  %v9566_v58 = vld [vmem:[#allocation24_spill] sm:$0xff]  ;;  %v9567_v12 = vld [vmem:[#allocation59_spill] sm:$0xff]  ;;  %v9569_v45 = vld [vmem:[#allocation73_spill] sm:$0xff] }
 0x1eb   : > { %v2232_v43 = vmax.f32 %v2200_v3, 0.0  ;;  %v2202_v30 = vadd.f32 %v7466_v33, %v2164_v51  ;;  %v2166_v11 = vadd.f32 %v9559_v22, %v7470_v21  ;;  %v9560_v6 = vand.u32 2147483648, %v6865_v32  ;;  %v9563_v21 = vld [vmem:[#allocation54_spill] sm:$0xff]  ;;  %v9568_v24 = vld [vmem:[#allocation60_spill] sm:$0xff]  ;;  %v9573_v22 = vld [vmem:[#allocation47_spill] sm:$0xff] }
 0x1ec   : > { %v1854_v23 = vmul.f32 %v7077_v17, %v9561_v48  ;;  %v2097_v18 = vadd.f32 %v7456_v63, %v1885_v19  ;;  %v1690_v14 = vadd.f32 %v1658_v0, %v1494_v36  ;;  %5689 = vmatmul.mubr.msk.f32.gmra.mrb[2].mxu0 %vm2269_vm2, %v2231_v25  ;;  %v1179_v55 = vsel %vm1178_vm5, %v6873_v39, %v1177_v8  ;;  %v1582_v36 = vpop.permute.xlu0 %1581  ;;  %v9570_v19 = vld [vmem:[#allocation76_spill] sm:$0xff] }
 0x1ed   : > { %v1168_v26 = vsel %vm1166_vm4, %v9560_v6, %v1165_v35  ;;  %6163 = vrsqrt.f32 %v9562_v59  ;;  %v1496_v16 = vmul.f32 %v7127_v50, %v9563_v21  ;;  %v9565_v32 = vand.u32 2147483648, %v6869_v38  ;;  %5691 = vmatprep.mubr.msk.f32.mxu0 %vm2269_vm2, %v2232_v43  ;;  %v1566_v63 = vpop.permute.xlu1 %1565  ;;  %v9571_v43 = vld [vmem:[#allocation25_spill] sm:$0xff] }
 0x1ee   : > { %v2233_v53 = vmax.f32 %v2201_v13, 0.0  ;;  %v2167_v28 = vadd.f32 %v7299_v52, %v2097_v18  ;;  %v1886_v8 = vadd.f32 %v1854_v23, %v1690_v14  ;;  %v1660_v42 = vmul.f32 %v7332_v15, %v1566_v63  ;;  %v9576_v18 = vld [vmem:[#allocation7_spill] sm:$0xff] }
 0x1ef   : > { %v1126_v35 = vsel %vm1124_vm3, %v9565_v32, %v9564_v2  ;;  %v2203_v20 = vadd.f32 %v7466_v33, %v2165_v9  ;;  %v2234_v29 = vmax.f32 %v2202_v30, 0.0  ;;  %v2204_v10 = vadd.f32 %v7466_v33, %v2166_v11  ;;  %v9572_v30 = vld [vmem:[#allocation58_spill] sm:$0xff]  ;;  %v9577_v2 = vld [vmem:[#allocation45_spill] sm:$0xff] }
 0x1f0   : > { %v7578_v56 = vmul.f32 %v7139_v49, %v1168_v26  ;;  %v7582_v38 = vsel %vm1180_vm6, %v1181_v37, %v1179_v55  ;;  %v1856_v31 = vmul.f32 %v7077_v17, %v9566_v58  ;;  %v2136_v52 = vmul.f32 %v7139_v49, %v1126_v35  ;;  %5692 = vmatmul.mubr.msk.f32.gmra.mrb[4].mxu0 %vm2269_vm2, %v2233_v53  ;;  %v9574_v26 = vld [vmem:[#allocation71_spill] sm:$0xff]  ;;  %v1598_v14 = vpop.permute.xlu0 %1597 }
 0x1f1   : > { %v2098_v3 = vadd.f32 %v7474_v44, %v1886_v8  ;;  %v1692_v7 = vadd.f32 %v1660_v42, %v1496_v16  ;;  %v7591_v51 = vmul.f32 %v7428_v62, %v6880_v46  ;;  %v1287_v39 = vmul.f32 %v9568_v24, %v9567_v12  ;;  %5694 = vmatprep.mubr.msk.f32.mxu0 %vm2269_vm2, %v2234_v29  ;;  %v1294_v37 = vpop.permute.xlu1 %1293  ;;  %v9578_v29 = vld [vmem:[#allocation28_spill] sm:$0xff]  ;;  %v9579_v58 = vld [vmem:[#allocation27_spill] sm:$0xff] }
 0x1f2   : > { %v2205_v47 = vadd.f32 %v7466_v33, %v2167_v28  ;;  %v2169_v13 = vadd.f32 %v9569_v45, %v7482_v34  ;;  %v1301_v0 = vmul.f32 %v9570_v19, %v1294_v37  ;;  %v2235_v25 = vmax.f32 %v2203_v20, 0.0  ;;  %v9581_v24 = vld [vmem:[#allocation32_spill] sm:$0xff] }
 0x1f3   : > { %v2168_v9 = vadd.f32 %v2136_v52, %v2098_v3  ;;  %v1888_v44 = vadd.f32 %v1856_v31, %v1692_v7  ;;  %v1317_v62 = vmul.f32 %v9572_v30, %v9571_v43  ;;  %v1500_v11 = vmul.f32 %v7127_v50, %v9573_v22  ;;  %v9584_v30 = vld [vmem:[#allocation61_spill] sm:$0xff] }
 0x1f4   : > { %v2236_v6 = vmax.f32 %v2204_v10, 0.0  ;;  %v9575_v48 = vand.u32 2147483648, %v6884_v54  ;;  %vm1173_vm9 = vcmp.eq.f32.partialorder %v9576_v18, 0.0  ;;  %v1664_v34 = vmul.f32 %v7332_v15, %v1582_v36  ;;  %5695 = vmatmul.mubr.msk.f32.gmra.mrb[6].mxu0 %vm2269_vm2, %v2235_v25 }
 0x1f5   : > { %v2100_v55 = vadd.f32 %v7485_v4, %v1888_v44  ;;  %v1303_v21 = vadd.f32 %v1301_v0, %v1287_v39  ;;  %v2206_v16 = vadd.f32 %v7466_v33, %v2168_v9  ;;  %v1498_v32 = vmul.f32 %v7127_v50, %v9577_v2  ;;  %v1574_v35 = vpop.permute.xlu1 %1573 }
 0x1f6   : > { %v1161_v23 = vsel %vm1159_vm7, %v9575_v48, %v9574_v26  ;;  %5697 = vmatprep.mubr.msk.f32.mxu0 %vm2269_vm2, %v2236_v6  ;;  %v1958_v54 = vcombine.high %v7459_v57, %v7459_v57  ;;  %v2237_v63 = vmax.f32 %v2205_v47, 0.0  ;;  %v2207_v53 = vadd.f32 %v7466_v33, %v2169_v13  ;;  %v9580_v57 = vld [vmem:[#allocation51_spill] sm:$0xff]  ;;  %v9582_v13 = vld [vmem:[#allocation74_spill] sm:$0xff] }
 0x1f7   : > { %v2170_v28 = vadd.f32 %v7541_v1, %v2100_v55  ;;  %v7621_v4 = vadd.f32 %v1317_v62, %v1303_v21  ;;  %v1662_v8 = vmul.f32 %v7332_v15, %v1574_v35  ;;  %v2238_v42 = vmax.f32 %v2206_v16, 0.0  ;;  %v7624_v20 = vpop.eup %6163 }
 0x1f8   : > { %v1858_v10 = vmul.f32 %v7077_v17, %v9578_v29  ;;  %v1864_v31 = vmul.f32 %v7077_v17, %v9579_v58  ;;  %v1504_v36 = vmul.f32 %v7127_v50, %v9580_v57  ;;  %v1668_v52 = vmul.f32 %v7332_v15, %v1598_v14  ;;  %5698 = vmatmul.mubr.msk.f32.gmra.mrb[8].mxu0 %vm2269_vm2, %v2237_v63  ;;  %v9586_v14 = vld [vmem:[#allocation64_spill] sm:$0xff]  ;;  %v9590_v57 = vld [vmem:[#allocation33_spill] sm:$0xff] }
 0x1f9   : > { %v1696_v3 = vadd.f32 %v1664_v34, %v1500_v11  ;;  %v1966_v1 = vrot.slane %v7621_v4, %v9545_v5  ;;  %v1694_v7 = vadd.f32 %v1662_v8, %v1498_v32  ;;  %v2208_v12 = vadd.f32 %v7466_v33, %v2170_v28  ;;  %5700 = vmatprep.mubr.msk.f32.mxu0 %vm2269_vm2, %v2238_v42  ;;  %v1578_v47 = vpop.permute.xlu1 %1577  ;;  %v9587_v32 = vld [vmem:[#allocation10_spill] sm:$0xff]  ;;  %v9588_v42 = vld [vmem:[#allocation72_spill] sm:$0xff] }
 0x1fa   : > { %v1860_v39 = vmul.f32 %v7077_v17, %v9581_v24  ;;  %v2141_v37 = vmul.f32 %v7139_v49, %v1161_v23  ;;  %v2209_v45 = vadd.f32 %v7466_v33, %v7536_v27  ;;  %v9583_v9 = vand.u32 2147483648, %v6896_v60  ;;  %v9585_v23 = vld [vmem:[#allocation30_spill] sm:$0xff] }
 0x1fb   : > { %v1982_v19 = vrot.slane %v1966_v1, %v9545_v5  ;;  %v2039_v0 = vrot.slane %v1958_v54, %v9547_v41  ;;  %v1890_v25 = vadd.f32 %v1858_v10, %v1694_v7  ;;  %v2239_v43 = vmax.f32 %v2207_v53, 0.0 }
 0x1fc   : > { %v1196_v44 = vsel %vm1194_vm8, %v9583_v9, %v9582_v13  ;;  %v1499_v62 = vmul.f32 %v7127_v50, %v9584_v30  ;;  %v1700_v22 = vadd.f32 %v1668_v52, %v1504_v36  ;;  %v1663_v27 = vmul.f32 %v7332_v15, %v1578_v47 }
 0x1fd   : > { %v2240_v11 = vmax.f32 %v2208_v12, 0.0  ;;  %v1892_v6 = vadd.f32 %v1860_v39, %v1696_v3  ;;  %v2102_v26 = vadd.f32 %v2039_v0, %v1890_v25  ;;  %5701 = vmatmul.mubr.msk.f32.gmra.mrb[10].mxu0 %vm2269_vm2, %v2239_v43  ;;  %v2043_v60 = vrot.slane %v1982_v19, %v9547_v41  ;;  %v1586_v16 = vpop.permute.xlu1 %1585  ;;  %v9591_v3 = vld [vmem:[#allocation49_spill] sm:$0xff]  ;;  %v9592_v25 = vld [vmem:[#allocation35_spill] sm:$0xff] }
 0x1fe   : > { %v2004_v48 = vcombine.high %v1982_v19, %v1982_v19  ;;  %v1859_v34 = vmul.f32 %v7077_v17, %v9585_v23  ;;  %v1501_v55 = vmul.f32 %v7127_v50, %v9586_v14  ;;  %v1695_v21 = vadd.f32 %v1663_v27, %v1499_v62  ;;  %v9594_v27 = vld [vmem:[#allocation67_spill] sm:$0xff] }
 0x1ff   : > { %5703 = vmatprep.mubr.msk.f32.mxu0 %vm2269_vm2, %v2240_v11  ;;  %v2241_v2 = vmax.f32 %v2209_v45, 0.0  ;;  %vm1199_vm11 = vcmp.eq.f32.partialorder %v9587_v32, inf  ;;  %v1974_v54 = vcombine.high %v1966_v1, %v1966_v1  ;;  %v2172_v35 = vadd.f32 %v7546_v40, %v2102_v26 }
 0x200   : > { %v2104_v63 = vadd.f32 %v2043_v60, %v1892_v6  ;;  %v1665_v53 = vmul.f32 %v7332_v15, %v1586_v16  ;;  %v1896_v28 = vadd.f32 %v1864_v31, %v1700_v22  ;;  %v1891_v8 = vadd.f32 %v1859_v34, %v1695_v21  ;;  %v9593_v22 = vld [vmem:[#allocation18_spill] sm:$0xff]  ;;  %v9595_v34 = vld [vmem:[#allocation37_spill] sm:$0xff] }
 0x201   : > { %v9589_v29 = vand.u32 2147483648, %v9576_v18  ;;  %v7670_v58 = vrot.slane %v2004_v48, %v9547_v41  ;;  %v1861_v36 = vmul.f32 %v7077_v17, %v9590_v57  ;;  %5704 = vmatmul.mubr.msk.f32.gmra.mrb[12].mxu0 %vm2269_vm2, %v2241_v2  ;;  %v2210_v40 = vadd.f32 %v7466_v33, %v2172_v35  ;;  %v1590_v12 = vpop.permute.xlu1 %1589 }
 0x202   : > { %v1697_v52 = vadd.f32 %v1665_v53, %v1501_v55  ;;  %v2174_v31 = vadd.f32 %v7578_v56, %v2104_v63  ;;  %v1502_v1 = vmul.f32 %v7127_v50, %v9591_v3  ;;  %v2103_v7 = vadd.f32 %v2039_v0, %v1891_v8  ;;  %v9596_v8 = vld [vmem:[#allocation53_spill] sm:$0xff] }
 0x203   : > { %v1175_v10 = vsel %vm1173_vm9, %v9589_v29, %v9588_v42  ;;  %v2108_v18 = vadd.f32 %v7670_v58, %v1896_v28  ;;  %v2146_v24 = vmul.f32 %v7139_v49, %v1196_v44  ;;  %v1666_v47 = vmul.f32 %v7332_v15, %v1590_v12 }
 0x204   : > { %v1893_v39 = vadd.f32 %v1861_v36, %v1697_v52  ;;  %v2242_v45 = vmax.f32 %v2210_v40, 0.0  ;;  %v7683_v13 = vrot.slane %v1974_v54, %v9545_v5  ;;  %v2173_v9 = vadd.f32 %v2141_v37, %v2103_v7  ;;  %v9597_v36 = vld [vmem:[#allocation29_spill] sm:$0xff] }
 0x205   : > { %v2143_v19 = vmul.f32 %v7139_v49, %v1175_v10  ;;  %v1186_v56 = vsel %vm1185_vm10, %v6880_v46, %v7591_v51  ;;  %v2178_v0 = vadd.f32 %v2146_v24, %v2108_v18  ;;  %v1862_v43 = vmul.f32 %v7077_v17, %v9592_v25  ;;  %v1594_v6 = vpop.permute.xlu1 %1593  ;;  %v7725_v24 = vpop.permute.xlu0 %1621  ;;  %v9598_v25 = vld [vmem:[#allocation8_spill] sm:$0xff] }
 0x206   : > { %v2105_v44 = vadd.f32 %v2043_v60, %v1893_v39  ;;  %v1698_v30 = vadd.f32 %v1666_v47, %v1502_v1  ;;  %5706 = vmatprep.mubr.msk.f32.mxu0 %vm2269_vm2, %v2242_v45  ;;  %v2212_v62 = vadd.f32 %v7466_v33, %v2174_v31  ;;  %v1198_v37 = vmul.f32 %v9593_v22, %v9587_v32 }
 0x207   : > { %v1503_v11 = vmul.f32 %v7127_v50, %v9594_v27  ;;  %v2211_v51 = vadd.f32 %v7466_v33, %v2173_v9  ;;  %v2047_v60 = vrot.slane %v7683_v13, %v9547_v41  ;;  %v1667_v23 = vmul.f32 %v7332_v15, %v1594_v6 }
 0x208   : > { %v2175_v26 = vadd.f32 %v2143_v19, %v2105_v44  ;;  %v1894_v48 = vadd.f32 %v1862_v43, %v1698_v30  ;;  %v1863_v14 = vmul.f32 %v7077_v17, %v9595_v34  ;;  %v1189_v55 = vsel %vm1187_vm12, %v1188_v61, %v1186_v56 }
 0x209   : > { %v2243_v21 = vmax.f32 %v2211_v51, 0.0  ;;  %v2144_v16 = vmul.f32 %v7139_v49, %v7582_v38  ;;  %v1699_v2 = vadd.f32 %v1667_v23, %v1503_v11  ;;  %v2244_v54 = vmax.f32 %v2212_v62, 0.0  ;;  %v1602_v61 = vpop.permute.xlu1 %1601  ;;  %v9599_v62 = vld [vmem:[#allocation11_spill] sm:$0xff]  ;;  %v7747_v51 = vpop.permute.xlu0 %1629 }
 0x20a   : > { %v2213_v35 = vadd.f32 %v7466_v33, %v2175_v26  ;;  %v2106_v63 = vadd.f32 %v2047_v60, %v1894_v48  ;;  %v1200_v53 = vsel %vm1199_vm11, %v9587_v32, %v1198_v37  ;;  %vm1201_vm13 = vcmp.eq.f32.partialorder %v9587_v32, 0.0 }
 0x20b   : > { %v1202_v28 = vand.u32 2147483648, %v9587_v32  ;;  %v1505_v46 = vmul.f32 %v7127_v50, %v9596_v8  ;;  %5707 = vmatmul.mubr.msk.f32.gmra.mrb[14].mxu0 %vm2269_vm2, %v2243_v21  ;;  %v1895_v38 = vadd.f32 %v1863_v14, %v1699_v2  ;;  %v1669_v42 = vmul.f32 %v7332_v15, %v1602_v61 }
 0x20c   : > { %5709 = vmatprep.mubr.msk.f32.mxu0 %vm2269_vm2, %v2244_v54  ;;  %v2245_v29 = vmax.f32 %v2213_v35, 0.0  ;;  %v2176_v10 = vadd.f32 %v2144_v16, %v2106_v63  ;;  %v2145_v57 = vmul.f32 %v7139_v49, %v1189_v55  ;;  %v1865_v52 = vmul.f32 %v7077_v17, %v9597_v36  ;;  %v9602_v16 = vld [vmem:[#allocation55_spill] sm:$0xff]  ;;  %v9603_v35 = vld [vmem:[#allocation13_spill] sm:$0xff] }
 0x20d   : > { %v2107_v40 = vadd.f32 %v2047_v60, %v1895_v38  ;;  %v1701_v32 = vadd.f32 %v1669_v42, %v1505_v46  ;;  %v1203_v3 = vsel %vm1201_vm13, %v1202_v28, %v1200_v53  ;;  %v1606_v1 = vpop.permute.xlu1 %1605  ;;  %v2216_v39 = vadd.f32 %v7466_v33, %v2178_v0  ;;  %v9600_v0 = vld [vmem:[#allocation12_spill] sm:$0xff]  ;;  %v7766_v61 = vpop.permute.xlu0 %1637 }
 0x20e   : > { %v2214_v31 = vadd.f32 %v7466_v33, %v2176_v10  ;;  %v1205_v47 = vmul.f32 %v7624_v20, %v9562_v59  ;;  %v2147_v45 = vmul.f32 %v7139_v49, %v1203_v3  ;;  %6165 = vrsqrt.f32 %v9598_v25  ;;  %v9604_v3 = vld [vmem:[#allocation9_spill] sm:$0xff] }
 0x20f   : > { %5710 = vmatmul.mubr.msk.f32.gmra.mrb[16].mxu0 %vm2269_vm2, %v2245_v29  ;;  %v2177_v7 = vadd.f32 %v2145_v57, %v2107_v40  ;;  %v1897_v12 = vadd.f32 %v1865_v52, %v1701_v32  ;;  %v1670_v44 = vmul.f32 %v7332_v15, %v1606_v1  ;;  %v1212_v22 = vmul.f32 %v9600_v0, %v9599_v62 }
 0x210   : > { %v2246_v18 = vmax.f32 %v2214_v31, 0.0  ;;  %vm1213_vm14 = vcmp.eq.f32.partialorder %v9599_v62, inf  ;;  %v2248_v20 = vmax.f32 %v2216_v39, 0.0  ;;  %vm1206_vm15 = vcmp.eq.f32.partialorder %v9562_v59, inf }
 0x211   : > { %v2109_v9 = vadd.f32 %v7670_v58, %v1897_v12  ;;  %v2215_v19 = vadd.f32 %v7466_v33, %v2177_v7  ;;  %v1610_v56 = vpop.permute.xlu1 %1609  ;;  %v9601_v58 = vld [vmem:[#allocation70_spill] sm:$0xff]  ;;  %v1207_v27 = vsel %vm1206_vm15, %v9562_v59, %v1205_v47  ;;  %v2006_v11 = vcombine.high %v7683_v13, %v7683_v13 }
 0x212   : > { %5712 = vmatprep.mubr.msk.f32.mxu1 %vm2269_vm2, %v2246_v18  ;;  %v1506_v37 = vmul.f32 %v7127_v50, %v9601_v58  ;;  %vm1208_vm0 = vcmp.eq.f32.partialorder %v9562_v59, 0.0  ;;  %v1209_v26 = vand.u32 2147483648, %v9562_v59  ;;  %v1671_v23 = vmul.f32 %v7332_v15, %v1610_v56  ;;  %v1810_v18 = vpop.permute.xlu0 %1809 }
 0x213   : > { %v2179_v43 = vadd.f32 %v2147_v45, %v2109_v9  ;;  %v2247_v30 = vmax.f32 %v2215_v19, 0.0  ;;  %v1216_v55 = vand.u32 2147483648, %v9599_v62  ;;  %v1214_v21 = vsel %vm1213_vm14, %v9599_v62, %v1212_v22 }
 0x214   : > { %v1702_v60 = vadd.f32 %v1670_v44, %v1506_v37  ;;  %v1210_v13 = vsel %vm1208_vm0, %v1209_v26, %v1207_v27  ;;  %v1507_v2 = vmul.f32 %v7127_v50, %v9602_v16  ;;  %v2055_v54 = vrot.slane %v2006_v11, %v9547_v41 }
 0x215   : > { %5713 = vmatmul.mubr.msk.f32.vlgmr.msra.gmra.mrb[0].mxu1 %vm2269_vm2, %v2247_v30  ;;  %v2217_v6 = vadd.f32 %v7466_v33, %v2179_v43  ;;  %v1802_v48 = vpop.permute.xlu1 %1801  ;;  %vm1215_vm1 = vcmp.eq.f32.partialorder %v9599_v62, 0.0  ;;  %6167 = vrsqrt.f32 %v9603_v35  ;;  %v2148_v28 = vmul.f32 %v7139_v49, %v1210_v13 }
 0x216   : > { %5715 = vmatprep.mubr.msk.f32.mxu1 %vm2269_vm2, %v2248_v20  ;;  %v1866_v34 = vmul.f32 %v7077_v17, %v1802_v48  ;;  %v1703_v53 = vadd.f32 %v1671_v23, %v1507_v2  ;;  %v1217_v38 = vsel %vm1215_vm1, %v1216_v55, %v1214_v21  ;;  %v1959_v29 = vcombine.high %v7621_v4, %v7621_v4  ;;  %v9605_v48 = vld [vmem:[#allocation57_spill] sm:$0xff] }
 0x217   : > { %v2249_v14 = vmax.f32 %v2217_v6, 0.0  ;;  %v2149_v36 = vmul.f32 %v7139_v49, %v1217_v38  ;;  %6169 = vrsqrt.f32 %v9604_v3  ;;  %vm1220_vm3 = vcmp.eq.f32.partialorder %v9598_v25, inf }
 0x218   : > { %v1898_v59 = vadd.f32 %v1866_v34, %v1702_v60  ;;  %v6166_v42 = vpop.eup %6165  ;;  %v1973_v1 = vrot.slane %v1959_v29, %v9545_v5  ;;  %v1868_v45 = vmul.f32 %v7077_v17, %v1810_v18  ;;  %v1223_v44 = vand.u32 2147483648, %v9598_v25  ;;  %v9606_v34 = vld [vmem:[#allocation15_spill] sm:$0xff] }
 0x219   : > { %5716 = vmatmul.mubr.msk.f32.gmra.mrb[2].mxu1 %vm2269_vm2, %v2249_v14  ;;  %v1806_v63 = vpop.permute.xlu1 %1805  ;;  %v1219_v31 = vmul.f32 %v6166_v42, %v9598_v25  ;;  %vm1222_vm4 = vcmp.eq.f32.partialorder %v9598_v25, 0.0  ;;  %vm1227_vm5 = vcmp.eq.f32.partialorder %v9603_v35, inf  ;;  %v1230_v11 = vand.u32 2147483648, %v9603_v35 }
 0x21a   : > { %v2110_v8 = vadd.f32 %v2055_v54, %v1898_v59  ;;  %v1867_v46 = vmul.f32 %v7077_v17, %v1806_v63  ;;  %v7783_v56 = vrot.slane %v1973_v1, %v9545_v5  ;;  %v1509_v60 = vmul.f32 %v7127_v50, %v9605_v48 }
 0x21b   : > { %v1221_v47 = vsel %vm1220_vm3, %v9598_v25, %v1219_v31  ;;  %v7797_v25 = vld [vmem:[%s9338_s5] ss:$0 sm:$0xff]  ;;  %vm1229_vm6 = vcmp.eq.f32.partialorder %v9603_v35, 0.0  ;;  %6171 = vrsqrt.f32 %v9606_v34  ;;  %v1975_v59 = vcombine.high %v1973_v1, %v1973_v1 }
 0x21c   : > { %v2180_v10 = vadd.f32 %v2148_v28, %v2110_v8  ;;  %v1899_v57 = vadd.f32 %v1867_v46, %v1703_v53  ;;  %v1224_v0 = vsel %vm1222_vm4, %v1223_v44, %v1221_v47  ;;  %v2059_v58 = vrot.slane %v7783_v56, %v9547_v41  ;;  %v1818_v53 = vpop.permute.xlu0 %1817  ;;  %v2629_v44 = vld [vmem:[%s9345_s12] sm:$0xff] }
 0x21d   : > { %v2150_v26 = vmul.f32 %v7797_v25, %v1224_v0  ;;  %vm1234_vm7 = vcmp.eq.f32.partialorder %v9604_v3, inf  ;;  %v1674_v42 = vmul.f32 %v7332_v15, %v7725_v24  ;;  %vm1236_vm8 = vcmp.eq.f32.partialorder %v9604_v3, 0.0 }
 0x21e   : > { %v2111_v52 = vadd.f32 %v2055_v54, %v1899_v57  ;;  %v1443_v40 = vpop.permute.xlu1 %1442  ;;  %v2218_v32 = vadd.f32 %v7466_v33, %v2180_v10  ;;  %v1870_v10 = vmul.f32 %v7077_v17, %v1818_v53  ;;  %v7817_v57 = vrot.slane %v1975_v59, %v9545_v5 }
 0x21f   : > { %v6168_v49 = vpop.eup %6167  ;;  %v1508_v9 = vmul.f32 %v7127_v50, %v1443_v40  ;;  %v1237_v40 = vand.u32 2147483648, %v9604_v3  ;;  %vm1241_vm9 = vcmp.eq.f32.partialorder %v9606_v34, inf  ;;  %vm1243_vm10 = vcmp.eq.f32.partialorder %v9606_v34, 0.0 }
 0x220   : > { %v2181_v7 = vadd.f32 %v2149_v36, %v2111_v52  ;;  %v2250_v12 = vmax.f32 %v2218_v32, 0.0  ;;  %v1226_v62 = vmul.f32 %v6168_v49, %v9603_v35  ;;  %v9607_v36 = vld [vmem:[#allocation38_spill] sm:$0xff]  ;;  %v2063_v18 = vrot.slane %v7817_v57, %v9547_v41 }
 0x221   : > { %v6170_v27 = vpop.eup %6169  ;;  %6173 = vrsqrt.f32 %v9607_v36  ;;  %vm1248_vm11 = vcmp.eq.f32.partialorder %v9607_v36, inf  ;;  %v2005_v53 = vcombine.high %v7783_v56, %v7783_v56  ;;  %vm1250_vm12 = vcmp.eq.f32.partialorder %v9607_v36, 0.0 }
 0x222   : > { %5718 = vmatprep.mubr.msk.f32.mxu1 %vm2269_vm2, %v2250_v12  ;;  %v2219_v4 = vadd.f32 %v7466_v33, %v2181_v7  ;;  %v1228_v23 = vsel %vm1227_vm5, %v9603_v35, %v1226_v62  ;;  %v1233_v13 = vmul.f32 %v6170_v27, %v9604_v3  ;;  %v1244_v62 = vand.u32 2147483648, %v9606_v34 }
 0x223   : > { %v1614_v39 = vpop.permute.xlu1 %1613  ;;  %v1231_v2 = vsel %vm1229_vm6, %v1230_v11, %v1228_v23  ;;  %vm4960_vm4 = vcmask 1041409   ;;  %vm4962_vm5 = vcmask 1042434   ;;  %vm4964_vm6 = vcmask 1043459  }
 0x224   : > { %v1672_v19 = vmul.f32 %v7332_v15, %v1614_v39  ;;  %v2251_v43 = vmax.f32 %v2219_v4, 0.0  ;;  %v2151_v35 = vmul.f32 %v7797_v25, %v1231_v2  ;;  %v1235_v38 = vsel %vm1234_vm7, %v9604_v3, %v1233_v13 }
 0x225   : > { %v1238_v31 = vsel %vm1236_vm8, %v1237_v40, %v1235_v38  ;;  %v6172_v7 = vpop.eup %6171  ;;  %vm4966_vm7 = vcmask 1044484   ;;  %vm4968_vm8 = vcmask 1045509  }
 0x226   : > { %v1704_v30 = vadd.f32 %v1672_v19, %v1508_v9  ;;  %5719 = vmatmul.mubr.msk.f32.gmra.mrb[4].mxu1 %vm2269_vm2, %v2251_v43  ;;  %v2152_v49 = vmul.f32 %v7797_v25, %v1238_v31  ;;  %v1240_v39 = vmul.f32 %v6172_v7, %v9606_v34  ;;  %v2625_v19 = vld [vmem:[%s9343_s10] sm:$0xff]  ;;  %v2626_v43 = vld [vmem:[%s9343_s10 + $0x8] sm:$0xff] }
 0x227   : > { %v1618_v22 = vpop.permute.xlu1 %1617 }
 0x228   : > { %v1900_v20 = vadd.f32 %v1868_v45, %v1704_v30  ;;  %v1673_v37 = vmul.f32 %v7332_v15, %v1618_v22  ;;  %v1242_v0 = vsel %vm1241_vm9, %v9606_v34, %v1240_v39  ;;  %v5959_v22 = vpack.c.bf16 %v2626_v43, %v2625_v19  ;;  %v9609_v34 = vld [vmem:[#allocation31_spill] sm:$0xff] }
 0x229   : > { %v1245_v23 = vsel %vm1243_vm10, %v1244_v62, %v1242_v0  ;;  %vm1262_vm15 = vcmp.eq.f32.partialorder %v9609_v34, inf  ;;  %vm1264_vm0 = vcmp.eq.f32.partialorder %v9609_v34, 0.0  ;;  %vm4970_vm9 = vcmask 1046534  }
 0x22a   : > { %v2112_v6 = vadd.f32 %v2059_v58, %v1900_v20  ;;  %v1705_v21 = vadd.f32 %v1673_v37, %v1509_v60  ;;  %v2630_v20 = vld [vmem:[%s9345_s12 + $0x8] sm:$0xff]  ;;  %5960 = vmatprep.subr.bf16.mxu1 %v5959_v22  ;;  %v2153_v13 = vmul.f32 %v7797_v25, %v1245_v23  ;;  %vm4972_vm10 = vcmask 1047559  }
 0x22b   : > { %v6174_v30 = vpop.eup %6173  ;;  %v5967_v27 = vpack.c.bf16 %v2630_v20, %v2629_v44  ;;  %5962 = vmatpush3.bf16.msra.mxu1 %v5959_v22  ;;  %v1265_v44 = vand.u32 2147483648, %v9609_v34  ;;  %v1678_v20 = vmul.f32 %v7332_v15, %v7766_v61 }
 0x22c   : > { %v2182_v14 = vadd.f32 %v2150_v26, %v2112_v6  ;;  %v1814_v55 = vpop.permute.xlu1 %1813  ;;  %v1247_v6 = vmul.f32 %v6174_v30, %v9607_v36  ;;  %v9608_v26 = vld [vmem:[#allocation40_spill] sm:$0xff] }
 0x22d   : > { %v1869_v16 = vmul.f32 %v7077_v17, %v1814_v55  ;;  %6175 = vrsqrt.f32 %v9608_v26  ;;  %5968 = vmatprep.subr.bf16.mxu0 %v5967_v27  ;;  %v1826_v55 = vpop.permute.xlu0 %1825  ;;  %vm1255_vm13 = vcmp.eq.f32.partialorder %v9608_v26, inf  ;;  %vm1257_vm14 = vcmp.eq.f32.partialorder %v9608_v26, 0.0 }
 0x22e   : > { %v2220_v54 = vadd.f32 %v7466_v33, %v2182_v14  ;;  %5970 = vmatpush3.bf16.msra.mxu0 %v5967_v27  ;;  %6177 = vrsqrt.f32 %v9609_v34  ;;  %v1249_v2 = vsel %vm1248_vm11, %v9607_v36, %v1247_v6  ;;  %v2007_v27 = vcombine.high %v7817_v57, %v7817_v57 }
 0x22f   : > { %v1901_v63 = vadd.f32 %v1869_v16, %v1705_v21  ;;  %vm5179_vm11 = vcmask 261120  }
 0x230   : > { %v2252_v28 = vmax.f32 %v2220_v54, 0.0  ;;  %v1676_v54 = vmul.f32 %v7332_v15, %v7747_v51  ;;  %v2067_v51 = vrot.slane %v2005_v53, %v9547_v41 }
 0x231   : > { %v2113_v8 = vadd.f32 %v2059_v58, %v1901_v63  ;;  %v1453_v46 = vpop.permute.xlu1 %1452  ;;  %v1872_v63 = vmul.f32 %v7077_v17, %v1826_v55  ;;  %v1834_v43 = vpop.permute.xlu0 %1833 }
 0x232   : > { %v1510_v29 = vmul.f32 %v7127_v50, %v1453_v46  ;;  %5721 = vmatprep.mubr.msk.f32.mxu1 %vm2269_vm2, %v2252_v28 }
 0x233   : > { %v2183_v52 = vadd.f32 %v2151_v35, %v2113_v8  ;;  %v1251_v35 = vand.u32 2147483648, %v9607_v36 }
 0x234   : > { %v1706_v32 = vadd.f32 %v1674_v42, %v1510_v29 }
 0x235   : > { %v1458_v1 = vpop.permute.xlu1 %1457  ;;  %v2221_v24 = vadd.f32 %v7466_v33, %v2183_v52  ;;  %v1252_v46 = vsel %vm1250_vm12, %v1251_v35, %v1249_v2 }
 0x236   : > { %v1902_v12 = vadd.f32 %v1870_v10, %v1706_v32  ;;  %v1511_v58 = vmul.f32 %v7127_v50, %v1458_v1  ;;  %v2154_v32 = vmul.f32 %v7797_v25, %v1252_v46 }
 0x237   : > { %v2253_v4 = vmax.f32 %v2221_v24, 0.0  ;;  %v6176_v10 = vpop.eup %6175 }
 0x238   : > { %v2114_v5 = vadd.f32 %v2063_v18, %v1902_v12  ;;  %v1254_v56 = vmul.f32 %v6176_v10, %v9608_v26  ;;  %v6178_v24 = vpop.eup %6177  ;;  %v2627_v10 = vld [vmem:[%s9344_s11] sm:$0xff] }
 0x239   : > { %5722 = vmatmul.mubr.msk.f32.gmra.mrb[6].mxu1 %vm2269_vm2, %v2253_v4 }
 0x23a   : > { %v2184_v3 = vadd.f32 %v2152_v49, %v2114_v5  ;;  %v1626_v47 = vpop.permute.xlu1 %1625  ;;  %v1261_v5 = vmul.f32 %v6178_v24, %v9609_v34  ;;  %v1258_v49 = vand.u32 2147483648, %v9608_v26 }
 0x23b   : > { %v1675_v45 = vmul.f32 %v7332_v15, %v1626_v47 }
 0x23c   : > { %v2222_v9 = vadd.f32 %v7466_v33, %v2184_v3  ;;  %v9610_v3 = vld [vmem:[#allocation75_spill] sm:$0xff]  ;;  %v1263_v22 = vsel %vm1262_vm15, %v9609_v34, %v1261_v5 }
 0x23d   : > { %v1707_v48 = vadd.f32 %v1675_v45, %v1511_v58  ;;  %6179 = vrsqrt.f32 %v9610_v3  ;;  %vm1269_vm1 = vcmp.eq.f32.partialorder %v9610_v3, inf  ;;  %v1272_v53 = vand.u32 2147483648, %v9610_v3 }
 0x23e   : > { %v2254_v37 = vmax.f32 %v2222_v9, 0.0  ;;  %vm1271_vm3 = vcmp.eq.f32.partialorder %v9610_v3, 0.0 }
 0x23f   : > { %v1822_v11 = vpop.permute.xlu1 %1821 }
 0x240   : > { %v1871_v60 = vmul.f32 %v7077_v17, %v1822_v11  ;;  %5724 = vmatprep.mubr.msk.f32.mxu1 %vm2269_vm2, %v2254_v37  ;;  %v1874_v37 = vmul.f32 %v7077_v17, %v1834_v43 }
 0x242   : > { %v1903_v14 = vadd.f32 %v1871_v60, %v1707_v48 }
 0x244   : > { %v2115_v21 = vadd.f32 %v2063_v18, %v1903_v14  ;;  %v1463_v16 = vpop.permute.xlu1 %1462  ;;  %v1256_v18 = vsel %vm1255_vm13, %v9608_v26, %v1254_v56  ;;  %v1266_v26 = vsel %vm1264_vm0, %v1265_v44, %v1263_v22  ;;  %v2071_v14 = vrot.slane %v2007_v27, %v9547_v41 }
 0x245   : > { %v1512_v59 = vmul.f32 %v7127_v50, %v1463_v16  ;;  %v1259_v9 = vsel %vm1257_vm14, %v1258_v49, %v1256_v18  ;;  %v2156_v61 = vmul.f32 %v7797_v25, %v1266_v26 }
 0x246   : > { %v2185_v28 = vadd.f32 %v2153_v13, %v2115_v21  ;;  %v2155_v30 = vmul.f32 %v7797_v25, %v1259_v9 }
 0x247   : > { %v1708_v8 = vadd.f32 %v1676_v54, %v1512_v59  ;;  %v6180_v55 = vpop.eup %6179 }
 0x248   : > { %v1468_v38 = vpop.permute.xlu1 %1467  ;;  %v2223_v42 = vadd.f32 %v7466_v33, %v2185_v28  ;;  %v1268_v21 = vmul.f32 %v6180_v55, %v9610_v3 }
 0x249   : > { %v1904_v29 = vadd.f32 %v1872_v63, %v1708_v8  ;;  %v1513_v12 = vmul.f32 %v7127_v50, %v1468_v38 }
 0x24a   : > { %v2255_v52 = vmax.f32 %v2223_v42, 0.0  ;;  %v1270_v41 = vsel %vm1269_vm1, %v9610_v3, %v1268_v21 }
 0x24b   : > { %v2116_v40 = vadd.f32 %v2067_v51, %v1904_v29 }
 0x24c   : > { %5725 = vmatmul.mubr.msk.f32.gmra.mrb[8].mxu1 %vm2269_vm2, %v2255_v52 }
 0x24d   : > { %v2186_v31 = vadd.f32 %v2154_v32, %v2116_v40  ;;  %v1634_v1 = vpop.permute.xlu1 %1633  ;;  %v7922_v32 = vld [vmem:[%s9341_s8] ss:$0 sm:$0xff] }
 0x24e   : > { %v1677_v36 = vmul.f32 %v7332_v15, %v1634_v1 }
 0x24f   : > { %v2224_v7 = vadd.f32 %v7466_v33, %v2186_v31 }
 0x250   : > { %v1709_v47 = vadd.f32 %v1677_v36, %v1513_v12 }
 0x251   : > { %v2256_v4 = vmax.f32 %v2224_v7, 0.0 }
 0x252   : > { %v1830_v39 = vpop.permute.xlu1 %1829 }
 0x253   : > { %v1873_v45 = vmul.f32 %v7077_v17, %v1830_v39  ;;  %5727 = vmatprep.mubr.msk.f32.mxu1 %vm2269_vm2, %v2256_v4 }
 0x255   : > { %v1905_v19 = vadd.f32 %v1873_v45, %v1709_v47 }
 0x257   : > { %v2117_v62 = vadd.f32 %v2067_v51, %v1905_v19  ;;  %v1473_v0 = vpop.permute.xlu1 %1472 }
 0x258   : > { %v1514_v58 = vmul.f32 %v7127_v50, %v1473_v0 }
 0x259   : > { %v2187_v11 = vadd.f32 %v2155_v30, %v2117_v62 }
 0x25a   : > { %v1710_v6 = vadd.f32 %v1678_v20, %v1514_v58 }
 0x25b   : > { %v1478_v48 = vpop.permute.xlu1 %1477  ;;  %v2225_v60 = vadd.f32 %v7466_v33, %v2187_v11 }
 0x25c   : > { %v1906_v23 = vadd.f32 %v1874_v37, %v1710_v6  ;;  %v1515_v59 = vmul.f32 %v7127_v50, %v1478_v48 }
 0x25d   : > { %v2257_v34 = vmax.f32 %v2225_v60, 0.0 }
 0x25e   : > { %v2118_v13 = vadd.f32 %v2071_v14, %v1906_v23 }
 0x25f   : > { %5728 = vmatmul.mubr.msk.f32.gmra.mrb[10].mxu1 %vm2269_vm2, %v2257_v34 }
 0x260   : > { %v2188_v16 = vadd.f32 %v2156_v61, %v2118_v13  ;;  %v1642_v57 = vpop.permute.xlu1 %1641 }
 0x261   : > { %v1679_v2 = vmul.f32 %v7332_v15, %v1642_v57  ;;  %v1273_v15 = vsel %vm1271_vm3, %v1272_v53, %v1270_v41 }
 0x262   : > { %v2226_v54 = vadd.f32 %v7466_v33, %v2188_v16  ;;  %v2157_v38 = vmul.f32 %v7797_v25, %v1273_v15  ;;  %v2623_v25 = vld [vmem:[%s9342_s9] sm:$0xff] }
 0x263   : > { %v1711_v35 = vadd.f32 %v1679_v2, %v1515_v59 }
 0x264   : > { %v2258_v63 = vmax.f32 %v2226_v54, 0.0 }
 0x265   : > { %v1838_v28 = vpop.permute.xlu1 %1837 }
 0x266   : > { %v1875_v8 = vmul.f32 %v7077_v17, %v1838_v28  ;;  %5730 = vmatprep.mubr.msk.f32.mxu1 %vm2269_vm2, %v2258_v63  ;;  %v2628_v17 = vld [vmem:[%s9344_s11 + $0x8] sm:$0xff] }
 0x267   : > { %v5971_v52 = vpack.c.bf16 %v2628_v17, %v2627_v10 }
 0x268   : > { %v1907_v46 = vadd.f32 %v1875_v8, %v1711_v35 }
 0x269   : > { %5972 = vmatprep.subr.bf16.mxu0 %v5971_v52 }
 0x26a   : > { %v2119_v42 = vadd.f32 %v2071_v14, %v1907_v46 }
 0x26c   : > { %v2189_v29 = vadd.f32 %v2157_v38, %v2119_v42 }
 0x26e   : > { %v2227_v50 = vadd.f32 %v7466_v33, %v2189_v29  ;;  %v2624_v33 = vld [vmem:[%s9342_s9 + $0x8] sm:$0xff] }
 0x26f   : > { %v5963_v40 = vpack.c.bf16 %v2624_v33, %v2623_v25 }
 0x270   : > { %v2259_v51 = vmax.f32 %v2227_v50, 0.0 }
 0x271   : > { %5964 = vmatprep.subr.bf16.mxu1 %v5963_v40 }
 0x272   : > { %5731 = vmatmul.mubr.msk.f32.gmra.mrb[12].mxu1 %vm2269_vm2, %v2259_v51 }
 0x2b8   : > { %v5687_v56 = vpop.f32.mrb[0].mxu0 }
 0x2b9   : > { %v2438_v31 = vadd.f32 %v5687_v56, %v7922_v32  ;;  %v2432_v1 = vpop.f32.mrb[1].mxu0 }
 0x2ba   : > { %v2433_v24 = vadd.f32 %v7922_v32, %v2432_v1 }
 0x2bb   : > { %v7928_v7 = vmax.f32 %v2438_v31, 0.0 }
 0x2bc   : > { %v7926_v36 = vmax.f32 %v2433_v24, 0.0 }
 0x2be   : > { %5737 = vmatprep.mubr.msk.f32.mxu1 %vm2269_vm2, %v7926_v36  ;;  %5841 = vmatprep.mubr.msk.f32.mxu0 %vm2269_vm2, %v7926_v36 }
 0x2bf   : > { %5738 = vmatmul.mubr.msk.f32.vlgmr.msra.gmra.mrb[14].mxu1 %vm2269_vm2, %v7928_v7  ;;  %5842 = vmatmul.mubr.msk.f32.vlgmr.msra.gmra.mrb[18].mxu0 %vm2269_vm2, %v7928_v7  ;;  %v5690_v12 = vpop.f32.mrb[2].mxu0 }
 0x2c0   : > { %v2448_v18 = vadd.f32 %v5690_v12, %v7922_v32  ;;  %v2442_v4 = vpop.f32.mrb[3].mxu0  ;;  %5974 = vmatpush3.bf16.msra.mxu0 %v5971_v52  ;;  %5966 = vmatpush3.bf16.msra.mxu1 %v5963_v40 }
 0x2c1   : > { %v2443_v5 = vadd.f32 %v7922_v32, %v2442_v4 }
 0x2c2   : > { %v7942_v3 = vmax.f32 %v2448_v18, 0.0 }
 0x2c3   : > { %v7940_v49 = vmax.f32 %v2443_v5, 0.0  ;;  %v5693_v39 = vpop.f32.mrb[4].mxu0 }
 0x2c4   : > { %v2458_v47 = vadd.f32 %v5693_v39, %v7922_v32  ;;  %v2452_v45 = vpop.f32.mrb[5].mxu0 }
 0x2c5   : > { %v2453_v9 = vadd.f32 %v7922_v32, %v2452_v45  ;;  %5740 = vmatprep.mubr.msk.f32.mxu1 %vm2269_vm2, %v7940_v49  ;;  %5844 = vmatprep.mubr.msk.f32.mxu0 %vm2269_vm2, %v7940_v49 }
 0x2c6   : > { %5741 = vmatmul.mubr.msk.f32.gmra.mrb[16].mxu1 %vm2269_vm2, %v7942_v3  ;;  %5845 = vmatmul.mubr.msk.f32.gmra.mrb[20].mxu0 %vm2269_vm2, %v7942_v3  ;;  %v7956_v44 = vmax.f32 %v2458_v47, 0.0 }
 0x2c7   : > { %v7954_v19 = vmax.f32 %v2453_v9, 0.0  ;;  %v5696_v43 = vpop.f32.mrb[6].mxu0 }
 0x2c8   : > { %v2468_v30 = vadd.f32 %v5696_v43, %v7922_v32  ;;  %v2462_v62 = vpop.f32.mrb[7].mxu0 }
 0x2c9   : > { %v2463_v0 = vadd.f32 %v7922_v32, %v2462_v62  ;;  %5743 = vmatprep.mubr.msk.f32.mxu1 %vm2269_vm2, %v7954_v19  ;;  %5847 = vmatprep.mubr.msk.f32.mxu0 %vm2269_vm2, %v7954_v19 }
 0x2ca   : > { %5744 = vmatmul.mubr.msk.f32.gmra.mrb[18].mxu1 %vm2269_vm2, %v7956_v44  ;;  %5848 = vmatmul.mubr.msk.f32.gmra.mrb[22].mxu0 %vm2269_vm2, %v7956_v44  ;;  %v7970_v58 = vmax.f32 %v2468_v30, 0.0 }
 0x2cb   : > { %v7968_v22 = vmax.f32 %v2463_v0, 0.0  ;;  %v5699_v20 = vpop.f32.mrb[8].mxu0 }
 0x2cc   : > { %9612 = vst [vmem:[#allocation16_spill] sm:$0xff] %v7970_v58  ;;  %v2478_v37 = vadd.f32 %v5699_v20, %v7922_v32  ;;  %v2472_v27 = vpop.f32.mrb[9].mxu0 }
 0x2cd   : > { %9611 = vst [vmem:[#allocation14_spill] sm:$0xff] %v7968_v22  ;;  %v2473_v11 = vadd.f32 %v7922_v32, %v2472_v27  ;;  %5746 = vmatprep.mubr.msk.f32.mxu1 %vm2269_vm2, %v7968_v22  ;;  %5850 = vmatprep.mubr.msk.f32.mxu0 %vm2269_vm2, %v7968_v22 }
 0x2ce   : > { %5747 = vmatmul.mubr.msk.f32.gmra.mrb[20].mxu1 %vm2269_vm2, %v7970_v58  ;;  %5851 = vmatmul.mubr.msk.f32.gmra.mrb[24].mxu0 %vm2269_vm2, %v7970_v58  ;;  %v7984_v48 = vmax.f32 %v2478_v37, 0.0 }
 0x2cf   : > { %v7982_v6 = vmax.f32 %v2473_v11, 0.0 }
 0x2d0   : > { %v5702_v26 = vpop.f32.mrb[10].mxu0  ;;  %9614 = vst [vmem:[#allocation62_spill] sm:$0xff] %v7984_v48 }
 0x2d1   : > { %9613 = vst [vmem:[#allocation39_spill] sm:$0xff] %v7982_v6  ;;  %v2488_v60 = vadd.f32 %v5702_v26, %v7922_v32  ;;  %v2482_v23 = vpop.f32.mrb[11].mxu0  ;;  %5749 = vmatprep.mubr.msk.f32.mxu1 %vm2269_vm2, %v7982_v6  ;;  %5853 = vmatprep.mubr.msk.f32.mxu0 %vm2269_vm2, %v7982_v6 }
 0x2d2   : > { %v2483_v14 = vadd.f32 %v7922_v32, %v2482_v23  ;;  %5750 = vmatmul.mubr.msk.f32.gmra.mrb[22].mxu1 %vm2269_vm2, %v7984_v48  ;;  %5854 = vmatmul.mubr.msk.f32.gmra.mrb[26].mxu0 %vm2269_vm2, %v7984_v48 }
 0x2d3   : > { %v7998_v61 = vmax.f32 %v2488_v60, 0.0 }
 0x2d4   : > { %v7996_v55 = vmax.f32 %v2483_v14, 0.0  ;;  %v5705_v34 = vpop.f32.mrb[12].mxu0 }
 0x2d5   : > { %9616 = vst [vmem:[#allocation17_spill] sm:$0xff] %v7998_v61  ;;  %v2498_v13 = vadd.f32 %v5705_v34, %v7922_v32  ;;  %v2492_v21 = vpop.f32.mrb[13].mxu0 }
 0x2d6   : > { %9615 = vst [vmem:[#allocation43_spill] sm:$0xff] %v7996_v55  ;;  %v2493_v16 = vadd.f32 %v7922_v32, %v2492_v21  ;;  %5752 = vmatprep.mubr.msk.f32.mxu1 %vm2269_vm2, %v7996_v55  ;;  %5856 = vmatprep.mubr.msk.f32.mxu0 %vm2269_vm2, %v7996_v55 }
 0x2d7   : > { %5753 = vmatmul.mubr.msk.f32.gmra.mrb[24].mxu1 %vm2269_vm2, %v7998_v61  ;;  %5857 = vmatmul.mubr.msk.f32.gmra.mrb[28].mxu0 %vm2269_vm2, %v7998_v61  ;;  %v8012_v2 = vmax.f32 %v2498_v13, 0.0 }
 0x2d8   : > { %v8010_v57 = vmax.f32 %v2493_v16, 0.0 }
 0x2d9   : > { %9618 = vst [vmem:[#allocation46_spill] sm:$0xff] %v8012_v2 }
 0x2da   : > { %9617 = vst [vmem:[#allocation21_spill] sm:$0xff] %v8010_v57  ;;  %5755 = vmatprep.mubr.msk.f32.mxu1 %vm2269_vm2, %v8010_v57  ;;  %5859 = vmatprep.mubr.msk.f32.mxu0 %vm2269_vm2, %v8010_v57 }
 0x2db   : > { %5756 = vmatmul.mubr.msk.f32.gmra.mrb[26].mxu1 %vm2269_vm2, %v8012_v2  ;;  %5860 = vmatmul.mubr.msk.f32.gmra.mrb[30].mxu0 %vm2269_vm2, %v8012_v2 }
 0x2de   : > { %v5708_v54 = vpop.f32.mrb[14].mxu0 }
 0x2df   : > { %v2508_v59 = vadd.f32 %v5708_v54, %v7922_v32  ;;  %v2502_v41 = vpop.f32.mrb[15].mxu0 }
 0x2e0   : > { %v2503_v63 = vadd.f32 %v7922_v32, %v2502_v41 }
 0x2e1   : > { %v8026_v35 = vmax.f32 %v2508_v59, 0.0 }
 0x2e2   : > { %v8024_v53 = vmax.f32 %v2503_v63, 0.0  ;;  %v5711_v28 = vpop.f32.mrb[16].mxu0 }
 0x2e3   : > { %9620 = vst [vmem:[#allocation50_spill] sm:$0xff] %v8026_v35  ;;  %v2518_v8 = vadd.f32 %v5711_v28, %v7922_v32  ;;  %v2512_v15 = vpop.f32.mrb[17].mxu0 }
 0x2e4   : > { %9619 = vst [vmem:[#allocation26_spill] sm:$0xff] %v8024_v53  ;;  %v2513_v46 = vadd.f32 %v7922_v32, %v2512_v15  ;;  %5758 = vmatprep.mubr.msk.f32.mxu1 %vm2269_vm2, %v8024_v53  ;;  %5862 = vmatprep.mubr.msk.f32.mxu0 %vm2269_vm2, %v8024_v53  ;;  %v8166_v15 = vld [vmem:[%s8140_s27 + $0x10] sm:$0xff] }
 0x2e5   : > { %5759 = vmatmul.mubr.msk.f32.gmra.mrb[28].mxu1 %vm2269_vm2, %v8026_v35  ;;  %5863 = vmatmul.mubr.msk.f32.gmra.mrb[32].mxu0 %vm2269_vm2, %v8026_v35  ;;  %v8040_v42 = vmax.f32 %v2518_v8, 0.0  ;;  %v8148_v8 = vld [vmem:[%s8140_s27] sm:$0xff] }
 0x2e6   : > { %v8038_v38 = vmax.f32 %v2513_v46, 0.0  ;;  %v8177_v46 = vld [vmem:[%s8140_s27 + $0x18] sm:$0xff] }
 0x2e7   : > { %9622 = vst [vmem:[#allocation56_spill] sm:$0xff] %v8040_v42 }
 0x2e8   : > { %9621 = vst [vmem:[#allocation42_spill] sm:$0xff] %v8038_v38  ;;  %5761 = vmatprep.mubr.msk.f32.mxu1 %vm2269_vm2, %v8038_v38  ;;  %5865 = vmatprep.mubr.msk.f32.mxu0 %vm2269_vm2, %v8038_v38  ;;  %v5714_v29 = vpop.f32.mrb[0].mxu1 }
 0x2e9   : > { %5762 = vmatmul.mubr.msk.f32.gmra.mrb[30].mxu1 %vm2269_vm2, %v8040_v42  ;;  %5866 = vmatmul.mubr.msk.f32.gmra.mrb[34].mxu0 %vm2269_vm2, %v8040_v42  ;;  %v2528_v50 = vadd.f32 %v5714_v29, %v7922_v32  ;;  %v2522_v51 = vpop.f32.mrb[1].mxu1  ;;  %v8180_v29 = vld [vmem:[%s8140_s27 + $0x20] sm:$0xff] }
 0x2ea   : > { %v2523_v10 = vadd.f32 %v7922_v32, %v2522_v51  ;;  %v8194_v51 = vld [vmem:[%s8140_s27 + $0x30] sm:$0xff] }
 0x2eb   : > { %v8054_v25 = vmax.f32 %v2528_v50, 0.0  ;;  %v8191_v50 = vld [vmem:[%s8140_s27 + $0x28] sm:$0xff] }
 0x2ec   : > { %v8052_v17 = vmax.f32 %v2523_v10, 0.0  ;;  %v5717_v52 = vpop.f32.mrb[2].mxu1  ;;  %v8205_v10 = vld [vmem:[%s8140_s27 + $0x38] sm:$0xff] }
 0x2ed   : > { %9624 = vst [vmem:[#allocation36_spill] sm:$0xff] %v8054_v25  ;;  %v2538_v33 = vadd.f32 %v5717_v52, %v7922_v32  ;;  %v2532_v40 = vpop.f32.mrb[3].mxu1  ;;  %v681_v52 = vld [vmem:[%s8140_s27 + $0x40] sm:$0xff] }
 0x2ee   : > { %9623 = vst [vmem:[#allocation34_spill] sm:$0xff] %v8052_v17  ;;  %v2533_v56 = vadd.f32 %v7922_v32, %v2532_v40  ;;  %5764 = vmatprep.mubr.msk.f32.mxu1 %vm2269_vm2, %v8052_v17  ;;  %5868 = vmatprep.mubr.msk.f32.mxu0 %vm2269_vm2, %v8052_v17  ;;  %v683_v40 = vld [vmem:[%s8140_s27 + $0x50] sm:$0xff] }
 0x2ef   : > { %5765 = vmatmul.mubr.msk.f32.gmra.mrb[32].mxu1 %vm2269_vm2, %v8054_v25  ;;  %5869 = vmatmul.mubr.msk.f32.gmra.mrb[36].mxu0 %vm2269_vm2, %v8054_v25  ;;  %v8068_v1 = vmax.f32 %v2538_v33, 0.0  ;;  %v682_v33 = vld [vmem:[%s8140_s27 + $0x48] sm:$0xff] }
 0x2f0   : > { %v8066_v31 = vmax.f32 %v2533_v56, 0.0  ;;  %v684_v56 = vld [vmem:[%s8140_s27 + $0x58] sm:$0xff] }
 0x2f1   : > { %9626 = vst [vmem:[#allocation44_spill] sm:$0xff] %v8068_v1 }
 0x2f2   : > { %9625 = vst [vmem:[#allocation3_spill] sm:$0xff] %v8066_v31  ;;  %5767 = vmatprep.mubr.msk.f32.mxu1 %vm2269_vm2, %v8066_v31  ;;  %5871 = vmatprep.mubr.msk.f32.mxu0 %vm2269_vm2, %v8066_v31 }
 0x2f3   : > { %5768 = vmatmul.mubr.msk.f32.gmra.mrb[34].mxu1 %vm2269_vm2, %v8068_v1  ;;  %5872 = vmatmul.mubr.msk.f32.gmra.mrb[38].mxu0 %vm2269_vm2, %v8068_v1 }
 0x2f9   : > { %v5720_v24 = vpop.f32.mrb[4].mxu1 }
 0x2fa   : > { %v2548_v12 = vadd.f32 %v5720_v24, %v7922_v32  ;;  %v2542_v18 = vpop.f32.mrb[5].mxu1  ;;  %v685_v24 = vld [vmem:[%s8140_s27 + $0x60] sm:$0xff] }
 0x2fb   : > { %v2543_v4 = vadd.f32 %v7922_v32, %v2542_v18  ;;  %v687_v18 = vld [vmem:[%s8140_s27 + $0x70] sm:$0xff] }
 0x2fc   : > { %v8082_v39 = vmax.f32 %v2548_v12, 0.0  ;;  %v686_v12 = vld [vmem:[%s8140_s27 + $0x68] sm:$0xff] }
 0x2fd   : > { %v8080_v5 = vmax.f32 %v2543_v4, 0.0  ;;  %v688_v4 = vld [vmem:[%s8140_s27 + $0x78] sm:$0xff] }
 0x2fe   : > { %9628 = vst [vmem:[#allocation5_spill] sm:$0xff] %v8082_v39 }
 0x2ff   : > { %9627 = vst [vmem:[#allocation4_spill] sm:$0xff] %v8080_v5  ;;  %5770 = vmatprep.mubr.msk.f32.mxu1 %vm2269_vm2, %v8080_v5  ;;  %5874 = vmatprep.mubr.msk.f32.mxu0 %vm2269_vm2, %v8080_v5 }
 0x300   : > { %5771 = vmatmul.mubr.msk.f32.gmra.mrb[36].mxu1 %vm2269_vm2, %v8082_v39  ;;  %5875 = vmatmul.mubr.msk.f32.gmra.mrb[40].mxu0 %vm2269_vm2, %v8082_v39 }
 0x30c   : > { %v5723_v47 = vpop.f32.mrb[6].mxu1 }
 0x30d   : > { %v2558_v45 = vadd.f32 %v5723_v47, %v7922_v32  ;;  %v2552_v9 = vpop.f32.mrb[7].mxu1  ;;  %v689_v47 = vld [vmem:[%s8140_s27 + $0x80] sm:$0xff] }
 0x30e   : > { %v2553_v43 = vadd.f32 %v7922_v32, %v2552_v9  ;;  %v691_v9 = vld [vmem:[%s8140_s27 + $0x90] sm:$0xff] }
 0x30f   : > { %v8096_v62 = vmax.f32 %v2558_v45, 0.0  ;;  %v690_v45 = vld [vmem:[%s8140_s27 + $0x88] sm:$0xff] }
 0x310   : > { %v8094_v30 = vmax.f32 %v2553_v43, 0.0  ;;  %v692_v43 = vld [vmem:[%s8140_s27 + $0x98] sm:$0xff] }
 0x311   : > { %9630 = vst [vmem:[#allocation48_spill] sm:$0xff] %v8096_v62 }
 0x312   : > { %9629 = vst [vmem:[#allocation19_spill] sm:$0xff] %v8094_v30  ;;  %5773 = vmatprep.mubr.msk.f32.mxu1 %vm2269_vm2, %v8094_v30  ;;  %5877 = vmatprep.mubr.msk.f32.mxu0 %vm2269_vm2, %v8094_v30 }
 0x313   : > { %5774 = vmatmul.mubr.msk.f32.gmra.mrb[38].mxu1 %vm2269_vm2, %v8096_v62  ;;  %5878 = vmatmul.mubr.msk.f32.gmra.mrb[42].mxu0 %vm2269_vm2, %v8096_v62 }
 0x31f   : > { %v5726_v0 = vpop.f32.mrb[8].mxu1 }
 0x320   : > { %v2568_v20 = vadd.f32 %v5726_v0, %v7922_v32  ;;  %v2562_v37 = vpop.f32.mrb[9].mxu1  ;;  %v693_v0 = vld [vmem:[%s8140_s27 + $0xa0] sm:$0xff] }
 0x321   : > { %v2563_v27 = vadd.f32 %v7922_v32, %v2562_v37  ;;  %v695_v37 = vld [vmem:[%s8140_s27 + $0xb0] sm:$0xff] }
 0x322   : > { %v8110_v26 = vmax.f32 %v2568_v20, 0.0  ;;  %v694_v20 = vld [vmem:[%s8140_s27 + $0xa8] sm:$0xff] }
 0x323   : > { %v8108_v11 = vmax.f32 %v2563_v27, 0.0  ;;  %v696_v27 = vld [vmem:[%s8140_s27 + $0xb8] sm:$0xff] }
 0x324   : > { %9632 = vst [vmem:[#allocation20_spill] sm:$0xff] %v8110_v26 }
 0x325   : > { %9631 = vst [vmem:[#allocation63_spill] sm:$0xff] %v8108_v11  ;;  %5776 = vmatprep.mubr.msk.f32.mxu1 %vm2269_vm2, %v8108_v11  ;;  %5880 = vmatprep.mubr.msk.f32.mxu0 %vm2269_vm2, %v8108_v11 }
 0x326   : > { %5777 = vmatmul.mubr.msk.f32.gmra.mrb[40].mxu1 %vm2269_vm2, %v8110_v26  ;;  %5881 = vmatmul.mubr.msk.f32.gmra.mrb[44].mxu0 %vm2269_vm2, %v8110_v26 }
 0x332   : > { %v5729_v60 = vpop.f32.mrb[10].mxu1 }
 0x333   : > { %v2578_v23 = vadd.f32 %v5729_v60, %v7922_v32  ;;  %v2572_v14 = vpop.f32.mrb[11].mxu1  ;;  %v697_v60 = vld [vmem:[%s8140_s27 + $0xc0] sm:$0xff] }
 0x334   : > { %v2573_v34 = vadd.f32 %v7922_v32, %v2572_v14  ;;  %v699_v14 = vld [vmem:[%s8140_s27 + $0xd0] sm:$0xff] }
 0x335   : > { %v8124_v21 = vmax.f32 %v2578_v23, 0.0  ;;  %v698_v23 = vld [vmem:[%s8140_s27 + $0xc8] sm:$0xff] }
 0x336   : > { %v8122_v13 = vmax.f32 %v2573_v34, 0.0  ;;  %v700_v34 = vld [vmem:[%s8140_s27 + $0xd8] sm:$0xff] }
 0x337   : > { %9634 = vst [vmem:[#allocation65_spill] sm:$0xff] %v8124_v21 }
 0x338   : > { %9633 = vst [vmem:[#allocation52_spill] sm:$0xff] %v8122_v13  ;;  %5779 = vmatprep.mubr.msk.f32.mxu1 %vm2269_vm2, %v8122_v13  ;;  %5883 = vmatprep.mubr.msk.f32.mxu0 %vm2269_vm2, %v8122_v13 }
 0x339   : > { %5780 = vmatmul.mubr.msk.f32.gmra.mrb[42].mxu1 %vm2269_vm2, %v8124_v21  ;;  %5884 = vmatmul.mubr.msk.f32.gmra.mrb[46].mxu0 %vm2269_vm2, %v8124_v21 }
 0x345   : > { %v5732_v16 = vpop.f32.mrb[12].mxu1 }
 0x346   : > { %v2588_v54 = vadd.f32 %v5732_v16, %v7922_v32  ;;  %v2582_v59 = vpop.f32.mrb[13].mxu1  ;;  %v701_v16 = vld [vmem:[%s8140_s27 + $0xe0] sm:$0xff] }
 0x347   : > { %v2583_v41 = vadd.f32 %v7922_v32, %v2582_v59  ;;  %v8163_v32 = vld [vmem:[%s8140_s27 + $0x8] sm:$0xff]  ;;  %v703_v59 = vld [vmem:[%s8140_s27 + $0xf0] sm:$0xff] }
 0x348   : > { %v8145_v28 = vmax.f32 %v2588_v54, 0.0  ;;  %v702_v54 = vld [vmem:[%s8140_s27 + $0xe8] sm:$0xff] }
 0x349   : > { %v8143_v63 = vmax.f32 %v2583_v41, 0.0  ;;  %v704_v41 = vld [vmem:[%s8140_s27 + $0xf8] sm:$0xff] }
 0x34a   : > { %9637 = vst [vmem:[#allocation41_spill] sm:$0xff] %v8145_v28 }
 0x34b   : > { %9636 = vst [vmem:[#allocation23_spill] sm:$0xff] %v8143_v63  ;;  %5782 = vmatprep.mubr.msk.f32.mxu1 %vm2269_vm2, %v8143_v63  ;;  %5886 = vmatprep.mubr.msk.f32.mxu0 %vm2269_vm2, %v8143_v63 }
 0x34c   : > { %5783 = vmatmul.mubr.msk.f32.gmra.mrb[44].mxu1 %vm2269_vm2, %v8145_v28  ;;  %5887 = vmatmul.mubr.msk.f32.gmra.mrb[48].mxu0 %vm2269_vm2, %v8145_v28 }
 0x34d   : > { %5789 = vmatprep.mubr.msk.f32.mxu1 %vm2269_vm2, %v8148_v8  ;;  %5893 = vmatprep.mubr.msk.f32.mxu0 %vm2269_vm2, %v8148_v8 }
 0x350   : > { %5790 = vmatmul.mubr.msk.f32.vlgmr.msra.gmra.mrb[14].mxu1 %vm2269_vm2, %v8163_v32  ;;  %5894 = vmatmul.mubr.msk.f32.vlgmr.msra.gmra.mrb[18].mxu0 %vm2269_vm2, %v8163_v32 }
 0x351   : > { %5792 = vmatprep.mubr.msk.f32.mxu1 %vm2269_vm2, %v8166_v15  ;;  %5896 = vmatprep.mubr.msk.f32.mxu0 %vm2269_vm2, %v8166_v15 }
 0x354   : > { %5793 = vmatmul.mubr.msk.f32.gmra.mrb[16].mxu1 %vm2269_vm2, %v8177_v46  ;;  %5897 = vmatmul.mubr.msk.f32.gmra.mrb[20].mxu0 %vm2269_vm2, %v8177_v46 }
 0x355   : > { %5795 = vmatprep.mubr.msk.f32.mxu1 %vm2269_vm2, %v8180_v29  ;;  %5899 = vmatprep.mubr.msk.f32.mxu0 %vm2269_vm2, %v8180_v29 }
 0x358   : > { %5796 = vmatmul.mubr.msk.f32.gmra.mrb[18].mxu1 %vm2269_vm2, %v8191_v50  ;;  %5900 = vmatmul.mubr.msk.f32.gmra.mrb[22].mxu0 %vm2269_vm2, %v8191_v50 }
 0x359   : > { %5798 = vmatprep.mubr.msk.f32.mxu1 %vm2269_vm2, %v8194_v51  ;;  %5902 = vmatprep.mubr.msk.f32.mxu0 %vm2269_vm2, %v8194_v51 }
 0x35c   : > { %5799 = vmatmul.mubr.msk.f32.gmra.mrb[20].mxu1 %vm2269_vm2, %v8205_v10  ;;  %5903 = vmatmul.mubr.msk.f32.gmra.mrb[24].mxu0 %vm2269_vm2, %v8205_v10 }
 0x35d   : > { %5801 = vmatprep.mubr.msk.f32.mxu1 %vm2269_vm2, %v681_v52  ;;  %5905 = vmatprep.mubr.msk.f32.mxu0 %vm2269_vm2, %v681_v52 }
 0x360   : > { %5802 = vmatmul.mubr.msk.f32.gmra.mrb[22].mxu1 %vm2269_vm2, %v682_v33  ;;  %5906 = vmatmul.mubr.msk.f32.gmra.mrb[26].mxu0 %vm2269_vm2, %v682_v33 }
 0x361   : > { %5804 = vmatprep.mubr.msk.f32.mxu1 %vm2269_vm2, %v683_v40  ;;  %5908 = vmatprep.mubr.msk.f32.mxu0 %vm2269_vm2, %v683_v40 }
 0x364   : > { %5805 = vmatmul.mubr.msk.f32.gmra.mrb[24].mxu1 %vm2269_vm2, %v684_v56  ;;  %5909 = vmatmul.mubr.msk.f32.gmra.mrb[28].mxu0 %vm2269_vm2, %v684_v56 }
 0x365   : > { %5807 = vmatprep.mubr.msk.f32.mxu1 %vm2269_vm2, %v685_v24  ;;  %5911 = vmatprep.mubr.msk.f32.mxu0 %vm2269_vm2, %v685_v24 }
 0x368   : > { %5808 = vmatmul.mubr.msk.f32.gmra.mrb[26].mxu1 %vm2269_vm2, %v686_v12  ;;  %5912 = vmatmul.mubr.msk.f32.gmra.mrb[30].mxu0 %vm2269_vm2, %v686_v12 }
 0x369   : > { %5810 = vmatprep.mubr.msk.f32.mxu1 %vm2269_vm2, %v687_v18  ;;  %5914 = vmatprep.mubr.msk.f32.mxu0 %vm2269_vm2, %v687_v18 }
 0x36c   : > { %5811 = vmatmul.mubr.msk.f32.gmra.mrb[28].mxu1 %vm2269_vm2, %v688_v4  ;;  %5915 = vmatmul.mubr.msk.f32.gmra.mrb[32].mxu0 %vm2269_vm2, %v688_v4 }
 0x36d   : > { %5813 = vmatprep.mubr.msk.f32.mxu1 %vm2269_vm2, %v689_v47  ;;  %5917 = vmatprep.mubr.msk.f32.mxu0 %vm2269_vm2, %v689_v47 }
 0x370   : > { %5814 = vmatmul.mubr.msk.f32.gmra.mrb[30].mxu1 %vm2269_vm2, %v690_v45  ;;  %5918 = vmatmul.mubr.msk.f32.gmra.mrb[34].mxu0 %vm2269_vm2, %v690_v45 }
 0x371   : > { %5816 = vmatprep.mubr.msk.f32.mxu1 %vm2269_vm2, %v691_v9  ;;  %5920 = vmatprep.mubr.msk.f32.mxu0 %vm2269_vm2, %v691_v9 }
 0x374   : > { %5817 = vmatmul.mubr.msk.f32.gmra.mrb[32].mxu1 %vm2269_vm2, %v692_v43  ;;  %5921 = vmatmul.mubr.msk.f32.gmra.mrb[36].mxu0 %vm2269_vm2, %v692_v43 }
 0x375   : > { %5819 = vmatprep.mubr.msk.f32.mxu1 %vm2269_vm2, %v693_v0  ;;  %5923 = vmatprep.mubr.msk.f32.mxu0 %vm2269_vm2, %v693_v0 }
 0x378   : > { %5820 = vmatmul.mubr.msk.f32.gmra.mrb[34].mxu1 %vm2269_vm2, %v694_v20  ;;  %5924 = vmatmul.mubr.msk.f32.gmra.mrb[38].mxu0 %vm2269_vm2, %v694_v20 }
 0x379   : > { %5822 = vmatprep.mubr.msk.f32.mxu1 %vm2269_vm2, %v695_v37  ;;  %5926 = vmatprep.mubr.msk.f32.mxu0 %vm2269_vm2, %v695_v37 }
 0x37c   : > { %5823 = vmatmul.mubr.msk.f32.gmra.mrb[36].mxu1 %vm2269_vm2, %v696_v27  ;;  %5927 = vmatmul.mubr.msk.f32.gmra.mrb[40].mxu0 %vm2269_vm2, %v696_v27 }
 0x37d   : > { %5825 = vmatprep.mubr.msk.f32.mxu1 %vm2269_vm2, %v697_v60  ;;  %5929 = vmatprep.mubr.msk.f32.mxu0 %vm2269_vm2, %v697_v60 }
 0x380   : > { %5826 = vmatmul.mubr.msk.f32.gmra.mrb[38].mxu1 %vm2269_vm2, %v698_v23  ;;  %5930 = vmatmul.mubr.msk.f32.gmra.mrb[42].mxu0 %vm2269_vm2, %v698_v23 }
 0x381   : > { %5828 = vmatprep.mubr.msk.f32.mxu1 %vm2269_vm2, %v699_v14  ;;  %5932 = vmatprep.mubr.msk.f32.mxu0 %vm2269_vm2, %v699_v14 }
 0x384   : > { %5829 = vmatmul.mubr.msk.f32.gmra.mrb[40].mxu1 %vm2269_vm2, %v700_v34  ;;  %5933 = vmatmul.mubr.msk.f32.gmra.mrb[44].mxu0 %vm2269_vm2, %v700_v34 }
 0x385   : > { %5831 = vmatprep.mubr.msk.f32.mxu1 %vm2269_vm2, %v701_v16  ;;  %5935 = vmatprep.mubr.msk.f32.mxu0 %vm2269_vm2, %v701_v16 }
 0x388   : > { %5832 = vmatmul.mubr.msk.f32.gmra.mrb[42].mxu1 %vm2269_vm2, %v702_v54  ;;  %5936 = vmatmul.mubr.msk.f32.gmra.mrb[46].mxu0 %vm2269_vm2, %v702_v54 }
 0x389   : > { %5834 = vmatprep.mubr.msk.f32.mxu1 %vm2269_vm2, %v703_v59  ;;  %5938 = vmatprep.mubr.msk.f32.mxu0 %vm2269_vm2, %v703_v59 }
 0x38c   : > { %5835 = vmatmul.mubr.msk.f32.gmra.mrb[44].mxu1 %vm2269_vm2, %v704_v41  ;;  %5939 = vmatmul.mubr.msk.f32.gmra.mrb[48].mxu0 %vm2269_vm2, %v704_v41 }
 0x423   : > { %v8283_v52 = vpop.f32.mrb[14].mxu1  ;;  %v8285_v33 = vpop.f32.mrb[18].mxu0 }
 0x424   : > { %v3729_v40 = vsel %vm2269_vm2, %v8283_v52, -inf  ;;  %v4337_v56 = vsel %vm2269_vm2, %v8285_v33, -inf  ;;  %v8291_v24 = vpop.f32.mrb[15].mxu1  ;;  %v8293_v12 = vpop.f32.mrb[19].mxu0 }
 0x425   : > { %v3728_v18 = vsel %vm2269_vm2, %v8291_v24, -inf  ;;  %v4336_v4 = vsel %vm2269_vm2, %v8293_v12, -inf }
 0x426   : > { %v3730_v47 = vmax.f32 %v3728_v18, %v3729_v40  ;;  %v4338_v45 = vmax.f32 %v4336_v4, %v4337_v56 }
 0x427   : > { %v8299_v9 = vpop.f32.mrb[16].mxu1  ;;  %v8301_v43 = vpop.f32.mrb[20].mxu0 }
 0x428   : > { %v3731_v0 = vrot.slane %v3730_v47, 4  ;;  %v4339_v20 = vrot.slane %v4338_v45, 4  ;;  %v3738_v37 = vsel %vm2269_vm2, %v8299_v9, -inf  ;;  %v4346_v27 = vsel %vm2269_vm2, %v8301_v43, -inf  ;;  %v8307_v60 = vpop.f32.mrb[17].mxu1  ;;  %v8309_v23 = vpop.f32.mrb[21].mxu0 }
 0x429   : > { %v3737_v14 = vsel %vm2269_vm2, %v8307_v60, -inf  ;;  %v4345_v34 = vsel %vm2269_vm2, %v8309_v23, -inf }
 0x42a   : > { %v3732_v16 = vmax.f32 %v3730_v47, %v3731_v0  ;;  %v4340_v54 = vmax.f32 %v4338_v45, %v4339_v20  ;;  %v3739_v59 = vmax.f32 %v3737_v14, %v3738_v37  ;;  %v4347_v41 = vmax.f32 %v4345_v34, %v4346_v27 }
 0x42b   : > { %v8315_v40 = vpop.f32.mrb[18].mxu1  ;;  %v8317_v56 = vpop.f32.mrb[22].mxu0 }
 0x42c   : > { %v3733_v18 = vrot.slane %v3732_v16, 2  ;;  %v4341_v4 = vrot.slane %v4340_v54, 2  ;;  %v3740_v28 = vrot.slane %v3739_v59, 4  ;;  %v4348_v63 = vrot.slane %v4347_v41, 4  ;;  %v8319_v21 = vpop.f32.mrb[19].mxu1  ;;  %v8321_v13 = vpop.f32.mrb[23].mxu0 }
 0x42d   : > { %v3747_v26 = vsel %vm2269_vm2, %v8315_v40, -inf  ;;  %v4355_v47 = vsel %vm2269_vm2, %v8317_v56, -inf  ;;  %v3746_v45 = vsel %vm2269_vm2, %v8319_v21, -inf  ;;  %v4354_v0 = vsel %vm2269_vm2, %v8321_v13, -inf }
 0x42e   : > { %v3734_v20 = vmax.f32 %v3732_v16, %v3733_v18  ;;  %v4342_v37 = vmax.f32 %v4340_v54, %v4341_v4  ;;  %v3741_v27 = vmax.f32 %v3739_v59, %v3740_v28  ;;  %v4349_v14 = vmax.f32 %v4347_v41, %v4348_v63 }
 0x42f   : > { %v3748_v34 = vmax.f32 %v3746_v45, %v3747_v26  ;;  %v4356_v11 = vmax.f32 %v4354_v0, %v4355_v47  ;;  %v8331_v62 = vpop.f32.mrb[20].mxu1  ;;  %v8333_v30 = vpop.f32.mrb[24].mxu0 }
 0x430   : > { %v3735_v35 = vrot.slane %v3734_v20, 1  ;;  %v4343_v2 = vrot.slane %v4342_v37, 1  ;;  %v3742_v39 = vrot.slane %v3741_v27, 2  ;;  %v4350_v5 = vrot.slane %v4349_v14, 2  ;;  %v8335_v1 = vpop.f32.mrb[21].mxu1  ;;  %v8337_v31 = vpop.f32.mrb[25].mxu0 }
 0x431   : > { %v3749_v25 = vrot.slane %v3748_v34, 4  ;;  %v4357_v17 = vrot.slane %v4356_v11, 4  ;;  %v3756_v28 = vsel %vm2269_vm2, %v8331_v62, -inf  ;;  %v4364_v26 = vsel %vm2269_vm2, %v8333_v30, -inf }
 0x432   : > { %v3736_v63 = vmax.f32 %v3734_v20, %v3735_v35  ;;  %v4344_v16 = vmax.f32 %v4342_v37, %v4343_v2  ;;  %v3743_v54 = vmax.f32 %v3741_v27, %v3742_v39  ;;  %v4351_v59 = vmax.f32 %v4349_v14, %v4350_v5 }
 0x433   : > { %v3750_v41 = vmax.f32 %v3748_v34, %v3749_v25  ;;  %v4358_v18 = vmax.f32 %v4356_v11, %v4357_v17  ;;  %v3755_v4 = vsel %vm2269_vm2, %v8335_v1, -inf  ;;  %v4363_v47 = vsel %vm2269_vm2, %v8337_v31, -inf  ;;  %v8347_v45 = vpop.f32.mrb[22].mxu1  ;;  %v8349_v0 = vpop.f32.mrb[26].mxu0 }
 0x434   : > { %v3872_v42 = vsub.f32 %v8291_v24, %v3736_v63  ;;  %v3873_v38 = vsub.f32 %v8283_v52, %v3736_v63  ;;  %v4480_v2 = vsub.f32 %v8293_v12, %v4344_v16  ;;  %v4481_v35 = vsub.f32 %v8285_v33, %v4344_v16  ;;  %v8355_v25 = vpop.f32.mrb[23].mxu1  ;;  %v8357_v17 = vpop.f32.mrb[27].mxu0 }
 0x435   : > { %v3744_v5 = vrot.slane %v3743_v54, 1  ;;  %v4352_v39 = vrot.slane %v4351_v59, 1  ;;  %v3751_v11 = vrot.slane %v3750_v41, 2  ;;  %v4359_v20 = vrot.slane %v4358_v18, 2 }
 0x436   : > { %v3904_v37 = vmul.f32 1.442695, %v3872_v42  ;;  %v3906_v27 = vmul.f32 1.442695, %v3873_v38  ;;  %v4512_v14 = vmul.f32 1.442695, %v4480_v2  ;;  %v3757_v34 = vmax.f32 %v3755_v4, %v3756_v28 }
 0x437   : > { %v4514_v53 = vmul.f32 1.442695, %v4481_v35  ;;  %v3745_v24 = vmax.f32 %v3743_v54, %v3744_v5  ;;  %v4353_v57 = vmax.f32 %v4351_v59, %v4352_v39  ;;  %v3752_v52 = vmax.f32 %v3750_v41, %v3751_v11  ;;  %v8359_v63 = vpop.f32.mrb[24].mxu1  ;;  %v8361_v12 = vpop.f32.mrb[28].mxu0 }
 0x438   : > { %9638 = vst [vmem:[#allocation68_spill] sm:$0xff] %v8359_v63  ;;  %6181 = vpow2.f32 %v3904_v37  ;;  %v4360_v33 = vmax.f32 %v4358_v18, %v4359_v20  ;;  %v3758_v16 = vrot.slane %v3757_v34, 4  ;;  %v4365_v61 = vmax.f32 %v4363_v47, %v4364_v26  ;;  %v8363_v55 = vpop.f32.mrb[25].mxu1  ;;  %v8365_v48 = vpop.f32.mrb[29].mxu0 }
 0x439   : > { %6183 = vpow2.f32 %v3906_v27  ;;  %v3874_v38 = vsub.f32 %v8307_v60, %v3745_v24  ;;  %v3875_v42 = vsub.f32 %v8299_v9, %v3745_v24  ;;  %v4482_v28 = vsub.f32 %v8309_v23, %v4353_v57 }
 0x43a   : > { %6185 = vpow2.f32 %v4512_v14  ;;  %v4483_v54 = vsub.f32 %v8301_v43, %v4353_v57  ;;  %v3753_v59 = vrot.slane %v3752_v52, 1  ;;  %v4361_v41 = vrot.slane %v4360_v33, 1 }
 0x43b   : > { %6187 = vpow2.f32 %v4514_v53  ;;  %v3908_v18 = vmul.f32 1.442695, %v3874_v38  ;;  %v3910_v4 = vmul.f32 1.442695, %v3875_v42  ;;  %v4516_v26 = vmul.f32 1.442695, %v4482_v28 }
 0x43c   : > { %v4518_v47 = vmul.f32 1.442695, %v4483_v54  ;;  %v3754_v2 = vmax.f32 %v3752_v52, %v3753_v59  ;;  %v4362_v35 = vmax.f32 %v4360_v33, %v4361_v41  ;;  %v3759_v5 = vmax.f32 %v3757_v34, %v3758_v16  ;;  %v8371_v39 = vpop.f32.mrb[26].mxu1  ;;  %v8373_v60 = vpop.f32.mrb[30].mxu0 }
 0x43d   : > { %6189 = vpow2.f32 %v3908_v18  ;;  %v4366_v9 = vrot.slane %v4365_v61, 4  ;;  %v3765_v23 = vsel %vm2269_vm2, %v8347_v45, -inf  ;;  %v4373_v57 = vsel %vm2269_vm2, %v8349_v0, -inf  ;;  %v8379_v53 = vpop.f32.mrb[27].mxu1  ;;  %v8381_v43 = vpop.f32.mrb[31].mxu0 }
 0x43e   : > { %9639 = vst [vmem:[#allocation69_spill] sm:$0xff] %v8379_v53  ;;  %9640 = vst [vmem:[#allocation22_spill] sm:$0xff] %v8381_v43  ;;  %6191 = vpow2.f32 %v3910_v4  ;;  %v3876_v11 = vsub.f32 %v8319_v21, %v3754_v2  ;;  %v3877_v20 = vsub.f32 %v8315_v40, %v3754_v2  ;;  %v4484_v37 = vsub.f32 %v8321_v13, %v4362_v35 }
 0x43f   : > { %6193 = vpow2.f32 %v4516_v26  ;;  %v4485_v27 = vsub.f32 %v8317_v56, %v4362_v35  ;;  %v3760_v14 = vrot.slane %v3759_v5, 2  ;;  %v4367_v34 = vmax.f32 %v4365_v61, %v4366_v9  ;;  %v8387_v24 = vpop.f32.mrb[28].mxu1  ;;  %v8389_v52 = vpop.f32.mrb[32].mxu0 }
 0x440   : > { %9641 = vst [vmem:[#allocation6_spill] sm:$0xff] %v8387_v24  ;;  %9642 = vst [vmem:[#allocation54_spill] sm:$0xff] %v8389_v52  ;;  %6195 = vpow2.f32 %v4518_v47  ;;  %v3912_v33 = vmul.f32 1.442695, %v3876_v11  ;;  %v3914_v16 = vmul.f32 1.442695, %v3877_v20 }
 0x441   : > { %v4520_v38 = vmul.f32 1.442695, %v4484_v37  ;;  %v4522_v42 = vmul.f32 1.442695, %v4485_v27  ;;  %v3761_v28 = vmax.f32 %v3759_v5, %v3760_v14  ;;  %v4368_v21 = vrot.slane %v4367_v34, 2  ;;  %v8393_v13 = vpop.f32.mrb[29].mxu1 }
 0x442   : > { %v3764_v40 = vsel %vm2269_vm2, %v8355_v25, -inf  ;;  %9643 = vst [vmem:[#allocation66_spill] sm:$0xff] %v8393_v13  ;;  %v8395_v54 = vpop.f32.mrb[33].mxu0  ;;  %v8397_v56 = vpop.eup %6181  ;;  %6197 = vpow2.f32 %v3912_v33  ;;  %v4372_v59 = vsel %vm2269_vm2, %v8357_v17, -inf  ;;  %v8403_v41 = vsel %vm2269_vm2, %v8359_v63, -inf }
 0x443   : > { %9644 = vst [vmem:[#allocation24_spill] sm:$0xff] %v8395_v54  ;;  %v3766_v61 = vmax.f32 %v3764_v40, %v3765_v23  ;;  %v8405_v18 = vpop.eup %6183  ;;  %v3968_v4 = vsel %vm2269_vm2, %v8397_v56, 0.0  ;;  %6199 = vpow2.f32 %v3914_v16  ;;  %v3762_v26 = vrot.slane %v3761_v28, 1  ;;  %v8409_v2 = vpop.f32.mrb[30].mxu1 }
 0x444   : > { %v4369_v47 = vmax.f32 %v4367_v34, %v4368_v21  ;;  %9645 = vst [vmem:[#allocation59_spill] sm:$0xff] %v8409_v2  ;;  %v8411_v35 = vpop.f32.mrb[34].mxu0  ;;  %v8413_v5 = vpop.eup %6185  ;;  %v3969_v9 = vsel %vm2269_vm2, %v8405_v18, 0.0  ;;  %6201 = vpow2.f32 %v4520_v38  ;;  %v4374_v11 = vmax.f32 %v4372_v59, %v4373_v57 }
 0x445   : > { %9646 = vst [vmem:[#allocation60_spill] sm:$0xff] %v8411_v35  ;;  %v3767_v23 = vrot.slane %v3766_v61, 4  ;;  %v8417_v20 = vpop.f32.mrb[31].mxu1  ;;  %v8419_v37 = vpop.f32.mrb[35].mxu0  ;;  %v3970_v14 = vadd.f32 %v3969_v9, %v3968_v4  ;;  %v4576_v34 = vsel %vm2269_vm2, %v8413_v5, 0.0  ;;  %6203 = vpow2.f32 %v4522_v42 }
 0x446   : > { %9647 = vst [vmem:[#allocation73_spill] sm:$0xff] %v8417_v20  ;;  %9648 = vst [vmem:[#allocation76_spill] sm:$0xff] %v8419_v37  ;;  %v8421_v27 = vpop.eup %6187  ;;  %v3763_v33 = vmax.f32 %v3761_v28, %v3762_v26  ;;  %v4370_v21 = vrot.slane %v4369_v47, 1  ;;  %v4375_v38 = vrot.slane %v4374_v11, 4 }
 0x447   : > { %v4577_v16 = vsel %vm2269_vm2, %v8421_v27, 0.0  ;;  %v8427_v40 = vmax.f32 %v3766_v61, %v3767_v23  ;;  %v8429_v57 = vpop.eup %6189  ;;  %v3971_v59 = vrot.slane %v3970_v14, 4  ;;  %v8433_v9 = vpop.f32.mrb[32].mxu1 }
 0x448   : > { %v4578_v6 = vadd.f32 %v4577_v16, %v4576_v34  ;;  %v3878_v37 = vsub.f32 %v8335_v1, %v3763_v33  ;;  %v3879_v4 = vsub.f32 %v8331_v62, %v3763_v33  ;;  %9649 = vst [vmem:[#allocation25_spill] sm:$0xff] %v8433_v9  ;;  %v8435_v20 = vpop.f32.mrb[36].mxu0  ;;  %v8437_v42 = vpop.eup %6191  ;;  %v3977_v28 = vsel %vm2269_vm2, %v8429_v57, 0.0 }
 0x449   : > { %9650 = vst [vmem:[#allocation58_spill] sm:$0xff] %v8435_v20  ;;  %v4371_v61 = vmax.f32 %v4369_v47, %v4370_v21  ;;  %v3769_v26 = vrot.slane %v8427_v40, 2  ;;  %v8442_v23 = vmax.f32 %v4374_v11, %v4375_v38  ;;  %v8444_v35 = vpop.f32.mrb[33].mxu1  ;;  %v8446_v34 = vpop.f32.mrb[37].mxu0  ;;  %v3972_v62 = vadd.f32 %v3971_v59, %v3970_v14 }
 0x44a   : > { %9651 = vst [vmem:[#allocation47_spill] sm:$0xff] %v8444_v35  ;;  %9652 = vst [vmem:[#allocation71_spill] sm:$0xff] %v8446_v34  ;;  %v8448_v1 = vpop.eup %6193  ;;  %v4579_v33 = vrot.slane %v4578_v6, 4  ;;  %v3978_v16 = vsel %vm2269_vm2, %v8437_v42, 0.0  ;;  %v3916_v20 = vmul.f32 1.442695, %v3878_v37 }
 0x44b   : > { %v8452_v9 = vpop.eup %6195  ;;  %v3979_v2 = vadd.f32 %v3978_v16, %v3977_v28  ;;  %v4585_v47 = vsel %vm2269_vm2, %v8448_v1, 0.0  ;;  %v3918_v11 = vmul.f32 1.442695, %v3879_v4  ;;  %v4486_v21 = vsub.f32 %v8337_v31, %v4371_v61  ;;  %v8459_v14 = vpop.f32.mrb[34].mxu1 }
 0x44c   : > { %v3973_v38 = vrot.slane %v3972_v62, 2  ;;  %v4580_v35 = vadd.f32 %v4579_v33, %v4578_v6  ;;  %v4586_v34 = vsel %vm2269_vm2, %v8452_v9, 0.0  ;;  %6205 = vpow2.f32 %v3916_v20  ;;  %9653 = vst [vmem:[#allocation7_spill] sm:$0xff] %v8459_v14  ;;  %v8461_v59 = vpop.f32.mrb[38].mxu0  ;;  %v8463_v37 = vpop.eup %6197 }
 0x44d   : > { %9654 = vst [vmem:[#allocation45_spill] sm:$0xff] %v8461_v59  ;;  %v3980_v58 = vrot.slane %v3979_v2, 4  ;;  %v4587_v28 = vadd.f32 %v4586_v34, %v4585_v47  ;;  %6207 = vpow2.f32 %v3918_v11  ;;  %v4487_v16 = vsub.f32 %v8333_v30, %v4371_v61  ;;  %v8466_v4 = vpop.f32.mrb[35].mxu1  ;;  %v8468_v31 = vpop.f32.mrb[39].mxu0 }
 0x44e   : > { %9655 = vst [vmem:[#allocation28_spill] sm:$0xff] %v8466_v4  ;;  %9656 = vst [vmem:[#allocation27_spill] sm:$0xff] %v8468_v31  ;;  %v8470_v6 = vpop.eup %6199  ;;  %v3974_v33 = vadd.f32 %v3973_v38, %v3972_v62  ;;  %v4581_v22 = vrot.slane %v4580_v35, 2  ;;  %v3986_v20 = vsel %vm2269_vm2, %v8463_v37, 0.0  ;;  %v4524_v14 = vmul.f32 1.442695, %v4486_v21 }
 0x44f   : > { %v8474_v59 = vpop.eup %6201  ;;  %v3981_v63 = vadd.f32 %v3980_v58, %v3979_v2  ;;  %v4588_v54 = vrot.slane %v4587_v28, 4  ;;  %v3987_v34 = vsel %vm2269_vm2, %v8470_v6, 0.0  ;;  %v4526_v30 = vmul.f32 1.442695, %v4487_v16  ;;  %v8482_v38 = vpop.f32.mrb[36].mxu1 }
 0x450   : > { %v8478_v61 = vpop.eup %6203  ;;  %v3975_v47 = vrot.slane %v3974_v33, 1  ;;  %v4582_v11 = vadd.f32 %v4581_v22, %v4580_v35  ;;  %v3988_v31 = vadd.f32 %v3987_v34, %v3986_v20  ;;  %v4594_v62 = vsel %vm2269_vm2, %v8474_v59, 0.0  ;;  %9657 = vst [vmem:[#allocation51_spill] sm:$0xff] %v8482_v38  ;;  %v8484_v4 = vpop.f32.mrb[40].mxu0 }
 0x451   : > { %9658 = vst [vmem:[#allocation32_spill] sm:$0xff] %v8484_v4  ;;  %v3982_v21 = vrot.slane %v3981_v63, 2  ;;  %v4589_v13 = vadd.f32 %v4588_v54, %v4587_v28  ;;  %v4595_v58 = vsel %vm2269_vm2, %v8478_v61, 0.0  ;;  %6209 = vpow2.f32 %v4524_v14  ;;  %v8488_v2 = vpop.f32.mrb[37].mxu1  ;;  %v8490_v16 = vpop.f32.mrb[41].mxu0 }
 0x452   : > { %9659 = vst [vmem:[#allocation74_spill] sm:$0xff] %v8488_v2  ;;  %9660 = vst [vmem:[#allocation61_spill] sm:$0xff] %v8490_v16  ;;  %v3976_v52 = vadd.f32 %v3975_v47, %v3974_v33  ;;  %v4583_v22 = vrot.slane %v4582_v11, 1  ;;  %v3989_v35 = vrot.slane %v3988_v31, 4  ;;  %v4596_v20 = vadd.f32 %v4595_v58, %v4594_v62 }
 0x453   : > { %v3983_v34 = vadd.f32 %v3982_v21, %v3981_v63  ;;  %v4590_v24 = vrot.slane %v4589_v13, 2  ;;  %6211 = vpow2.f32 %v4526_v30  ;;  %v3770_v38 = vmax.f32 %v8427_v40, %v3769_v26  ;;  %v8493_v43 = vpop.f32.mrb[38].mxu1  ;;  %v8495_v14 = vpop.f32.mrb[42].mxu0 }
 0x454   : > { %6213 = vrcp.f32 %v3976_v52  ;;  %v4584_v4 = vadd.f32 %v4583_v22, %v4582_v11  ;;  %v3990_v54 = vadd.f32 %v3989_v35, %v3988_v31  ;;  %v4597_v28 = vrot.slane %v4596_v20, 4  ;;  %9661 = vst [vmem:[#allocation30_spill] sm:$0xff] %v8495_v14  ;;  %v8498_v47 = vpop.f32.mrb[39].mxu1 }
 0x455   : > { %v3984_v2 = vrot.slane %v3983_v34, 1  ;;  %v4591_v53 = vadd.f32 %v4590_v24, %v4589_v13  ;;  %v3771_v16 = vrot.slane %v3770_v38, 1  ;;  %v4377_v33 = vrot.slane %v8442_v23, 2  ;;  %9662 = vst [vmem:[#allocation64_spill] sm:$0xff] %v8498_v47 }
 0x456   : > { %v8500_v63 = vpop.eup %6205  ;;  %6215 = vrcp.f32 %v4584_v4  ;;  %v3991_v30 = vrot.slane %v3990_v54, 2  ;;  %v4598_v40 = vadd.f32 %v4597_v28, %v4596_v20  ;;  %v8504_v52 = vsel %vm2269_vm2, %v8361_v12, -inf  ;;  %v8514_v28 = vpop.f32.mrb[43].mxu0 }
 0x457   : > { %v8506_v26 = vpop.eup %6207  ;;  %v3985_v31 = vadd.f32 %v3984_v2, %v3983_v34  ;;  %v4592_v11 = vrot.slane %v4591_v53, 1  ;;  %v3995_v24 = vsel %vm2269_vm2, %v8500_v63, 0.0  ;;  %v3772_v13 = vmax.f32 %v3770_v38, %v3771_v16 }
 0x458   : > { %v3992_v62 = vadd.f32 %v3991_v30, %v3990_v54  ;;  %v4599_v21 = vrot.slane %v4598_v40, 2  ;;  %v3996_v58 = vsel %vm2269_vm2, %v8506_v26, 0.0  ;;  %v4378_v4 = vmax.f32 %v8442_v23, %v4377_v33 }
 0x459   : > { %6217 = vrcp.f32 %v3985_v31  ;;  %v4593_v22 = vadd.f32 %v4592_v11, %v4591_v53  ;;  %v3997_v35 = vadd.f32 %v3996_v58, %v3995_v24  ;;  %v3880_v20 = vsub.f32 %v8355_v25, %v3772_v13 }
 0x45a   : > { %v3993_v2 = vrot.slane %v3992_v62, 1  ;;  %v4600_v34 = vadd.f32 %v4599_v21, %v4598_v40  ;;  %v3881_v47 = vsub.f32 %v8347_v45, %v3772_v13  ;;  %v4379_v14 = vrot.slane %v4378_v4, 1 }
 0x45b   : > { %v8517_v38 = vpop.eup %6209  ;;  %6219 = vrcp.f32 %v4593_v22  ;;  %v3998_v16 = vrot.slane %v3997_v35, 4  ;;  %v3920_v54 = vmul.f32 1.442695, %v3880_v20  ;;  %v3773_v23 = vsel %vm2269_vm2, %v8363_v55, -inf }
 0x45c   : > { %v3994_v33 = vadd.f32 %v3993_v2, %v3992_v62  ;;  %v4601_v53 = vrot.slane %v4600_v34, 1  ;;  %v4603_v25 = vsel %vm2269_vm2, %v8517_v38, 0.0  ;;  %v3922_v30 = vmul.f32 1.442695, %v3881_v47 }
 0x45d   : > { %v8523_v31 = vpop.eup %6211  ;;  %v3999_v40 = vadd.f32 %v3998_v16, %v3997_v35  ;;  %6221 = vpow2.f32 %v3920_v54  ;;  %v8525_v45 = vmax.f32 %v4378_v4, %v4379_v14  ;;  %v8528_v11 = vmax.f32 %v3773_v23, %v8403_v41 }
 0x45e   : > { %v6214_v24 = vpop.eup %6213  ;;  %6223 = vrcp.f32 %v3994_v33  ;;  %v4602_v13 = vadd.f32 %v4601_v53, %v4600_v34  ;;  %v4604_v62 = vsel %vm2269_vm2, %v8523_v31, 0.0  ;;  %v8534_v21 = vsel %vm2269_vm2, %v8365_v48, -inf }
 0x45f   : > { %v4128_v47 = vmul.f32 %v6214_v24, %v8397_v56  ;;  %v4129_v58 = vmul.f32 %v6214_v24, %v8405_v18  ;;  %v4000_v22 = vrot.slane %v3999_v40, 2  ;;  %v4605_v14 = vadd.f32 %v4604_v62, %v4603_v25 }
 0x460   : > { %v6216_v4 = vpop.eup %6215  ;;  %6225 = vrcp.f32 %v4602_v13  ;;  %v4488_v41 = vsub.f32 %v8357_v17, %v8525_v45  ;;  %v4489_v35 = vsub.f32 %v8349_v0, %v8525_v45  ;;  %v3776_v20 = vrot.slane %v8528_v11, 4 }
 0x461   : > { %v4160_v2 = vmul.f32 %v4128_v47, %v8148_v8  ;;  %v4161_v34 = vmul.f32 %v4129_v58, %v8163_v32  ;;  %v4736_v56 = vmul.f32 %v6216_v4, %v8413_v5  ;;  %v4737_v18 = vmul.f32 %v6216_v4, %v8421_v27 }
 0x462   : > { %v4001_v16 = vadd.f32 %v4000_v22, %v3999_v40  ;;  %v4606_v54 = vrot.slane %v4605_v14, 4  ;;  %6227 = vpow2.f32 %v3922_v30  ;;  %v4528_v23 = vmul.f32 1.442695, %v4488_v41 }
 0x463   : > { %v6218_v33 = vpop.eup %6217  ;;  %v4192_v17 = vsel %vm2269_vm2, %v4160_v2, 0.0  ;;  %v4193_v53 = vsel %vm2269_vm2, %v4161_v34, 0.0  ;;  %v4768_v25 = vmul.f32 %v4736_v56, %v7926_v36  ;;  %v4769_v24 = vmul.f32 %v4737_v18, %v7928_v7  ;;  %v8561_v2 = vpop.f32.mrb[40].mxu1 }
 0x464   : > { %v4194_v8 = vadd.f32 %v4193_v53, %v4192_v17  ;;  %v4130_v32 = vmul.f32 %v6218_v33, %v8429_v57  ;;  %v4131_v5 = vmul.f32 %v6218_v33, %v8437_v42  ;;  %v4002_v13 = vrot.slane %v4001_v16, 1  ;;  %v8563_v34 = vpop.f32.mrb[44].mxu0 }
 0x465   : > { %v6220_v27 = vpop.eup %6219  ;;  %v4800_v40 = vsel %vm2269_vm2, %v4768_v25, 0.0  ;;  %v4801_v30 = vsel %vm2269_vm2, %v4769_v24, 0.0  ;;  %v4607_v62 = vadd.f32 %v4606_v54, %v4605_v14  ;;  %6229 = vpow2.f32 %v4528_v23  ;;  %v8573_v24 = vpop.f32.mrb[45].mxu0 }
 0x466   : > { %v4195_v47 = vrot.slane %v4194_v8, 4  ;;  %v4802_v58 = vadd.f32 %v4801_v30, %v4800_v40  ;;  %v4162_v22 = vmul.f32 %v4130_v32, %v8166_v15  ;;  %v4163_v36 = vmul.f32 %v4131_v5, %v8177_v46  ;;  %v8567_v46 = vpop.f32.mrb[41].mxu1 }
 0x467   : > { %v8557_v7 = vpop.eup %6221  ;;  %v4738_v57 = vmul.f32 %v6220_v27, %v8448_v1  ;;  %v4739_v42 = vmul.f32 %v6220_v27, %v8452_v9  ;;  %v4003_v4 = vadd.f32 %v4002_v13, %v4001_v16  ;;  %v4608_v41 = vrot.slane %v4607_v62, 2 }
 0x468   : > { %v6224_v14 = vpop.eup %6223  ;;  %v4196_v56 = vadd.f32 %v4195_v47, %v4194_v8  ;;  %v4803_v18 = vrot.slane %v4802_v58, 4  ;;  %v4201_v54 = vsel %vm2269_vm2, %v4162_v22, 0.0  ;;  %v4202_v15 = vsel %vm2269_vm2, %v4163_v36, 0.0 }
 0x469   : > { %v4203_v23 = vadd.f32 %v4202_v15, %v4201_v54  ;;  %v4770_v1 = vmul.f32 %v4738_v57, %v7940_v49  ;;  %v4771_v9 = vmul.f32 %v4739_v42, %v7942_v3  ;;  %v4132_v16 = vmul.f32 %v6224_v14, %v8463_v37 }
 0x46a   : > { %v6226_v33 = vpop.eup %6225  ;;  %v4197_v17 = vrot.slane %v4196_v56, 2  ;;  %v4804_v53 = vadd.f32 %v4803_v18, %v4802_v58  ;;  %v4133_v25 = vmul.f32 %v6224_v14, %v8470_v6  ;;  %6231 = vrcp.f32 %v4003_v4 }
 0x46b   : > { %v4204_v8 = vrot.slane %v4203_v23, 4  ;;  %v4809_v32 = vsel %vm2269_vm2, %v4770_v1, 0.0  ;;  %v4810_v5 = vsel %vm2269_vm2, %v4771_v9, 0.0  ;;  %v4164_v13 = vmul.f32 %v4132_v16, %v8180_v29 }
 0x46c   : > { %v8578_v49 = vpop.eup %6227  ;;  %v8580_v3 = vadd.f32 %v4197_v17, %v4196_v56  ;;  %v4805_v37 = vrot.slane %v4804_v53, 2  ;;  %v4811_v27 = vadd.f32 %v4810_v5, %v4809_v32  ;;  %v4165_v40 = vmul.f32 %v4133_v25, %v8191_v50 }
 0x46d   : > { %v4205_v30 = vadd.f32 %v4204_v8, %v4203_v23  ;;  %v4210_v6 = vsel %vm2269_vm2, %v4164_v13, 0.0  ;;  %v4740_v47 = vmul.f32 %v6226_v33, %v8474_v59  ;;  %v4741_v58 = vmul.f32 %v6226_v33, %v8478_v61 }
 0x46e   : > { %9663 = vst [vmem:[#allocation10_spill] sm:$0xff] %v8580_v3  ;;  %v8586_v22 = vadd.f32 %v4805_v37, %v4804_v53  ;;  %v4812_v36 = vrot.slane %v4811_v27, 4  ;;  %v4211_v29 = vsel %vm2269_vm2, %v4165_v40, 0.0  ;;  %v4609_v57 = vadd.f32 %v4608_v41, %v4607_v62 }
 0x46f   : > { %v8589_v42 = vpop.eup %6229  ;;  %v4206_v4 = vrot.slane %v4205_v30, 2  ;;  %v4212_v14 = vadd.f32 %v4211_v29, %v4210_v6  ;;  %v4772_v56 = vmul.f32 %v4740_v47, %v7954_v19  ;;  %v4773_v50 = vmul.f32 %v4741_v58, %v7956_v44 }
 0x470   : > { %v4813_v18 = vadd.f32 %v4812_v36, %v4811_v27  ;;  %v4610_v54 = vrot.slane %v4609_v57, 1  ;;  %v4004_v59 = vsel %vm2269_vm2, %v8557_v7, 0.0  ;;  %v4005_v61 = vsel %vm2269_vm2, %v8578_v49, 0.0 }
 0x471   : > { %v8597_v15 = vadd.f32 %v4206_v4, %v4205_v30  ;;  %v4213_v23 = vrot.slane %v4212_v14, 4  ;;  %v4818_v62 = vsel %vm2269_vm2, %v4772_v56, 0.0  ;;  %v4819_v41 = vsel %vm2269_vm2, %v4773_v50, 0.0  ;;  %v8637_v4 = vpop.f32.mrb[46].mxu0 }
 0x472   : > { %v4814_v1 = vrot.slane %v4813_v18, 2  ;;  %v4820_v9 = vadd.f32 %v4819_v41, %v4818_v62  ;;  %v4611_v19 = vadd.f32 %v4610_v54, %v4609_v57  ;;  %v4006_v16 = vadd.f32 %v4005_v61, %v4004_v59  ;;  %v8635_v57 = vpop.f32.mrb[42].mxu1  ;;  %v9668_v61 = vld [vmem:[#allocation6_spill] sm:$0xff] }
 0x473   : > { %9664 = vst [vmem:[#allocation72_spill] sm:$0xff] %v8597_v15  ;;  %v8601_v44 = vadd.f32 %v4213_v23, %v4212_v14  ;;  %v4530_v33 = vmul.f32 1.442695, %v4489_v35  ;;  %v8608_v17 = vsel %vm2269_vm2, %v8589_v42, 0.0  ;;  %v3777_v53 = vmax.f32 %v8528_v11, %v3776_v20  ;;  %v9669_v62 = vld [vmem:[#allocation54_spill] sm:$0xff] }
 0x474   : > { %v6232_v25 = vpop.eup %6231  ;;  %v8613_v8 = vadd.f32 %v4814_v1, %v4813_v18  ;;  %v4821_v32 = vrot.slane %v4820_v9, 4  ;;  %6233 = vrcp.f32 %v4611_v19  ;;  %v4007_v5 = vrot.slane %v4006_v16, 4  ;;  %v8643_v1 = vpop.f32.mrb[43].mxu1 }
 0x475   : > { %9665 = vst [vmem:[#allocation33_spill] sm:$0xff] %v8601_v44  ;;  %v4134_v37 = vmul.f32 %v6232_v25, %v8500_v63  ;;  %v4135_v0 = vmul.f32 %v6232_v25, %v8506_v26  ;;  %6235 = vpow2.f32 %v4530_v33  ;;  %v3778_v27 = vrot.slane %v3777_v53, 2 }
 0x476   : > { %v8618_v45 = vadd.f32 %v4821_v32, %v4820_v9  ;;  %v4008_v35 = vadd.f32 %v4007_v5, %v4006_v16  ;;  %v4383_v11 = vmax.f32 %v8534_v21, %v8504_v52  ;;  %v3783_v30 = vsel %vm2269_vm2, %v8371_v39, -inf  ;;  %v9666_v52 = vld [vmem:[#allocation69_spill] sm:$0xff]  ;;  %v9667_v21 = vld [vmem:[#allocation22_spill] sm:$0xff] }
 0x477   : > { %v4166_v20 = vmul.f32 %v4134_v37, %v8194_v51  ;;  %v4167_v40 = vmul.f32 %v4135_v0, %v8205_v10  ;;  %v4391_v63 = vsel %vm2269_vm2, %v8373_v60, -inf  ;;  %v3779_v47 = vmax.f32 %v3777_v53, %v3778_v27  ;;  %v9670_v32 = vld [vmem:[#allocation66_spill] sm:$0xff]  ;;  %v9671_v37 = vld [vmem:[#allocation24_spill] sm:$0xff] }
 0x478   : > { %v4009_v6 = vrot.slane %v4008_v35, 2  ;;  %v4384_v58 = vrot.slane %v4383_v11, 4  ;;  %v3782_v51 = vsel %vm2269_vm2, %v9666_v52, -inf  ;;  %v4390_v10 = vsel %vm2269_vm2, %v9667_v21, -inf }
 0x479   : > { %v4219_v36 = vsel %vm2269_vm2, %v4166_v20, 0.0  ;;  %v4220_v29 = vsel %vm2269_vm2, %v4167_v40, 0.0  ;;  %v3780_v50 = vrot.slane %v3779_v47, 1  ;;  %v3784_v54 = vmax.f32 %v3782_v51, %v3783_v30  ;;  %v9673_v40 = vld [vmem:[#allocation68_spill] sm:$0xff] }
 0x47a   : > { %v4221_v14 = vadd.f32 %v4220_v29, %v4219_v36  ;;  %v4010_v56 = vadd.f32 %v4009_v6, %v4008_v35  ;;  %v4385_v18 = vmax.f32 %v4383_v11, %v4384_v58  ;;  %v4392_v59 = vmax.f32 %v4390_v10, %v4391_v63  ;;  %v8657_v29 = vpop.f32.mrb[47].mxu0 }
 0x47b   : > { %v3792_v23 = vsel %vm2269_vm2, %v9668_v61, -inf  ;;  %v4400_v41 = vsel %vm2269_vm2, %v9669_v62, -inf  ;;  %v3781_v16 = vmax.f32 %v3779_v47, %v3780_v50  ;;  %v3785_v53 = vrot.slane %v3784_v54, 4  ;;  %v9675_v50 = vld [vmem:[#allocation16_spill] sm:$0xff] }
 0x47c   : > { %v4222_v9 = vrot.slane %v4221_v14, 4  ;;  %v4011_v19 = vrot.slane %v4010_v56, 1  ;;  %v4386_v33 = vrot.slane %v4385_v18, 2  ;;  %v4393_v25 = vrot.slane %v4392_v59, 4 }
 0x47d   : > { %v3791_v5 = vsel %vm2269_vm2, %v9670_v32, -inf  ;;  %v4399_v0 = vsel %vm2269_vm2, %v9671_v37, -inf  ;;  %v3882_v20 = vsub.f32 %v8363_v55, %v3781_v16  ;;  %v3883_v30 = vsub.f32 %v9673_v40, %v3781_v16 }
 0x47e   : > { %v6234_v35 = vpop.eup %6233  ;;  %v8649_v27 = vadd.f32 %v4222_v9, %v4221_v14  ;;  %v4012_v11 = vadd.f32 %v4011_v19, %v4010_v56  ;;  %v4387_v58 = vmax.f32 %v4385_v18, %v4386_v33  ;;  %v3786_v36 = vmax.f32 %v3784_v54, %v3785_v53  ;;  %v9674_v56 = vld [vmem:[#allocation14_spill] sm:$0xff] }
 0x47f   : > { %v8653_v63 = vpop.eup %6235  ;;  %v4742_v6 = vmul.f32 %v6234_v35, %v8517_v38  ;;  %v4743_v47 = vmul.f32 %v6234_v35, %v8523_v31  ;;  %v3924_v10 = vmul.f32 1.442695, %v3882_v20  ;;  %v3926_v14 = vmul.f32 1.442695, %v3883_v30 }
 0x480   : > { %9672 = vst [vmem:[#allocation49_spill] sm:$0xff] %v8649_v27  ;;  %6237 = vrcp.f32 %v4012_v11  ;;  %v4613_v51 = vsel %vm2269_vm2, %v8653_v63, 0.0  ;;  %v4388_v16 = vrot.slane %v4387_v58, 1  ;;  %v3787_v38 = vrot.slane %v3786_v36, 2 }
 0x481   : > { %v4774_v55 = vmul.f32 %v4742_v6, %v9674_v56  ;;  %v4775_v9 = vmul.f32 %v4743_v47, %v9675_v50  ;;  %v4614_v19 = vadd.f32 %v4613_v51, %v8608_v17  ;;  %6239 = vpow2.f32 %v3924_v10  ;;  %v9676_v56 = vld [vmem:[#allocation59_spill] sm:$0xff] }
 0x482   : > { %v4394_v31 = vmax.f32 %v4392_v59, %v4393_v25  ;;  %v3793_v18 = vmax.f32 %v3791_v5, %v3792_v23  ;;  %6241 = vpow2.f32 %v3926_v14  ;;  %v4389_v11 = vmax.f32 %v4387_v58, %v4388_v16 }
 0x483   : > { %v4827_v54 = vsel %vm2269_vm2, %v4774_v55, 0.0  ;;  %v4828_v33 = vsel %vm2269_vm2, %v4775_v9, 0.0  ;;  %v4615_v53 = vrot.slane %v4614_v19, 4  ;;  %v3788_v20 = vmax.f32 %v3786_v36, %v3787_v38 }
 0x484   : > { %v4829_v35 = vadd.f32 %v4828_v33, %v4827_v54  ;;  %v4395_v40 = vrot.slane %v4394_v31, 2  ;;  %v3794_v6 = vrot.slane %v3793_v18, 4  ;;  %v4401_v47 = vmax.f32 %v4399_v0, %v4400_v41  ;;  %v8674_v41 = vpop.f32.mrb[48].mxu0 }
 0x485   : > { %v4616_v30 = vadd.f32 %v4615_v53, %v4614_v19  ;;  %v3801_v17 = vsel %vm2269_vm2, %v9676_v56, -inf  ;;  %v4490_v59 = vsub.f32 %v8365_v48, %v4389_v11  ;;  %v4491_v23 = vsub.f32 %v8361_v12, %v4389_v11  ;;  %v8672_v19 = vpop.f32.mrb[44].mxu1 }
 0x486   : > { %v4830_v51 = vrot.slane %v4829_v35, 4  ;;  %v3789_v25 = vrot.slane %v3788_v20, 1  ;;  %v4396_v10 = vmax.f32 %v4394_v31, %v4395_v40  ;;  %v3795_v55 = vmax.f32 %v3793_v18, %v3794_v6  ;;  %v9677_v18 = vld [vmem:[#allocation60_spill] sm:$0xff] }
 0x487   : > { %v4617_v5 = vrot.slane %v4616_v30, 2  ;;  %v4402_v14 = vrot.slane %v4401_v47, 4  ;;  %v4532_v58 = vmul.f32 1.442695, %v4490_v59  ;;  %v4534_v36 = vmul.f32 1.442695, %v4491_v23 }
 0x488   : > { %v8670_v50 = vadd.f32 %v4830_v51, %v4829_v35  ;;  %v3790_v9 = vmax.f32 %v3788_v20, %v3789_v25  ;;  %v4397_v16 = vrot.slane %v4396_v10, 1  ;;  %v3796_v38 = vrot.slane %v3795_v55, 2  ;;  %v8682_v20 = vpop.f32.mrb[45].mxu1  ;;  %v8686_v51 = vpop.f32.mrb[49].mxu0  ;;  %v6374_v59 = vld [vmem:[%s8140_s27 + $0x40] sm:$0xff]  ;;  %v6375_v25 = vld [vmem:[%s8140_s27 + $0x48] sm:$0xff] }
 0x489   : > { %v4618_v0 = vadd.f32 %v4617_v5, %v4616_v30  ;;  %v4403_v48 = vmax.f32 %v4401_v47, %v4402_v14  ;;  %6243 = vpow2.f32 %v4532_v58  ;;  %v4409_v33 = vsel %vm2269_vm2, %v9677_v18, -inf }
 0x48a   : > { %v6238_v54 = vpop.eup %6237  ;;  %v3884_v12 = vsub.f32 %v9666_v52, %v3790_v9  ;;  %v3885_v31 = vsub.f32 %v8371_v39, %v3790_v9  ;;  %6245 = vpow2.f32 %v4534_v36  ;;  %v4398_v47 = vmax.f32 %v4396_v10, %v4397_v16 }
 0x48b   : > { %v4136_v53 = vmul.f32 %v6238_v54, %v8557_v7  ;;  %v4137_v35 = vmul.f32 %v6238_v54, %v8578_v49  ;;  %v4619_v11 = vrot.slane %v4618_v0, 1  ;;  %v8684_v40 = vpop.eup %6239  ;;  %v3797_v52 = vmax.f32 %v3795_v55, %v3796_v38 }
 0x48c   : > { %v3928_v30 = vmul.f32 1.442695, %v3884_v12  ;;  %v3930_v6 = vmul.f32 1.442695, %v3885_v31  ;;  %v8688_v39 = vpop.eup %6241  ;;  %v4013_v49 = vsel %vm2269_vm2, %v8684_v40, 0.0  ;;  %v4492_v58 = vsub.f32 %v9667_v21, %v4398_v47 }
 0x48d   : > { %v4168_v23 = vmul.f32 %v6374_v59, %v4136_v53  ;;  %v4169_v7 = vmul.f32 %v6375_v25, %v4137_v35  ;;  %v4620_v5 = vadd.f32 %v4619_v11, %v4618_v0  ;;  %v4014_v14 = vsel %vm2269_vm2, %v8688_v39, 0.0  ;;  %v9679_v53 = vld [vmem:[#allocation73_spill] sm:$0xff] }
 0x48e   : > { %6247 = vpow2.f32 %v3928_v30  ;;  %v4493_v10 = vsub.f32 %v8373_v60, %v4398_v47  ;;  %v4015_v9 = vadd.f32 %v4014_v14, %v4013_v49  ;;  %v4536_v0 = vmul.f32 1.442695, %v4492_v58  ;;  %v9680_v60 = vld [vmem:[#allocation76_spill] sm:$0xff]  ;;  %v9681_v30 = vld [vmem:[#allocation25_spill] sm:$0xff]  ;;  %v9682_v49 = vld [vmem:[#allocation58_spill] sm:$0xff] }
 0x48f   : > { %v4228_v55 = vsel %vm2269_vm2, %v4168_v23, 0.0  ;;  %v4229_v36 = vsel %vm2269_vm2, %v4169_v7, 0.0  ;;  %6249 = vrcp.f32 %v4620_v5  ;;  %v3798_v12 = vrot.slane %v3797_v52, 1  ;;  %v9683_v58 = vld [vmem:[#allocation47_spill] sm:$0xff] }
 0x490   : > { %v8700_v16 = vadd.f32 %v4229_v36, %v4228_v55  ;;  %6251 = vpow2.f32 %v3930_v6  ;;  %v4538_v38 = vmul.f32 1.442695, %v4493_v10  ;;  %v4016_v54 = vrot.slane %v4015_v9, 4 }
 0x491   : > { %v4404_v31 = vrot.slane %v4403_v48, 2  ;;  %v3800_v35 = vsel %vm2269_vm2, %v9679_v53, -inf  ;;  %6253 = vpow2.f32 %v4536_v0  ;;  %v4408_v11 = vsel %vm2269_vm2, %v9680_v60, -inf }
 0x492   : > { %9678 = vst [vmem:[#allocation35_spill] sm:$0xff] %v8700_v16  ;;  %v3802_v21 = vmax.f32 %v3800_v35, %v3801_v17  ;;  %v3810_v47 = vsel %vm2269_vm2, %v9681_v30, -inf  ;;  %v4017_v59 = vadd.f32 %v4016_v54, %v4015_v9  ;;  %6255 = vpow2.f32 %v4538_v38 }
 0x493   : > { %v3799_v23 = vmax.f32 %v3797_v52, %v3798_v12  ;;  %v4405_v6 = vmax.f32 %v4403_v48, %v4404_v31  ;;  %v8708_v25 = vpop.eup %6243  ;;  %v4410_v5 = vmax.f32 %v4408_v11, %v4409_v33  ;;  %v8712_v14 = vsel %vm2269_vm2, %v9682_v49, -inf }
 0x494   : > { %v3803_v7 = vrot.slane %v3802_v21, 4  ;;  %v3809_v17 = vsel %vm2269_vm2, %v9683_v58, -inf  ;;  %v8716_v10 = vpop.eup %6245  ;;  %v4018_v55 = vrot.slane %v4017_v59, 2  ;;  %v4621_v36 = vsel %vm2269_vm2, %v8708_v25, 0.0 }
 0x495   : > { %v3886_v52 = vsub.f32 %v9670_v32, %v3799_v23  ;;  %v3887_v48 = vsub.f32 %v9668_v61, %v3799_v23  ;;  %v4622_v33 = vsel %vm2269_vm2, %v8716_v10, 0.0  ;;  %v4406_v9 = vrot.slane %v4405_v6, 1 }
 0x496   : > { %v3804_v0 = vmax.f32 %v3802_v21, %v3803_v7  ;;  %v4411_v38 = vrot.slane %v4410_v5, 4  ;;  %v4019_v54 = vadd.f32 %v4018_v55, %v4017_v59  ;;  %v4623_v12 = vadd.f32 %v4622_v33, %v4621_v36  ;;  %v9684_v36 = vld [vmem:[#allocation39_spill] sm:$0xff] }
 0x497   : > { %v3932_v31 = vmul.f32 1.442695, %v3886_v52  ;;  %v3934_v35 = vmul.f32 1.442695, %v3887_v48  ;;  %v4407_v13 = vmax.f32 %v4405_v6, %v4406_v9  ;;  %v3811_v27 = vmax.f32 %v3809_v17, %v3810_v47  ;;  %v9685_v48 = vld [vmem:[#allocation62_spill] sm:$0xff] }
 0x498   : > { %v8724_v11 = vpop.eup %6247  ;;  %v3805_v26 = vrot.slane %v3804_v0, 2  ;;  %v4412_v16 = vmax.f32 %v4410_v5, %v4411_v38  ;;  %v4020_v32 = vrot.slane %v4019_v54, 1  ;;  %v4624_v15 = vrot.slane %v4623_v12, 4 }
 0x499   : > { %v6250_v44 = vpop.eup %6249  ;;  %v4022_v61 = vsel %vm2269_vm2, %v8724_v11, 0.0  ;;  %6257 = vpow2.f32 %v3932_v31  ;;  %v4494_v7 = vsub.f32 %v9671_v37, %v4407_v13  ;;  %v4495_v5 = vsub.f32 %v9669_v62, %v4407_v13 }
 0x49a   : > { %v8728_v23 = vpop.eup %6251  ;;  %v4744_v21 = vmul.f32 %v6250_v44, %v8589_v42  ;;  %v4745_v59 = vmul.f32 %v6250_v44, %v8653_v63  ;;  %6259 = vpow2.f32 %v3934_v35  ;;  %v4021_v6 = vadd.f32 %v4020_v32, %v4019_v54 }
 0x49b   : > { %v4625_v55 = vadd.f32 %v4624_v15, %v4623_v12  ;;  %v4023_v47 = vsel %vm2269_vm2, %v8728_v23, 0.0  ;;  %v8736_v17 = vpop.eup %6253  ;;  %v4540_v42 = vmul.f32 1.442695, %v4494_v7  ;;  %v4542_v37 = vmul.f32 1.442695, %v4495_v5 }
 0x49c   : > { %v4776_v52 = vmul.f32 %v4744_v21, %v9684_v36  ;;  %v4777_v33 = vmul.f32 %v4745_v59, %v9685_v48  ;;  %v4024_v9 = vadd.f32 %v4023_v47, %v4022_v61  ;;  %v8740_v38 = vpop.eup %6255  ;;  %6261 = vrcp.f32 %v4021_v6  ;;  %v9686_v47 = vld [vmem:[#allocation71_spill] sm:$0xff] }
 0x49d   : > { %v4626_v44 = vrot.slane %v4625_v55, 2  ;;  %v4630_v15 = vsel %vm2269_vm2, %v8736_v17, 0.0  ;;  %v4631_v54 = vsel %vm2269_vm2, %v8740_v38, 0.0  ;;  %6263 = vpow2.f32 %v4540_v42 }
 0x49e   : > { %v4836_v63 = vsel %vm2269_vm2, %v4776_v52, 0.0  ;;  %v4837_v13 = vsel %vm2269_vm2, %v4777_v33, 0.0  ;;  %v4025_v62 = vrot.slane %v4024_v9, 4  ;;  %v4632_v35 = vadd.f32 %v4631_v54, %v4630_v15 }
 0x49f   : > { %v8748_v12 = vadd.f32 %v4837_v13, %v4836_v63  ;;  %v4627_v31 = vadd.f32 %v4626_v44, %v4625_v55  ;;  %6265 = vpow2.f32 %v4542_v37  ;;  %v3806_v61 = vmax.f32 %v3804_v0, %v3805_v26 }
 0x4a0   : > { %v4026_v32 = vadd.f32 %v4025_v62, %v4024_v9  ;;  %v4413_v21 = vrot.slane %v4412_v16, 2  ;;  %v4633_v7 = vrot.slane %v4632_v35, 4  ;;  %v3812_v6 = vrot.slane %v3811_v27, 4  ;;  %v9687_v9 = vld [vmem:[#allocation7_spill] sm:$0xff] }
 0x4a1   : > { %v4628_v59 = vrot.slane %v4627_v31, 1  ;;  %v4417_v5 = vsel %vm2269_vm2, %v9686_v47, -inf  ;;  %v3807_v52 = vrot.slane %v3806_v61, 1  ;;  %v8757_v26 = vsel %vm2269_vm2, %v9687_v9, -inf }
 0x4a2   : > { %v4027_v36 = vrot.slane %v4026_v32, 2  ;;  %v4414_v48 = vmax.f32 %v4412_v16, %v4413_v21  ;;  %v4419_v33 = vmax.f32 %v4417_v5, %v8712_v14  ;;  %v4634_v44 = vadd.f32 %v4633_v7, %v4632_v35 }
 0x4a3   : > { %v8753_v63 = vpop.eup %6257  ;;  %v4629_v55 = vadd.f32 %v4628_v59, %v4627_v31  ;;  %v3813_v42 = vmax.f32 %v3811_v27, %v3812_v6  ;;  %v3808_v13 = vmax.f32 %v3806_v61, %v3807_v52 }
 0x4a4   : > { %v8759_v0 = vpop.eup %6259  ;;  %v4028_v15 = vadd.f32 %v4027_v36, %v4026_v32  ;;  %v4031_v37 = vsel %vm2269_vm2, %v8753_v63, 0.0  ;;  %v4415_v62 = vrot.slane %v4414_v48, 1  ;;  %v4635_v16 = vrot.slane %v4634_v44, 2 }
 0x4a5   : > { %6267 = vrcp.f32 %v4629_v55  ;;  %v4032_v14 = vsel %vm2269_vm2, %v8759_v0, 0.0  ;;  %v3814_v54 = vrot.slane %v3813_v42, 2  ;;  %v3888_v35 = vsub.f32 %v9679_v53, %v3808_v13 }
 0x4a6   : > { %v4029_v31 = vrot.slane %v4028_v15, 1  ;;  %v4033_v27 = vadd.f32 %v4032_v14, %v4031_v37  ;;  %v3889_v21 = vsub.f32 %v9676_v56, %v3808_v13  ;;  %v6262_v59 = vpop.eup %6261  ;;  %v4636_v32 = vadd.f32 %v4635_v16, %v4634_v44  ;;  %v6376_v44 = vld [vmem:[%s8140_s27 + $0x50] sm:$0xff] }
 0x4a7   : > { %v4416_v7 = vmax.f32 %v4414_v48, %v4415_v62  ;;  %v3815_v6 = vmax.f32 %v3813_v42, %v3814_v54  ;;  %v4420_v61 = vrot.slane %v4419_v33, 4  ;;  %v4138_v5 = vmul.f32 %v6262_v59, %v8684_v40  ;;  %v8769_v3 = vpop.eup %6263  ;;  %v6377_v48 = vld [vmem:[%s8140_s27 + $0x58] sm:$0xff] }
 0x4a8   : > { %v4139_v36 = vmul.f32 %v6262_v59, %v8688_v39  ;;  %v4030_v52 = vadd.f32 %v4029_v31, %v4028_v15  ;;  %v4034_v55 = vrot.slane %v4033_v27, 4  ;;  %v4637_v37 = vrot.slane %v4636_v32, 1 }
 0x4a9   : > { %v3936_v14 = vmul.f32 1.442695, %v3888_v35  ;;  %v3938_v53 = vmul.f32 1.442695, %v3889_v21  ;;  %v4496_v56 = vsub.f32 %v9680_v60, %v4416_v7  ;;  %v8772_v13 = vpop.eup %6265  ;;  %v4170_v16 = vmul.f32 %v6376_v44, %v4138_v5  ;;  %v9691_v44 = vld [vmem:[#allocation28_spill] sm:$0xff] }
 0x4aa   : > { %v8776_v42 = vmul.f32 %v6377_v48, %v4139_v36  ;;  %6269 = vrcp.f32 %v4030_v52  ;;  %v4035_v40 = vadd.f32 %v4034_v55, %v4033_v27  ;;  %v4638_v62 = vadd.f32 %v4637_v37, %v4636_v32  ;;  %v9690_v36 = vld [vmem:[#allocation45_spill] sm:$0xff] }
 0x4ab   : > { %v4639_v39 = vsel %vm2269_vm2, %v8769_v3, 0.0  ;;  %v4640_v15 = vsel %vm2269_vm2, %v8772_v13, 0.0  ;;  %6271 = vpow2.f32 %v3936_v14  ;;  %v8783_v54 = vsel %vm2269_vm2, %v4170_v16, 0.0 }
 0x4ac   : > { %9688 = vst [vmem:[#allocation18_spill] sm:$0xff] %v8776_v42  ;;  %9689 = vst [vmem:[#allocation67_spill] sm:$0xff] %v8783_v54  ;;  %v4036_v60 = vrot.slane %v4035_v40, 2  ;;  %v4641_v31 = vadd.f32 %v4640_v15, %v4639_v39  ;;  %6273 = vpow2.f32 %v3938_v53  ;;  %v4497_v35 = vsub.f32 %v9677_v18, %v4416_v7  ;;  %v9693_v39 = vld [vmem:[#allocation17_spill] sm:$0xff] }
 0x4ad   : > { %6275 = vrcp.f32 %v4638_v62  ;;  %v4544_v21 = vmul.f32 1.442695, %v4496_v56  ;;  %v3816_v59 = vrot.slane %v3815_v6, 1  ;;  %v4421_v5 = vmax.f32 %v4419_v33, %v4420_v61  ;;  %v6379_v54 = vld [vmem:[%s8140_s27 + $0x70] sm:$0xff] }
 0x4ae   : > { %v4037_v27 = vadd.f32 %v4036_v60, %v4035_v40  ;;  %v4642_v32 = vrot.slane %v4641_v31, 4  ;;  %v4427_v52 = vsel %vm2269_vm2, %v9690_v36, -inf  ;;  %v4546_v37 = vmul.f32 1.442695, %v4497_v35  ;;  %v9692_v40 = vld [vmem:[#allocation43_spill] sm:$0xff] }
 0x4af   : > { %v6268_v55 = vpop.eup %6267  ;;  %6277 = vpow2.f32 %v4544_v21  ;;  %v3817_v14 = vmax.f32 %v3815_v6, %v3816_v59  ;;  %v3818_v16 = vsel %vm2269_vm2, %v9691_v44, -inf  ;;  %v4422_v61 = vrot.slane %v4421_v5, 2 }
 0x4b0   : > { %v4746_v53 = vmul.f32 %v6268_v55, %v8708_v25  ;;  %v4747_v48 = vmul.f32 %v6268_v55, %v8716_v10  ;;  %v4038_v18 = vrot.slane %v4037_v27, 1  ;;  %v4643_v7 = vadd.f32 %v4642_v32, %v4641_v31 }
 0x4b1   : > { %6279 = vpow2.f32 %v4546_v37  ;;  %v3890_v56 = vsub.f32 %v9683_v58, %v3817_v14  ;;  %v3891_v33 = vsub.f32 %v9681_v30, %v3817_v14  ;;  %v4423_v25 = vmax.f32 %v4421_v5, %v4422_v61  ;;  %v9696_v58 = vld [vmem:[#allocation27_spill] sm:$0xff] }
 0x4b2   : > { %v4778_v62 = vmul.f32 %v4746_v53, %v9692_v40  ;;  %v8796_v15 = vmul.f32 %v4747_v48, %v9693_v39  ;;  %v4039_v6 = vadd.f32 %v4038_v18, %v4037_v27  ;;  %v4644_v60 = vrot.slane %v4643_v7, 2  ;;  %v6378_v18 = vld [vmem:[%s8140_s27 + $0x60] sm:$0xff] }
 0x4b3   : > { %v3940_v35 = vmul.f32 1.442695, %v3890_v56  ;;  %v3942_v21 = vmul.f32 1.442695, %v3891_v33  ;;  %v3820_v10 = vmax.f32 %v3818_v16, %v8757_v26  ;;  %v4426_v32 = vsel %vm2269_vm2, %v9696_v58, -inf }
 0x4b4   : > { %9694 = vst [vmem:[#allocation37_spill] sm:$0xff] %v8796_v15  ;;  %v6270_v59 = vpop.eup %6269  ;;  %v8800_v31 = vsel %vm2269_vm2, %v4778_v62, 0.0  ;;  %6281 = vrcp.f32 %v4039_v6  ;;  %v4645_v30 = vadd.f32 %v4644_v60, %v4643_v7  ;;  %v4424_v5 = vrot.slane %v4423_v25, 1 }
 0x4b5   : > { %9695 = vst [vmem:[#allocation53_spill] sm:$0xff] %v8800_v31  ;;  %v8804_v55 = vpop.eup %6271  ;;  %v4140_v27 = vmul.f32 %v6270_v59, %v8724_v11  ;;  %v8808_v37 = vmul.f32 %v6270_v59, %v8728_v23  ;;  %6283 = vpow2.f32 %v3940_v35  ;;  %v3821_v53 = vrot.slane %v3820_v10, 4  ;;  %v9699_v59 = vld [vmem:[#allocation21_spill] sm:$0xff] }
 0x4b6   : > { %v8810_v26 = vpop.eup %6273  ;;  %v4646_v14 = vrot.slane %v4645_v30, 1  ;;  %v4040_v16 = vsel %vm2269_vm2, %v8804_v55, 0.0  ;;  %6285 = vpow2.f32 %v3942_v21  ;;  %v4425_v56 = vmax.f32 %v4423_v25, %v4424_v5 }
 0x4b7   : > { %9697 = vst [vmem:[#allocation29_spill] sm:$0xff] %v8808_v37  ;;  %v6276_v48 = vpop.eup %6275  ;;  %v8815_v7 = vmul.f32 %v6378_v18, %v4140_v27  ;;  %v4041_v11 = vsel %vm2269_vm2, %v8810_v26, 0.0  ;;  %v4428_v23 = vmax.f32 %v4426_v32, %v4427_v52  ;;  %v3822_v35 = vmax.f32 %v3820_v10, %v3821_v53 }
 0x4b8   : > { %v4748_v33 = vmul.f32 %v6276_v48, %v8736_v17  ;;  %v8821_v61 = vmul.f32 %v6276_v48, %v8740_v38  ;;  %v4647_v40 = vadd.f32 %v4646_v14, %v4645_v30  ;;  %v4042_v62 = vadd.f32 %v4041_v11, %v4040_v16  ;;  %v9702_v16 = vld [vmem:[#allocation32_spill] sm:$0xff] }
 0x4b9   : > { %9698 = vst [vmem:[#allocation8_spill] sm:$0xff] %v8815_v7  ;;  %v8823_v39 = vpop.eup %6277  ;;  %v4498_v6 = vsub.f32 %v9686_v47, %v4425_v56  ;;  %v4499_v60 = vsub.f32 %v9682_v49, %v4425_v56  ;;  %v4429_v21 = vrot.slane %v4428_v23, 4  ;;  %v3823_v32 = vrot.slane %v3822_v35, 2  ;;  %v9701_v47 = vld [vmem:[#allocation51_spill] sm:$0xff] }
 0x4ba   : > { %v8828_v27 = vmul.f32 %v4748_v33, %v9699_v59  ;;  %6287 = vrcp.f32 %v4647_v40  ;;  %v4043_v52 = vrot.slane %v4042_v62, 4  ;;  %v4648_v17 = vsel %vm2269_vm2, %v8823_v39, 0.0  ;;  %v9703_v40 = vld [vmem:[#allocation74_spill] sm:$0xff] }
 0x4bb   : > { %v8832_v38 = vpop.eup %6279  ;;  %v4548_v25 = vmul.f32 1.442695, %v4498_v6  ;;  %v4550_v30 = vmul.f32 1.442695, %v4499_v60  ;;  %v4430_v5 = vmax.f32 %v4428_v23, %v4429_v21  ;;  %v3828_v10 = vsel %vm2269_vm2, %v9701_v47, -inf }
 0x4bc   : > { %9700 = vst [vmem:[#allocation11_spill] sm:$0xff] %v8828_v27  ;;  %v4044_v14 = vadd.f32 %v4043_v52, %v4042_v62  ;;  %v4649_v49 = vsel %vm2269_vm2, %v8832_v38, 0.0  ;;  %v4436_v53 = vsel %vm2269_vm2, %v9702_v16, -inf  ;;  %v3824_v18 = vmax.f32 %v3822_v35, %v3823_v32  ;;  %v9704_v62 = vld [vmem:[#allocation61_spill] sm:$0xff] }
 0x4bd   : > { %v4650_v48 = vadd.f32 %v4649_v49, %v4648_v17  ;;  %6289 = vpow2.f32 %v4548_v25  ;;  %v4431_v11 = vrot.slane %v4430_v5, 2  ;;  %v3827_v23 = vsel %vm2269_vm2, %v9703_v40, -inf }
 0x4be   : > { %v6282_v56 = vpop.eup %6281  ;;  %v4045_v33 = vrot.slane %v4044_v14, 2  ;;  %6291 = vpow2.f32 %v4550_v30  ;;  %v4435_v6 = vsel %vm2269_vm2, %v9704_v62, -inf  ;;  %v3825_v35 = vrot.slane %v3824_v18, 1 }
 0x4bf   : > { %v8844_v60 = vpop.eup %6283  ;;  %v4142_v21 = vmul.f32 %v6282_v56, %v8753_v63  ;;  %v8848_v59 = vmul.f32 %v6282_v56, %v8759_v0  ;;  %v4651_v52 = vrot.slane %v4650_v48, 4  ;;  %v4432_v32 = vmax.f32 %v4430_v5, %v4431_v11 }
 0x4c0   : > { %v8850_v17 = vpop.eup %6285  ;;  %v4046_v25 = vadd.f32 %v4045_v33, %v4044_v14  ;;  %v4049_v30 = vsel %vm2269_vm2, %v8844_v60, 0.0  ;;  %v3829_v49 = vmax.f32 %v3827_v23, %v3828_v10  ;;  %v3826_v37 = vmax.f32 %v3824_v18, %v3825_v35 }
 0x4c1   : > { %9705 = vst [vmem:[#allocation12_spill] sm:$0xff] %v8848_v59  ;;  %v8855_v7 = vmul.f32 %v6379_v54, %v4142_v21  ;;  %v4652_v42 = vadd.f32 %v4651_v52, %v4650_v48  ;;  %v4050_v63 = vsel %vm2269_vm2, %v8850_v17, 0.0  ;;  %v4433_v59 = vrot.slane %v4432_v32, 1 }
 0x4c2   : > { %v4047_v0 = vrot.slane %v4046_v25, 1  ;;  %v4051_v56 = vadd.f32 %v4050_v63, %v4049_v30  ;;  %v3830_v27 = vrot.slane %v3829_v49, 4  ;;  %v3892_v14 = vsub.f32 %v9691_v44, %v3826_v37 }
 0x4c3   : > { %v4653_v31 = vrot.slane %v4652_v42, 2  ;;  %v3893_v33 = vsub.f32 %v9687_v9, %v3826_v37  ;;  %v4437_v15 = vmax.f32 %v4435_v6, %v4436_v53  ;;  %v4434_v54 = vmax.f32 %v4432_v32, %v4433_v59  ;;  %v9706_v9 = vld [vmem:[#allocation26_spill] sm:$0xff] }
 0x4c4   : > { %v6288_v5 = vpop.eup %6287  ;;  %v4048_v10 = vadd.f32 %v4047_v0, %v4046_v25  ;;  %v4052_v11 = vrot.slane %v4051_v56, 4  ;;  %v3831_v23 = vmax.f32 %v3829_v49, %v3830_v27  ;;  %v3944_v52 = vmul.f32 1.442695, %v3892_v14  ;;  %v9707_v14 = vld [vmem:[#allocation30_spill] sm:$0xff] }
 0x4c5   : > { %v4750_v48 = vmul.f32 %v6288_v5, %v8769_v3  ;;  %v8863_v21 = vmul.f32 %v6288_v5, %v8772_v13  ;;  %v4654_v18 = vadd.f32 %v4653_v31, %v4652_v42  ;;  %v3946_v30 = vmul.f32 1.442695, %v3893_v33 }
 0x4c6   : > { %6293 = vrcp.f32 %v4048_v10  ;;  %v4053_v35 = vadd.f32 %v4052_v11, %v4051_v56  ;;  %v4500_v44 = vsub.f32 %v9696_v58, %v4434_v54  ;;  %v4501_v27 = vsub.f32 %v9690_v36, %v4434_v54 }
 0x4c7   : > { %v8866_v63 = vpop.eup %6289  ;;  %v8869_v37 = vmul.f32 %v4750_v48, %v9706_v9  ;;  %v4655_v53 = vrot.slane %v4654_v18, 1  ;;  %6295 = vpow2.f32 %v3944_v52  ;;  %v3832_v25 = vrot.slane %v3831_v23, 2  ;;  %v9708_v48 = vld [vmem:[#allocation64_spill] sm:$0xff] }
 0x4c8   : > { %v8872_v3 = vpop.eup %6291  ;;  %v4054_v13 = vrot.slane %v4053_v35, 2  ;;  %v4657_v42 = vsel %vm2269_vm2, %v8866_v63, 0.0  ;;  %6297 = vpow2.f32 %v3946_v30  ;;  %v4552_v31 = vmul.f32 1.442695, %v4500_v44 }
 0x4c9   : > { %v4656_v6 = vadd.f32 %v4655_v53, %v4654_v18  ;;  %v4658_v58 = vsel %vm2269_vm2, %v8872_v3, 0.0  ;;  %v4554_v59 = vmul.f32 1.442695, %v4501_v27  ;;  %v4438_v0 = vrot.slane %v4437_v15, 4 }
 0x4ca   : > { %v4055_v32 = vadd.f32 %v4054_v13, %v4053_v35  ;;  %v4659_v49 = vadd.f32 %v4658_v58, %v4657_v42  ;;  %6299 = vpow2.f32 %v4552_v31  ;;  %v3833_v36 = vmax.f32 %v3831_v23, %v3832_v25 }
 0x4cb   : > { %6301 = vrcp.f32 %v4656_v6  ;;  %v3837_v56 = vsel %vm2269_vm2, %v8493_v43, -inf  ;;  %v4445_v33 = vsel %vm2269_vm2, %v9707_v14, -inf  ;;  %v4439_v11 = vmax.f32 %v4437_v15, %v4438_v0 }
 0x4cc   : > { %v4056_v5 = vrot.slane %v4055_v32, 1  ;;  %v4660_v10 = vrot.slane %v4659_v49, 4  ;;  %6303 = vpow2.f32 %v4554_v59  ;;  %v3834_v54 = vrot.slane %v3833_v36, 1 }
 0x4cd   : > { %v3836_v18 = vsel %vm2269_vm2, %v9708_v48, -inf  ;;  %v4444_v52 = vsel %vm2269_vm2, %v8514_v28, -inf  ;;  %v8888_v23 = vsel %vm2269_vm2, %v8561_v2, -inf  ;;  %v4440_v44 = vrot.slane %v4439_v11, 2 }
 0x4ce   : > { %v4057_v35 = vadd.f32 %v4056_v5, %v4055_v32  ;;  %v4661_v30 = vadd.f32 %v4660_v10, %v4659_v49  ;;  %v3838_v9 = vmax.f32 %v3836_v18, %v3837_v56  ;;  %v3835_v53 = vmax.f32 %v3833_v36, %v3834_v54  ;;  %v6381_v18 = vld [vmem:[%s8140_s27 + $0x88] sm:$0xff] }
 0x4cf   : > { %v8890_v27 = vmax.f32 %v4444_v52, %v4445_v33  ;;  %v8894_v15 = vsel %vm2269_vm2, %v8563_v34, -inf  ;;  %v8898_v13 = vsel %vm2269_vm2, %v8567_v46, -inf  ;;  %v4441_v6 = vmax.f32 %v4439_v11, %v4440_v44  ;;  %v6380_v11 = vld [vmem:[%s8140_s27 + $0x80] sm:$0xff] }
 0x4d0   : > { %v6294_v42 = vpop.eup %6293  ;;  %6305 = vrcp.f32 %v4057_v35  ;;  %v4662_v31 = vrot.slane %v4661_v30, 2  ;;  %v3839_v58 = vrot.slane %v3838_v9, 4  ;;  %v3894_v49 = vsub.f32 %v9703_v40, %v3835_v53 }
 0x4d1   : > { %v8900_v59 = vpop.eup %6295  ;;  %v4144_v25 = vmul.f32 %v6294_v42, %v8804_v55  ;;  %v4145_v32 = vmul.f32 %v6294_v42, %v8810_v26  ;;  %v3895_v0 = vsub.f32 %v9701_v47, %v3835_v53  ;;  %v4442_v5 = vrot.slane %v4441_v6, 1 }
 0x4d2   : > { %v8906_v36 = vpop.eup %6297  ;;  %v4663_v56 = vadd.f32 %v4662_v31, %v4661_v30  ;;  %v4058_v33 = vsel %vm2269_vm2, %v8900_v59, 0.0  ;;  %v3840_v10 = vmax.f32 %v3838_v9, %v3839_v58  ;;  %v3948_v26 = vmul.f32 1.442695, %v3894_v49 }
 0x4d3   : > { %v4176_v54 = vmul.f32 %v6380_v11, %v4144_v25  ;;  %v4177_v52 = vmul.f32 %v6381_v18, %v4145_v32  ;;  %v4059_v55 = vsel %vm2269_vm2, %v8906_v36, 0.0  ;;  %v3950_v44 = vmul.f32 1.442695, %v3895_v0 }
 0x4d4   : > { %v8914_v35 = vpop.eup %6299  ;;  %v4664_v40 = vrot.slane %v4663_v56, 1  ;;  %v4060_v47 = vadd.f32 %v4059_v55, %v4058_v33  ;;  %v4443_v53 = vmax.f32 %v4441_v6, %v4442_v5  ;;  %6307 = vpow2.f32 %v3948_v26 }
 0x4d5   : > { %v6302_v30 = vpop.eup %6301  ;;  %v4264_v42 = vsel %vm2269_vm2, %v4176_v54, 0.0  ;;  %v4265_v31 = vsel %vm2269_vm2, %v4177_v52, 0.0  ;;  %v4666_v9 = vsel %vm2269_vm2, %v8914_v35, 0.0  ;;  %6309 = vpow2.f32 %v3950_v44  ;;  %v9709_v54 = vld [vmem:[#allocation42_spill] sm:$0xff]  ;;  %v9710_v52 = vld [vmem:[#allocation56_spill] sm:$0xff] }
 0x4d6   : > { %v8920_v58 = vpop.eup %6303  ;;  %v4266_v25 = vadd.f32 %v4265_v31, %v4264_v42  ;;  %v4752_v32 = vmul.f32 %v6302_v30, %v8823_v39  ;;  %v4753_v49 = vmul.f32 %v6302_v30, %v8832_v38  ;;  %v4665_v11 = vadd.f32 %v4664_v40, %v4663_v56 }
 0x4d7   : > { %v4061_v33 = vrot.slane %v4060_v47, 4  ;;  %v4667_v6 = vsel %vm2269_vm2, %v8920_v58, 0.0  ;;  %v4502_v0 = vsub.f32 %v9704_v62, %v4443_v53  ;;  %v4503_v39 = vsub.f32 %v9702_v16, %v4443_v53 }
 0x4d8   : > { %v4267_v5 = vrot.slane %v4266_v25, 4  ;;  %v4784_v18 = vmul.f32 %v4752_v32, %v9709_v54  ;;  %v4785_v55 = vmul.f32 %v4753_v49, %v9710_v52  ;;  %6311 = vrcp.f32 %v4665_v11 }
 0x4d9   : > { %v4062_v26 = vadd.f32 %v4061_v33, %v4060_v47  ;;  %v4668_v42 = vadd.f32 %v4667_v6, %v4666_v9  ;;  %v4556_v38 = vmul.f32 1.442695, %v4502_v0  ;;  %v3841_v62 = vrot.slane %v3840_v10, 2  ;;  %v6382_v33 = vld [vmem:[%s8140_s27 + $0x90] sm:$0xff]  ;;  %v6383_v0 = vld [vmem:[%s8140_s27 + $0x98] sm:$0xff] }
 0x4da   : > { %v6306_v56 = vpop.eup %6305  ;;  %v4268_v40 = vadd.f32 %v4267_v5, %v4266_v25  ;;  %v4872_v30 = vsel %vm2269_vm2, %v4784_v18, 0.0  ;;  %v4873_v44 = vsel %vm2269_vm2, %v4785_v55, 0.0  ;;  %v4558_v16 = vmul.f32 1.442695, %v4503_v39 }
 0x4db   : > { %v4874_v31 = vadd.f32 %v4873_v44, %v4872_v30  ;;  %v4146_v32 = vmul.f32 %v6306_v56, %v8844_v60  ;;  %v4147_v49 = vmul.f32 %v6306_v56, %v8850_v17  ;;  %v4063_v11 = vrot.slane %v4062_v26, 2 }
 0x4dc   : > { %v4269_v47 = vrot.slane %v4268_v40, 2  ;;  %v4669_v9 = vrot.slane %v4668_v42, 4  ;;  %6313 = vpow2.f32 %v4556_v38  ;;  %v3842_v52 = vmax.f32 %v3840_v10, %v3841_v62 }
 0x4dd   : > { %v4875_v53 = vrot.slane %v4874_v31, 4  ;;  %v4178_v6 = vmul.f32 %v6382_v33, %v4146_v32  ;;  %v4179_v25 = vmul.f32 %v6383_v0, %v4147_v49  ;;  %v4064_v5 = vadd.f32 %v4063_v11, %v4062_v26 }
 0x4de   : > { %v8936_v54 = vadd.f32 %v4269_v47, %v4268_v40  ;;  %v4670_v18 = vadd.f32 %v4669_v9, %v4668_v42  ;;  %6315 = vpow2.f32 %v4558_v16  ;;  %v8938_v55 = vpop.eup %6307  ;;  %v3843_v10 = vrot.slane %v3842_v52, 1 }
 0x4df   : > { %v4876_v60 = vadd.f32 %v4875_v53, %v4874_v31  ;;  %v4273_v17 = vsel %vm2269_vm2, %v4178_v6, 0.0  ;;  %v4274_v56 = vsel %vm2269_vm2, %v4179_v25, 0.0  ;;  %v4065_v38 = vrot.slane %v4064_v5, 1  ;;  %v8945_v40 = vpop.eup %6309 }
 0x4e0   : > { %9711 = vst [vmem:[#allocation70_spill] sm:$0xff] %v8936_v54  ;;  %v4275_v30 = vadd.f32 %v4274_v56, %v4273_v17  ;;  %v4671_v44 = vrot.slane %v4670_v18, 2  ;;  %v4067_v26 = vsel %vm2269_vm2, %v8938_v55, 0.0  ;;  %v4447_v62 = vrot.slane %v8890_v27, 4  ;;  %v9712_v56 = vld [vmem:[#allocation34_spill] sm:$0xff] }
 0x4e1   : > { %v4877_v42 = vrot.slane %v4876_v60, 2  ;;  %v4066_v32 = vadd.f32 %v4065_v38, %v4064_v5  ;;  %v4068_v47 = vsel %vm2269_vm2, %v8945_v40, 0.0  ;;  %v3847_v9 = vmax.f32 %v8898_v13, %v8888_v23 }
 0x4e2   : > { %v6312_v31 = vpop.eup %6311  ;;  %v4276_v49 = vrot.slane %v4275_v30, 4  ;;  %v4672_v11 = vadd.f32 %v4671_v44, %v4670_v18  ;;  %v4069_v25 = vadd.f32 %v4068_v47, %v4067_v26  ;;  %v3844_v5 = vmax.f32 %v3842_v52, %v3843_v10  ;;  %v9713_v18 = vld [vmem:[#allocation36_spill] sm:$0xff] }
 0x4e3   : > { %v4878_v16 = vadd.f32 %v4877_v42, %v4876_v60  ;;  %v4754_v53 = vmul.f32 %v6312_v31, %v8866_v63  ;;  %v4755_v33 = vmul.f32 %v6312_v31, %v8872_v3  ;;  %6317 = vrcp.f32 %v4066_v32 }
 0x4e4   : > { %v4277_v6 = vadd.f32 %v4276_v49, %v4275_v30  ;;  %v4673_v0 = vrot.slane %v4672_v11, 1  ;;  %v4448_v39 = vmax.f32 %v8890_v27, %v4447_v62  ;;  %v4070_v60 = vrot.slane %v4069_v25, 4 }
 0x4e5   : > { %v4879_v17 = vrot.slane %v4878_v16, 1  ;;  %v4786_v38 = vmul.f32 %v4754_v53, %v9712_v56  ;;  %v4787_v44 = vmul.f32 %v4755_v33, %v9713_v18  ;;  %v3896_v63 = vsub.f32 %v9708_v48, %v3844_v5 }
 0x4e6   : > { %v8957_v54 = vpop.eup %6313  ;;  %v4278_v23 = vrot.slane %v4277_v6, 2  ;;  %v4674_v13 = vadd.f32 %v4673_v0, %v4672_v11  ;;  %v4071_v10 = vadd.f32 %v4070_v60, %v4069_v25  ;;  %v3897_v48 = vsub.f32 %v8493_v43, %v3844_v5 }
 0x4e7   : > { %v8960_v3 = vadd.f32 %v4879_v17, %v4878_v16  ;;  %v4881_v30 = vsel %vm2269_vm2, %v4786_v38, 0.0  ;;  %v4882_v52 = vsel %vm2269_vm2, %v4787_v44, 0.0  ;;  %v4675_v26 = vsel %vm2269_vm2, %v8957_v54, 0.0 }
 0x4e8   : > { %v8966_v42 = vpop.eup %6315  ;;  %v8968_v32 = vadd.f32 %v4278_v23, %v4277_v6  ;;  %v4883_v27 = vadd.f32 %v4882_v52, %v4881_v30  ;;  %6319 = vrcp.f32 %v4674_v13  ;;  %v3952_v31 = vmul.f32 1.442695, %v3896_v63 }
 0x4e9   : > { %v4676_v62 = vsel %vm2269_vm2, %v8966_v42, 0.0  ;;  %v4449_v49 = vrot.slane %v4448_v39, 2  ;;  %v4072_v16 = vrot.slane %v4071_v10, 2  ;;  %v3954_v33 = vmul.f32 1.442695, %v3897_v48  ;;  %v6385_v48 = vld [vmem:[%s8140_s27 + $0xa8] sm:$0xff] }
 0x4ea   : > { %v4280_v11 = vrot.slane %v8968_v32, 1  ;;  %v4884_v47 = vrot.slane %v4883_v27, 4  ;;  %v4677_v53 = vadd.f32 %v4676_v62, %v4675_v26  ;;  %6321 = vpow2.f32 %v3952_v31 }
 0x4eb   : > { %v4450_v0 = vmax.f32 %v4448_v39, %v4449_v49  ;;  %v3848_v6 = vrot.slane %v3847_v9, 4  ;;  %v4073_v56 = vadd.f32 %v4072_v16, %v4071_v10  ;;  %v4453_v25 = vsel %vm2269_vm2, %v8573_v24, -inf  ;;  %v6384_v10 = vld [vmem:[%s8140_s27 + $0xa0] sm:$0xff] }
 0x4ec   : > { %v4885_v17 = vadd.f32 %v4884_v47, %v4883_v27  ;;  %v4678_v38 = vrot.slane %v4677_v53, 4  ;;  %6323 = vpow2.f32 %v3954_v33  ;;  %v4455_v44 = vmax.f32 %v4453_v25, %v8894_v15 }
 0x4ed   : > { %v6318_v18 = vpop.eup %6317  ;;  %v4451_v43 = vrot.slane %v4450_v0, 1  ;;  %v3849_v5 = vmax.f32 %v3847_v9, %v3848_v6  ;;  %v4074_v60 = vrot.slane %v4073_v56, 1 }
 0x4ee   : > { %v4886_v23 = vrot.slane %v4885_v17, 2  ;;  %v4148_v13 = vmul.f32 %v6318_v18, %v8900_v59  ;;  %v4149_v39 = vmul.f32 %v6318_v18, %v8906_v36  ;;  %v4679_v63 = vadd.f32 %v4678_v38, %v4677_v53 }
 0x4ef   : > { %v4452_v30 = vmax.f32 %v4450_v0, %v4451_v43  ;;  %v3850_v52 = vrot.slane %v3849_v5, 2  ;;  %v4456_v26 = vrot.slane %v4455_v44, 4  ;;  %v4075_v49 = vadd.f32 %v4074_v60, %v4073_v56 }
 0x4f0   : > { %v4887_v27 = vadd.f32 %v4886_v23, %v4885_v17  ;;  %v4180_v62 = vmul.f32 %v6384_v10, %v4148_v13  ;;  %v4181_v31 = vmul.f32 %v6385_v48, %v4149_v39  ;;  %v4680_v47 = vrot.slane %v4679_v63, 2  ;;  %v9715_v13 = vld [vmem:[#allocation44_spill] sm:$0xff] }
 0x4f1   : > { %v4504_v9 = vsub.f32 %v8514_v28, %v4452_v30  ;;  %v4505_v15 = vsub.f32 %v9707_v14, %v4452_v30  ;;  %v3851_v16 = vmax.f32 %v3849_v5, %v3850_v52  ;;  %6325 = vrcp.f32 %v4075_v49  ;;  %v9714_v5 = vld [vmem:[#allocation3_spill] sm:$0xff] }
 0x4f2   : > { %v6320_v59 = vpop.eup %6319  ;;  %v4888_v33 = vrot.slane %v4887_v27, 1  ;;  %v4282_v36 = vsel %vm2269_vm2, %v4180_v62, 0.0  ;;  %v4283_v53 = vsel %vm2269_vm2, %v4181_v31, 0.0  ;;  %v4681_v38 = vadd.f32 %v4680_v47, %v4679_v63 }
 0x4f3   : > { %v4284_v0 = vadd.f32 %v4283_v53, %v4282_v36  ;;  %v4756_v6 = vmul.f32 %v6320_v59, %v8914_v35  ;;  %v4757_v17 = vmul.f32 %v6320_v59, %v8920_v58  ;;  %v4560_v25 = vmul.f32 1.442695, %v4504_v9 }
 0x4f4   : > { %v8987_v56 = vadd.f32 %v4888_v33, %v4887_v27  ;;  %v4562_v28 = vmul.f32 1.442695, %v4505_v15  ;;  %v3852_v18 = vrot.slane %v3851_v16, 1  ;;  %v8989_v14 = vpop.eup %6321  ;;  %v4682_v60 = vrot.slane %v4681_v38, 1 }
 0x4f5   : > { %v4285_v43 = vrot.slane %v4284_v0, 4  ;;  %v4788_v23 = vmul.f32 %v4756_v6, %v9714_v5  ;;  %v4789_v39 = vmul.f32 %v4757_v17, %v9715_v13  ;;  %v4076_v30 = vsel %vm2269_vm2, %v8989_v14, 0.0  ;;  %v6386_v13 = vld [vmem:[%s8140_s27 + $0xb0] sm:$0xff] }
 0x4f6   : > { %6327 = vpow2.f32 %v4560_v25  ;;  %v3853_v35 = vmax.f32 %v3851_v16, %v3852_v18  ;;  %v4457_v58 = vmax.f32 %v4455_v44, %v4456_v26  ;;  %v8995_v63 = vpop.eup %6323  ;;  %v4683_v62 = vadd.f32 %v4682_v60, %v4681_v38  ;;  %v6387_v60 = vld [vmem:[%s8140_s27 + $0xb8] sm:$0xff] }
 0x4f7   : > { %v4286_v52 = vadd.f32 %v4285_v43, %v4284_v0  ;;  %v4890_v27 = vsel %vm2269_vm2, %v4788_v23, 0.0  ;;  %v4891_v10 = vsel %vm2269_vm2, %v4789_v39, 0.0  ;;  %v4077_v31 = vsel %vm2269_vm2, %v8995_v63, 0.0 }
 0x4f8   : > { %v4892_v48 = vadd.f32 %v4891_v10, %v4890_v27  ;;  %6329 = vpow2.f32 %v4562_v28  ;;  %v3898_v49 = vsub.f32 %v8567_v46, %v3853_v35  ;;  %v4078_v9 = vadd.f32 %v4077_v31, %v4076_v30 }
 0x4f9   : > { %v4287_v47 = vrot.slane %v4286_v52, 2  ;;  %6331 = vrcp.f32 %v4683_v62  ;;  %v3899_v44 = vsub.f32 %v8561_v2, %v3853_v35  ;;  %v4458_v16 = vrot.slane %v4457_v58, 2 }
 0x4fa   : > { %v4893_v26 = vrot.slane %v4892_v48, 4  ;;  %v3956_v15 = vmul.f32 1.442695, %v3898_v49  ;;  %v3855_v59 = vsel %vm2269_vm2, %v8635_v57, -inf  ;;  %v4079_v36 = vrot.slane %v4078_v9, 4 }
 0x4fb   : > { %v9005_v33 = vadd.f32 %v4287_v47, %v4286_v52  ;;  %v3958_v53 = vmul.f32 1.442695, %v3899_v44  ;;  %v4463_v0 = vsel %vm2269_vm2, %v8637_v4, -inf  ;;  %v6326_v46 = vpop.eup %6325  ;;  %v4459_v17 = vmax.f32 %v4457_v58, %v4458_v16 }
 0x4fc   : > { %v4894_v6 = vadd.f32 %v4893_v26, %v4892_v48  ;;  %6333 = vpow2.f32 %v3956_v15  ;;  %v3854_v2 = vsel %vm2269_vm2, %v8643_v1, -inf  ;;  %v4150_v38 = vmul.f32 %v6326_v46, %v8938_v55 }
 0x4fd   : > { %v4151_v25 = vmul.f32 %v6326_v46, %v8945_v40  ;;  %v4080_v28 = vadd.f32 %v4079_v36, %v4078_v9  ;;  %6335 = vpow2.f32 %v3958_v53  ;;  %v4460_v43 = vrot.slane %v4459_v17, 1 }
 0x4fe   : > { %v4895_v18 = vrot.slane %v4894_v6, 2  ;;  %v3856_v5 = vmax.f32 %v3854_v2, %v3855_v59  ;;  %v4462_v23 = vsel %vm2269_vm2, %v8657_v29, -inf  ;;  %v4182_v39 = vmul.f32 %v6386_v13, %v4150_v38  ;;  %v9717_v13 = vld [vmem:[#allocation5_spill] sm:$0xff] }
 0x4ff   : > { %v4183_v30 = vmul.f32 %v6387_v60, %v4151_v25  ;;  %v4081_v35 = vrot.slane %v4080_v28, 2  ;;  %v4464_v58 = vmax.f32 %v4462_v23, %v4463_v0  ;;  %v4461_v55 = vmax.f32 %v4459_v17, %v4460_v43  ;;  %v9716_v43 = vld [vmem:[#allocation4_spill] sm:$0xff] }
 0x500   : > { %v9017_v52 = vpop.eup %6327  ;;  %v9019_v27 = vadd.f32 %v4895_v18, %v4894_v6  ;;  %v3857_v40 = vrot.slane %v3856_v5, 4  ;;  %v3864_v10 = vsel %vm2269_vm2, %v8672_v19, -inf  ;;  %v4291_v62 = vsel %vm2269_vm2, %v4182_v39, 0.0 }
 0x501   : > { %v4292_v48 = vsel %vm2269_vm2, %v4183_v30, 0.0  ;;  %v4082_v31 = vadd.f32 %v4081_v35, %v4080_v28  ;;  %v4684_v49 = vsel %vm2269_vm2, %v9017_v52, 0.0  ;;  %v4506_v26 = vsub.f32 %v8573_v24, %v4461_v55 }
 0x502   : > { %v9027_v47 = vpop.eup %6329  ;;  %v4897_v9 = vrot.slane %v9019_v27, 1  ;;  %v4293_v44 = vadd.f32 %v4292_v48, %v4291_v62  ;;  %v4507_v15 = vsub.f32 %v8563_v34, %v4461_v55  ;;  %v3858_v53 = vmax.f32 %v3856_v5, %v3857_v40 }
 0x503   : > { %v6332_v16 = vpop.eup %6331  ;;  %v4083_v59 = vrot.slane %v4082_v31, 1  ;;  %v4685_v36 = vsel %vm2269_vm2, %v9027_v47, 0.0  ;;  %v4465_v0 = vrot.slane %v4464_v58, 4  ;;  %v4564_v25 = vmul.f32 1.442695, %v4506_v26 }
 0x504   : > { %v4294_v46 = vrot.slane %v4293_v44, 4  ;;  %v4758_v6 = vmul.f32 %v6332_v16, %v8957_v54  ;;  %v4759_v17 = vmul.f32 %v6332_v16, %v8966_v42  ;;  %v4686_v2 = vadd.f32 %v4685_v36, %v4684_v49 }
 0x505   : > { %v4084_v38 = vadd.f32 %v4083_v59, %v4082_v31  ;;  %v4566_v28 = vmul.f32 1.442695, %v4507_v15  ;;  %v3859_v18 = vrot.slane %v3858_v53, 2  ;;  %v4466_v30 = vmax.f32 %v4464_v58, %v4465_v0 }
 0x506   : > { %v9036_v24 = vpop.eup %6333  ;;  %v9038_v34 = vadd.f32 %v4294_v46, %v4293_v44  ;;  %v4790_v23 = vmul.f32 %v4758_v6, %v9716_v43  ;;  %v4791_v39 = vmul.f32 %v4759_v17, %v9717_v13  ;;  %v4687_v5 = vrot.slane %v4686_v2, 4  ;;  %v2633_v13 = vld [vmem:[%s9347_s14] sm:$0xff] }
 0x507   : > { %v9042_v60 = vpop.eup %6335  ;;  %6337 = vrcp.f32 %v4084_v38  ;;  %v4085_v54 = vsel %vm2269_vm2, %v9036_v24, 0.0  ;;  %v3860_v42 = vmax.f32 %v3858_v53, %v3859_v18  ;;  %v4467_v15 = vrot.slane %v4466_v30, 2 }
 0x508   : > { %v4296_v35 = vrot.slane %v9038_v34, 2  ;;  %v4899_v55 = vsel %vm2269_vm2, %v4790_v23, 0.0  ;;  %v4900_v40 = vsel %vm2269_vm2, %v4791_v39, 0.0  ;;  %v4688_v62 = vadd.f32 %v4687_v5, %v4686_v2 }
 0x509   : > { %v4901_v48 = vadd.f32 %v4900_v40, %v4899_v55  ;;  %v4086_v31 = vsel %vm2269_vm2, %v9042_v60, 0.0  ;;  %6339 = vpow2.f32 %v4564_v25  ;;  %v3861_v49 = vrot.slane %v3860_v42, 1 }
 0x50a   : > { %v4689_v44 = vrot.slane %v4688_v62, 2  ;;  %v4087_v26 = vadd.f32 %v4086_v31, %v4085_v54  ;;  %6341 = vpow2.f32 %v4566_v28  ;;  %v4472_v58 = vsel %vm2269_vm2, %v8674_v41, -inf }
 0x50b   : > { %v4902_v16 = vrot.slane %v4901_v48, 4  ;;  %v3862_v59 = vmax.f32 %v3860_v42, %v3861_v49  ;;  %v3863_v36 = vsel %vm2269_vm2, %v8682_v20, -inf  ;;  %v4468_v46 = vmax.f32 %v4466_v30, %v4467_v15 }
 0x50c   : > { %v4690_v53 = vadd.f32 %v4689_v44, %v4688_v62  ;;  %v4088_v0 = vrot.slane %v4087_v26, 4  ;;  %v3865_v6 = vmax.f32 %v3863_v36, %v3864_v10  ;;  %v4471_v25 = vsel %vm2269_vm2, %v8686_v51, -inf  ;;  %v2634_v10 = vld [vmem:[%s9347_s14 + $0x8] sm:$0xff] }
 0x50d   : > { %v4903_v17 = vadd.f32 %v4902_v16, %v4901_v48  ;;  %v3900_v2 = vsub.f32 %v8643_v1, %v3862_v59  ;;  %v3901_v38 = vsub.f32 %v8635_v57, %v3862_v59  ;;  %v4469_v43 = vrot.slane %v4468_v46, 1 }
 0x50e   : > { %v4691_v28 = vrot.slane %v4690_v53, 1  ;;  %v4089_v18 = vadd.f32 %v4088_v0, %v4087_v26  ;;  %v3866_v23 = vrot.slane %v3865_v6, 4  ;;  %v4473_v54 = vmax.f32 %v4471_v25, %v4472_v58 }
 0x50f   : > { %v4904_v39 = vrot.slane %v4903_v17, 2  ;;  %v3960_v5 = vmul.f32 1.442695, %v3900_v2  ;;  %v3962_v1 = vmul.f32 1.442695, %v3901_v38  ;;  %v4470_v30 = vmax.f32 %v4468_v46, %v4469_v43  ;;  %v6389_v46 = vld [vmem:[%s8140_s27 + $0xc8] sm:$0xff] }
 0x510   : > { %v4692_v57 = vadd.f32 %v4691_v28, %v4690_v53  ;;  %v4090_v42 = vrot.slane %v4089_v18, 2  ;;  %v3867_v55 = vmax.f32 %v3865_v6, %v3866_v23  ;;  %v4474_v48 = vrot.slane %v4473_v54, 4  ;;  %v6388_v53 = vld [vmem:[%s8140_s27 + $0xc0] sm:$0xff] }
 0x511   : > { %v6338_v40 = vpop.eup %6337  ;;  %v9065_v62 = vadd.f32 %v4904_v39, %v4903_v17  ;;  %6343 = vpow2.f32 %v3960_v5  ;;  %v5975_v31 = vpack.c.bf16 %v2634_v10, %v2633_v13  ;;  %v4508_v16 = vsub.f32 %v8657_v29, %v4470_v30  ;;  %v9718_v39 = vld [vmem:[#allocation46_spill] sm:$0xff] }
 0x512   : > { %v4152_v49 = vmul.f32 %v6338_v40, %v8989_v14  ;;  %v4153_v44 = vmul.f32 %v6338_v40, %v8995_v63  ;;  %6345 = vrcp.f32 %v4692_v57  ;;  %v4091_v26 = vadd.f32 %v4090_v42, %v4089_v18 }
 0x513   : > { %v9069_v15 = vpop.eup %6339  ;;  %6347 = vpow2.f32 %v3962_v1  ;;  %v4509_v59 = vsub.f32 %v8637_v4, %v4470_v30  ;;  %v3868_v58 = vrot.slane %v3867_v55, 2  ;;  %5976 = vmatprep.subr.bf16.mxu1 %v5975_v31  ;;  %v4568_v2 = vmul.f32 1.442695, %v4508_v16  ;;  %v9719_v1 = vld [vmem:[#allocation50_spill] sm:$0xff] }
 0x514   : > { %v9073_v36 = vpop.eup %6341  ;;  %v4184_v0 = vmul.f32 %v6388_v53, %v4152_v49  ;;  %v4185_v6 = vmul.f32 %v6389_v46, %v4153_v44  ;;  %v4092_v14 = vrot.slane %v4091_v26, 1  ;;  %v4693_v63 = vsel %vm2269_vm2, %v9069_v15, 0.0  ;;  %5978 = vmatpush3.bf16.msra.mxu1 %v5975_v31 }
 0x515   : > { %v4694_v17 = vsel %vm2269_vm2, %v9073_v36, 0.0  ;;  %v4570_v29 = vmul.f32 1.442695, %v4509_v59  ;;  %v3869_v38 = vmax.f32 %v3867_v55, %v3868_v58  ;;  %6349 = vpow2.f32 %v4568_v2 }
 0x516   : > { %v4300_v4 = vsel %vm2269_vm2, %v4184_v0, 0.0  ;;  %v4301_v25 = vsel %vm2269_vm2, %v4185_v6, 0.0  ;;  %v4093_v28 = vadd.f32 %v4092_v14, %v4091_v26  ;;  %v4695_v18 = vadd.f32 %v4694_v17, %v4693_v63 }
 0x517   : > { %v4302_v43 = vadd.f32 %v4301_v25, %v4300_v4  ;;  %v3870_v23 = vrot.slane %v3869_v38, 1  ;;  %v4475_v13 = vmax.f32 %v4473_v54, %v4474_v48  ;;  %v9085_v5 = vmul.f32 %v8821_v61, %v9718_v39  ;;  %v9722_v4 = vld [vmem:[#allocation48_spill] sm:$0xff] }
 0x518   : > { %6351 = vrcp.f32 %v4093_v28  ;;  %v4696_v10 = vrot.slane %v4695_v18, 4  ;;  %v9089_v57 = vmul.f32 %v8863_v21, %v9719_v1  ;;  %v4807_v31 = vrot.slane %v8586_v22, 1 }
 0x519   : > { %v4303_v42 = vrot.slane %v4302_v43, 4  ;;  %6353 = vpow2.f32 %v4570_v29  ;;  %v3871_v30 = vmax.f32 %v3869_v38, %v3870_v23  ;;  %v4476_v55 = vrot.slane %v4475_v13, 2  ;;  %v9721_v38 = vld [vmem:[#allocation19_spill] sm:$0xff] }
 0x51a   : > { %v4697_v40 = vadd.f32 %v4696_v10, %v4695_v18  ;;  %v4816_v49 = vrot.slane %v8613_v8, 1  ;;  %v9720_v54 = vrot.slane %v8618_v45, 2  ;;  %v9105_v0 = vadd.f32 %v4807_v31, %v8586_v22 }
 0x51b   : > { %v9096_v44 = vpop.eup %6343  ;;  %v9098_v61 = vadd.f32 %v4303_v42, %v4302_v43  ;;  %v3902_v21 = vsub.f32 %v8682_v20, %v3871_v30  ;;  %v3903_v26 = vsub.f32 %v8672_v19, %v3871_v30  ;;  %v4477_v16 = vmax.f32 %v4475_v13, %v4476_v55 }
 0x51c   : > { %v4824_v48 = vadd.f32 %v9720_v54, %v8618_v45  ;;  %v6346_v59 = vpop.eup %6345  ;;  %v4698_v58 = vrot.slane %v4697_v40, 2  ;;  %v4094_v53 = vsel %vm2269_vm2, %v9096_v44, 0.0  ;;  %v9108_v46 = vadd.f32 %v4816_v49, %v8613_v8 }
 0x51d   : > { %v9110_v45 = vpop.eup %6347  ;;  %v4760_v6 = vmul.f32 %v6346_v59, %v9017_v52  ;;  %v4761_v20 = vmul.f32 %v6346_v59, %v9027_v47  ;;  %v3964_v14 = vmul.f32 1.442695, %v3902_v21  ;;  %v3966_v19 = vmul.f32 1.442695, %v3903_v26  ;;  %v6390_v59 = vld [vmem:[%s8140_s27 + $0xd0] sm:$0xff] }
 0x51e   : > { %v4699_v63 = vadd.f32 %v4698_v58, %v4697_v40  ;;  %v4095_v17 = vsel %vm2269_vm2, %v9110_v45, 0.0  ;;  %v4478_v2 = vrot.slane %v4477_v16, 1  ;;  %v4825_v29 = vrot.slane %v4824_v48, 1 }
 0x51f   : > { %v4792_v22 = vmul.f32 %v4760_v6, %v9721_v38  ;;  %v4793_v25 = vmul.f32 %v4761_v20, %v9722_v4  ;;  %v4096_v8 = vadd.f32 %v4095_v17, %v4094_v53  ;;  %6355 = vpow2.f32 %v3964_v14  ;;  %v9120_v47 = vpop.eup %6349  ;;  %v6391_v53 = vld [vmem:[%s8140_s27 + $0xd8] sm:$0xff] }
 0x520   : > { %v4700_v28 = vrot.slane %v4699_v63, 1  ;;  %6357 = vpow2.f32 %v3966_v19  ;;  %v4479_v18 = vmax.f32 %v4477_v16, %v4478_v2  ;;  %v9118_v52 = vadd.f32 %v4825_v29, %v4824_v48 }
 0x521   : > { %v4908_v43 = vsel %vm2269_vm2, %v4792_v22, 0.0  ;;  %v4909_v23 = vsel %vm2269_vm2, %v4793_v25, 0.0  ;;  %v4097_v13 = vrot.slane %v4096_v8, 4  ;;  %v4832_v10 = vrot.slane %v8670_v50, 2 }
 0x522   : > { %v6352_v39 = vpop.eup %6351  ;;  %v4910_v1 = vadd.f32 %v4909_v23, %v4908_v43  ;;  %v4701_v42 = vadd.f32 %v4700_v28, %v4699_v63  ;;  %v4702_v30 = vsel %vm2269_vm2, %v9120_v47, 0.0  ;;  %v4510_v55 = vsub.f32 %v8686_v51, %v4479_v18  ;;  %v9723_v28 = vld [vmem:[#allocation37_spill] sm:$0xff] }
 0x523   : > { %v9128_v40 = vpop.eup %6353  ;;  %v4154_v31 = vmul.f32 %v6352_v39, %v9036_v24  ;;  %v4155_v49 = vmul.f32 %v6352_v39, %v9042_v60  ;;  %v4098_v54 = vadd.f32 %v4097_v13, %v4096_v8  ;;  %v4511_v48 = vsub.f32 %v8674_v41, %v4479_v18  ;;  %v9724_v13 = vld [vmem:[#allocation53_spill] sm:$0xff]  ;;  %v9725_v39 = vld [vmem:[#allocation11_spill] sm:$0xff] }
 0x524   : > { %v4911_v21 = vrot.slane %v4910_v1, 4  ;;  %6359 = vrcp.f32 %v4701_v42  ;;  %v4703_v26 = vsel %vm2269_vm2, %v9128_v40, 0.0  ;;  %v4572_v16 = vmul.f32 1.442695, %v4510_v55 }
 0x525   : > { %v4186_v58 = vmul.f32 %v6390_v59, %v4154_v31  ;;  %v4187_v6 = vmul.f32 %v6391_v53, %v4155_v49  ;;  %v4099_v51 = vrot.slane %v4098_v54, 2  ;;  %v4704_v20 = vadd.f32 %v4703_v26, %v4702_v30 }
 0x526   : > { %v9137_v14 = vadd.f32 %v4911_v21, %v4910_v1  ;;  %6361 = vpow2.f32 %v4572_v16  ;;  %v4574_v24 = vmul.f32 1.442695, %v4511_v48  ;;  %v4833_v60 = vadd.f32 %v4832_v10, %v8670_v50 }
 0x527   : > { %v4309_v41 = vsel %vm2269_vm2, %v4186_v58, 0.0  ;;  %v4310_v19 = vsel %vm2269_vm2, %v4187_v6, 0.0  ;;  %v4100_v63 = vadd.f32 %v4099_v51, %v4098_v54  ;;  %v4705_v17 = vrot.slane %v4704_v20, 4 }
 0x528   : > { %v4913_v2 = vrot.slane %v9137_v14, 2  ;;  %v9143_v29 = vadd.f32 %v4310_v19, %v4309_v41  ;;  %6363 = vpow2.f32 %v4574_v24  ;;  %v4834_v38 = vrot.slane %v4833_v60, 1 }
 0x529   : > { %v9145_v22 = vpop.eup %6355  ;;  %v4101_v4 = vrot.slane %v4100_v63, 1  ;;  %v4706_v25 = vadd.f32 %v4705_v17, %v4704_v20  ;;  %v4839_v8 = vrot.slane %v8748_v12, 4  ;;  %v4846_v50 = vsel %vm2269_vm2, %v9723_v28, 0.0  ;;  %v9726_v17 = vld [vmem:[#allocation63_spill] sm:$0xff] }
 0x52a   : > { %v9150_v18 = vpop.eup %6357  ;;  %v4103_v43 = vsel %vm2269_vm2, %v9145_v22, 0.0  ;;  %v9154_v23 = vadd.f32 %v4834_v38, %v4833_v60  ;;  %v4847_v10 = vadd.f32 %v4846_v50, %v9724_v13  ;;  %v4854_v1 = vsel %vm2269_vm2, %v9725_v39, 0.0 }
 0x52b   : > { %v4102_v42 = vadd.f32 %v4101_v4, %v4100_v63  ;;  %v4707_v30 = vrot.slane %v4706_v25, 2  ;;  %v4104_v55 = vsel %vm2269_vm2, %v9150_v18, 0.0  ;;  %v4840_v31 = vadd.f32 %v4839_v8, %v8748_v12  ;;  %v9727_v4 = vld [vmem:[#allocation20_spill] sm:$0xff] }
 0x52c   : > { %v4105_v49 = vadd.f32 %v4104_v55, %v4103_v43  ;;  %v4848_v54 = vrot.slane %v4847_v10, 4  ;;  %v4855_v48 = vsel %vm2269_vm2, %v9085_v5, 0.0  ;;  %v4863_v21 = vsel %vm2269_vm2, %v8869_v37, 0.0 }
 0x52d   : > { %6365 = vrcp.f32 %v4102_v42  ;;  %v4708_v26 = vadd.f32 %v4707_v30, %v4706_v25  ;;  %v4841_v16 = vrot.slane %v4840_v31, 2  ;;  %v4856_v59 = vadd.f32 %v4855_v48, %v4854_v1 }
 0x52e   : > { %v6360_v58 = vpop.eup %6359  ;;  %v4106_v53 = vrot.slane %v4105_v49, 4  ;;  %v4849_v6 = vadd.f32 %v4848_v54, %v4847_v10  ;;  %v4864_v51 = vsel %vm2269_vm2, %v9089_v57, 0.0  ;;  %v4961_v48 = vsel %vm4960_vm4, %v9108_v46, %v9105_v0 }
 0x52f   : > { %v4762_v12 = vmul.f32 %v6360_v58, %v9069_v15  ;;  %v4763_v20 = vmul.f32 %v6360_v58, %v9073_v36  ;;  %v4709_v24 = vrot.slane %v4708_v26, 1  ;;  %v4842_v5 = vadd.f32 %v4841_v16, %v4840_v31 }
 0x530   : > { %v9170_v60 = vpop.eup %6361  ;;  %v4107_v37 = vadd.f32 %v4106_v53, %v4105_v49  ;;  %v4850_v41 = vrot.slane %v4849_v6, 2  ;;  %v4857_v19 = vrot.slane %v4856_v59, 4  ;;  %v4865_v63 = vadd.f32 %v4864_v51, %v4863_v21 }
 0x531   : > { %v4794_v38 = vmul.f32 %v4762_v12, %v9726_v17  ;;  %v4795_v25 = vmul.f32 %v4763_v20, %v9727_v4  ;;  %v4710_v8 = vadd.f32 %v4709_v24, %v4708_v26  ;;  %v4711_v57 = vsel %vm2269_vm2, %v9170_v60, 0.0  ;;  %v6393_v17 = vld [vmem:[%s8140_s27 + $0xe8] sm:$0xff] }
 0x532   : > { %v9176_v28 = vpop.eup %6363  ;;  %v4108_v15 = vrot.slane %v4107_v37, 2  ;;  %v4843_v36 = vrot.slane %v4842_v5, 1  ;;  %v4851_v50 = vadd.f32 %v4850_v41, %v4849_v6  ;;  %v4858_v43 = vadd.f32 %v4857_v19, %v4856_v59  ;;  %v6392_v41 = vld [vmem:[%s8140_s27 + $0xe0] sm:$0xff] }
 0x533   : > { %v4917_v13 = vsel %vm2269_vm2, %v4794_v38, 0.0  ;;  %v4918_v10 = vsel %vm2269_vm2, %v4795_v25, 0.0  ;;  %6367 = vrcp.f32 %v4710_v8  ;;  %v4712_v39 = vsel %vm2269_vm2, %v9176_v28, 0.0 }
 0x534   : > { %v4919_v1 = vadd.f32 %v4918_v10, %v4917_v13  ;;  %v4109_v42 = vadd.f32 %v4108_v15, %v4107_v37  ;;  %v4713_v30 = vadd.f32 %v4712_v39, %v4711_v57  ;;  %v4844_v55 = vadd.f32 %v4843_v36, %v4842_v5 }
 0x535   : > { %v4852_v31 = vrot.slane %v4851_v50, 1  ;;  %v4859_v49 = vrot.slane %v4858_v43, 2  ;;  %v4866_v54 = vrot.slane %v4865_v63, 4  ;;  %v4963_v51 = vsel %vm4962_vm5, %v9118_v52, %v4961_v48 }
 0x536   : > { %v4920_v21 = vrot.slane %v4919_v1, 4  ;;  %v4110_v26 = vrot.slane %v4109_v42, 1  ;;  %v4714_v16 = vrot.slane %v4713_v30, 4 }
 0x537   : > { %v6366_v59 = vpop.eup %6365  ;;  %v4853_v58 = vadd.f32 %v4852_v31, %v4851_v50  ;;  %v4860_v53 = vadd.f32 %v4859_v49, %v4858_v43  ;;  %v4867_v6 = vadd.f32 %v4866_v54, %v4865_v63  ;;  %v4965_v63 = vsel %vm4964_vm6, %v9154_v23, %v4963_v51  ;;  %v9728_v31 = vld [vmem:[#allocation52_spill] sm:$0xff]  ;;  %v9729_v54 = vld [vmem:[#allocation65_spill] sm:$0xff] }
 0x538   : > { %v4921_v12 = vadd.f32 %v4920_v21, %v4919_v1  ;;  %v4156_v20 = vmul.f32 %v6366_v59, %v9096_v44  ;;  %v4157_v24 = vmul.f32 %v6366_v59, %v9110_v45  ;;  %v4111_v5 = vadd.f32 %v4110_v26, %v4109_v42  ;;  %v2631_v44 = vld [vmem:[%s9346_s13] sm:$0xff]  ;;  %v2632_v45 = vld [vmem:[%s9346_s13 + $0x8] sm:$0xff]  ;;  %v9730_v51 = vld [vmem:[#allocation29_spill] sm:$0xff] }
 0x539   : > { %v4715_v0 = vadd.f32 %v4714_v16, %v4713_v30  ;;  %v4861_v46 = vrot.slane %v4860_v53, 1  ;;  %v4868_v37 = vrot.slane %v4867_v6, 2  ;;  %v4967_v57 = vsel %vm4966_vm7, %v4844_v55, %v4965_v63 }
 0x53a   : > { %v4188_v19 = vmul.f32 %v6392_v41, %v4156_v20  ;;  %v9191_v38 = vmul.f32 %v6393_v17, %v4157_v24  ;;  %6369 = vrcp.f32 %v4111_v5  ;;  %v4969_v50 = vsel %vm4968_vm8, %v4853_v58, %v4967_v57 }
 0x53b   : > { %v4716_v52 = vrot.slane %v4715_v0, 2  ;;  %v4862_v4 = vadd.f32 %v4861_v46, %v4860_v53  ;;  %v4869_v25 = vadd.f32 %v4868_v37, %v4867_v6  ;;  %v9209_v39 = vpack.c.bf16 %v2632_v45, %v2631_v44  ;;  %v6394_v6 = vld [vmem:[%s8140_s27 + $0x68] sm:$0xff]  ;;  %v9734_v44 = vld [vmem:[#allocation33_spill] sm:$0xff] }
 0x53c   : > { %v9202_v8 = vsel %vm2269_vm2, %v4188_v19, 0.0  ;;  %v4898_v30 = vadd.f32 %v4897_v9, %v9019_v27  ;;  %v4906_v55 = vrot.slane %v9065_v62, 1  ;;  %v4974_v27 = vsel %vm4960_vm4, %v8987_v56, %v8960_v3  ;;  %v6395_v56 = vld [vmem:[%s8140_s27 + $0x78] sm:$0xff] }
 0x53d   : > { %v6368_v23 = vpop.eup %6367  ;;  %v4717_v15 = vadd.f32 %v4716_v52, %v4715_v0  ;;  %v4870_v36 = vrot.slane %v4869_v25, 1  ;;  %v4971_v10 = vsel %vm4970_vm9, %v4862_v4, %v4969_v50  ;;  %5980 = vmatprep.subr.bf16.mxu1 %v9209_v39  ;;  %v9731_v0 = vld [vmem:[#allocation12_spill] sm:$0xff]  ;;  %v9732_v19 = vld [vmem:[#allocation10_spill] sm:$0xff]  ;;  %v9735_v45 = vrot.slane %v9734_v44, 2 }
 0x53e   : > { %v4764_v43 = vmul.f32 %v6368_v23, %v9120_v47  ;;  %v4765_v13 = vmul.f32 %v6368_v23, %v9128_v40  ;;  %v4914_v47 = vadd.f32 %v4913_v2, %v9137_v14  ;;  %v4922_v40 = vrot.slane %v4921_v12, 2  ;;  %v9733_v4 = vld [vmem:[#allocation72_spill] sm:$0xff]  ;;  %v6396_v23 = vld [vmem:[%s8140_s27 + $0xf0] sm:$0xff] }
 0x53f   : > { %v4718_v1 = vrot.slane %v4717_v15, 1  ;;  %v4871_v42 = vadd.f32 %v4870_v36, %v4869_v25  ;;  %v4907_v16 = vadd.f32 %v4906_v55, %v9065_v62  ;;  %v4975_v2 = vsel %vm4962_vm5, %v4898_v30, %v4974_v27 }
 0x540   : > { %v4796_v49 = vmul.f32 %v4764_v43, %v9728_v31  ;;  %v4797_v48 = vmul.f32 %v4765_v13, %v9729_v54  ;;  %v4915_v58 = vrot.slane %v4914_v47, 1  ;;  %v4923_v53 = vadd.f32 %v4922_v40, %v4921_v12  ;;  %v9738_v31 = vld [vmem:[#allocation18_spill] sm:$0xff]  ;;  %v9739_v54 = vld [vmem:[#allocation8_spill] sm:$0xff] }
 0x541   : > { %v4719_v21 = vadd.f32 %v4718_v1, %v4717_v15  ;;  %v4973_v26 = vsel %vm4972_vm10, %v4871_v42, %v4971_v10  ;;  %v4173_v62 = vmul.f32 %v6394_v6, %v9730_v51  ;;  %v4976_v3 = vsel %vm4964_vm6, %v4907_v16, %v4975_v2  ;;  %v9737_v1 = vld [vmem:[#allocation35_spill] sm:$0xff] }
 0x542   : > { %v4926_v9 = vsel %vm2269_vm2, %v4796_v49, 0.0  ;;  %v4927_v59 = vsel %vm2269_vm2, %v4797_v48, 0.0  ;;  %5945 = vmatprep.mubr.msk.f32.mxu1 %vm2269_vm2, %v4973_v26  ;;  %v4916_v24 = vadd.f32 %v4915_v58, %v4914_v47  ;;  %v4924_v5 = vrot.slane %v4923_v53, 1 }
 0x543   : > { %v4928_v14 = vadd.f32 %v4927_v59, %v4926_v9  ;;  %6371 = vrcp.f32 %v4719_v21  ;;  %v4175_v46 = vmul.f32 %v6395_v56, %v9731_v0  ;;  %v4199_v17 = vrot.slane %v9732_v19, 1  ;;  %v9740_v21 = vld [vmem:[#allocation67_spill] sm:$0xff] }
 0x544   : > { %v6370_v20 = vpop.eup %6369  ;;  %v4925_v63 = vadd.f32 %v4924_v5, %v4923_v53  ;;  %v4977_v52 = vsel %vm4966_vm7, %v4916_v24, %v4976_v3  ;;  %v4208_v25 = vrot.slane %v9733_v4, 1  ;;  %v4216_v57 = vadd.f32 %v9735_v45, %v9734_v44 }
 0x545   : > { %v4929_v37 = vrot.slane %v4928_v14, 4  ;;  %v4158_v41 = vmul.f32 %v6370_v20, %v9145_v22  ;;  %v4159_v12 = vmul.f32 %v6370_v20, %v9150_v18  ;;  %v4200_v50 = vadd.f32 %v4199_v17, %v9732_v19  ;;  %v9736_v22 = vld [vmem:[#allocation49_spill] sm:$0xff] }
 0x546   : > { %v4224_v43 = vrot.slane %v9736_v22, 2  ;;  %v4978_v18 = vsel %vm4968_vm8, %v4925_v63, %v4977_v52  ;;  %v4209_v13 = vadd.f32 %v4208_v25, %v9733_v4  ;;  %v4217_v10 = vrot.slane %v4216_v57, 1  ;;  %v9741_v63 = vld [vmem:[#allocation23_spill] sm:$0xff]  ;;  %v9742_v52 = vld [vmem:[#allocation41_spill] sm:$0xff] }
 0x547   : > { %v9244_v15 = vmul.f32 %v6396_v23, %v4158_v41  ;;  %v4930_v36 = vadd.f32 %v4929_v37, %v4928_v14  ;;  %v4231_v42 = vrot.slane %v9737_v1, 4  ;;  %v4238_v49 = vsel %vm2269_vm2, %v9738_v31, 0.0  ;;  %v9743_v31 = vld [vmem:[#allocation70_spill] sm:$0xff] }
 0x548   : > { %v4225_v55 = vadd.f32 %v4224_v43, %v9736_v22  ;;  %v4246_v48 = vsel %vm2269_vm2, %v9739_v54, 0.0  ;;  %v4218_v47 = vadd.f32 %v4217_v10, %v4216_v57  ;;  %v4239_v26 = vadd.f32 %v4238_v49, %v9740_v21 }
 0x549   : > { %v4931_v30 = vrot.slane %v4930_v36, 2  ;;  %v4232_v40 = vadd.f32 %v4231_v42, %v9737_v1  ;;  %v4247_v16 = vsel %vm2269_vm2, %v4173_v62, 0.0  ;;  %v4255_v58 = vsel %vm2269_vm2, %v8855_v7, 0.0  ;;  %v6397_v1 = vld [vmem:[%s8140_s27 + $0xf8] sm:$0xff]  ;;  %s9745_s27 = sshll.u32 %s6565_s0, 3 }
 0x54a   : > { %v4226_v9 = vrot.slane %v4225_v55, 1  ;;  %v4248_v59 = vadd.f32 %v4247_v16, %v4246_v48  ;;  %v4240_v14 = vrot.slane %v4239_v26, 4  ;;  %v4256_v2 = vsel %vm2269_vm2, %v4175_v46, 0.0  ;;  %s637_s21 = scalar_lea.vmem %s9349_s16, %s9745_s27 }
 0x54b   : > { %v4932_v27 = vadd.f32 %v4931_v30, %v4930_v36  ;;  %v4233_v53 = vrot.slane %v4232_v40, 2  ;;  %v5076_v6 = vsel %vm4960_vm4, %v4209_v13, %v4200_v50  ;;  %v4257_v3 = vadd.f32 %v4256_v2, %v4255_v58 }
 0x54c   : > { %v4227_v24 = vadd.f32 %v4226_v9, %v4225_v55  ;;  %v4249_v5 = vrot.slane %v4248_v59, 4  ;;  %v4241_v37 = vadd.f32 %v4240_v14, %v4239_v26  ;;  %v5077_v17 = vsel %vm4962_vm5, %v4218_v47, %v5076_v6 }
 0x54d   : > { %v6372_v51 = vpop.eup %6371  ;;  %v4933_v20 = vrot.slane %v4932_v27, 1  ;;  %v4234_v0 = vadd.f32 %v4233_v53, %v4232_v40  ;;  %v4258_v7 = vrot.slane %v4257_v3, 4  ;;  %v4191_v42 = vmul.f32 %v6397_v1, %v4159_v12  ;;  %v5500_v1 = vld [vmem:[%s9348_s15] ss:$0 sm:$0xff] }
 0x54e   : > { %v4766_v56 = vmul.f32 %v6372_v51, %v9170_v60  ;;  %v4767_v62 = vmul.f32 %v6372_v51, %v9176_v28  ;;  %v4250_v19 = vadd.f32 %v4249_v5, %v4248_v59  ;;  %v4242_v44 = vrot.slane %v4241_v37, 2 }
 0x54f   : > { %v4934_v41 = vadd.f32 %v4933_v20, %v4932_v27  ;;  %v4235_v25 = vrot.slane %v4234_v0, 1  ;;  %v4259_v60 = vadd.f32 %v4258_v7, %v4257_v3  ;;  %v5078_v28 = vsel %vm4964_vm6, %v4227_v24, %v5077_v17 }
 0x550   : > { %v4798_v46 = vmul.f32 %v4766_v56, %v9741_v63  ;;  %v4799_v4 = vmul.f32 %v4767_v62, %v9742_v52  ;;  %v4251_v57 = vrot.slane %v4250_v19, 2  ;;  %v4243_v22 = vadd.f32 %v4242_v44, %v4241_v37 }
 0x551   : > { %v4979_v45 = vsel %vm4970_vm9, %v4934_v41, %v4978_v18  ;;  %v4236_v50 = vadd.f32 %v4235_v25, %v4234_v0  ;;  %v4260_v10 = vrot.slane %v4259_v60, 2  ;;  %v9744_v18 = vrot.slane %v9743_v31, 1 }
 0x552   : > { %v4935_v23 = vsel %vm2269_vm2, %v4798_v46, 0.0  ;;  %v4936_v36 = vsel %vm2269_vm2, %v4799_v4, 0.0  ;;  %v4252_v13 = vadd.f32 %v4251_v57, %v4250_v19  ;;  %v4244_v30 = vrot.slane %v4243_v22, 1 }
 0x553   : > { %v4937_v43 = vadd.f32 %v4936_v36, %v4935_v23  ;;  %v5079_v55 = vsel %vm4966_vm7, %v4236_v50, %v5078_v28  ;;  %v4272_v49 = vadd.f32 %v9744_v18, %v9743_v31  ;;  %v4281_v54 = vadd.f32 %v4280_v11, %v8968_v32 }
 0x554   : > { %v4253_v47 = vrot.slane %v4252_v13, 1  ;;  %v4261_v40 = vadd.f32 %v4260_v10, %v4259_v60  ;;  %v4289_v21 = vrot.slane %v9005_v33, 1  ;;  %v4245_v26 = vadd.f32 %v4244_v30, %v4243_v22 }
 0x555   : > { %v4938_v48 = vrot.slane %v4937_v43, 4  ;;  %v4297_v12 = vadd.f32 %v4296_v35, %v9038_v34  ;;  %v4305_v16 = vrot.slane %v9098_v61, 2  ;;  %v4312_v27 = vrot.slane %v9143_v29, 4 }
 0x556   : > { %v4254_v59 = vadd.f32 %v4253_v47, %v4252_v13  ;;  %v4262_v58 = vrot.slane %v4261_v40, 1  ;;  %v4290_v53 = vadd.f32 %v4289_v21, %v9005_v33  ;;  %v5080_v32 = vsel %vm4968_vm8, %v4245_v26, %v5079_v55 }
 0x557   : > { %v4939_v9 = vadd.f32 %v4938_v48, %v4937_v43  ;;  %v4298_v11 = vrot.slane %v4297_v12, 1  ;;  %v4306_v14 = vadd.f32 %v4305_v16, %v9098_v61  ;;  %v4313_v2 = vadd.f32 %v4312_v27, %v9143_v29 }
 0x558   : > { %v4263_v51 = vadd.f32 %v4262_v58, %v4261_v40  ;;  %v5081_v34 = vsel %vm4970_vm9, %v4254_v59, %v5080_v32  ;;  %v4319_v35 = vsel %vm2269_vm2, %v9191_v38, 0.0  ;;  %v4327_v61 = vsel %vm2269_vm2, %v9244_v15, 0.0 }
 0x559   : > { %v4940_v6 = vrot.slane %v4939_v9, 2  ;;  %v4299_v20 = vadd.f32 %v4298_v11, %v4297_v12  ;;  %v4307_v24 = vrot.slane %v4306_v14, 1  ;;  %v4314_v5 = vrot.slane %v4313_v2, 2 }
 0x55a   : > { %v4320_v3 = vadd.f32 %v4319_v35, %v9202_v8  ;;  %v5082_v56 = vsel %vm4972_vm10, %v4263_v51, %v5081_v34  ;;  %v4328_v29 = vsel %vm2269_vm2, %v4191_v42, 0.0  ;;  %v5083_v38 = vsel %vm4960_vm4, %v4281_v54, %v4272_v49 }
 0x55b   : > { %v4941_v33 = vadd.f32 %v4940_v6, %v4939_v9  ;;  %v4308_v62 = vadd.f32 %v4307_v24, %v4306_v14  ;;  %v4315_v0 = vadd.f32 %v4314_v5, %v4313_v2  ;;  %v4329_v41 = vadd.f32 %v4328_v29, %v4327_v61 }
 0x55c   : > { %v4321_v37 = vrot.slane %v4320_v3, 4  ;;  %v5084_v8 = vsel %vm4962_vm5, %v4290_v53, %v5083_v38 }
 0x55d   : > { %v4942_v19 = vrot.slane %v4941_v33, 1  ;;  %v4316_v7 = vrot.slane %v4315_v0, 1  ;;  %v4330_v63 = vrot.slane %v4329_v41, 4  ;;  %v5085_v52 = vsel %vm4964_vm6, %v4299_v20, %v5084_v8 }
 0x55e   : > { %v4322_v17 = vadd.f32 %v4321_v37, %v4320_v3  ;;  %v5086_v44 = vsel %vm4966_vm7, %v4308_v62, %v5085_v52 }
 0x55f   : > { %v4943_v46 = vadd.f32 %v4942_v19, %v4941_v33  ;;  %v4317_v4 = vadd.f32 %v4316_v7, %v4315_v0  ;;  %v4331_v15 = vadd.f32 %v4330_v63, %v4329_v41 }
 0x560   : > { %v4323_v25 = vrot.slane %v4322_v17, 2 }
 0x561   : > { %v4980_v57 = vsel %vm4972_vm10, %v4943_v46, %v4979_v45  ;;  %v4332_v28 = vrot.slane %v4331_v15, 2  ;;  %v5087_v23 = vsel %vm4968_vm8, %v4317_v4, %v5086_v44 }
 0x562   : > { %5946 = vmatmul.mubr.msk.f32.vlgmr.msra.gmra.mrb[46].mxu1 %vm2269_vm2, %v4980_v57  ;;  %v4324_v60 = vadd.f32 %v4323_v25, %v4322_v17 }
 0x563   : > { %5982 = vmatpush3.bf16.msra.mxu1 %v9209_v39  ;;  %5952 = vmatprep.mubr.msk.f32.mxu1 %vm2269_vm2, %v5082_v56  ;;  %v4333_v50 = vadd.f32 %v4332_v28, %v4331_v15 }
 0x564   : > { %v4325_v36 = vrot.slane %v4324_v60, 1 }
 0x565   : > { %v4334_v43 = vrot.slane %v4333_v50, 1 }
 0x566   : > { %v4326_v22 = vadd.f32 %v4325_v36, %v4324_v60 }
 0x567   : > { %v4335_v13 = vadd.f32 %v4334_v43, %v4333_v50 }
 0x568   : > { %v5088_v10 = vsel %vm4970_vm9, %v4326_v22, %v5087_v23 }
 0x569   : > { %v5089_v45 = vsel %vm4972_vm10, %v4335_v13, %v5088_v10 }
 0x56a   : > { %5953 = vmatmul.mubr.msk.f32.vlgmr.msra.gmra.mrb[46].mxu1 %vm2269_vm2, %v5089_v45 }
 0x63d   : > { %v5954_v42 = vpop.f32.mrb[46].mxu1 }
 0x63e   : > { %v5176_v30 = vadd.f32 %v5954_v42, %v5500_v1  ;;  %v5160_v39 = vpop.f32.mrb[47].mxu1 }
 0x63f   : > { %v5175_v55 = vadd.f32 %v5500_v1, %v5160_v39 }
 0x640   : > { %v5178_v31 = vmax.f32 %v5176_v30, 0.0 }
 0x641   : > { %v5177_v18 = vmax.f32 %v5175_v55, 0.0 }
 0x642   : > { %5181 = vst.msk [vmem:[%s637_s21 + $0x8] sm:$0xff] %vm5179_vm11, %v5178_v31 }
 0x643   : > { %5180 = vst.msk [vmem:[%s637_s21] sm:$0xff] %vm5179_vm11, %v5177_v18 }
 0x644 PF: > { %s26_s25 = sadd.s32 1, %s6436_s25   ;;  %s9746_s28 = sld [smem:[#allocation2_spill]] }
 0x645   : > { %p23_p8 = scmp.ge.s32.totalorder %s26_s25, 10   ;;  %s9747_s21 = smov %s6428_s23 }
 0x646   : > { %s9748_s22 = smov %s6432_s24  ;;  %s9749_s23 = smov %s9752_s26 }
 0x647   :  { %25 = sbr.rel (!%p23_p8) target bundleno = 4 (0x4), region = 120 }
 0x64a   : > { %s9750_s24 = smov %s9746_s28 }

</bundles_post_ra>
